<compile_context>
chip_gen: v6e
topology: v6e:2x2x1
jax: 0.10.0
libtpu: 0.0.40
codegen_flags: <defaults>
</compile_context>

<pallas_src>
import jax
import jax.numpy as jnp
from jax import lax
from jax.experimental import pallas as pl
from jax.experimental.pallas import tpu as pltpu

EPS = 1e-6                                   # EPS from vn_layers.py
BN_EPS = 1e-5                                # nn.BatchNorm default eps
BN_SCALE = 1.0 / (1.0 + BN_EPS) ** 0.5       # eval-mode BN with default stats/affine

# Channel sizes from the torch module.
C1, C2, C3 = 64 // 3, 128 // 3, 1024 // 3    # 21, 42, 341
F1, F2 = 512 // 3, 256 // 3                  # 170, 85


# ---------------------------------------------------------------------------
# Math helpers (pure jnp -> usable inside the Pallas kernels and as reference)
# ---------------------------------------------------------------------------
def _vn_layer(x, w, *, approx_recip):
    """Fused VNLinear + eval-mode VNBatchNorm + vector leaky-relu (slope=0).

    x: (Cin, 3*M) f32, component-major in the lane dim.
    w: (2*Cout, Cin) bf16 = concat([wf * BN_SCALE, wd], axis=0).
    returns (Cout, 3*M) f32.
    """
    cout = w.shape[0] // 2
    m = x.shape[1] // 3
    y = jnp.dot(w, x.astype(jnp.bfloat16), preferred_element_type=jnp.float32)
    p, dv = y[:cout], y[cout:]                               # feature / direction
    p0, p1, p2 = p[:, :m], p[:, m:2 * m], p[:, 2 * m:]
    d0, d1, d2 = dv[:, :m], dv[:, m:2 * m], dv[:, 2 * m:]
    dotpd = p0 * d0 + p1 * d1 + p2 * d2                      # (Cout, M)
    dnsq = d0 * d0 + d1 * d1 + d2 * d2                       # (Cout, M)
    if approx_recip:
        # EUP approximate reciprocal (in-kernel only; used post-pool).
        coef = dotpd * pl.reciprocal(dnsq + EPS, approx=True)
    else:
        coef = dotpd / (dnsq + EPS)
    keep = dotpd >= 0.0
    o0 = jnp.where(keep, p0, p0 - coef * d0)
    o1 = jnp.where(keep, p1, p1 - coef * d1)
    o2 = jnp.where(keep, p2, p2 - coef * d2)
    return jnp.concatenate([o0, o1, o2], axis=1)


def _vn_max_pool(x, wp):
    """VNMaxPool. x: (C, 3*N) f32 component-major, wp: (C, C) bf16 -> (C, 3) f32."""
    n = x.shape[1] // 3
    d = jnp.dot(wp, x.astype(jnp.bfloat16), preferred_element_type=jnp.float32)
    x0, x1, x2 = x[:, :n], x[:, n:2 * n], x[:, 2 * n:]
    d0, d1, d2 = d[:, :n], d[:, n:2 * n], d[:, 2 * n:]
    dotxd = x0 * d0 + x1 * d1 + x2 * d2                      # (C, N) f32
    maxv = jnp.max(dotxd, axis=1, keepdims=True)
    iota = lax.broadcasted_iota(jnp.int32, dotxd.shape, 1)
    # first-argmax (torch.max tie-breaking) via min index among maxima
    idx = jnp.min(jnp.where(dotxd == maxv, iota, n), axis=1, keepdims=True)
    onehot = (iota == idx).astype(x.dtype)
    p0 = jnp.sum(x0 * onehot, axis=1, keepdims=True)
    p1 = jnp.sum(x1 * onehot, axis=1, keepdims=True)
    p2 = jnp.sum(x2 * onehot, axis=1, keepdims=True)
    return jnp.concatenate([p0, p1, p2], axis=1)             # (C, 3)


# ---------------------------------------------------------------------------
# Kernel 1: conv1 -> conv2 -> conv3 -> max-pool, one batch element per grid step.
# ---------------------------------------------------------------------------
def _conv_pool_kernel(x_ref, w1_ref, w2_ref, w3_ref, wp_ref, out_ref):
    # x_ref block: (1, Cin, 3*N); out_ref block: (1, C3, 3)
    x = x_ref[0]
    # Pre-pool layers keep exact division (not approx reciprocal) so the pooling
    # argmax stays deterministic against the pure-XLA reference: approx-reciprocal
    # noise upstream of an argmax can flip near-ties and swap selected points.
    h = _vn_layer(x, w1_ref[...], approx_recip=False)        # (21, 3N)
    h = _vn_layer(h, w2_ref[...], approx_recip=False)        # (42, 3N)
    h = _vn_layer(h, w3_ref[...], approx_recip=False)        # (341, 3N)
    out_ref[0] = _vn_max_pool(h, wp_ref[...])                # (341, 3), one store


# ---------------------------------------------------------------------------
# Kernel 2: post-pool FC stack (fc1 -> fc2 -> fc3), whole batch in the lane dim.
# ---------------------------------------------------------------------------
def _fc_kernel(h_ref, w4_ref, w5_ref, w6_ref, out_ref):
    # h_ref: (C3, 3*B) component-major; out_ref: (d, 3*B)
    h = _vn_layer(h_ref[...], w4_ref[...], approx_recip=True)   # (170, 3B)
    h = _vn_layer(h, w5_ref[...], approx_recip=True)            # (85, 3B)
    out_ref[...] = jnp.dot(w6_ref[...], h.astype(jnp.bfloat16),
                           preferred_element_type=jnp.float32)  # (d, 3B)


# ---------------------------------------------------------------------------
# Host-side weight preparation: fold BN scale into wf, stack wf/wd, cast to bf16.
# ---------------------------------------------------------------------------
def fuse_params(params):
    def fuse(wf, wd):
        return jnp.concatenate([wf * BN_SCALE, wd], axis=0).astype(jnp.bfloat16)

    return {
        "w1": fuse(params["wf1"], params["wd1"]),            # (2*21, d)
        "w2": fuse(params["wf2"], params["wd2"]),            # (2*42, 21)
        "w3": fuse(params["wf3"], params["wd3"]),            # (2*341, 42)
        "wp": params["wp"].astype(jnp.bfloat16),             # (341, 341)
        "w4": fuse(params["wf4"], params["wd4"]),            # (2*170, 341)
        "w5": fuse(params["wf5"], params["wd5"]),            # (2*85, 170)
        "w6": params["w6"].astype(jnp.bfloat16),             # (d, 85)
    }


def stnkd_forward(x, params):
    """x: (B, d, 3, N) float32 (PyTorch layout). Returns (B, d, 3) float32."""
    B, d, three, N = x.shape
    assert three == 3
    fused = fuse_params(params)

    # Component-major lane layout: row c = [comp0 pts | comp1 pts | comp2 pts].
    xc = x.reshape(B, d, 3 * N)

    conv_ws = [fused["w1"], fused["w2"], fused["w3"], fused["wp"]]
    conv_w_specs = [pl.BlockSpec(w.shape, lambda b: (0, 0)) for w in conv_ws]

    pooled = pl.pallas_call(
        _conv_pool_kernel,
        out_shape=jax.ShapeDtypeStruct((B, C3, 3), jnp.float32),
        grid_spec=pltpu.PrefetchScalarGridSpec(
            num_scalar_prefetch=0,
            grid=(B,),
            in_specs=[pl.BlockSpec((1, d, 3 * N), lambda b: (b, 0, 0))]
                     + conv_w_specs,
            out_specs=pl.BlockSpec((1, C3, 3), lambda b: (b, 0, 0)),
        ),
        compiler_params=pltpu.CompilerParams(
            dimension_semantics=("parallel",),               # batch-independent
            vmem_limit_bytes=48 * 1024 * 1024),
    )(xc, *conv_ws)

    # Post-pool FC stack: fold the whole batch (and the 3 components) into lanes.
    h = pooled.transpose(1, 2, 0).reshape(C3, 3 * B)         # (341, 3B)
    out = pl.pallas_call(
        _fc_kernel,
        out_shape=jax.ShapeDtypeStruct((d, 3 * B), jnp.float32),
        compiler_params=pltpu.CompilerParams(
            vmem_limit_bytes=48 * 1024 * 1024),
    )(h, fused["w4"], fused["w5"], fused["w6"])

    return out.reshape(d, 3, B).transpose(2, 0, 1)           # (B, d, 3)


# ---------------------------------------------------------------------------
# Pure-JAX reference (same math, executed by XLA) to validate the Pallas plumbing.
# The fused form is algebraically identical to the per-layer torch math (weight
# concatenation + component batching are exact; BN fold is exact in eval mode).
# ---------------------------------------------------------------------------
def stnkd_reference(x, params):
    B, d, three, N = x.shape
    fused = fuse_params(params)
    xc = x.reshape(B, d, 3 * N)

    def single(xb):
        h = _vn_layer(xb, fused["w1"], approx_recip=False)
        h = _vn_layer(h, fused["w2"], approx_recip=False)
        h = _vn_layer(h, fused["w3"], approx_recip=False)
        return _vn_max_pool(h, fused["wp"])                  # (C3, 3)

    pooled = jax.vmap(single)(xc)                            # (B, C3, 3)
    h = pooled.transpose(1, 2, 0).reshape(C3, 3 * B)
    h = _vn_layer(h, fused["w4"], approx_recip=False)
    h = _vn_layer(h, fused["w5"], approx_recip=False)
    o = jnp.dot(fused["w6"], h.astype(jnp.bfloat16),
                preferred_element_type=jnp.float32)
    return o.reshape(d, 3, B).transpose(2, 0, 1)


# ---------------------------------------------------------------------------
# Deterministic parameter construction (nn.Linear-style uniform init, bias-free).
# ---------------------------------------------------------------------------
def init_params(key, d=64):
    def linear(k, out_c, in_c):
        bound = 1.0 / (in_c ** 0.5)
        return jax.random.uniform(k, (out_c, in_c), jnp.float32, -bound, bound)

    keys = jax.random.split(key, 12)
    shapes = [("wf1", C1, d), ("wd1", C1, d),
              ("wf2", C2, C1), ("wd2", C2, C1),
              ("wf3", C3, C2), ("wd3", C3, C2),
              ("wp", C3, C3),
              ("wf4", F1, C3), ("wd4", F1, C3),
              ("wf5", F2, F1), ("wd5", F2, F1),
              ("w6", d, F2)]
    return {name: linear(k, o, i) for k, (name, o, i) in zip(keys, shapes)}


if __name__ == "__main__":
    key = jax.random.PRNGKey(0)
    k_param, k_x = jax.random.split(key)

    B, d, N = 2, 64, 16                                      # small test shapes
    params = init_params(k_param, d=d)
    x = jax.random.normal(k_x, (B, d, 3, N), dtype=jnp.float32)  # [B, C, 3, N]

    out = jax.block_until_ready(stnkd_forward(x, params))
    assert out.shape == (B, d, 3), out.shape

    ref = jax.block_until_ready(stnkd_reference(x, params))
    assert jnp.allclose(out, ref, rtol=1e-2, atol=1e-2), (
        float(jnp.max(jnp.abs(out - ref))))

    print("KERNEL_OK")
</pallas_src>

<mosaic_0001>
module attributes {stable_mosaic.version = 11 : i64} {
  func.func @_conv_pool_kernel(%arg0: i32, %arg1: memref<1x64x48xf32, #tpu.memory_space<vmem>>, %arg2: memref<42x64xbf16, #tpu.memory_space<vmem>>, %arg3: memref<84x21xbf16, #tpu.memory_space<vmem>>, %arg4: memref<682x42xbf16, #tpu.memory_space<vmem>>, %arg5: memref<341x341xbf16, #tpu.memory_space<vmem>>, %arg6: memref<1x341x3xf32, #tpu.memory_space<vmem>>) attributes {dimension_semantics = [#tpu.dimension_semantics<parallel>], iteration_bounds = array<i64: 2>, scalar_prefetch = 0 : i64, scratch_operands = 0 : i64, tpu.core_type = #tpu.core_type<tc>, window_params = [{transform_indices = @transform_0, window_bounds = array<i64: 1, 64, 48>}, {pipeline_mode = #tpu.pipeline_mode<synchronous>, transform_indices = @transform_1, window_bounds = array<i64: 42, 64>}, {pipeline_mode = #tpu.pipeline_mode<synchronous>, transform_indices = @transform_2, window_bounds = array<i64: 84, 21>}, {pipeline_mode = #tpu.pipeline_mode<synchronous>, transform_indices = @transform_3, window_bounds = array<i64: 682, 42>}, {pipeline_mode = #tpu.pipeline_mode<synchronous>, transform_indices = @transform_4, window_bounds = array<i64: 341, 341>}, {transform_indices = @transform_5, window_bounds = array<i64: 1, 341, 3>}]} {
    %c0 = arith.constant 0 : index
    %c0_0 = arith.constant 0 : index
    %c0_1 = arith.constant 0 : index
    %0 = vector.load %arg1[%c0, %c0_0, %c0_1] : memref<1x64x48xf32, #tpu.memory_space<vmem>>, vector<1x64x48xf32>
    %1 = vector.shape_cast %0 : vector<1x64x48xf32> to vector<64x48xf32>
    %c0_2 = arith.constant 0 : index
    %c0_3 = arith.constant 0 : index
    %2 = vector.load %arg2[%c0_2, %c0_3] : memref<42x64xbf16, #tpu.memory_space<vmem>>, vector<42x64xbf16>
    %3 = arith.truncf %1 : vector<64x48xf32> to vector<64x48xbf16>
    %cst = arith.constant dense<0.000000e+00> : vector<42x48xf32>
    %4 = tpu.matmul %2, %3, %cst {dimension_numbers = #tpu.dot_dimension_numbers<[1], [0], [0], [1], [0, 0, 1, 1], [], []>} : vector<42x64xbf16>, vector<64x48xbf16>, vector<42x48xf32> -> vector<42x48xf32>
    %5 = vector.extract_strided_slice %4 {offsets = [0, 0], sizes = [21, 48], strides = [1, 1]} : vector<42x48xf32> to vector<21x48xf32>
    %6 = vector.extract_strided_slice %4 {offsets = [21, 0], sizes = [21, 48], strides = [1, 1]} : vector<42x48xf32> to vector<21x48xf32>
    %7 = vector.extract_strided_slice %5 {offsets = [0, 0], sizes = [21, 16], strides = [1, 1]} : vector<21x48xf32> to vector<21x16xf32>
    %8 = vector.extract_strided_slice %5 {offsets = [0, 16], sizes = [21, 16], strides = [1, 1]} : vector<21x48xf32> to vector<21x16xf32>
    %9 = vector.extract_strided_slice %5 {offsets = [0, 32], sizes = [21, 16], strides = [1, 1]} : vector<21x48xf32> to vector<21x16xf32>
    %10 = vector.extract_strided_slice %6 {offsets = [0, 0], sizes = [21, 16], strides = [1, 1]} : vector<21x48xf32> to vector<21x16xf32>
    %11 = vector.extract_strided_slice %6 {offsets = [0, 16], sizes = [21, 16], strides = [1, 1]} : vector<21x48xf32> to vector<21x16xf32>
    %12 = vector.extract_strided_slice %6 {offsets = [0, 32], sizes = [21, 16], strides = [1, 1]} : vector<21x48xf32> to vector<21x16xf32>
    %13 = arith.mulf %7, %10 : vector<21x16xf32>
    %14 = arith.mulf %8, %11 : vector<21x16xf32>
    %15 = arith.addf %13, %14 : vector<21x16xf32>
    %16 = arith.mulf %9, %12 : vector<21x16xf32>
    %17 = arith.addf %15, %16 : vector<21x16xf32>
    %18 = arith.mulf %10, %10 : vector<21x16xf32>
    %19 = arith.mulf %11, %11 : vector<21x16xf32>
    %20 = arith.addf %18, %19 : vector<21x16xf32>
    %21 = arith.mulf %12, %12 : vector<21x16xf32>
    %22 = arith.addf %20, %21 : vector<21x16xf32>
    %cst_4 = arith.constant 9.99999997E-7 : f32
    %23 = vector.broadcast %cst_4 : f32 to vector<21x16xf32>
    %24 = arith.addf %22, %23 : vector<21x16xf32>
    %25 = arith.divf %17, %24 : vector<21x16xf32>
    %cst_5 = arith.constant 0.000000e+00 : f32
    %26 = vector.broadcast %cst_5 : f32 to vector<21x16xf32>
    %27 = arith.cmpf oge, %17, %26 : vector<21x16xf32>
    %28 = arith.mulf %25, %10 : vector<21x16xf32>
    %29 = arith.subf %7, %28 : vector<21x16xf32>
    %30 = arith.select %27, %7, %29 : vector<21x16xi1>, vector<21x16xf32>
    %31 = arith.mulf %25, %11 : vector<21x16xf32>
    %32 = arith.subf %8, %31 : vector<21x16xf32>
    %33 = arith.select %27, %8, %32 : vector<21x16xi1>, vector<21x16xf32>
    %34 = arith.mulf %25, %12 : vector<21x16xf32>
    %35 = arith.subf %9, %34 : vector<21x16xf32>
    %36 = arith.select %27, %9, %35 : vector<21x16xi1>, vector<21x16xf32>
    %37 = tpu.concatenate %30, %33, %36 in 1 : vector<21x16xf32>, vector<21x16xf32>, vector<21x16xf32> -> vector<21x48xf32>
    %c0_6 = arith.constant 0 : index
    %c0_7 = arith.constant 0 : index
    %38 = vector.load %arg3[%c0_6, %c0_7] : memref<84x21xbf16, #tpu.memory_space<vmem>>, vector<84x21xbf16>
    %39 = arith.truncf %37 : vector<21x48xf32> to vector<21x48xbf16>
    %cst_8 = arith.constant dense<0.000000e+00> : vector<84x48xf32>
    %40 = tpu.matmul %38, %39, %cst_8 {dimension_numbers = #tpu.dot_dimension_numbers<[1], [0], [0], [1], [0, 0, 1, 1], [], []>} : vector<84x21xbf16>, vector<21x48xbf16>, vector<84x48xf32> -> vector<84x48xf32>
    %41 = vector.extract_strided_slice %40 {offsets = [0, 0], sizes = [42, 48], strides = [1, 1]} : vector<84x48xf32> to vector<42x48xf32>
    %42 = vector.extract_strided_slice %40 {offsets = [42, 0], sizes = [42, 48], strides = [1, 1]} : vector<84x48xf32> to vector<42x48xf32>
    %43 = vector.extract_strided_slice %41 {offsets = [0, 0], sizes = [42, 16], strides = [1, 1]} : vector<42x48xf32> to vector<42x16xf32>
    %44 = vector.extract_strided_slice %41 {offsets = [0, 16], sizes = [42, 16], strides = [1, 1]} : vector<42x48xf32> to vector<42x16xf32>
    %45 = vector.extract_strided_slice %41 {offsets = [0, 32], sizes = [42, 16], strides = [1, 1]} : vector<42x48xf32> to vector<42x16xf32>
    %46 = vector.extract_strided_slice %42 {offsets = [0, 0], sizes = [42, 16], strides = [1, 1]} : vector<42x48xf32> to vector<42x16xf32>
    %47 = vector.extract_strided_slice %42 {offsets = [0, 16], sizes = [42, 16], strides = [1, 1]} : vector<42x48xf32> to vector<42x16xf32>
    %48 = vector.extract_strided_slice %42 {offsets = [0, 32], sizes = [42, 16], strides = [1, 1]} : vector<42x48xf32> to vector<42x16xf32>
    %49 = arith.mulf %43, %46 : vector<42x16xf32>
    %50 = arith.mulf %44, %47 : vector<42x16xf32>
    %51 = arith.addf %49, %50 : vector<42x16xf32>
    %52 = arith.mulf %45, %48 : vector<42x16xf32>
    %53 = arith.addf %51, %52 : vector<42x16xf32>
    %54 = arith.mulf %46, %46 : vector<42x16xf32>
    %55 = arith.mulf %47, %47 : vector<42x16xf32>
    %56 = arith.addf %54, %55 : vector<42x16xf32>
    %57 = arith.mulf %48, %48 : vector<42x16xf32>
    %58 = arith.addf %56, %57 : vector<42x16xf32>
    %cst_9 = arith.constant 9.99999997E-7 : f32
    %59 = vector.broadcast %cst_9 : f32 to vector<42x16xf32>
    %60 = arith.addf %58, %59 : vector<42x16xf32>
    %61 = arith.divf %53, %60 : vector<42x16xf32>
    %cst_10 = arith.constant 0.000000e+00 : f32
    %62 = vector.broadcast %cst_10 : f32 to vector<42x16xf32>
    %63 = arith.cmpf oge, %53, %62 : vector<42x16xf32>
    %64 = arith.mulf %61, %46 : vector<42x16xf32>
    %65 = arith.subf %43, %64 : vector<42x16xf32>
    %66 = arith.select %63, %43, %65 : vector<42x16xi1>, vector<42x16xf32>
    %67 = arith.mulf %61, %47 : vector<42x16xf32>
    %68 = arith.subf %44, %67 : vector<42x16xf32>
    %69 = arith.select %63, %44, %68 : vector<42x16xi1>, vector<42x16xf32>
    %70 = arith.mulf %61, %48 : vector<42x16xf32>
    %71 = arith.subf %45, %70 : vector<42x16xf32>
    %72 = arith.select %63, %45, %71 : vector<42x16xi1>, vector<42x16xf32>
    %73 = tpu.concatenate %66, %69, %72 in 1 : vector<42x16xf32>, vector<42x16xf32>, vector<42x16xf32> -> vector<42x48xf32>
    %c0_11 = arith.constant 0 : index
    %c0_12 = arith.constant 0 : index
    %74 = vector.load %arg4[%c0_11, %c0_12] : memref<682x42xbf16, #tpu.memory_space<vmem>>, vector<682x42xbf16>
    %75 = arith.truncf %73 : vector<42x48xf32> to vector<42x48xbf16>
    %cst_13 = arith.constant dense<0.000000e+00> : vector<682x48xf32>
    %76 = tpu.matmul %74, %75, %cst_13 {dimension_numbers = #tpu.dot_dimension_numbers<[1], [0], [0], [1], [0, 0, 1, 1], [], []>} : vector<682x42xbf16>, vector<42x48xbf16>, vector<682x48xf32> -> vector<682x48xf32>
    %77 = vector.extract_strided_slice %76 {offsets = [0, 0], sizes = [341, 48], strides = [1, 1]} : vector<682x48xf32> to vector<341x48xf32>
    %78 = vector.extract_strided_slice %76 {offsets = [341, 0], sizes = [341, 48], strides = [1, 1]} : vector<682x48xf32> to vector<341x48xf32>
    %79 = vector.extract_strided_slice %77 {offsets = [0, 0], sizes = [341, 16], strides = [1, 1]} : vector<341x48xf32> to vector<341x16xf32>
    %80 = vector.extract_strided_slice %77 {offsets = [0, 16], sizes = [341, 16], strides = [1, 1]} : vector<341x48xf32> to vector<341x16xf32>
    %81 = vector.extract_strided_slice %77 {offsets = [0, 32], sizes = [341, 16], strides = [1, 1]} : vector<341x48xf32> to vector<341x16xf32>
    %82 = vector.extract_strided_slice %78 {offsets = [0, 0], sizes = [341, 16], strides = [1, 1]} : vector<341x48xf32> to vector<341x16xf32>
    %83 = vector.extract_strided_slice %78 {offsets = [0, 16], sizes = [341, 16], strides = [1, 1]} : vector<341x48xf32> to vector<341x16xf32>
    %84 = vector.extract_strided_slice %78 {offsets = [0, 32], sizes = [341, 16], strides = [1, 1]} : vector<341x48xf32> to vector<341x16xf32>
    %85 = arith.mulf %79, %82 : vector<341x16xf32>
    %86 = arith.mulf %80, %83 : vector<341x16xf32>
    %87 = arith.addf %85, %86 : vector<341x16xf32>
    %88 = arith.mulf %81, %84 : vector<341x16xf32>
    %89 = arith.addf %87, %88 : vector<341x16xf32>
    %90 = arith.mulf %82, %82 : vector<341x16xf32>
    %91 = arith.mulf %83, %83 : vector<341x16xf32>
    %92 = arith.addf %90, %91 : vector<341x16xf32>
    %93 = arith.mulf %84, %84 : vector<341x16xf32>
    %94 = arith.addf %92, %93 : vector<341x16xf32>
    %cst_14 = arith.constant 9.99999997E-7 : f32
    %95 = vector.broadcast %cst_14 : f32 to vector<341x16xf32>
    %96 = arith.addf %94, %95 : vector<341x16xf32>
    %97 = arith.divf %89, %96 : vector<341x16xf32>
    %cst_15 = arith.constant 0.000000e+00 : f32
    %98 = vector.broadcast %cst_15 : f32 to vector<341x16xf32>
    %99 = arith.cmpf oge, %89, %98 : vector<341x16xf32>
    %100 = arith.mulf %97, %82 : vector<341x16xf32>
    %101 = arith.subf %79, %100 : vector<341x16xf32>
    %102 = arith.select %99, %79, %101 : vector<341x16xi1>, vector<341x16xf32>
    %103 = arith.mulf %97, %83 : vector<341x16xf32>
    %104 = arith.subf %80, %103 : vector<341x16xf32>
    %105 = arith.select %99, %80, %104 : vector<341x16xi1>, vector<341x16xf32>
    %106 = arith.mulf %97, %84 : vector<341x16xf32>
    %107 = arith.subf %81, %106 : vector<341x16xf32>
    %108 = arith.select %99, %81, %107 : vector<341x16xi1>, vector<341x16xf32>
    %109 = tpu.concatenate %102, %105, %108 in 1 : vector<341x16xf32>, vector<341x16xf32>, vector<341x16xf32> -> vector<341x48xf32>
    %c0_16 = arith.constant 0 : index
    %c0_17 = arith.constant 0 : index
    %110 = vector.load %arg5[%c0_16, %c0_17] : memref<341x341xbf16, #tpu.memory_space<vmem>>, vector<341x341xbf16>
    %111 = arith.truncf %109 : vector<341x48xf32> to vector<341x48xbf16>
    %cst_18 = arith.constant dense<0.000000e+00> : vector<341x48xf32>
    %112 = tpu.matmul %110, %111, %cst_18 {dimension_numbers = #tpu.dot_dimension_numbers<[1], [0], [0], [1], [0, 0, 1, 1], [], []>} : vector<341x341xbf16>, vector<341x48xbf16>, vector<341x48xf32> -> vector<341x48xf32>
    %113 = vector.extract_strided_slice %109 {offsets = [0, 0], sizes = [341, 16], strides = [1, 1]} : vector<341x48xf32> to vector<341x16xf32>
    %114 = vector.extract_strided_slice %109 {offsets = [0, 16], sizes = [341, 16], strides = [1, 1]} : vector<341x48xf32> to vector<341x16xf32>
    %115 = vector.extract_strided_slice %109 {offsets = [0, 32], sizes = [341, 16], strides = [1, 1]} : vector<341x48xf32> to vector<341x16xf32>
    %116 = vector.extract_strided_slice %112 {offsets = [0, 0], sizes = [341, 16], strides = [1, 1]} : vector<341x48xf32> to vector<341x16xf32>
    %117 = vector.extract_strided_slice %112 {offsets = [0, 16], sizes = [341, 16], strides = [1, 1]} : vector<341x48xf32> to vector<341x16xf32>
    %118 = vector.extract_strided_slice %112 {offsets = [0, 32], sizes = [341, 16], strides = [1, 1]} : vector<341x48xf32> to vector<341x16xf32>
    %119 = arith.mulf %113, %116 : vector<341x16xf32>
    %120 = arith.mulf %114, %117 : vector<341x16xf32>
    %121 = arith.addf %119, %120 : vector<341x16xf32>
    %122 = arith.mulf %115, %118 : vector<341x16xf32>
    %123 = arith.addf %121, %122 : vector<341x16xf32>
    %cst_19 = arith.constant dense<0xFF800000> : vector<341xf32>
    %124 = vector.multi_reduction <maximumf>, %123, %cst_19 [1] : vector<341x16xf32> to vector<341xf32>
    %125 = vector.shape_cast %124 : vector<341xf32> to vector<341x1xf32>
    %126 = tpu.iota {dimensions = array<i32: 1>} : vector<341x16xi32>
    %127 = vector.broadcast %125 : vector<341x1xf32> to vector<341x16xf32>
    %128 = arith.cmpf oeq, %123, %127 : vector<341x16xf32>
    %c16_i32 = arith.constant 16 : i32
    %129 = vector.broadcast %c16_i32 : i32 to vector<341x16xi32>
    %130 = arith.select %128, %126, %129 : vector<341x16xi1>, vector<341x16xi32>
    %cst_20 = arith.constant dense<2147483647> : vector<341xi32>
    %131 = vector.multi_reduction <minsi>, %130, %cst_20 [1] : vector<341x16xi32> to vector<341xi32>
    %132 = vector.shape_cast %131 : vector<341xi32> to vector<341x1xi32>
    %133 = vector.broadcast %132 : vector<341x1xi32> to vector<341x16xi32>
    %134 = arith.cmpi eq, %126, %133 : vector<341x16xi32>
    %135 = arith.extui %134 : vector<341x16xi1> to vector<341x16xi32>
    %136 = arith.sitofp %135 : vector<341x16xi32> to vector<341x16xf32>
    %137 = arith.mulf %113, %136 : vector<341x16xf32>
    %cst_21 = arith.constant dense<0.000000e+00> : vector<341xf32>
    %138 = vector.multi_reduction <add>, %137, %cst_21 [1] : vector<341x16xf32> to vector<341xf32>
    %139 = vector.shape_cast %138 : vector<341xf32> to vector<341x1xf32>
    %140 = arith.mulf %114, %136 : vector<341x16xf32>
    %cst_22 = arith.constant dense<0.000000e+00> : vector<341xf32>
    %141 = vector.multi_reduction <add>, %140, %cst_22 [1] : vector<341x16xf32> to vector<341xf32>
    %142 = vector.shape_cast %141 : vector<341xf32> to vector<341x1xf32>
    %143 = arith.mulf %115, %136 : vector<341x16xf32>
    %cst_23 = arith.constant dense<0.000000e+00> : vector<341xf32>
    %144 = vector.multi_reduction <add>, %143, %cst_23 [1] : vector<341x16xf32> to vector<341xf32>
    %145 = vector.shape_cast %144 : vector<341xf32> to vector<341x1xf32>
    %146 = tpu.concatenate %139, %142, %145 in 1 : vector<341x1xf32>, vector<341x1xf32>, vector<341x1xf32> -> vector<341x3xf32>
    %c0_24 = arith.constant 0 : index
    %c0_25 = arith.constant 0 : index
    %c0_26 = arith.constant 0 : index
    %147 = vector.load %arg6[%c0_24, %c0_25, %c0_26] : memref<1x341x3xf32, #tpu.memory_space<vmem>>, vector<1x341x3xf32>
    %148 = vector.shape_cast %147 : vector<1x341x3xf32> to vector<341x3xf32>
    %149 = vector.shape_cast %146 : vector<341x3xf32> to vector<1x341x3xf32>
    tpu.vector_store %arg6[%c0_24, %c0_25, %c0_26], %149 {strides = array<i32>} : memref<1x341x3xf32, #tpu.memory_space<vmem>>, vector<1x341x3xf32>,
    return
  }
  func.func @transform_0(%arg0: i32) -> (i32, i32, i32) {
    %c0_i32 = arith.constant 0 : i32
    %c0_i32_0 = arith.constant 0 : i32
    %c0_i32_1 = arith.constant 0 : i32
    return %arg0, %c0_i32, %c0_i32_0 : i32, i32, i32
  }
  func.func @transform_1(%arg0: i32) -> (i32, i32) {
    %c0_i32 = arith.constant 0 : i32
    %c0_i32_0 = arith.constant 0 : i32
    %c0_i32_1 = arith.constant 0 : i32
    return %c0_i32, %c0_i32_0 : i32, i32
  }
  func.func @transform_2(%arg0: i32) -> (i32, i32) {
    %c0_i32 = arith.constant 0 : i32
    %c0_i32_0 = arith.constant 0 : i32
    %c0_i32_1 = arith.constant 0 : i32
    return %c0_i32, %c0_i32_0 : i32, i32
  }
  func.func @transform_3(%arg0: i32) -> (i32, i32) {
    %c0_i32 = arith.constant 0 : i32
    %c0_i32_0 = arith.constant 0 : i32
    %c0_i32_1 = arith.constant 0 : i32
    return %c0_i32, %c0_i32_0 : i32, i32
  }
  func.func @transform_4(%arg0: i32) -> (i32, i32) {
    %c0_i32 = arith.constant 0 : i32
    %c0_i32_0 = arith.constant 0 : i32
    %c0_i32_1 = arith.constant 0 : i32
    return %c0_i32, %c0_i32_0 : i32, i32
  }
  func.func @transform_5(%arg0: i32) -> (i32, i32, i32) {
    %c0_i32 = arith.constant 0 : i32
    %c0_i32_0 = arith.constant 0 : i32
    %c0_i32_1 = arith.constant 0 : i32
    return %arg0, %c0_i32, %c0_i32_0 : i32, i32, i32
  }
}

</mosaic_0001>

<bundles_post_ra>
// kernel: tpu_custom_call.1
= control target key start
LH: loop header
LB: loop body
LE: loop exit
PB: predicated region body
PF: predicated region fallthrough
CT: control target
= control target key end

     0   :  { %s10417_s18 = smov 0   ;;  %s18846_s0 = inlined_call_operand.vmem [shape: f32[2,64,48], index: 0, kind: input, shape index: {}]   ;;  %s18847_s1 = inlined_call_operand.vmem [shape: bf16[42,64], index: 1, kind: input, shape index: {}]   ;;  %s18848_s2 = inlined_call_operand.vmem [shape: bf16[84,21], index: 2, kind: input, shape index: {}]   ;;  %s18849_s3 = inlined_call_operand.vmem [shape: bf16[682,42], index: 3, kind: input, shape index: {}]   ;;  %s18850_s4 = inlined_call_operand.vmem [shape: bf16[341,341], index: 4, kind: input, shape index: {}]   ;;  %s18851_s5 = inlined_call_operand.vmem [shape: f32[2,341,3], index: 5, kind: output, shape index: {}]  }
   0x1 LB: > { %s9166_s19 = sadd.s32 4294967295, %s10377_s18   ;;  %p9170_p0 = scmp.ge.s32.totalorder %s10377_s18, 1  ;;  %s10377_s18 = sphi %s10417_s18, %s15_s18  }
   0x2   : > { %p187_p1 = scmp.lt.s32.totalorder %s10377_s18, 3 }
   0x4   : > { %p188_p2 = pnand %p9170_p0, %p187_p1 }
   0x6   : > { %191 = sbr.rel (%p188_p2) target bundleno = 5289 (0x14a9), region = 40 }
   0xb   : > { %p215_p3 = scmp.lt.s32.totalorder %s9166_s19, 1  ;;  %v18852_v0 = vmov 0.0   ;;  %vm10380_vm0 = vmmov 0   ;;  %vm259_vm1 = vcmask 523264   ;;  %v10128_v13 = vld [vmem:[%s18847_s1] sm:$0xff]   ;;  %v10129_v14 = vld [vmem:[%s18847_s1 + $0x8] sm:$0xff]  }
   0xc   : > { %9501 = vmatprep.subr.bf16.mxu0 %v18852_v0  ;;  %9509 = vmatprep.mubr.msk.bf16.mxu0 %vm10380_vm0, %v18852_v0  ;;  %v10130_v15 = vld [vmem:[%s18847_s1 + $0x10] sm:$0x1f]   ;;  %s10381_s30 = smov 96   ;;  %s10382_s6 = smov 112   ;;  %vm330_vm2 = vcmask 1042432   ;;  %vm624_vm6 = vcmask 171008  }
   0xd   : > { %s20917_s19 = smov (!%p215_p3, %s9166_s19), 1  ;;  %9537 = vmatprep.subr.bf16.mxu1 %v18852_v0  ;;  %9543 = vmatprep.mubr.msk.bf16.mxu1 %vm10380_vm0, %v18852_v0  ;;  %s10383_s7 = smov 32   ;;  %vm643_vm7 = vcmask 1041408   ;;  %vm575_vm8 = vcmask 130048   ;;  %vm579_vm9 = vcmask 261120   ;;  %vm735_vm10 = vcmask 1045504  }
   0xe   : > { %s9411_s20 = sshll.u32 %s20917_s19, 6  ;;  %s10384_s8 = smov 16  }
   0xf   : > { %s219_s23 = scalar_lea.vmem %s18846_s0, %s9411_s20 }
  0x10   : > { %v232_v1 = vld [vmem:[%s219_s23 + $0x30] sm:$0xff]  ;;  %v233_v2 = vld [vmem:[%s219_s23 + $0x38] sm:$0xff]  ;;  %v230_v3 = vld [vmem:[%s219_s23 + $0x20] sm:$0xff] }
  0x11   : > { %v243_v4 = vpack.c.bf16 %v233_v2, %v232_v1  ;;  %v231_v5 = vld [vmem:[%s219_s23 + $0x28] sm:$0xff]  ;;  %v228_v6 = vld [vmem:[%s219_s23 + $0x10] sm:$0xff]  ;;  %v229_v7 = vld [vmem:[%s219_s23 + $0x18] sm:$0xff] }
  0x12   : > { %v242_v8 = vpack.c.bf16 %v231_v5, %v230_v3  ;;  %v226_v9 = vld [vmem:[%s219_s23] sm:$0xff]  ;;  %v227_v10 = vld [vmem:[%s219_s23 + $0x8] sm:$0xff]  ;;  %v241_v11 = vpack.c.bf16 %v229_v7, %v228_v6 }
  0x13   : > { %9502 = vmatpush3.bf16.msra.mxu0 %v243_v4  ;;  %v240_v12 = vpack.c.bf16 %v227_v10, %v226_v9 }
  0x14   : > { %9503 = vmatprep.subr.bf16.mxu0 %v18852_v0 }
  0x17   : > { %9504 = vmatpush3.bf16.msra.mxu0 %v242_v8 }
  0x18   : > { %9505 = vmatprep.subr.bf16.mxu0 %v18852_v0 }
  0x1b   : > { %9506 = vmatpush3.bf16.msra.mxu0 %v241_v11 }
  0x1c   : > { %9507 = vmatprep.subr.bf16.mxu0 %v18852_v0 }
  0x1f   : > { %9508 = vmatpush3.bf16.msra.mxu0 %v240_v12 }
  0x22   : > { %9510 = vmatmul.mubr.msk.bf16.vlgmr.msra.gmra.mxu0 %vm259_vm1, %v10128_v13 }
  0x23   : > { %9513 = vmatprep.mubr.msk.bf16.mxu0 %vm10380_vm0, %v18852_v0 }
  0x2a   : > { %9514 = vmatmul.mubr.msk.bf16.gmra.mxu0 %vm259_vm1, %v10129_v14 }
  0x2b   : > { %9517 = vmatprep.mubr.msk.bf16.mxu0 %vm10380_vm0, %v18852_v0 }
  0x32   : > { %9518 = vmatmul.mubr.msk.bf16.gmra.mxu0 %vm259_vm1, %v10130_v15 }
  0xe2   : > { %v10453_v16 = vpop.f32.mrf.mxu0 }
  0xe4   : > { %v9511_v17 = vpop.f32.mrf.mxu0 }
  0xe6   : > { %v10455_v18 = vpop.f32.mrf.mxu0 }
  0xe7   : > { %v9793_v19 = vpack.i.bf16 %v10455_v18, %v10453_v16 }
  0xe8   : > { %v9512_v20 = vpop.f32.mrf.mxu0 }
  0xe9   : > { %9794 = vrot.lane.b32.xlu1 %v9793_v19, %s10381_s30  ;;  %9789 = vrot.lane.b32.xlu0 %v9793_v19, %s10382_s6 }
  0xea   : > { %v10461_v21 = vpop.f32.mrf.mxu0 }
  0xeb   : > { %v371_v22 = vmul.f32 %v10461_v21, %v10461_v21  ;;  %v331_v29 = vrot.slane %v10461_v21, 5 }
  0xec   : > { %v9515_v23 = vpop.f32.mrf.mxu0 }
  0xed   : > { %379 = vrot.lane.b32.xlu0 %v371_v22, %s10382_s6 }
  0xee   : > { %v314_v24 = vpop.f32.mrf.mxu0 }
  0xef   : > { %v372_v25 = vmul.f32 %v314_v24, %v314_v24  ;;  %v332_v26 = vrot.slane %v314_v24, 5 }
  0xf0   : > { %v9516_v27 = vpop.f32.mrf.mxu0 }
  0xf1   : > { %395 = vrot.lane.b32.xlu0 %v371_v22, %s10381_s30  ;;  %381 = vrot.lane.b32.xlu1 %v372_v25, %s10382_s6  ;;  %v10470_v31 = vsel %vm330_vm2, %v331_v29, %v332_v26 }
  0xf2   : > { %v319_v28 = vpop.f32.mrf.mxu0  ;;  %v341_v33 = vmul.f32 %v10470_v31, %v10453_v16 }
  0xf3   : > { %v373_v35 = vmul.f32 %v319_v28, %v319_v28  ;;  %v334_v36 = vrot.slane %v319_v28, 5 }
  0xf4   : > { %v9519_v30 = vpop.f32.mrf.mxu0 }
  0xf5   : > { %397 = vrot.lane.b32.xlu1 %v372_v25, %s10381_s30  ;;  %447 = vrot.lane.b32.xlu0 %v10470_v31, %s10382_s6  ;;  %v10483_v37 = vsel %vm330_vm2, %v332_v26, %v334_v36 }
  0xf6   : > { %v322_v32 = vpop.f32.mrf.mxu0  ;;  %v342_v39 = vmul.f32 %v10483_v37, %v10455_v18 }
  0xf7   : > { %v374_v38 = vmul.f32 %v322_v32, %v322_v32  ;;  %v336_v40 = vrot.slane %v322_v32, 5 }
  0xf8   : > { %v9520_v34 = vpop.f32.mrf.mxu0 }
  0xf9   : > { %500 = vrot.lane.b32.xlu1 %v10470_v31, %s10381_s30  ;;  %347 = vrot.lane.b32.xlu0 %v341_v33, %s10382_s6  ;;  %v10496_v41 = vsel %vm330_vm2, %v334_v36, %v336_v40 }
  0xfa   : > { %v10503_v42 = vmul.f32 %v10496_v41, %v10461_v21 }
  0xfd   : > { %359 = vrot.lane.b32.xlu1 %v341_v33, %s10381_s30  ;;  %383 = vrot.lane.b32.xlu0 %v373_v35, %s10382_s6 }
 0x101   : > { %399 = vrot.lane.b32.xlu0 %v373_v35, %s10381_s30  ;;  %449 = vrot.lane.b32.xlu1 %v10483_v37, %s10382_s6 }
 0x105   : > { %502 = vrot.lane.b32.xlu0 %v10483_v37, %s10381_s30  ;;  %385 = vrot.lane.b32.xlu1 %v374_v38, %s10382_s6 }
 0x109   : > { %349 = vrot.lane.b32.xlu0 %v342_v39, %s10382_s6  ;;  %401 = vrot.lane.b32.xlu1 %v374_v38, %s10381_s30 }
 0x10d   : > { %361 = vrot.lane.b32.xlu0 %v342_v39, %s10381_s30  ;;  %504 = vrot.lane.b32.xlu1 %v10496_v41, %s10381_s30 }
 0x111   : > { %451 = vrot.lane.b32.xlu0 %v10496_v41, %s10382_s6  ;;  %351 = vrot.lane.b32.xlu1 %v10503_v42, %s10382_s6 }
 0x115   : > { %363 = vrot.lane.b32.xlu1 %v10503_v42, %s10381_s30 }
 0x15b   : > { %v10511_v43 = vpop.permute.xlu0 %9789  ;;  %v10513_v44 = vpop.permute.xlu1 %9794 }
 0x15f   : > { %v380_v45 = vpop.permute.xlu0 %379 }
 0x160   : > { %v391_v46 = vadd.f32 %v380_v45, %v371_v22 }
 0x163   : > { %v396_v47 = vpop.permute.xlu0 %395  ;;  %v382_v48 = vpop.permute.xlu1 %381 }
 0x164   : > { %v407_v49 = vadd.f32 %v396_v47, %v391_v46  ;;  %v392_v50 = vadd.f32 %v382_v48, %v372_v25 }
 0x166   : > { %v411_v53 = vadd.f32 1e-06, %v407_v49 }
 0x167   : > { %v398_v51 = vpop.permute.xlu1 %397  ;;  %v448_v52 = vpop.permute.xlu0 %447 }
 0x168   : > { %v408_v54 = vadd.f32 %v398_v51, %v392_v50  ;;  %v419_v58 = vrot.slane %v411_v53, 5 }
 0x16a   : > { %v412_v55 = vadd.f32 1e-06, %v408_v54 }
 0x16b   : > { %v501_v56 = vpop.permute.xlu1 %500  ;;  %v348_v57 = vpop.permute.xlu0 %347 }
 0x16c   : > { %v420_v59 = vrot.slane %v412_v55, 5  ;;  %v356_v8 = vadd.f32 %v348_v57, %v341_v33 }
 0x16e   : > { %v421_v60 = vsel %vm330_vm2, %v419_v58, %v420_v59 }
 0x16f   : > { %10267 = vrcp.f32 %v421_v60  ;;  %v360_v61 = vpop.permute.xlu1 %359  ;;  %v384_v62 = vpop.permute.xlu0 %383 }
 0x170   : > { %v393_v63 = vadd.f32 %v384_v62, %v373_v35  ;;  %v10517_v11 = vadd.f32 %v360_v61, %v356_v8 }
 0x172   : > { %vm435_vm3 = vcmp.ge.f32.partialorder %v10517_v11, 0.0 }
 0x173   : > { %v400_v1 = vpop.permute.xlu0 %399  ;;  %v450_v2 = vpop.permute.xlu1 %449 }
 0x174   : > { %v409_v3 = vadd.f32 %v400_v1, %v393_v63 }
 0x176   : > { %v413_v4 = vadd.f32 1e-06, %v409_v3  ;;  %v9797_v3 = vunpack.i.h.bf16 %v10513_v44 }
 0x177   : > { %v386_v5 = vpop.permute.xlu1 %385  ;;  %v503_v7 = vpop.permute.xlu0 %502 }
 0x178   : > { %v422_v6 = vrot.slane %v413_v4, 5  ;;  %v394_v10 = vadd.f32 %v386_v5, %v374_v38  ;;  %v9792_v4 = vunpack.i.h.bf16 %v10511_v43  ;;  %v9791_v5 = vunpack.i.l.bf16 %v10511_v43 }
 0x17a   : > { %v423_v9 = vsel %vm330_vm2, %v420_v59, %v422_v6 }
 0x17b   : > { %10269 = vrcp.f32 %v423_v9  ;;  %v402_v12 = vpop.permute.xlu1 %401  ;;  %v350_v17 = vpop.permute.xlu0 %349 }
 0x17c   : > { %v10268_v13 = vpop.eup %10267  ;;  %v410_v14 = vadd.f32 %v402_v12, %v394_v10  ;;  %v357_v27 = vadd.f32 %v350_v17, %v342_v39 }
 0x17d   : > { %v10520_v15 = vmul.f32 %v10268_v13, %v10517_v11  ;;  %v10134_v11 = vld [vmem:[%s18848_s2 + $0x18] sm:$0xff]  }
 0x17e   : > { %v414_v19 = vadd.f32 1e-06, %v410_v14 }
 0x17f   : > { %v509_v20 = vmul.f32 %v501_v56, %v10520_v15  ;;  %v456_v22 = vmul.f32 %v448_v52, %v10520_v15  ;;  %v505_v24 = vpop.permute.xlu1 %504  ;;  %v362_v26 = vpop.permute.xlu0 %361 }
 0x180   : > { %v424_v23 = vrot.slane %v414_v19, 5  ;;  %v10527_v29 = vadd.f32 %v362_v26, %v357_v27 }
 0x181   : > { %515 = vrot.lane.b32.xlu0 %v509_v20, %s10383_s7  ;;  %462 = vrot.lane.b32.xlu1 %v456_v22, %s10384_s8  ;;  %v9796_v22 = vunpack.i.l.bf16 %v10513_v44 }
 0x182   : > { %v425_v25 = vsel %vm330_vm2, %v422_v6, %v424_v23  ;;  %vm436_vm4 = vcmp.ge.f32.partialorder %v10527_v29, 0.0 }
 0x183   : > { %10271 = vrcp.f32 %v425_v25  ;;  %v352_v28 = vpop.permute.xlu1 %351  ;;  %v452_v45 = vpop.permute.xlu0 %451  ;;  %v10131_v25 = vld [vmem:[%s18848_s2] sm:$0xff]  }
 0x184   : > { %v358_v36 = vadd.f32 %v352_v28, %v10503_v42  ;;  %9525 = vmatprep.mubr.msk.bf16.mxu0 %vm624_vm6, %v10131_v25 }
 0x187   : > { %v364_v35 = vpop.permute.xlu1 %363 }
 0x188   : > { %v10270_v30 = vpop.eup %10269  ;;  %v10537_v38 = vadd.f32 %v364_v35, %v358_v36 }
 0x189   : > { %v10530_v32 = vmul.f32 %v10270_v30, %v10527_v29  ;;  %v438_v30 = vmul.f32 %v10520_v15, %v10470_v31  ;;  %v10135_v29 = vld [vmem:[%s18848_s2 + $0x20] sm:$0xff]  }
 0x18a   : > { %vm437_vm5 = vcmp.ge.f32.partialorder %v10537_v38, 0.0 }
 0x18b   : > { %v457_v33 = vmul.f32 %v450_v2, %v10530_v32  ;;  %v510_v34 = vmul.f32 %v503_v7, %v10530_v32 }
 0x18d   : > { %464 = vrot.lane.b32.xlu0 %v457_v33, %s10384_s8  ;;  %517 = vrot.lane.b32.xlu1 %v510_v34, %s10383_s7  ;;  %v439_v33 = vmul.f32 %v10530_v32, %v10483_v37 }
 0x190   : > { %v10272_v39 = vpop.eup %10271 }
 0x191   : > { %v434_v40 = vmul.f32 %v10272_v39, %v10537_v38  ;;  %v10385_v39 = vmov 65535  }
 0x193   : > { %v511_v46 = vmul.f32 %v505_v24, %v434_v40  ;;  %v458_v47 = vmul.f32 %v452_v45, %v434_v40  ;;  %v440_v28 = vmul.f32 %v434_v40, %v10496_v41  ;;  %v644_v45 = vsel %vm643_vm7, 4294967295, %v10385_v39 }
 0x195   : > { %519 = vrot.lane.b32.xlu0 %v511_v46, %s10383_s7  ;;  %466 = vrot.lane.b32.xlu1 %v458_v47, %s10384_s8  ;;  %v443_v34 = vsub.f32 %v10461_v21, %v440_v28  ;;  %v441_v46 = vsub.f32 %v10453_v16, %v438_v30  ;;  %v442_v47 = vsub.f32 %v10455_v18, %v439_v33 }
 0x197   : > { %v446_v31 = vsel %vm437_vm5, %v10461_v21, %v443_v34 }
 0x1f3   : > { %v516_v48 = vpop.permute.xlu0 %515  ;;  %v463_v49 = vpop.permute.xlu1 %462 }
 0x1f4   : > { %v524_v42 = vsub.f32 %v10453_v16, %v516_v48  ;;  %v471_v50 = vsub.f32 %v10453_v16, %v463_v49  ;;  %v10595_v48 = vsel %vm330_vm2, %v644_v45, 0 }
 0x1f5   : > { %19446 = vst [vmem:[#allocation2_spill] sm:$0xff] %v10595_v48 }
 0x1f6   : > { %v9803_v51 = vpack.i.bf16 %v524_v42, %v10461_v21  ;;  %v9798_v52 = vpack.i.bf16 %v471_v50, %v10461_v21  ;;  %v444_v50 = vsel %vm435_vm3, %v10453_v16, %v441_v46  ;;  %v10132_v16 = vld [vmem:[%s18848_s2 + $0x8] sm:$0xff]  }
 0x1f8   : > { %9804 = vrot.lane.b32.xlu0 %v9803_v51, %s10381_s30  ;;  %9799 = vrot.lane.b32.xlu1 %v9798_v52, %s10382_s6 }
 0x1ff   : > { %v465_v53 = vpop.permute.xlu0 %464  ;;  %v518_v54 = vpop.permute.xlu1 %517 }
 0x200   : > { %v472_v57 = vsub.f32 %v10455_v18, %v465_v53  ;;  %v525_v58 = vsub.f32 %v10455_v18, %v518_v54 }
 0x207   : > { %v520_v55 = vpop.permute.xlu0 %519  ;;  %v467_v56 = vpop.permute.xlu1 %466 }
 0x208   : > { %v526_v59 = vsub.f32 %v10461_v21, %v520_v55  ;;  %v473_v60 = vsub.f32 %v10461_v21, %v467_v56  ;;  %v445_v21 = vsel %vm436_vm4, %v10455_v18, %v442_v47  ;;  %v10133_v18 = vld [vmem:[%s18848_s2 + $0x10] sm:$0xff]  }
 0x20a   : > { %v9813_v61 = vpack.i.bf16 %v526_v59, %v525_v58  ;;  %v9808_v62 = vpack.i.bf16 %v473_v60, %v472_v57  ;;  %v10136_v58 = vld [vmem:[%s18848_s2 + $0x28] ss:$0 sps:$4 sm:$0x33]  }
 0x20c   : > { %9814 = vrot.lane.b32.xlu1 %v9813_v61, %s10381_s30  ;;  %9809 = vrot.lane.b32.xlu0 %v9808_v62, %s10382_s6 }
 0x26a   : > { %v9805_v63 = vpop.permute.xlu0 %9804  ;;  %v9800_v1 = vpop.permute.xlu1 %9799 }
 0x26b   : > { %v9802_v2 = vunpack.i.h.bf16 %v9800_v1  ;;  %v9801_v8 = vunpack.i.l.bf16 %v9800_v1  ;;  %v9807_v13 = vunpack.i.h.bf16 %v9805_v63  ;;  %v9806_v23 = vunpack.i.l.bf16 %v9805_v63 }
 0x26d   : > { %v497_v43 = vsel %vm435_vm3, %v9791_v5, %v9802_v2  ;;  %v548_v27 = vsel %vm435_vm3, %v9796_v22, %v9807_v13  ;;  %vm1641_vm3 = vcmask 1044480  }
 0x27e   : > { %v9810_v6 = vpop.permute.xlu0 %9809  ;;  %v9815_v7 = vpop.permute.xlu1 %9814 }
 0x27f   : > { %v9812_v9 = vunpack.i.h.bf16 %v9810_v6  ;;  %v9811_v10 = vunpack.i.l.bf16 %v9810_v6  ;;  %v9816_v12 = vunpack.i.l.bf16 %v9815_v7  ;;  %v9817_v14 = vunpack.i.h.bf16 %v9815_v7 }
 0x281   : > { %v499_v17 = vsel %vm437_vm5, %v9801_v8, %v9812_v9  ;;  %v498_v19 = vsel %vm436_vm4, %v9792_v4, %v9811_v10  ;;  %v549_v24 = vsel %vm436_vm4, %v9797_v3, %v9816_v12  ;;  %v550_v26 = vsel %vm437_vm5, %v9806_v23, %v9817_v14 }
 0x282   : > { %558 = vrot.lane.b32.xlu1 %v499_v17, %s10384_s8  ;;  %v9818_v20 = vpack.i.bf16 %v498_v19, %v497_v43  ;;  %v9823_v44 = vpack.i.bf16 %v549_v24, %v548_v27  ;;  %vm1511_vm4 = vcmask 343040  }
 0x284   : > { %9819 = vrot.lane.b32.xlu0 %v9818_v20, %s10384_s8 }
 0x286   : > { %570 = vrot.lane.b32.xlu1 %v550_v26, %s10383_s7 }
 0x288   : > { %9824 = vrot.lane.b32.xlu0 %v9823_v44, %s10383_s7 }
 0x2f4   : > { %v559_v35 = vpop.permute.xlu1 %558 }
 0x2f5   : > { %v578_v41 = vsel %vm575_vm8, %v446_v31, %v559_v35 }
 0x2f6   : > { %v9820_v36 = vpop.permute.xlu0 %9819 }
 0x2f7   : > { %v9822_v37 = vunpack.i.h.bf16 %v9820_v36  ;;  %v9821_v15 = vunpack.i.l.bf16 %v9820_v36 }
 0x2f8   : > { %v571_v32 = vpop.permute.xlu1 %570 }
 0x2f9   : > { %v582_v40 = vsel %vm579_vm9, %v578_v41, %v571_v32  ;;  %v576_v53 = vsel %vm575_vm8, %v444_v50, %v9821_v15  ;;  %v577_v54 = vsel %vm575_vm8, %v445_v21, %v9822_v37 }
 0x2fa   : > { %v595_v49 = vpack.c.bf16 %v582_v40, %v582_v40  ;;  %v9825_v42 = vpop.permute.xlu0 %9824 }
 0x2fb   : > { %v9827_v38 = vunpack.i.h.bf16 %v9825_v42  ;;  %v9826_v51 = vunpack.i.l.bf16 %v9825_v42 }
 0x2fc   : > { %v647_v52 = vand.u32 %v10595_v48, %v595_v49 }
 0x2fd   : > { %v580_v55 = vsel %vm579_vm9, %v576_v53, %v9826_v51  ;;  %v581_v56 = vsel %vm579_vm9, %v577_v54, %v9827_v38 }
 0x2fe   : > { %9521 = vmatprep.subr.bf16.mxu0 %v647_v52  ;;  %v594_v57 = vpack.c.bf16 %v581_v56, %v580_v55 }
 0x2ff   : > { %9522 = vmatpush3.bf16.msra.mxu0 %v647_v52 }
 0x300   : > { %9523 = vmatprep.subr.bf16.mxu0 %v594_v57 }
 0x303   : > { %9524 = vmatpush3.bf16.msra.mxu0 %v594_v57 }
 0x306   : > { %9526 = vmatmul.mubr.msk.bf16.vlgmr.msra.gmra.mxu0 %vm624_vm6, %v10132_v16 }
 0x307   : > { %9529 = vmatprep.mubr.msk.bf16.mxu0 %vm624_vm6, %v10133_v18 }
 0x30e   : > { %9530 = vmatmul.mubr.msk.bf16.gmra.mxu0 %vm624_vm6, %v10134_v11 }
 0x30f   : > { %9533 = vmatprep.mubr.msk.bf16.mxu0 %vm624_vm6, %v10135_v29 }
 0x316   : > { %9534 = vmatmul.mubr.msk.bf16.gmra.mxu0 %vm624_vm6, %v10136_v58 }
 0x3c6   : > { %v10628_v59 = vpop.f32.mrf.mxu0 }
 0x3c8   : > { %v10630_v60 = vpop.f32.mrf.mxu0 }
 0x3ca   : > { %v10632_v61 = vpop.f32.mrf.mxu0 }
 0x3cb   : > { %v9828_v62 = vpack.i.bf16 %v10632_v61, %v10628_v59 }
 0x3cc   : > { %v10636_v63 = vpop.f32.mrf.mxu0 }
 0x3cd   : > { %9829 = vrot.lane.b32.xlu1 %v9828_v62, %s10382_s6  ;;  %v9838_v1 = vpack.i.bf16 %v10636_v63, %v10630_v60 }
 0x3ce   : > { %v9531_v2 = vpop.f32.mrf.mxu0 }
 0x3cf   : > { %9839 = vrot.lane.b32.xlu0 %v9838_v1, %s10382_s6  ;;  %v10645_v5 = vmul.f32 %v9531_v2, %v9531_v2  ;;  %v737_v12 = vrot.slane %v9531_v2, 2 }
 0x3d0   : > { %v10642_v3 = vpop.f32.mrf.mxu0 }
 0x3d1   : > { %9834 = vrot.lane.b32.xlu1 %v9828_v62, %s10381_s30 }
 0x3d2   : > { %v9532_v4 = vpop.f32.mrf.mxu0 }
 0x3d3   : > { %9844 = vrot.lane.b32.xlu0 %v9838_v1, %s10381_s30  ;;  %v10650_v7 = vmul.f32 %v9532_v4, %v9532_v4  ;;  %v739_v9 = vrot.slane %v9532_v4, 2 }
 0x3d4   : > { %v10648_v6 = vpop.f32.mrf.mxu0 }
 0x3d5   : > { %827 = vrot.lane.b32.xlu1 %v10645_v5, %s10382_s6  ;;  %v10661_v14 = vsel %vm735_vm10, %v737_v12, %v739_v9  ;;  %v9848_v17 = vpack.i.bf16 %v10648_v6, %v10642_v3  ;;  %v10679_v19 = vmul.f32 %v10648_v6, %v10648_v6  ;;  %v736_v22 = vrot.slane %v10648_v6, 2 }
 0x3d6   : > { %v9535_v8 = vpop.f32.mrf.mxu0  ;;  %v10673_v43 = vmul.f32 %v10661_v14, %v10636_v63 }
 0x3d7   : > { %829 = vrot.lane.b32.xlu0 %v10650_v7, %s10382_s6  ;;  %v10683_v20 = vmul.f32 %v9535_v8, %v9535_v8  ;;  %v10693_v23 = vsel %vm735_vm10, %v736_v22, %v737_v12  ;;  %v10699_v24 = vrot.slane %v9535_v8, 2 }
 0x3d8   : > { %v715_v10 = vpop.f32.mrf.mxu0  ;;  %v10707_v25 = vmul.f32 %v10693_v23, %v10630_v60 }
 0x3d9   : > { %851 = vrot.lane.b32.xlu1 %v10645_v5, %s10381_s30  ;;  %v741_v26 = vrot.slane %v715_v10, 2  ;;  %v10717_v27 = vmul.f32 %v10699_v24, %v10648_v6  ;;  %v10728_v28 = vmul.f32 %v715_v10, %v715_v10 }
 0x3da   : > { %v9536_v13 = vpop.f32.mrf.mxu0 }
 0x3db   : > { %853 = vrot.lane.b32.xlu0 %v10650_v7, %s10381_s30  ;;  %v10722_v44 = vsel %vm735_vm10, %v739_v9, %v741_v26 }
 0x3dc   : > { %v718_v30 = vpop.f32.mrf.mxu0  ;;  %v10736_v33 = vmul.f32 %v10628_v59, %v10722_v44 }
 0x3dd   : > { %940 = vrot.lane.b32.xlu1 %v10661_v14, %s10382_s6  ;;  %v743_v34 = vrot.slane %v718_v30, 2  ;;  %v10747_v36 = vmul.f32 %v718_v30, %v718_v30 }
 0x3df   : > { %9849 = vrot.lane.b32.xlu0 %v9848_v17, %s10382_s6  ;;  %v10745_v35 = vsel %vm735_vm10, %v741_v26, %v743_v34  ;;  %v10765_v45 = vsel %vm735_vm10, %v743_v34, %v10699_v24 }
 0x3e0   : > { %v10759_v39 = vmul.f32 %v10632_v61, %v10745_v35  ;;  %v10775_v46 = vmul.f32 %v10765_v45, %v10642_v3 }
 0x3e1   : > { %1047 = vrot.lane.b32.xlu1 %v10661_v14, %s10381_s30 }
 0x3e3   : > { %9854 = vrot.lane.b32.xlu0 %v9848_v17, %s10381_s30 }
 0x3e5   : > { %767 = vrot.lane.b32.xlu1 %v10673_v43, %s10382_s6 }
 0x3e7   : > { %825 = vrot.lane.b32.xlu0 %v10679_v19, %s10382_s6 }
 0x3e9   : > { %791 = vrot.lane.b32.xlu1 %v10673_v43, %s10381_s30 }
 0x3eb   : > { %849 = vrot.lane.b32.xlu0 %v10679_v19, %s10381_s30 }
 0x3ed   : > { %835 = vrot.lane.b32.xlu1 %v10683_v20, %s10382_s6 }
 0x3ef   : > { %938 = vrot.lane.b32.xlu0 %v10693_v23, %s10382_s6 }
 0x3f1   : > { %859 = vrot.lane.b32.xlu1 %v10683_v20, %s10381_s30 }
 0x3f3   : > { %1045 = vrot.lane.b32.xlu0 %v10693_v23, %s10381_s30 }
 0x3f5   : > { %948 = vrot.lane.b32.xlu1 %v10699_v24, %s10382_s6 }
 0x3f7   : > { %765 = vrot.lane.b32.xlu0 %v10707_v25, %s10382_s6 }
 0x3f9   : > { %1055 = vrot.lane.b32.xlu1 %v10699_v24, %s10381_s30 }
 0x3fb   : > { %789 = vrot.lane.b32.xlu0 %v10707_v25, %s10381_s30 }
 0x3fd   : > { %775 = vrot.lane.b32.xlu1 %v10717_v27, %s10382_s6 }
 0x3ff   : > { %942 = vrot.lane.b32.xlu0 %v10722_v44, %s10382_s6 }
 0x401   : > { %799 = vrot.lane.b32.xlu1 %v10717_v27, %s10381_s30 }
 0x403   : > { %1049 = vrot.lane.b32.xlu0 %v10722_v44, %s10381_s30 }
 0x405   : > { %831 = vrot.lane.b32.xlu1 %v10728_v28, %s10382_s6 }
 0x407   : > { %769 = vrot.lane.b32.xlu0 %v10736_v33, %s10382_s6 }
 0x409   : > { %855 = vrot.lane.b32.xlu1 %v10728_v28, %s10381_s30 }
 0x40b   : > { %793 = vrot.lane.b32.xlu0 %v10736_v33, %s10381_s30 }
 0x40d   : > { %944 = vrot.lane.b32.xlu1 %v10745_v35, %s10382_s6 }
 0x40f   : > { %833 = vrot.lane.b32.xlu0 %v10747_v36, %s10382_s6 }
 0x411   : > { %1051 = vrot.lane.b32.xlu1 %v10745_v35, %s10381_s30 }
 0x413   : > { %857 = vrot.lane.b32.xlu0 %v10747_v36, %s10381_s30 }
 0x415   : > { %771 = vrot.lane.b32.xlu1 %v10759_v39, %s10382_s6 }
 0x417   : > { %946 = vrot.lane.b32.xlu0 %v10765_v45, %s10382_s6 }
 0x419   : > { %795 = vrot.lane.b32.xlu1 %v10759_v39, %s10381_s30 }
 0x41b   : > { %1053 = vrot.lane.b32.xlu0 %v10765_v45, %s10381_s30 }
 0x41f   : > { %773 = vrot.lane.b32.xlu0 %v10775_v46, %s10382_s6 }
 0x423   : > { %797 = vrot.lane.b32.xlu0 %v10775_v46, %s10381_s30 }
 0x43f   : > { %v10781_v47 = vpop.permute.xlu1 %9829 }
 0x441   : > { %v10783_v31 = vpop.permute.xlu0 %9839 }
 0x443   : > { %v10785_v41 = vpop.permute.xlu1 %9834 }
 0x445   : > { %v10787_v37 = vpop.permute.xlu0 %9844 }
 0x447   : > { %v828_v15 = vpop.permute.xlu1 %827 }
 0x448   : > { %v844_v40 = vadd.f32 %v828_v15, %v10645_v5 }
 0x449   : > { %v830_v32 = vpop.permute.xlu0 %829 }
 0x44a   : > { %v845_v42 = vadd.f32 %v830_v32, %v10650_v7 }
 0x44b   : > { %v852_v49 = vpop.permute.xlu1 %851 }
 0x44c   : > { %v868_v50 = vadd.f32 %v852_v49, %v844_v40 }
 0x44d   : > { %v854_v21 = vpop.permute.xlu0 %853 }
 0x44e   : > { %v874_v38 = vadd.f32 1e-06, %v868_v50  ;;  %v869_v51 = vadd.f32 %v854_v21, %v845_v42 }
 0x44f   : > { %v941_v52 = vpop.permute.xlu1 %940 }
 0x450   : > { %v10791_v53 = vadd.f32 1e-06, %v869_v51  ;;  %v886_v55 = vrot.slane %v874_v38, 2 }
 0x451   : > { %v10793_v54 = vpop.permute.xlu0 %9849 }
 0x452   : > { %v888_v56 = vrot.slane %v10791_v53, 2 }
 0x453   : > { %v1048_v57 = vpop.permute.xlu1 %1047 }
 0x454   : > { %v889_v16 = vsel %vm735_vm10, %v886_v55, %v888_v56 }
 0x455   : > { %10273 = vrcp.f32 %v889_v16  ;;  %v10799_v18 = vpop.permute.xlu0 %9854 }
 0x457   : > { %v768_v11 = vpop.permute.xlu1 %767 }
 0x458   : > { %v784_v4 = vadd.f32 %v768_v11, %v10673_v43 }
 0x459   : > { %v826_v29 = vpop.permute.xlu0 %825 }
 0x45a   : > { %v843_v62 = vadd.f32 %v826_v29, %v10679_v19 }
 0x45b   : > { %v792_v58 = vpop.permute.xlu1 %791 }
 0x45c   : > { %v10803_v8 = vadd.f32 %v792_v58, %v784_v4 }
 0x45d   : > { %v850_v1 = vpop.permute.xlu0 %849 }
 0x45e   : > { %v867_v2 = vadd.f32 %v850_v1, %v843_v62  ;;  %vm915_vm11 = vcmp.ge.f32.partialorder %v10803_v8, 0.0 }
 0x45f   : > { %v836_v5 = vpop.permute.xlu1 %835 }
 0x460   : > { %v873_v7 = vadd.f32 1e-06, %v867_v2  ;;  %v848_v13 = vadd.f32 %v836_v5, %v10683_v20 }
 0x461   : > { %v939_v9 = vpop.permute.xlu0 %938 }
 0x462   : > { %v10274_v10 = vpop.eup %10273  ;;  %v885_v12 = vrot.slane %v873_v7, 2 }
 0x463   : > { %v10807_v17 = vmul.f32 %v10274_v10, %v10803_v8  ;;  %v860_v22 = vpop.permute.xlu1 %859 }
 0x464   : > { %v887_v26 = vsel %vm735_vm10, %v885_v12, %v886_v55  ;;  %v872_v19 = vadd.f32 %v860_v22, %v848_v13 }
 0x465   : > { %10275 = vrcp.f32 %v887_v26  ;;  %v1046_v30 = vpop.permute.xlu0 %1045  ;;  %v957_v43 = vmul.f32 %v941_v52, %v10807_v17  ;;  %v1064_v49 = vmul.f32 %v1048_v57, %v10807_v17 }
 0x466   : > { %v878_v34 = vadd.f32 1e-06, %v872_v19 }
 0x467   : > { %v949_v15 = vpop.permute.xlu1 %948  ;;  %970 = vrot.lane.b32.xlu1 %v957_v43, %s10384_s8 }
 0x468   : > { %v894_v32 = vrot.slane %v878_v34, 2 }
 0x469   : > { %v766_v40 = vpop.permute.xlu0 %765 }
 0x46a   : > { %10277 = vrcp.f32 %v894_v32  ;;  %v783_v50 = vadd.f32 %v766_v40, %v10707_v25 }
 0x46b   : > { %v1056_v20 = vpop.permute.xlu1 %1055  ;;  %1077 = vrot.lane.b32.xlu1 %v1064_v49, %s10383_s7 }
 0x46d   : > { %v790_v42 = vpop.permute.xlu0 %789 }
 0x46e   : > { %v10815_v38 = vadd.f32 %v790_v42, %v783_v50 }
 0x46f   : > { %v776_v21 = vpop.permute.xlu1 %775 }
 0x470   : > { %v788_v11 = vadd.f32 %v776_v21, %v10717_v27  ;;  %vm914_vm12 = vcmp.ge.f32.partialorder %v10815_v38, 0.0 }
 0x471   : > { %v943_v51 = vpop.permute.xlu0 %942 }
 0x472   : > { %v10276_v52 = vpop.eup %10275 }
 0x473   : > { %v10818_v55 = vmul.f32 %v10276_v52, %v10815_v38  ;;  %v800_v16 = vpop.permute.xlu1 %799 }
 0x474   : > { %v10822_v58 = vadd.f32 %v800_v16, %v788_v11 }
 0x475   : > { %v1050_v29 = vpop.permute.xlu0 %1049  ;;  %v956_v57 = vmul.f32 %v939_v9, %v10818_v55  ;;  %v1063_v4 = vmul.f32 %v1046_v30, %v10818_v55 }
 0x476   : > { %vm919_vm15 = vcmp.ge.f32.partialorder %v10822_v58, 0.0 }
 0x477   : > { %v10278_v62 = vpop.eup %10277  ;;  %v832_v1 = vpop.permute.xlu1 %831  ;;  %968 = vrot.lane.b32.xlu0 %v956_v57, %s10384_s8 }
 0x478   : > { %v10826_v25 = vmul.f32 %v10278_v62, %v10822_v58  ;;  %v846_v5 = vadd.f32 %v832_v1, %v10728_v28 }
 0x479   : > { %v770_v2 = vpop.permute.xlu0 %769 }
 0x47a   : > { %v961_v7 = vmul.f32 %v949_v15, %v10826_v25  ;;  %v1068_v13 = vmul.f32 %v1056_v20, %v10826_v25  ;;  %v785_v21 = vadd.f32 %v770_v2, %v10736_v33 }
 0x47b   : > { %v856_v27 = vpop.permute.xlu1 %855  ;;  %1075 = vrot.lane.b32.xlu0 %v1063_v4, %s10383_s7 }
 0x47c   : > { %v870_v9 = vadd.f32 %v856_v27, %v846_v5  ;;  %978 = vrot.lane.b32.xlu1 %v961_v7, %s10384_s8 }
 0x47d   : > { %v794_v10 = vpop.permute.xlu0 %793 }
 0x47e   : > { %v876_v12 = vadd.f32 1e-06, %v870_v9 }
 0x47f   : > { %v945_v19 = vpop.permute.xlu1 %944 }
 0x480   : > { %v890_v22 = vrot.slane %v876_v12, 2  ;;  %1085 = vrot.lane.b32.xlu1 %v1068_v13, %s10383_s7 }
 0x481   : > { %v834_v26 = vpop.permute.xlu0 %833 }
 0x482   : > { %v891_v28 = vsel %vm735_vm10, %v888_v56, %v890_v22  ;;  %v847_v30 = vadd.f32 %v834_v26, %v10747_v36  ;;  %v10842_v56 = vadd.f32 %v794_v10, %v785_v21 }
 0x483   : > { %10279 = vrcp.f32 %v891_v28  ;;  %v1052_v49 = vpop.permute.xlu1 %1051 }
 0x484   : > { %vm916_vm13 = vcmp.ge.f32.partialorder %v10842_v56, 0.0 }
 0x485   : > { %v858_v43 = vpop.permute.xlu0 %857 }
 0x486   : > { %v871_v34 = vadd.f32 %v858_v43, %v847_v30 }
 0x487   : > { %v772_v16 = vpop.permute.xlu1 %771 }
 0x488   : > { %v877_v15 = vadd.f32 1e-06, %v871_v34 }
 0x489   : > { %v947_v40 = vpop.permute.xlu0 %946 }
 0x48a   : > { %v892_v42 = vrot.slane %v877_v15, 2 }
 0x48b   : > { %v796_v62 = vpop.permute.xlu1 %795 }
 0x48c   : > { %v893_v20 = vsel %vm735_vm10, %v890_v22, %v892_v42  ;;  %v895_v50 = vsel %vm735_vm10, %v892_v42, %v894_v32  ;;  %v786_v32 = vadd.f32 %v772_v16, %v10759_v39 }
 0x48d   : > { %10281 = vrcp.f32 %v893_v20  ;;  %v1054_v53 = vpop.permute.xlu0 %1053 }
 0x48e   : > { %10283 = vrcp.f32 %v895_v50  ;;  %v10852_v4 = vadd.f32 %v796_v62, %v786_v32 }
 0x490   : > { %v10280_v52 = vpop.eup %10279  ;;  %vm917_vm14 = vcmp.ge.f32.partialorder %v10852_v4, 0.0 }
 0x491   : > { %v10845_v36 = vmul.f32 %v10280_v52, %v10842_v56  ;;  %v774_v11 = vpop.permute.xlu0 %773 }
 0x492   : > { %v787_v2 = vadd.f32 %v774_v11, %v10775_v46 }
 0x493   : > { %v958_v57 = vmul.f32 %v943_v51, %v10845_v36  ;;  %v1065_v33 = vmul.f32 %v1050_v29, %v10845_v36 }
 0x495   : > { %972 = vrot.lane.b32.xlu0 %v958_v57, %s10384_s8  ;;  %v798_v1 = vpop.permute.xlu0 %797 }
 0x496   : > { %v10855_v7 = vadd.f32 %v798_v1, %v787_v2 }
 0x498   : > { %vm918_vm1 = vcmp.ge.f32.partialorder %v10855_v7, 0.0 }
 0x499   : > { %1079 = vrot.lane.b32.xlu0 %v1065_v33, %s10383_s7 }
 0x49a   : > { %v10282_v5 = vpop.eup %10281 }
 0x49b   : > { %v10284_v27 = vpop.eup %10283  ;;  %v10858_v51 = vmul.f32 %v10282_v5, %v10852_v4 }
 0x49c   : > { %v10861_v9 = vmul.f32 %v10284_v27, %v10855_v7 }
 0x49d   : > { %v959_v39 = vmul.f32 %v945_v19, %v10858_v51  ;;  %v1066_v46 = vmul.f32 %v1052_v49, %v10858_v51 }
 0x49e   : > { %v960_v29 = vmul.f32 %v947_v40, %v10861_v9  ;;  %v1067_v10 = vmul.f32 %v1054_v53, %v10861_v9  ;;  %v924_v8 = vmul.f32 %v10861_v9, %v10765_v45 }
 0x49f   : > { %974 = vrot.lane.b32.xlu1 %v959_v39, %s10384_s8 }
 0x4a0   : > { %976 = vrot.lane.b32.xlu0 %v960_v29, %s10384_s8 }
 0x4a3   : > { %1081 = vrot.lane.b32.xlu1 %v1066_v46, %s10383_s7 }
 0x4a4   : > { %1083 = vrot.lane.b32.xlu0 %v1067_v10, %s10383_s7  ;;  %v9842_v10 = vunpack.i.h.bf16 %v10783_v31 }
 0x4d9   : > { %v971_v12 = vpop.permute.xlu1 %970 }
 0x4da   : > { %v987_v22 = vsub.f32 %v10636_v63, %v971_v12  ;;  %v9841_v12 = vunpack.i.l.bf16 %v10783_v31 }
 0x4dd   : > { %v1078_v28 = vpop.permute.xlu1 %1077 }
 0x4de   : > { %v1094_v43 = vsub.f32 %v10636_v63, %v1078_v28 }
 0x4e9   : > { %v969_v13 = vpop.permute.xlu0 %968 }
 0x4ea   : > { %v986_v26 = vsub.f32 %v10630_v60, %v969_v13 }
 0x4ec   : > { %v9858_v19 = vpack.i.bf16 %v987_v22, %v986_v26 }
 0x4ed   : > { %v1076_v30 = vpop.permute.xlu0 %1075 }
 0x4ee   : > { %v1093_v34 = vsub.f32 %v10630_v60, %v1076_v30  ;;  %9859 = vrot.lane.b32.xlu1 %v9858_v19, %s10382_s6  ;;  %v979_v40 = vpop.permute.xlu1 %978 }
 0x4ef   : > { %v991_v16 = vsub.f32 %v10648_v6, %v979_v40 }
 0x4f0   : > { %v9863_v15 = vpack.i.bf16 %v1094_v43, %v1093_v34  ;;  %v9847_v43 = vunpack.i.h.bf16 %v10787_v37  ;;  %v9846_v34 = vunpack.i.l.bf16 %v10787_v37  ;;  %v9852_v37 = vunpack.i.h.bf16 %v10793_v54 }
 0x4f2   : > { %9864 = vrot.lane.b32.xlu1 %v9863_v15, %s10381_s30  ;;  %v1086_v42 = vpop.permute.xlu1 %1085 }
 0x4f3   : > { %v1098_v5 = vsub.f32 %v10648_v6, %v1086_v42 }
 0x507   : > { %v973_v49 = vpop.permute.xlu0 %972 }
 0x508   : > { %v988_v21 = vsub.f32 %v10628_v59, %v973_v49 }
 0x50b   : > { %v1080_v20 = vpop.permute.xlu0 %1079 }
 0x50c   : > { %v1095_v1 = vsub.f32 %v10628_v59, %v1080_v20  ;;  %v9832_v20 = vunpack.i.h.bf16 %v10781_v47 }
 0x511   : > { %v975_v50 = vpop.permute.xlu1 %974 }
 0x512   : > { %v977_v53 = vpop.permute.xlu0 %976  ;;  %v989_v52 = vsub.f32 %v10632_v61, %v975_v50  ;;  %v9831_v50 = vunpack.i.l.bf16 %v10781_v47 }
 0x513   : > { %v990_v11 = vsub.f32 %v10642_v3, %v977_v53  ;;  %v9851_v53 = vunpack.i.l.bf16 %v10793_v54  ;;  %v9837_v54 = vunpack.i.h.bf16 %v10785_v41 }
 0x514   : > { %v9868_v57 = vpack.i.bf16 %v989_v52, %v988_v21 }
 0x515   : > { %v9873_v62 = vpack.i.bf16 %v991_v16, %v990_v11  ;;  %v1082_v32 = vpop.permute.xlu1 %1081 }
 0x516   : > { %v1084_v33 = vpop.permute.xlu0 %1083  ;;  %v1096_v2 = vsub.f32 %v10632_v61, %v1082_v32  ;;  %9869 = vrot.lane.b32.xlu0 %v9868_v57, %s10382_s6 }
 0x517   : > { %v1097_v27 = vsub.f32 %v10642_v3, %v1084_v33  ;;  %9874 = vrot.lane.b32.xlu1 %v9873_v62, %s10382_s6 }
 0x518   : > { %v9878_v39 = vpack.i.bf16 %v1096_v2, %v1095_v1 }
 0x519   : > { %v9883_v29 = vpack.i.bf16 %v1098_v5, %v1097_v27  ;;  %v9836_v27 = vunpack.i.l.bf16 %v10785_v41 }
 0x51a   : > { %9879 = vrot.lane.b32.xlu0 %v9878_v39, %s10381_s30 }
 0x51b   : > { %9884 = vrot.lane.b32.xlu1 %v9883_v29, %s10381_s30 }
 0x560   : > { %v9860_v46 = vpop.permute.xlu1 %9859 }
 0x561   : > { %v9862_v13 = vunpack.i.h.bf16 %v9860_v46  ;;  %v9861_v22 = vunpack.i.l.bf16 %v9860_v46 }
 0x563   : > { %v1039_v26 = vsel %vm914_vm12, %v9841_v12, %v9861_v22  ;;  %v1040_v28 = vsel %vm915_vm11, %v9842_v10, %v9862_v13  ;;  %v9857_v12 = vunpack.i.h.bf16 %v10799_v18  ;;  %v9856_v13 = vunpack.i.l.bf16 %v10799_v18 }
 0x564   : > { %v9865_v19 = vpop.permute.xlu1 %9864  ;;  %v9888_v30 = vpack.i.bf16 %v1040_v28, %v1039_v26 }
 0x565   : > { %v9867_v15 = vunpack.i.h.bf16 %v9865_v19  ;;  %v9866_v31 = vunpack.i.l.bf16 %v9865_v19 }
 0x566   : > { %9889 = vrot.lane.b32.xlu0 %v9888_v30, %s10384_s8 }
 0x567   : > { %v1141_v40 = vsel %vm914_vm12, %v9846_v34, %v9866_v31  ;;  %v1142_v49 = vsel %vm915_vm11, %v9847_v43, %v9867_v15  ;;  %v921_v34 = vmul.f32 %v10807_v17, %v10661_v14  ;;  %v920_v15 = vmul.f32 %v10818_v55, %v10693_v23 }
 0x568   : > { %v9893_v42 = vpack.i.bf16 %v1142_v49, %v1141_v40 }
 0x569   : > { %v927_v40 = vsub.f32 %v10636_v63, %v921_v34  ;;  %v926_v49 = vsub.f32 %v10630_v60, %v920_v15  ;;  %v10147_v34 = vld [vmem:[%s18849_s3 + $0x50] sm:$0xff]   ;;  %v10148_v15 = vld [vmem:[%s18849_s3 + $0x58] sm:$0xff]  }
 0x56a   : > { %9894 = vrot.lane.b32.xlu1 %v9893_v42, %s10383_s7 }
 0x588   : > { %v9870_v21 = vpop.permute.xlu0 %9869 }
 0x589   : > { %v9872_v52 = vunpack.i.h.bf16 %v9870_v21  ;;  %v9871_v16 = vunpack.i.l.bf16 %v9870_v21  ;;  %v9875_v11 = vpop.permute.xlu1 %9874  ;;  %v933_v21 = vsel %vm915_vm11, %v10636_v63, %v927_v40  ;;  %v922_v63 = vmul.f32 %v10845_v36, %v10722_v44  ;;  %v10150_v40 = vld [vmem:[%s18849_s3 + $0x68] sm:$0xff]  }
 0x58a   : > { %v9877_v57 = vunpack.i.h.bf16 %v9875_v11  ;;  %v9876_v62 = vunpack.i.l.bf16 %v9875_v11  ;;  %v925_v11 = vmul.f32 %v10826_v25, %v10699_v24 }
 0x58b   : > { %v1042_v47 = vsel %vm917_vm14, %v9832_v20, %v9872_v52  ;;  %v1041_v32 = vsel %vm916_vm13, %v9831_v50, %v9871_v16 }
 0x58c   : > { %v1044_v1 = vsel %vm919_vm15, %v9852_v37, %v9877_v57  ;;  %v1043_v33 = vsel %vm918_vm1, %v9851_v53, %v9876_v62  ;;  %v9880_v2 = vpop.permute.xlu0 %9879  ;;  %v9898_v5 = vpack.i.bf16 %v1042_v47, %v1041_v32  ;;  %v932_v37 = vsel %vm914_vm12, %v10630_v60, %v926_v49  ;;  %v10151_v49 = vld [vmem:[%s18849_s3 + $0x70] sm:$0xff]  }
 0x58d   : > { %v9882_v39 = vunpack.i.h.bf16 %v9880_v2  ;;  %v9881_v29 = vunpack.i.l.bf16 %v9880_v2  ;;  %v9885_v46 = vpop.permute.xlu1 %9884  ;;  %v9903_v10 = vpack.i.bf16 %v1044_v1, %v1043_v33  ;;  %v923_v60 = vmul.f32 %v10858_v51, %v10745_v35 }
 0x58e   : > { %v9887_v22 = vunpack.i.h.bf16 %v9885_v46  ;;  %v9886_v26 = vunpack.i.l.bf16 %v9885_v46  ;;  %9899 = vrot.lane.b32.xlu1 %v9898_v5, %s10384_s8  ;;  %v931_v38 = vsub.f32 %v10648_v6, %v925_v11  ;;  %v928_v62 = vsub.f32 %v10628_v59, %v922_v63  ;;  %v10162_v63 = vld [vmem:[%s18849_s3 + $0xc8] sm:$0xff]  }
 0x58f   : > { %v1144_v28 = vsel %vm917_vm14, %v9837_v54, %v9882_v39  ;;  %v1143_v19 = vsel %vm916_vm13, %v9836_v27, %v9881_v29  ;;  %9904 = vrot.lane.b32.xlu0 %v9903_v10, %s10384_s8  ;;  %v929_v47 = vsub.f32 %v10632_v61, %v923_v60  ;;  %v930_v32 = vsub.f32 %v10642_v3, %v924_v8 }
 0x590   : > { %v1146_v41 = vsel %vm919_vm15, %v9857_v12, %v9887_v22  ;;  %v1145_v30 = vsel %vm918_vm1, %v9856_v13, %v9886_v26  ;;  %v9908_v43 = vpack.i.bf16 %v1144_v28, %v1143_v19  ;;  %v937_v35 = vsel %vm919_vm15, %v10648_v6, %v931_v38  ;;  %v10137_v12 = vld [vmem:[%s18849_s3] sm:$0xff]   ;;  %v10138_v13 = vld [vmem:[%s18849_s3 + $0x8] sm:$0xff]   ;;  %v10139_v22 = vld [vmem:[%s18849_s3 + $0x10] sm:$0xff]  }
 0x591   : > { %v9913_v18 = vpack.i.bf16 %v1146_v41, %v1145_v30  ;;  %v934_v45 = vsel %vm916_vm13, %v10628_v59, %v928_v62  ;;  %v935_v36 = vsel %vm917_vm14, %v10632_v61, %v929_v47  ;;  %v936_v51 = vsel %vm918_vm1, %v10642_v3, %v930_v32  ;;  %v10140_v26 = vld [vmem:[%s18849_s3 + $0x18] sm:$0xff]   ;;  %v10141_v28 = vld [vmem:[%s18849_s3 + $0x20] sm:$0xff]   ;;  %v10142_v19 = vld [vmem:[%s18849_s3 + $0x28] sm:$0xff]  }
 0x592   : > { %v10143_v41 = vld [vmem:[%s18849_s3 + $0x30] sm:$0xff]   ;;  %v10144_v30 = vld [vmem:[%s18849_s3 + $0x38] sm:$0xff]  }
 0x593   : > { %9914 = vrot.lane.b32.xlu1 %v9913_v18, %s10383_s7  ;;  %9909 = vrot.lane.b32.xlu0 %v9908_v43, %s10383_s7  ;;  %v10145_v43 = vld [vmem:[%s18849_s3 + $0x40] sm:$0xff]   ;;  %v10146_v18 = vld [vmem:[%s18849_s3 + $0x48] sm:$0xff]  }
 0x594   : > { %v10163_v62 = vld [vmem:[%s18849_s3 + $0xd0] sm:$0xff]  }
 0x5d8   : > { %v9890_v31 = vpop.permute.xlu0 %9889 }
 0x5d9   : > { %v9892_v42 = vunpack.i.h.bf16 %v9890_v31  ;;  %v9891_v20 = vunpack.i.l.bf16 %v9890_v31  ;;  %v10149_v31 = vld [vmem:[%s18849_s3 + $0x60] sm:$0xff]  }
 0x5db   : > { %v1195_v23 = vsel %vm575_vm8, %v932_v37, %v9891_v20  ;;  %v1196_v55 = vsel %vm575_vm8, %v933_v21, %v9892_v42  ;;  %v10152_v42 = vld [vmem:[%s18849_s3 + $0x78] sm:$0xff]   ;;  %v10153_v20 = vld [vmem:[%s18849_s3 + $0x80] sm:$0xff]   ;;  %v10155_v21 = vld [vmem:[%s18849_s3 + $0x90] sm:$0xff]  }
 0x5dc   : > { %v9895_v50 = vpop.permute.xlu1 %9894  ;;  %v10156_v37 = vld [vmem:[%s18849_s3 + $0x98] sm:$0xff]  }
 0x5dd   : > { %v9897_v14 = vunpack.i.h.bf16 %v9895_v50  ;;  %v9896_v17 = vunpack.i.l.bf16 %v9895_v50  ;;  %v10154_v50 = vld [vmem:[%s18849_s3 + $0x88] sm:$0xff]  }
 0x5df   : > { %v1201_v53 = vsel %vm579_vm9, %v1195_v23, %v9896_v17  ;;  %v1202_v52 = vsel %vm579_vm9, %v1196_v55, %v9897_v14  ;;  %v10157_v14 = vld [vmem:[%s18849_s3 + $0xa0] sm:$0xff]   ;;  %v10158_v17 = vld [vmem:[%s18849_s3 + $0xa8] sm:$0xff]   ;;  %v10159_v23 = vld [vmem:[%s18849_s3 + $0xb0] sm:$0xff]  }
 0x5e0   : > { %v1293_v16 = vpack.c.bf16 %v1202_v52, %v1201_v53  ;;  %v10160_v55 = vld [vmem:[%s18849_s3 + $0xb8] sm:$0xff]   ;;  %v10161_v53 = vld [vmem:[%s18849_s3 + $0xc0] sm:$0xff]  }
 0x600   : > { %v9900_v57 = vpop.permute.xlu1 %9899 }
 0x601   : > { %v9905_v54 = vpop.permute.xlu0 %9904  ;;  %v9902_v24 = vunpack.i.h.bf16 %v9900_v57  ;;  %v9901_v25 = vunpack.i.l.bf16 %v9900_v57 }
 0x602   : > { %v9907_v1 = vunpack.i.h.bf16 %v9905_v54  ;;  %v9906_v44 = vunpack.i.l.bf16 %v9905_v54 }
 0x603   : > { %v1197_v59 = vsel %vm575_vm8, %v934_v45, %v9901_v25  ;;  %v1198_v4 = vsel %vm575_vm8, %v935_v36, %v9902_v24  ;;  %v10164_v25 = vld [vmem:[%s18849_s3 + $0xd8] sm:$0xff]   ;;  %v10165_v36 = vld [vmem:[%s18849_s3 + $0xe0] sm:$0xff]  }
 0x604   : > { %v1199_v6 = vsel %vm575_vm8, %v936_v51, %v9906_v44  ;;  %v1200_v56 = vsel %vm575_vm8, %v937_v35, %v9907_v1 }
 0x605   : > { %v9915_v9 = vpop.permute.xlu1 %9914  ;;  %v9910_v33 = vpop.permute.xlu0 %9909 }
 0x606   : > { %v9917_v2 = vunpack.i.h.bf16 %v9915_v9  ;;  %v9916_v5 = vunpack.i.l.bf16 %v9915_v9  ;;  %v9912_v27 = vunpack.i.h.bf16 %v9910_v33  ;;  %v9911_v58 = vunpack.i.l.bf16 %v9910_v33 }
 0x608   : > { %v1205_v61 = vsel %vm579_vm9, %v1199_v6, %v9916_v5  ;;  %v1206_v7 = vsel %vm579_vm9, %v1200_v56, %v9917_v2  ;;  %v1203_v3 = vsel %vm579_vm9, %v1197_v59, %v9911_v58  ;;  %v1204_v39 = vsel %vm579_vm9, %v1198_v4, %v9912_v27  ;;  %v10166_v5 = vld [vmem:[%s18849_s3 + $0xe8] sm:$0xff]   ;;  %v10167_v59 = vld [vmem:[%s18849_s3 + $0xf0] sm:$0xff]  }
 0x609   : > { %v1295_v29 = vpack.c.bf16 %v1206_v7, %v1205_v61  ;;  %v1294_v46 = vpack.c.bf16 %v1204_v39, %v1203_v3  ;;  %v10168_v39 = vld [vmem:[%s18849_s3 + $0xf8] sm:$0xff]  }
 0x60b   : > { %v1643_v10 = vsel %vm1641_vm3, %v1295_v29, 0 }
 0x60c   : > { %9538 = vmatpush3.bf16.msra.mxu1 %v1643_v10 }
 0x60d   : > { %9539 = vmatprep.subr.bf16.mxu1 %v18852_v0 }
 0x610   : > { %9540 = vmatpush3.bf16.msra.mxu1 %v1294_v46 }
 0x611   : > { %9541 = vmatprep.subr.bf16.mxu1 %v18852_v0 }
 0x614   : > { %9542 = vmatpush3.bf16.msra.mxu1 %v1293_v16 }
 0x617   : > { %9544 = vmatmul.mubr.msk.bf16.vlgmr.msra.gmra.mxu1 %vm1511_vm4, %v10137_v12 }
 0x618   : > { %9547 = vmatprep.mubr.msk.bf16.mxu1 %vm10380_vm0, %v18852_v0 }
 0x61f   : > { %9548 = vmatmul.mubr.msk.bf16.gmra.mxu1 %vm1511_vm4, %v10138_v13  ;;  %v10169_v13 = vld [vmem:[%s18849_s3 + $0x100] sm:$0xff]  }
 0x620   : > { %9551 = vmatprep.mubr.msk.bf16.mxu1 %vm10380_vm0, %v18852_v0 }
 0x627   : > { %9552 = vmatmul.mubr.msk.bf16.gmra.mxu1 %vm1511_vm4, %v10139_v22 }
 0x628   : > { %9555 = vmatprep.mubr.msk.bf16.mxu1 %vm10380_vm0, %v18852_v0 }
 0x62f   : > { %9556 = vmatmul.mubr.msk.bf16.gmra.mxu1 %vm1511_vm4, %v10140_v26 }
 0x630   : > { %9559 = vmatprep.mubr.msk.bf16.mxu1 %vm10380_vm0, %v18852_v0 }
 0x637   : > { %9560 = vmatmul.mubr.msk.bf16.gmra.mxu1 %vm1511_vm4, %v10141_v28 }
 0x638   : > { %9563 = vmatprep.mubr.msk.bf16.mxu1 %vm10380_vm0, %v18852_v0 }
 0x63f   : > { %9564 = vmatmul.mubr.msk.bf16.gmra.mxu1 %vm1511_vm4, %v10142_v19 }
 0x640   : > { %9567 = vmatprep.mubr.msk.bf16.mxu1 %vm10380_vm0, %v18852_v0 }
 0x647   : > { %9568 = vmatmul.mubr.msk.bf16.gmra.mxu1 %vm1511_vm4, %v10143_v41  ;;  %v10170_v41 = vld [vmem:[%s18849_s3 + $0x108] sm:$0xff]  }
 0x648   : > { %9571 = vmatprep.mubr.msk.bf16.mxu1 %vm10380_vm0, %v18852_v0 }
 0x64f   : > { %9572 = vmatmul.mubr.msk.bf16.gmra.mxu1 %vm1511_vm4, %v10144_v30 }
 0x650   : > { %9575 = vmatprep.mubr.msk.bf16.mxu1 %vm10380_vm0, %v18852_v0 }
 0x657   : > { %9576 = vmatmul.mubr.msk.bf16.gmra.mxu1 %vm1511_vm4, %v10145_v43 }
 0x658   : > { %9579 = vmatprep.mubr.msk.bf16.mxu1 %vm10380_vm0, %v18852_v0 }
 0x65f   : > { %9580 = vmatmul.mubr.msk.bf16.gmra.mxu1 %vm1511_vm4, %v10146_v18 }
 0x660   : > { %9583 = vmatprep.mubr.msk.bf16.mxu1 %vm10380_vm0, %v18852_v0 }
 0x667   : > { %9584 = vmatmul.mubr.msk.bf16.gmra.mxu1 %vm1511_vm4, %v10147_v34 }
 0x668   : > { %9587 = vmatprep.mubr.msk.bf16.mxu1 %vm10380_vm0, %v18852_v0 }
 0x66f   : > { %9588 = vmatmul.mubr.msk.bf16.gmra.mxu1 %vm1511_vm4, %v10148_v15  ;;  %v10171_v15 = vld [vmem:[%s18849_s3 + $0x110] sm:$0xff]  }
 0x670   : > { %9591 = vmatprep.mubr.msk.bf16.mxu1 %vm10380_vm0, %v18852_v0 }
 0x677   : > { %9592 = vmatmul.mubr.msk.bf16.gmra.mxu1 %vm1511_vm4, %v10149_v31 }
 0x678   : > { %9595 = vmatprep.mubr.msk.bf16.mxu1 %vm10380_vm0, %v18852_v0 }
 0x67f   : > { %9596 = vmatmul.mubr.msk.bf16.gmra.mxu1 %vm1511_vm4, %v10150_v40 }
 0x680   : > { %9599 = vmatprep.mubr.msk.bf16.mxu1 %vm10380_vm0, %v18852_v0 }
 0x687   : > { %9600 = vmatmul.mubr.msk.bf16.gmra.mxu1 %vm1511_vm4, %v10151_v49 }
 0x688   : > { %9603 = vmatprep.mubr.msk.bf16.mxu1 %vm10380_vm0, %v18852_v0 }
 0x68f   : > { %9604 = vmatmul.mubr.msk.bf16.gmra.mxu1 %vm1511_vm4, %v10152_v42 }
 0x690   : > { %9607 = vmatprep.mubr.msk.bf16.mxu1 %vm10380_vm0, %v18852_v0 }
 0x697   : > { %9608 = vmatmul.mubr.msk.bf16.gmra.mxu1 %vm1511_vm4, %v10153_v20  ;;  %v10172_v20 = vld [vmem:[%s18849_s3 + $0x118] sm:$0xff]  }
 0x698   : > { %9611 = vmatprep.mubr.msk.bf16.mxu1 %vm10380_vm0, %v18852_v0 }
 0x69f   : > { %9612 = vmatmul.mubr.msk.bf16.gmra.mxu1 %vm1511_vm4, %v10154_v50 }
 0x6a0   : > { %9615 = vmatprep.mubr.msk.bf16.mxu1 %vm10380_vm0, %v18852_v0 }
 0x6a7   : > { %9616 = vmatmul.mubr.msk.bf16.gmra.mxu1 %vm1511_vm4, %v10155_v21 }
 0x6a8   : > { %9619 = vmatprep.mubr.msk.bf16.mxu1 %vm10380_vm0, %v18852_v0 }
 0x6af   : > { %9620 = vmatmul.mubr.msk.bf16.gmra.mxu1 %vm1511_vm4, %v10156_v37 }
 0x6b0   : > { %9623 = vmatprep.mubr.msk.bf16.mxu1 %vm10380_vm0, %v18852_v0 }
 0x6b7   : > { %9624 = vmatmul.mubr.msk.bf16.gmra.mxu1 %vm1511_vm4, %v10157_v14 }
 0x6b8   : > { %9627 = vmatprep.mubr.msk.bf16.mxu1 %vm10380_vm0, %v18852_v0 }
 0x6bf   : > { %9628 = vmatmul.mubr.msk.bf16.gmra.mxu1 %vm1511_vm4, %v10158_v17  ;;  %v10173_v17 = vld [vmem:[%s18849_s3 + $0x120] sm:$0xff]  }
 0x6c0   : > { %9631 = vmatprep.mubr.msk.bf16.mxu1 %vm10380_vm0, %v18852_v0 }
 0x6c7   : > { %9632 = vmatmul.mubr.msk.bf16.gmra.mxu1 %vm1511_vm4, %v10159_v23 }
 0x6c8   : > { %9635 = vmatprep.mubr.msk.bf16.mxu1 %vm10380_vm0, %v18852_v0 }
 0x6cf   : > { %9636 = vmatmul.mubr.msk.bf16.gmra.mxu1 %vm1511_vm4, %v10160_v55 }
 0x6d0   : > { %9639 = vmatprep.mubr.msk.bf16.mxu1 %vm10380_vm0, %v18852_v0 }
 0x6d7   : > { %v11134_v52 = vpop.f32.mrf.mxu1  ;;  %9640 = vmatmul.mubr.msk.bf16.gmra.mxu1 %vm1511_vm4, %v10161_v53 }
 0x6d8   : > { %19447 = vst [vmem:[#allocation3_spill] sm:$0xff] %v11134_v52  ;;  %3971 = vrot.lane.b32.xlu0 %v11134_v52, %s10382_s6  ;;  %9643 = vmatprep.mubr.msk.bf16.mxu1 %vm10380_vm0, %v18852_v0 }
 0x6d9   : > { %v9545_v16 = vpop.f32.mrf.mxu1 }
 0x6db   : > { %v11141_v11 = vpop.f32.mrf.mxu1 }
 0x6dc   : > { %19448 = vst [vmem:[#allocation4_spill] sm:$0xff] %v11141_v11  ;;  %4702 = vrot.lane.b32.xlu0 %v11134_v52, %s10381_s30  ;;  %3973 = vrot.lane.b32.xlu1 %v11141_v11, %s10382_s6 }
 0x6dd   : > { %v9546_v60 = vpop.f32.mrf.mxu1 }
 0x6df   : > { %v11150_v8 = vpop.f32.mrf.mxu1  ;;  %9644 = vmatmul.mubr.msk.bf16.gmra.mxu1 %vm1511_vm4, %v10162_v63  ;;  %v10174_v63 = vld [vmem:[%s18849_s3 + $0x128] sm:$0xff]  }
 0x6e0   : > { %19449 = vst [vmem:[#allocation5_spill] sm:$0xff] %v11150_v8  ;;  %4704 = vrot.lane.b32.xlu1 %v11141_v11, %s10381_s30  ;;  %3975 = vrot.lane.b32.xlu0 %v11150_v8, %s10382_s6 }
 0x6e1   : > { %v9549_v38 = vpop.f32.mrf.mxu1  ;;  %9647 = vmatprep.mubr.msk.bf16.mxu1 %vm10380_vm0, %v18852_v0 }
 0x6e3   : > { %v11159_v57 = vpop.f32.mrf.mxu1 }
 0x6e4   : > { %19450 = vst [vmem:[#allocation6_spill] sm:$0xff] %v11159_v57  ;;  %4706 = vrot.lane.b32.xlu0 %v11150_v8, %s10381_s30  ;;  %3977 = vrot.lane.b32.xlu1 %v11159_v57, %s10382_s6 }
 0x6e5   : > { %v9550_v47 = vpop.f32.mrf.mxu1 }
 0x6e7   : > { %v11168_v32 = vpop.f32.mrf.mxu1  ;;  %9648 = vmatmul.mubr.msk.bf16.gmra.mxu1 %vm1511_vm4, %v10163_v62 }
 0x6e8   : > { %19451 = vst [vmem:[#allocation7_spill] sm:$0xff] %v11168_v32  ;;  %4708 = vrot.lane.b32.xlu1 %v11159_v57, %s10381_s30  ;;  %3979 = vrot.lane.b32.xlu0 %v11168_v32, %s10382_s6 }
 0x6e9   : > { %v9553_v54 = vpop.f32.mrf.mxu1  ;;  %9651 = vmatprep.mubr.msk.bf16.mxu1 %vm10380_vm0, %v18852_v0 }
 0x6ea   : > { %v10175_v54 = vld [vmem:[%s18849_s3 + $0x130] sm:$0xff]  }
 0x6eb   : > { %v11177_v24 = vpop.f32.mrf.mxu1 }
 0x6ec   : > { %19452 = vst [vmem:[#allocation8_spill] sm:$0xff] %v11177_v24  ;;  %4710 = vrot.lane.b32.xlu0 %v11168_v32, %s10381_s30  ;;  %3981 = vrot.lane.b32.xlu1 %v11177_v24, %s10382_s6 }
 0x6ed   : > { %v9554_v1 = vpop.f32.mrf.mxu1 }
 0x6ef   : > { %v11186_v44 = vpop.f32.mrf.mxu1  ;;  %9652 = vmatmul.mubr.msk.bf16.gmra.mxu1 %vm1511_vm4, %v10164_v25 }
 0x6f0   : > { %19453 = vst [vmem:[#allocation9_spill] sm:$0xff] %v11186_v44  ;;  %4712 = vrot.lane.b32.xlu1 %v11177_v24, %s10381_s30  ;;  %3983 = vrot.lane.b32.xlu0 %v11186_v44, %s10382_s6 }
 0x6f1   : > { %v9557_v35 = vpop.f32.mrf.mxu1  ;;  %9655 = vmatprep.mubr.msk.bf16.mxu1 %vm10380_vm0, %v18852_v0 }
 0x6f3   : > { %v11195_v45 = vpop.f32.mrf.mxu1 }
 0x6f4   : > { %19454 = vst [vmem:[#allocation10_spill] sm:$0xff] %v11195_v45  ;;  %4714 = vrot.lane.b32.xlu0 %v11186_v44, %s10381_s30  ;;  %3985 = vrot.lane.b32.xlu1 %v11195_v45, %s10382_s6 }
 0x6f5   : > { %v9558_v51 = vpop.f32.mrf.mxu1 }
 0x6f7   : > { %v11204_v9 = vpop.f32.mrf.mxu1  ;;  %9656 = vmatmul.mubr.msk.bf16.gmra.mxu1 %vm1511_vm4, %v10165_v36 }
 0x6f8   : > { %19455 = vst [vmem:[#allocation11_spill] sm:$0xff] %v11204_v9  ;;  %4716 = vrot.lane.b32.xlu1 %v11195_v45, %s10381_s30  ;;  %3987 = vrot.lane.b32.xlu0 %v11204_v9, %s10382_s6 }
 0x6f9   : > { %v9561_v33 = vpop.f32.mrf.mxu1  ;;  %9659 = vmatprep.mubr.msk.bf16.mxu1 %vm10380_vm0, %v18852_v0 }
 0x6fa   : > { %v10176_v33 = vld [vmem:[%s18849_s3 + $0x138] sm:$0xff]  }
 0x6fb   : > { %v11213_v2 = vpop.f32.mrf.mxu1 }
 0x6fc   : > { %19456 = vst [vmem:[#allocation12_spill] sm:$0xff] %v11213_v2  ;;  %4718 = vrot.lane.b32.xlu0 %v11204_v9, %s10381_s30  ;;  %3989 = vrot.lane.b32.xlu1 %v11213_v2, %s10382_s6 }
 0x6fd   : > { %v9562_v27 = vpop.f32.mrf.mxu1 }
 0x6ff   : > { %v11222_v58 = vpop.f32.mrf.mxu1  ;;  %9660 = vmatmul.mubr.msk.bf16.gmra.mxu1 %vm1511_vm4, %v10166_v5 }
 0x700   : > { %19457 = vst [vmem:[#allocation13_spill] sm:$0xff] %v11222_v58  ;;  %4720 = vrot.lane.b32.xlu1 %v11213_v2, %s10381_s30  ;;  %3991 = vrot.lane.b32.xlu0 %v11222_v58, %s10382_s6 }
 0x701   : > { %v9565_v6 = vpop.f32.mrf.mxu1  ;;  %9663 = vmatprep.mubr.msk.bf16.mxu1 %vm10380_vm0, %v18852_v0 }
 0x703   : > { %v11231_v56 = vpop.f32.mrf.mxu1 }
 0x704   : > { %19458 = vst [vmem:[#allocation14_spill] sm:$0xff] %v11231_v56  ;;  %4722 = vrot.lane.b32.xlu0 %v11222_v58, %s10381_s30  ;;  %3993 = vrot.lane.b32.xlu1 %v11231_v56, %s10382_s6 }
 0x705   : > { %v9566_v4 = vpop.f32.mrf.mxu1 }
 0x707   : > { %v11240_v61 = vpop.f32.mrf.mxu1  ;;  %9664 = vmatmul.mubr.msk.bf16.gmra.mxu1 %vm1511_vm4, %v10167_v59 }
 0x708   : > { %19459 = vst [vmem:[#allocation15_spill] sm:$0xff] %v11240_v61  ;;  %4724 = vrot.lane.b32.xlu1 %v11231_v56, %s10381_s30  ;;  %3995 = vrot.lane.b32.xlu0 %v11240_v61, %s10382_s6 }
 0x709   : > { %v9569_v7 = vpop.f32.mrf.mxu1  ;;  %9667 = vmatprep.mubr.msk.bf16.mxu1 %vm10380_vm0, %v18852_v0 }
 0x70b   : > { %v11249_v3 = vpop.f32.mrf.mxu1 }
 0x70c   : > { %19460 = vst [vmem:[#allocation16_spill] sm:$0xff] %v11249_v3  ;;  %4726 = vrot.lane.b32.xlu0 %v11240_v61, %s10381_s30  ;;  %3997 = vrot.lane.b32.xlu1 %v11249_v3, %s10382_s6 }
 0x70d   : > { %v9570_v29 = vpop.f32.mrf.mxu1 }
 0x70f   : > { %v11258_v46 = vpop.f32.mrf.mxu1  ;;  %9668 = vmatmul.mubr.msk.bf16.gmra.mxu1 %vm1511_vm4, %v10168_v39 }
 0x710   : > { %19461 = vst [vmem:[#allocation17_spill] sm:$0xff] %v11258_v46  ;;  %4728 = vrot.lane.b32.xlu1 %v11249_v3, %s10381_s30  ;;  %3999 = vrot.lane.b32.xlu0 %v11258_v46, %s10382_s6 }
 0x711   : > { %v9573_v10 = vpop.f32.mrf.mxu1  ;;  %9671 = vmatprep.mubr.msk.bf16.mxu1 %vm10380_vm0, %v18852_v0 }
 0x712   : > { %v10177_v10 = vld [vmem:[%s18849_s3 + $0x140] sm:$0xff]  }
 0x713   : > { %v11267_v12 = vpop.f32.mrf.mxu1 }
 0x714   : > { %19462 = vst [vmem:[#allocation18_spill] sm:$0xff] %v11267_v12  ;;  %4730 = vrot.lane.b32.xlu0 %v11258_v46, %s10381_s30  ;;  %4001 = vrot.lane.b32.xlu1 %v11267_v12, %s10382_s6 }
 0x715   : > { %v9574_v22 = vpop.f32.mrf.mxu1 }
 0x717   : > { %v11276_v26 = vpop.f32.mrf.mxu1  ;;  %9672 = vmatmul.mubr.msk.bf16.gmra.mxu1 %vm1511_vm4, %v10169_v13 }
 0x718   : > { %19463 = vst [vmem:[#allocation19_spill] sm:$0xff] %v11276_v26  ;;  %4732 = vrot.lane.b32.xlu1 %v11267_v12, %s10381_s30  ;;  %4003 = vrot.lane.b32.xlu0 %v11276_v26, %s10382_s6 }
 0x719   : > { %v9577_v28 = vpop.f32.mrf.mxu1  ;;  %9675 = vmatprep.mubr.msk.bf16.mxu1 %vm10380_vm0, %v18852_v0 }
 0x71b   : > { %v11285_v19 = vpop.f32.mrf.mxu1 }
 0x71c   : > { %19464 = vst [vmem:[#allocation20_spill] sm:$0xff] %v11285_v19  ;;  %4734 = vrot.lane.b32.xlu0 %v11276_v26, %s10381_s30  ;;  %4005 = vrot.lane.b32.xlu1 %v11285_v19, %s10382_s6 }
 0x71d   : > { %v9578_v30 = vpop.f32.mrf.mxu1 }
 0x71f   : > { %v11294_v43 = vpop.f32.mrf.mxu1  ;;  %9676 = vmatmul.mubr.msk.bf16.gmra.mxu1 %vm1511_vm4, %v10170_v41 }
 0x720   : > { %19465 = vst [vmem:[#allocation21_spill] sm:$0xff] %v11294_v43  ;;  %4736 = vrot.lane.b32.xlu1 %v11285_v19, %s10381_s30  ;;  %4007 = vrot.lane.b32.xlu0 %v11294_v43, %s10382_s6 }
 0x721   : > { %v9581_v18 = vpop.f32.mrf.mxu1  ;;  %9679 = vmatprep.mubr.msk.bf16.mxu1 %vm10380_vm0, %v18852_v0 }
 0x723   : > { %v11303_v34 = vpop.f32.mrf.mxu1 }
 0x724   : > { %19466 = vst [vmem:[#allocation22_spill] sm:$0xff] %v11303_v34  ;;  %4738 = vrot.lane.b32.xlu0 %v11294_v43, %s10381_s30  ;;  %4009 = vrot.lane.b32.xlu1 %v11303_v34, %s10382_s6 }
 0x725   : > { %v9582_v31 = vpop.f32.mrf.mxu1 }
 0x727   : > { %v11312_v40 = vpop.f32.mrf.mxu1  ;;  %9680 = vmatmul.mubr.msk.bf16.gmra.mxu1 %vm1511_vm4, %v10171_v15 }
 0x728   : > { %19467 = vst [vmem:[#allocation23_spill] sm:$0xff] %v11312_v40  ;;  %4740 = vrot.lane.b32.xlu1 %v11303_v34, %s10381_s30  ;;  %4011 = vrot.lane.b32.xlu0 %v11312_v40, %s10382_s6 }
 0x729   : > { %v9585_v49 = vpop.f32.mrf.mxu1  ;;  %9683 = vmatprep.mubr.msk.bf16.mxu1 %vm10380_vm0, %v18852_v0 }
 0x72a   : > { %v10178_v49 = vld [vmem:[%s18849_s3 + $0x148] sm:$0xff]  }
 0x72b   : > { %v11321_v42 = vpop.f32.mrf.mxu1 }
 0x72c   : > { %19468 = vst [vmem:[#allocation24_spill] sm:$0xff] %v11321_v42  ;;  %4742 = vrot.lane.b32.xlu0 %v11312_v40, %s10381_s30  ;;  %4013 = vrot.lane.b32.xlu1 %v11321_v42, %s10382_s6 }
 0x72d   : > { %v9586_v50 = vpop.f32.mrf.mxu1 }
 0x72f   : > { %v11330_v21 = vpop.f32.mrf.mxu1  ;;  %9684 = vmatmul.mubr.msk.bf16.gmra.mxu1 %vm1511_vm4, %v10172_v20 }
 0x730   : > { %19469 = vst [vmem:[#allocation25_spill] sm:$0xff] %v11330_v21  ;;  %4744 = vrot.lane.b32.xlu1 %v11321_v42, %s10381_s30  ;;  %4015 = vrot.lane.b32.xlu0 %v11330_v21, %s10382_s6 }
 0x731   : > { %v9589_v37 = vpop.f32.mrf.mxu1  ;;  %9687 = vmatprep.mubr.msk.bf16.mxu1 %vm10380_vm0, %v18852_v0 }
 0x733   : > { %v11339_v14 = vpop.f32.mrf.mxu1 }
 0x734   : > { %19470 = vst [vmem:[#allocation26_spill] sm:$0xff] %v11339_v14  ;;  %4746 = vrot.lane.b32.xlu0 %v11330_v21, %s10381_s30  ;;  %4017 = vrot.lane.b32.xlu1 %v11339_v14, %s10382_s6 }
 0x735   : > { %v9590_v23 = vpop.f32.mrf.mxu1 }
 0x737   : > { %v11348_v55 = vpop.f32.mrf.mxu1  ;;  %9688 = vmatmul.mubr.msk.bf16.gmra.mxu1 %vm1511_vm4, %v10173_v17 }
 0x738   : > { %19471 = vst [vmem:[#allocation27_spill] sm:$0xff] %v11348_v55  ;;  %4748 = vrot.lane.b32.xlu1 %v11339_v14, %s10381_s30  ;;  %4019 = vrot.lane.b32.xlu0 %v11348_v55, %s10382_s6 }
 0x739   : > { %v9593_v53 = vpop.f32.mrf.mxu1  ;;  %9691 = vmatprep.mubr.msk.bf16.mxu1 %vm10380_vm0, %v18852_v0 }
 0x73b   : > { %v11357_v16 = vpop.f32.mrf.mxu1 }
 0x73c   : > { %19472 = vst [vmem:[#allocation28_spill] sm:$0xff] %v11357_v16  ;;  %4750 = vrot.lane.b32.xlu0 %v11348_v55, %s10381_s30  ;;  %4021 = vrot.lane.b32.xlu1 %v11357_v16, %s10382_s6 }
 0x73d   : > { %v9594_v60 = vpop.f32.mrf.mxu1 }
 0x73f   : > { %v11366_v38 = vpop.f32.mrf.mxu1  ;;  %9692 = vmatmul.mubr.msk.bf16.gmra.mxu1 %vm1511_vm4, %v10174_v63 }
 0x740   : > { %19473 = vst [vmem:[#allocation29_spill] sm:$0xff] %v11366_v38  ;;  %4752 = vrot.lane.b32.xlu1 %v11357_v16, %s10381_s30  ;;  %4023 = vrot.lane.b32.xlu0 %v11366_v38, %s10382_s6 }
 0x741   : > { %v9597_v62 = vpop.f32.mrf.mxu1  ;;  %9695 = vmatprep.mubr.msk.bf16.mxu1 %vm10380_vm0, %v18852_v0 }
 0x742   : > { %v10179_v62 = vld [vmem:[%s18849_s3 + $0x150] sm:$0x1f]  }
 0x743   : > { %v11375_v47 = vpop.f32.mrf.mxu1 }
 0x744   : > { %19474 = vst [vmem:[#allocation30_spill] sm:$0xff] %v11375_v47  ;;  %4754 = vrot.lane.b32.xlu0 %v11366_v38, %s10381_s30  ;;  %4025 = vrot.lane.b32.xlu1 %v11375_v47, %s10382_s6 }
 0x745   : > { %v9598_v25 = vpop.f32.mrf.mxu1 }
 0x747   : > { %v11384_v1 = vpop.f32.mrf.mxu1  ;;  %9696 = vmatmul.mubr.msk.bf16.gmra.mxu1 %vm1511_vm4, %v10175_v54 }
 0x748   : > { %19475 = vst [vmem:[#allocation31_spill] sm:$0xff] %v11384_v1  ;;  %4756 = vrot.lane.b32.xlu1 %v11375_v47, %s10381_s30  ;;  %4027 = vrot.lane.b32.xlu0 %v11384_v1, %s10382_s6 }
 0x749   : > { %v9601_v35 = vpop.f32.mrf.mxu1  ;;  %9699 = vmatprep.mubr.msk.bf16.mxu1 %vm10380_vm0, %v18852_v0 }
 0x74a   : > { %v11393_v36 = vpop.permute.xlu0 %3971 }
 0x74b   : > { %19476 = vst [vmem:[#allocation32_spill] sm:$0xff] %v11393_v36  ;;  %v11395_v51 = vpop.f32.mrf.mxu1 }
 0x74c   : > { %19477 = vst [vmem:[#allocation33_spill] sm:$0xff] %v11395_v51  ;;  %4758 = vrot.lane.b32.xlu0 %v11384_v1, %s10381_s30  ;;  %4029 = vrot.lane.b32.xlu1 %v11395_v51, %s10382_s6 }
 0x74d   : > { %v9602_v5 = vpop.f32.mrf.mxu1 }
 0x74e   : > { %v11404_v27 = vpop.permute.xlu0 %4702  ;;  %v11406_v6 = vpop.permute.xlu1 %3973 }
 0x74f   : > { %19478 = vst [vmem:[#allocation34_spill] sm:$0xff] %v11404_v27  ;;  %19479 = vst [vmem:[#allocation35_spill] sm:$0xff] %v11406_v6  ;;  %v11408_v59 = vpop.f32.mrf.mxu1  ;;  %9700 = vmatmul.mubr.msk.bf16.gmra.mxu1 %vm1511_vm4, %v10176_v33 }
 0x750   : > { %19480 = vst [vmem:[#allocation36_spill] sm:$0xff] %v11408_v59  ;;  %4760 = vrot.lane.b32.xlu1 %v11395_v51, %s10381_s30  ;;  %4031 = vrot.lane.b32.xlu0 %v11408_v59, %s10382_s6 }
 0x751   : > { %v9605_v4 = vpop.f32.mrf.mxu1  ;;  %9703 = vmatprep.mubr.msk.bf16.mxu1 %vm10380_vm0, %v18852_v0 }
 0x752   : > { %v11417_v7 = vpop.permute.xlu1 %4704  ;;  %v11419_v39 = vpop.permute.xlu0 %3975 }
 0x753   : > { %19481 = vst [vmem:[#allocation37_spill] sm:$0xff] %v11417_v7  ;;  %19482 = vst [vmem:[#allocation38_spill] sm:$0xff] %v11419_v39  ;;  %v11421_v29 = vpop.f32.mrf.mxu1 }
 0x754   : > { %19483 = vst [vmem:[#allocation39_spill] sm:$0xff] %v11421_v29  ;;  %4762 = vrot.lane.b32.xlu0 %v11408_v59, %s10381_s30  ;;  %4033 = vrot.lane.b32.xlu1 %v11421_v29, %s10382_s6 }
 0x755   : > { %v9606_v13 = vpop.f32.mrf.mxu1 }
 0x756   : > { %v11430_v22 = vpop.permute.xlu0 %4706  ;;  %v11432_v28 = vpop.permute.xlu1 %3977 }
 0x757   : > { %19484 = vst [vmem:[#allocation40_spill] sm:$0xff] %v11430_v22  ;;  %19485 = vst [vmem:[#allocation41_spill] sm:$0xff] %v11432_v28  ;;  %v11434_v41 = vpop.f32.mrf.mxu1  ;;  %9704 = vmatmul.mubr.msk.bf16.gmra.mxu1 %vm1511_vm4, %v10177_v10 }
 0x758   : > { %19486 = vst [vmem:[#allocation42_spill] sm:$0xff] %v11434_v41  ;;  %4764 = vrot.lane.b32.xlu1 %v11421_v29, %s10381_s30  ;;  %4035 = vrot.lane.b32.xlu0 %v11434_v41, %s10382_s6 }
 0x759   : > { %v9609_v30 = vpop.f32.mrf.mxu1  ;;  %9707 = vmatprep.mubr.msk.bf16.mxu1 %vm10380_vm0, %v18852_v0 }
 0x75a   : > { %v11443_v18 = vpop.permute.xlu1 %4708  ;;  %v11445_v15 = vpop.permute.xlu0 %3979 }
 0x75b   : > { %19487 = vst [vmem:[#allocation43_spill] sm:$0xff] %v11443_v18  ;;  %19488 = vst [vmem:[#allocation44_spill] sm:$0xff] %v11445_v15  ;;  %v11447_v31 = vpop.f32.mrf.mxu1 }
 0x75c   : > { %19489 = vst [vmem:[#allocation45_spill] sm:$0xff] %v11447_v31  ;;  %4766 = vrot.lane.b32.xlu0 %v11434_v41, %s10381_s30  ;;  %4037 = vrot.lane.b32.xlu1 %v11447_v31, %s10382_s6 }
 0x75d   : > { %v9610_v20 = vpop.f32.mrf.mxu1 }
 0x75e   : > { %v11456_v50 = vpop.permute.xlu0 %4710  ;;  %v11458_v37 = vpop.permute.xlu1 %3981 }
 0x75f   : > { %19490 = vst [vmem:[#allocation46_spill] sm:$0xff] %v11456_v50  ;;  %19491 = vst [vmem:[#allocation47_spill] sm:$0xff] %v11458_v37  ;;  %v11460_v17 = vpop.f32.mrf.mxu1  ;;  %9708 = vmatmul.mubr.msk.bf16.gmra.mxu1 %vm1511_vm4, %v10178_v49 }
 0x760   : > { %19492 = vst [vmem:[#allocation48_spill] sm:$0xff] %v11460_v17  ;;  %4768 = vrot.lane.b32.xlu1 %v11447_v31, %s10381_s30  ;;  %4039 = vrot.lane.b32.xlu0 %v11460_v17, %s10382_s6 }
 0x761   : > { %v9613_v23 = vpop.f32.mrf.mxu1  ;;  %9711 = vmatprep.mubr.msk.bf16.mxu1 %vm10380_vm0, %v18852_v0 }
 0x762   : > { %v11469_v53 = vpop.permute.xlu1 %4712  ;;  %v11471_v63 = vpop.permute.xlu0 %3983 }
 0x763   : > { %19493 = vst [vmem:[#allocation49_spill] sm:$0xff] %v11469_v53  ;;  %19494 = vst [vmem:[#allocation50_spill] sm:$0xff] %v11471_v63  ;;  %v11473_v60 = vpop.f32.mrf.mxu1 }
 0x764   : > { %19495 = vst [vmem:[#allocation51_spill] sm:$0xff] %v11473_v60  ;;  %4770 = vrot.lane.b32.xlu0 %v11460_v17, %s10381_s30  ;;  %4041 = vrot.lane.b32.xlu1 %v11473_v60, %s10382_s6 }
 0x765   : > { %v9614_v54 = vpop.f32.mrf.mxu1 }
 0x766   : > { %v11482_v25 = vpop.permute.xlu0 %4714  ;;  %v11484_v35 = vpop.permute.xlu1 %3985 }
 0x767   : > { %19496 = vst [vmem:[#allocation52_spill] sm:$0xff] %v11482_v25  ;;  %19497 = vst [vmem:[#allocation53_spill] sm:$0xff] %v11484_v35  ;;  %v11486_v33 = vpop.f32.mrf.mxu1  ;;  %9712 = vmatmul.mubr.msk.bf16.gmra.mxu1 %vm1511_vm4, %v10179_v62 }
 0x768   : > { %19498 = vst [vmem:[#allocation54_spill] sm:$0xff] %v11486_v33  ;;  %4772 = vrot.lane.b32.xlu1 %v11473_v60, %s10381_s30  ;;  %4043 = vrot.lane.b32.xlu0 %v11486_v33, %s10382_s6 }
 0x769   : > { %v9617_v5 = vpop.f32.mrf.mxu1 }
 0x76a   : > { %v11493_v4 = vpop.permute.xlu1 %4716  ;;  %v11495_v10 = vpop.permute.xlu0 %3987 }
 0x76b   : > { %19499 = vst [vmem:[#allocation55_spill] sm:$0xff] %v11493_v4  ;;  %19500 = vst [vmem:[#allocation56_spill] sm:$0xff] %v11495_v10  ;;  %v11497_v13 = vpop.f32.mrf.mxu1 }
 0x76c   : > { %19501 = vst [vmem:[#allocation57_spill] sm:$0xff] %v11497_v13  ;;  %4774 = vrot.lane.b32.xlu0 %v11486_v33, %s10381_s30  ;;  %4045 = vrot.lane.b32.xlu1 %v11497_v13, %s10382_s6 }
 0x76d   : > { %v9618_v30 = vpop.f32.mrf.mxu1 }
 0x76e   : > { %v11503_v49 = vpop.permute.xlu0 %4718  ;;  %v11505_v20 = vpop.permute.xlu1 %3989 }
 0x76f   : > { %19502 = vst [vmem:[#allocation58_spill] sm:$0xff] %v11503_v49  ;;  %19503 = vst [vmem:[#allocation59_spill] sm:$0xff] %v11505_v20  ;;  %v11507_v23 = vpop.f32.mrf.mxu1 }
 0x770   : > { %19504 = vst [vmem:[#allocation60_spill] sm:$0xff] %v11507_v23  ;;  %4776 = vrot.lane.b32.xlu1 %v11497_v13, %s10381_s30  ;;  %4047 = vrot.lane.b32.xlu0 %v11507_v23, %s10382_s6 }
 0x771   : > { %v9621_v62 = vpop.f32.mrf.mxu1 }
 0x772   : > { %v11513_v54 = vpop.permute.xlu1 %4720  ;;  %v11515_v5 = vpop.permute.xlu0 %3991 }
 0x773   : > { %19505 = vst [vmem:[#allocation61_spill] sm:$0xff] %v11513_v54  ;;  %19506 = vst [vmem:[#allocation62_spill] sm:$0xff] %v11515_v5  ;;  %v11517_v0 = vpop.f32.mrf.mxu1 }
 0x774   : > { %19507 = vst [vmem:[#allocation63_spill] sm:$0xff] %v11517_v0  ;;  %4778 = vrot.lane.b32.xlu0 %v11507_v23, %s10381_s30  ;;  %4049 = vrot.lane.b32.xlu1 %v11517_v0, %s10382_s6 }
 0x775   : > { %v9622_v30 = vpop.f32.mrf.mxu1 }
 0x776   : > { %v11523_v48 = vpop.permute.xlu0 %4722  ;;  %v11525_v20 = vpop.permute.xlu1 %3993 }
 0x777   : > { %19508 = vst [vmem:[#allocation64_spill] sm:$0xff] %v11523_v48  ;;  %19509 = vst [vmem:[#allocation65_spill] sm:$0xff] %v11525_v20  ;;  %v11527_v10 = vpop.f32.mrf.mxu1 }
 0x778   : > { %19510 = vst [vmem:[#allocation66_spill] sm:$0xff] %v11527_v10  ;;  %4780 = vrot.lane.b32.xlu1 %v11517_v0, %s10381_s30  ;;  %4051 = vrot.lane.b32.xlu0 %v11527_v10, %s10382_s6 }
 0x779   : > { %v9625_v62 = vpop.f32.mrf.mxu1 }
 0x77a   : > { %v11533_v5 = vpop.permute.xlu1 %4724  ;;  %v11535_v54 = vpop.permute.xlu0 %3995 }
 0x77b   : > { %19511 = vst [vmem:[#allocation67_spill] sm:$0xff] %v11533_v5  ;;  %19512 = vst [vmem:[#allocation68_spill] sm:$0xff] %v11535_v54  ;;  %v11537_v49 = vpop.f32.mrf.mxu1 }
 0x77c   : > { %19513 = vst [vmem:[#allocation69_spill] sm:$0xff] %v11537_v49  ;;  %4782 = vrot.lane.b32.xlu0 %v11527_v10, %s10381_s30  ;;  %4053 = vrot.lane.b32.xlu1 %v11537_v49, %s10382_s6 }
 0x77d   : > { %v9626_v30 = vpop.f32.mrf.mxu1 }
 0x77e   : > { %v11543_v20 = vpop.permute.xlu0 %4726  ;;  %v11545_v48 = vpop.permute.xlu1 %3997 }
 0x77f   : > { %19514 = vst [vmem:[#allocation70_spill] sm:$0xff] %v11543_v20  ;;  %19515 = vst [vmem:[#allocation71_spill] sm:$0xff] %v11545_v48  ;;  %v11547_v35 = vpop.f32.mrf.mxu1 }
 0x780   : > { %19516 = vst [vmem:[#allocation72_spill] sm:$0xff] %v11547_v35  ;;  %4784 = vrot.lane.b32.xlu1 %v11537_v49, %s10381_s30  ;;  %4055 = vrot.lane.b32.xlu0 %v11547_v35, %s10382_s6 }
 0x781   : > { %v9629_v62 = vpop.f32.mrf.mxu1 }
 0x782   : > { %v11553_v54 = vpop.permute.xlu1 %4728  ;;  %v11555_v5 = vpop.permute.xlu0 %3999  ;;  %v11569_v62 = vmul.f32 %v11547_v35, %v11547_v35 }
 0x783   : > { %19517 = vst [vmem:[#allocation73_spill] sm:$0xff] %v11553_v54  ;;  %19518 = vst [vmem:[#allocation74_spill] sm:$0xff] %v11555_v5  ;;  %v1850_v4 = vpop.f32.mrf.mxu1  ;;  %v2066_v5 = vrot.slane %v11547_v35, 5 }
 0x784   : > { %v11557_v63 = vmul.f32 %v1850_v4, %v1850_v4  ;;  %4786 = vrot.lane.b32.xlu0 %v11547_v35, %s10381_s30  ;;  %v2067_v30 = vrot.slane %v1850_v4, 5  ;;  %19522 = vst [vmem:[#allocation78_spill] sm:$0xff] %v11569_v62 }
 0x785   : > { %v9630_v48 = vpop.f32.mrf.mxu1 }
 0x786   : > { %19519 = vst [vmem:[#allocation75_spill] sm:$0xff] %v11557_v63  ;;  %v11561_v20 = vpop.permute.xlu0 %4730  ;;  %v11563_v25 = vpop.permute.xlu1 %4001  ;;  %2716 = vrot.lane.b32.xlu1 %v11557_v63, %s10382_s6  ;;  %v11575_v4 = vsel %vm330_vm2, %v2066_v5, %v2067_v30 }
 0x787   : > { %19520 = vst [vmem:[#allocation76_spill] sm:$0xff] %v11561_v20  ;;  %19521 = vst [vmem:[#allocation77_spill] sm:$0xff] %v11563_v25  ;;  %v1855_v54 = vpop.f32.mrf.mxu1  ;;  %v11587_v53 = vmul.f32 %v11575_v4, %v11134_v52 }
 0x788   : > { %2714 = vrot.lane.b32.xlu0 %v11569_v62, %s10382_s6  ;;  %19523 = vst [vmem:[#allocation79_spill] sm:$0xff] %v11575_v4  ;;  %v2069_v15 = vrot.slane %v1855_v54, 5 }
 0x789   : > { %v9633_v48 = vpop.f32.mrf.mxu1  ;;  %19526 = vst [vmem:[#allocation82_spill] sm:$0xff] %v11587_v53 }
 0x78a   : > { %v11577_v20 = vpop.permute.xlu1 %4732  ;;  %v11579_v25 = vpop.permute.xlu0 %4003  ;;  %2892 = vrot.lane.b32.xlu1 %v11557_v63, %s10381_s30  ;;  %v11600_v28 = vsel %vm330_vm2, %v2067_v30, %v2069_v15 }
 0x78b   : > { %19524 = vst [vmem:[#allocation80_spill] sm:$0xff] %v11577_v20  ;;  %19525 = vst [vmem:[#allocation81_spill] sm:$0xff] %v11579_v25  ;;  %v1858_v37 = vpop.f32.mrf.mxu1  ;;  %v11624_v30 = vmul.f32 %v11600_v28, %v11141_v11 }
 0x78c   : > { %2890 = vrot.lane.b32.xlu0 %v11569_v62, %s10381_s30  ;;  %19529 = vst [vmem:[#allocation85_spill] sm:$0xff] %v11600_v28  ;;  %v2071_v6 = vrot.slane %v1858_v37, 5 }
 0x78d   : > { %v9634_v50 = vpop.f32.mrf.mxu1  ;;  %19534 = vst [vmem:[#allocation90_spill] sm:$0xff] %v11624_v30 }
 0x78e   : > { %v11589_v5 = vpop.permute.xlu0 %4734  ;;  %v11591_v48 = vpop.permute.xlu1 %4005  ;;  %2454 = vrot.lane.b32.xlu1 %v11587_v53, %s10381_s30 }
 0x78f   : > { %19527 = vst [vmem:[#allocation83_spill] sm:$0xff] %v11589_v5  ;;  %19528 = vst [vmem:[#allocation84_spill] sm:$0xff] %v11591_v48  ;;  %v11595_v25 = vpop.f32.mrf.mxu1 }
 0x790   : > { %3542 = vrot.lane.b32.xlu0 %v11575_v4, %s10382_s6 }
 0x791   : > { %v9637_v20 = vpop.f32.mrf.mxu1 }
 0x792   : > { %v11602_v18 = vpop.permute.xlu1 %4736  ;;  %v11604_v39 = vpop.permute.xlu0 %4007  ;;  %3544 = vrot.lane.b32.xlu1 %v11600_v28, %s10382_s6 }
 0x793   : > { %19530 = vst [vmem:[#allocation86_spill] sm:$0xff] %v11602_v18  ;;  %19531 = vst [vmem:[#allocation87_spill] sm:$0xff] %v11604_v39  ;;  %v11608_v50 = vpop.f32.mrf.mxu1  ;;  %v11626_v18 = vmul.f32 %v1855_v54, %v1855_v54 }
 0x794   : > { %4315 = vrot.lane.b32.xlu0 %v11575_v4, %s10381_s30 }
 0x795   : > { %v9638_v48 = vpop.f32.mrf.mxu1  ;;  %19535 = vst [vmem:[#allocation91_spill] sm:$0xff] %v11626_v18 }
 0x796   : > { %v11612_v5 = vpop.permute.xlu0 %4738  ;;  %v11614_v22 = vpop.permute.xlu1 %4009  ;;  %4317 = vrot.lane.b32.xlu1 %v11600_v28, %s10381_s30 }
 0x797   : > { %19532 = vst [vmem:[#allocation88_spill] sm:$0xff] %v11612_v5  ;;  %19533 = vst [vmem:[#allocation89_spill] sm:$0xff] %v11614_v22  ;;  %v11618_v20 = vpop.f32.mrf.mxu1  ;;  %v11636_v5 = vmul.f32 %v1858_v37, %v1858_v37 }
 0x798   : > { %2282 = vrot.lane.b32.xlu0 %v11587_v53, %s10382_s6 }
 0x799   : > { %v9641_v39 = vpop.f32.mrf.mxu1  ;;  %19538 = vst [vmem:[#allocation94_spill] sm:$0xff] %v11636_v5 }
 0x79a   : > { %v11628_v48 = vpop.permute.xlu1 %4740  ;;  %v11630_v4 = vpop.permute.xlu0 %4011  ;;  %2284 = vrot.lane.b32.xlu1 %v11624_v30, %s10382_s6 }
 0x79b   : > { %19536 = vst [vmem:[#allocation92_spill] sm:$0xff] %v11628_v48  ;;  %19537 = vst [vmem:[#allocation93_spill] sm:$0xff] %v11630_v4  ;;  %v11634_v22 = vpop.f32.mrf.mxu1  ;;  %v11651_v4 = vsel %vm330_vm2, %v2069_v15, %v2071_v6  ;;  %v2073_v15 = vrot.slane %v11595_v25, 5 }
 0x79c   : > { %2718 = vrot.lane.b32.xlu0 %v11626_v18, %s10382_s6  ;;  %19541 = vst [vmem:[#allocation97_spill] sm:$0xff] %v11651_v4 }
 0x79d   : > { %v9642_v28 = vpop.f32.mrf.mxu1  ;;  %v11681_v52 = vsel %vm330_vm2, %v2071_v6, %v2073_v15 }
 0x79e   : > { %v11640_v7 = vpop.permute.xlu0 %4742  ;;  %v11642_v39 = vpop.permute.xlu1 %4013  ;;  %2720 = vrot.lane.b32.xlu1 %v11636_v5, %s10382_s6  ;;  %19547 = vst [vmem:[#allocation103_spill] sm:$0xff] %v11681_v52 }
 0x79f   : > { %19539 = vst [vmem:[#allocation95_spill] sm:$0xff] %v11640_v7  ;;  %19540 = vst [vmem:[#allocation96_spill] sm:$0xff] %v11642_v39  ;;  %v11646_v54 = vpop.f32.mrf.mxu1  ;;  %v11665_v39 = vmul.f32 %v11651_v4, %v11150_v8 }
 0x7a0   : > { %2894 = vrot.lane.b32.xlu0 %v11626_v18, %s10381_s30 }
 0x7a1   : > { %v9645_v48 = vpop.f32.mrf.mxu1  ;;  %19544 = vst [vmem:[#allocation100_spill] sm:$0xff] %v11665_v39 }
 0x7a2   : > { %v11653_v36 = vpop.permute.xlu1 %4744  ;;  %v11655_v37 = vpop.permute.xlu0 %4015  ;;  %2896 = vrot.lane.b32.xlu1 %v11636_v5, %s10381_s30 }
 0x7a3   : > { %19542 = vst [vmem:[#allocation98_spill] sm:$0xff] %v11653_v36  ;;  %19543 = vst [vmem:[#allocation99_spill] sm:$0xff] %v11655_v37  ;;  %v11659_v28 = vpop.f32.mrf.mxu1 }
 0x7a4   : > { %2456 = vrot.lane.b32.xlu0 %v11624_v30, %s10381_s30  ;;  %v18867_v27 = vrot.slane %v11659_v28, 5  ;;  %v19612_v47 = vrot.slane %v11659_v28, 5 }
 0x7a5   : > { %v9646_v7 = vpop.f32.mrf.mxu1 }
 0x7a6   : > { %v11668_v48 = vpop.permute.xlu0 %4746  ;;  %v11670_v36 = vpop.permute.xlu1 %4017  ;;  %2458 = vrot.lane.b32.xlu1 %v11665_v39, %s10381_s30 }
 0x7a7   : > { %19545 = vst [vmem:[#allocation101_spill] sm:$0xff] %v11668_v48  ;;  %19546 = vst [vmem:[#allocation102_spill] sm:$0xff] %v11670_v36  ;;  %v11674_v37 = vpop.f32.mrf.mxu1 }
 0x7a8   : > { %v2085_v11 = vrot.slane %v11674_v37, 5  ;;  %3546 = vrot.lane.b32.xlu0 %v11651_v4, %s10382_s6 }
 0x7a9   : > { %v9649_v8 = vpop.f32.mrf.mxu1 }
 0x7aa   : > { %v11683_v7 = vpop.permute.xlu1 %4748  ;;  %v11685_v48 = vpop.permute.xlu0 %4019  ;;  %3548 = vrot.lane.b32.xlu1 %v11681_v52, %s10382_s6  ;;  %v11692_v36 = vsel %vm330_vm2, %v18867_v27, %v2085_v11 }
 0x7ab   : > { %19548 = vst [vmem:[#allocation104_spill] sm:$0xff] %v11683_v7  ;;  %19549 = vst [vmem:[#allocation105_spill] sm:$0xff] %v11685_v48  ;;  %v11694_v35 = vpop.f32.mrf.mxu1 }
 0x7ac   : > { %19550 = vst [vmem:[#allocation106_spill] sm:$0xff] %v11692_v36  ;;  %v2087_v49 = vrot.slane %v11694_v35, 5  ;;  %4319 = vrot.lane.b32.xlu0 %v11651_v4, %s10381_s30  ;;  %v11719_v4 = vmul.f32 %v11595_v25, %v11595_v25  ;;  %v2075_v25 = vrot.slane %v11608_v50, 5 }
 0x7ad   : > { %v9650_v8 = vpop.f32.mrf.mxu1 }
 0x7ae   : > { %v11700_v6 = vsel %vm330_vm2, %v2085_v11, %v2087_v49  ;;  %v11702_v48 = vpop.permute.xlu0 %4750  ;;  %v11704_v7 = vpop.permute.xlu1 %4021  ;;  %4321 = vrot.lane.b32.xlu1 %v11681_v52, %s10381_s30  ;;  %v11715_v8 = vmul.f32 %v11681_v52, %v11159_v57  ;;  %19555 = vst [vmem:[#allocation111_spill] sm:$0xff] %v11719_v4  ;;  %v11734_v52 = vmul.f32 %v11608_v50, %v11608_v50 }
 0x7af   : > { %19551 = vst [vmem:[#allocation107_spill] sm:$0xff] %v11700_v6  ;;  %19552 = vst [vmem:[#allocation108_spill] sm:$0xff] %v11702_v48  ;;  %v11708_v27 = vpop.f32.mrf.mxu1  ;;  %v11755_v50 = vsel %vm330_vm2, %v2073_v15, %v2075_v25 }
 0x7b0   : > { %19553 = vst [vmem:[#allocation109_spill] sm:$0xff] %v11704_v7  ;;  %v2089_v10 = vrot.slane %v11708_v27, 5  ;;  %2286 = vrot.lane.b32.xlu0 %v11665_v39, %s10382_s6  ;;  %19554 = vst [vmem:[#allocation110_spill] sm:$0xff] %v11715_v8  ;;  %v11773_v15 = vmul.f32 %v11755_v50, %v11168_v32 }
 0x7b1   : > { %v9653_v11 = vpop.f32.mrf.mxu1  ;;  %19559 = vst [vmem:[#allocation115_spill] sm:$0xff] %v11734_v52  ;;  %19563 = vst [vmem:[#allocation119_spill] sm:$0xff] %v11755_v50 }
 0x7b2   : > { %v11721_v7 = vpop.permute.xlu1 %4752  ;;  %v11723_v48 = vpop.permute.xlu0 %4023  ;;  %2288 = vrot.lane.b32.xlu1 %v11715_v8, %s10382_s6  ;;  %v11728_v0 = vsel %vm330_vm2, %v2087_v49, %v2089_v10  ;;  %19567 = vst [vmem:[#allocation123_spill] sm:$0xff] %v11773_v15 }
 0x7b3   : > { %19556 = vst [vmem:[#allocation112_spill] sm:$0xff] %v11721_v7  ;;  %19557 = vst [vmem:[#allocation113_spill] sm:$0xff] %v11723_v48  ;;  %v11730_v23 = vpop.f32.mrf.mxu1 }
 0x7b4   : > { %19558 = vst [vmem:[#allocation114_spill] sm:$0xff] %v11728_v0  ;;  %v2091_v11 = vrot.slane %v11730_v23, 5  ;;  %2722 = vrot.lane.b32.xlu0 %v11719_v4, %s10382_s6 }
 0x7b5   : > { %v9654_v48 = vpop.f32.mrf.mxu1 }
 0x7b6   : > { %v11741_v7 = vsel %vm330_vm2, %v2089_v10, %v2091_v11  ;;  %v11743_v57 = vpop.permute.xlu0 %4754  ;;  %v11745_v49 = vpop.permute.xlu1 %4025  ;;  %2724 = vrot.lane.b32.xlu1 %v11734_v52, %s10382_s6 }
 0x7b7   : > { %19560 = vst [vmem:[#allocation116_spill] sm:$0xff] %v11741_v7  ;;  %19561 = vst [vmem:[#allocation117_spill] sm:$0xff] %v11743_v57  ;;  %v11749_v13 = vpop.f32.mrf.mxu1 }
 0x7b8   : > { %19562 = vst [vmem:[#allocation118_spill] sm:$0xff] %v11745_v49  ;;  %v2093_v39 = vrot.slane %v11749_v13, 5  ;;  %2898 = vrot.lane.b32.xlu0 %v11719_v4, %s10381_s30 }
 0x7b9   : > { %v9657_v48 = vpop.f32.mrf.mxu1 }
 0x7ba   : > { %v11757_v10 = vpop.permute.xlu1 %4756  ;;  %v11759_v33 = vpop.permute.xlu0 %4027  ;;  %2900 = vrot.lane.b32.xlu1 %v11734_v52, %s10381_s30  ;;  %v11764_v49 = vsel %vm330_vm2, %v2091_v11, %v2093_v39  ;;  %v2077_v48 = vrot.slane %v11618_v20, 5 }
 0x7bb   : > { %19564 = vst [vmem:[#allocation120_spill] sm:$0xff] %v11757_v10  ;;  %19565 = vst [vmem:[#allocation121_spill] sm:$0xff] %v11759_v33  ;;  %v11766_v57 = vpop.f32.mrf.mxu1 }
 0x7bc   : > { %19566 = vst [vmem:[#allocation122_spill] sm:$0xff] %v11764_v49  ;;  %v2095_v30 = vrot.slane %v11766_v57, 5  ;;  %2460 = vrot.lane.b32.xlu0 %v11715_v8, %s10381_s30 }
 0x7bd   : > { %v9658_v33 = vpop.f32.mrf.mxu1 }
 0x7be   : > { %v11777_v10 = vsel %vm330_vm2, %v2093_v39, %v2095_v30  ;;  %v11779_v52 = vpop.permute.xlu0 %4758  ;;  %v11781_v11 = vpop.permute.xlu1 %4029  ;;  %2462 = vrot.lane.b32.xlu1 %v11773_v15, %s10381_s30  ;;  %v11791_v33 = vsel %vm330_vm2, %v2075_v25, %v2077_v48 }
 0x7bf   : > { %19568 = vst [vmem:[#allocation124_spill] sm:$0xff] %v11777_v10  ;;  %19569 = vst [vmem:[#allocation125_spill] sm:$0xff] %v11779_v52  ;;  %v11785_v4 = vpop.f32.mrf.mxu1 }
 0x7c0   : > { %19570 = vst [vmem:[#allocation126_spill] sm:$0xff] %v11781_v11  ;;  %v2097_v8 = vrot.slane %v11785_v4, 5  ;;  %3550 = vrot.lane.b32.xlu0 %v11755_v50, %s10382_s6  ;;  %19571 = vst [vmem:[#allocation127_spill] sm:$0xff] %v11791_v33 }
 0x7c1   : > { %v9661_v32 = vpop.f32.mrf.mxu1 }
 0x7c2   : > { %v11793_v39 = vpop.permute.xlu1 %4760  ;;  %v11795_v60 = vpop.permute.xlu0 %4031  ;;  %3552 = vrot.lane.b32.xlu1 %v11791_v33, %s10382_s6  ;;  %v11800_v11 = vsel %vm330_vm2, %v2095_v30, %v2097_v8 }
 0x7c3   : > { %19572 = vst [vmem:[#allocation128_spill] sm:$0xff] %v11793_v39  ;;  %19573 = vst [vmem:[#allocation129_spill] sm:$0xff] %v11795_v60  ;;  %v11802_v52 = vpop.f32.mrf.mxu1 }
 0x7c4   : > { %19574 = vst [vmem:[#allocation130_spill] sm:$0xff] %v11800_v11  ;;  %v2099_v5 = vrot.slane %v11802_v52, 5  ;;  %4323 = vrot.lane.b32.xlu0 %v11755_v50, %s10381_s30  ;;  %v11827_v50 = vmul.f32 %v11618_v20, %v11618_v20  ;;  %v2079_v20 = vrot.slane %v11634_v22, 5 }
 0x7c5   : > { %v9662_v32 = vpop.f32.mrf.mxu1 }
 0x7c6   : > { %v11808_v25 = vsel %vm330_vm2, %v2097_v8, %v2099_v5  ;;  %v11810_v39 = vpop.permute.xlu0 %4762  ;;  %v11812_v60 = vpop.permute.xlu1 %4033  ;;  %4325 = vrot.lane.b32.xlu1 %v11791_v33, %s10381_s30  ;;  %v11823_v32 = vmul.f32 %v11791_v33, %v11177_v24  ;;  %19579 = vst [vmem:[#allocation135_spill] sm:$0xff] %v11827_v50  ;;  %v11842_v33 = vmul.f32 %v11634_v22, %v11634_v22 }
 0x7c7   : > { %19575 = vst [vmem:[#allocation131_spill] sm:$0xff] %v11808_v25  ;;  %19576 = vst [vmem:[#allocation132_spill] sm:$0xff] %v11810_v39  ;;  %v11816_v30 = vpop.f32.mrf.mxu1  ;;  %v11863_v22 = vsel %vm330_vm2, %v2077_v48, %v2079_v20 }
 0x7c8   : > { %19577 = vst [vmem:[#allocation133_spill] sm:$0xff] %v11812_v60  ;;  %v2101_v53 = vrot.slane %v11816_v30, 5  ;;  %2290 = vrot.lane.b32.xlu0 %v11773_v15, %s10382_s6  ;;  %19578 = vst [vmem:[#allocation134_spill] sm:$0xff] %v11823_v32  ;;  %v11881_v48 = vmul.f32 %v11863_v22, %v11186_v44 }
 0x7c9   : > { %v9665_v8 = vpop.f32.mrf.mxu1  ;;  %19583 = vst [vmem:[#allocation139_spill] sm:$0xff] %v11842_v33  ;;  %19587 = vst [vmem:[#allocation143_spill] sm:$0xff] %v11863_v22 }
 0x7ca   : > { %v11829_v60 = vpop.permute.xlu1 %4764  ;;  %v11831_v39 = vpop.permute.xlu0 %4035  ;;  %2292 = vrot.lane.b32.xlu1 %v11823_v32, %s10382_s6  ;;  %v11836_v17 = vsel %vm330_vm2, %v2099_v5, %v2101_v53  ;;  %19591 = vst [vmem:[#allocation147_spill] sm:$0xff] %v11881_v48 }
 0x7cb   : > { %19580 = vst [vmem:[#allocation136_spill] sm:$0xff] %v11829_v60  ;;  %19581 = vst [vmem:[#allocation137_spill] sm:$0xff] %v11831_v39  ;;  %v11838_v15 = vpop.f32.mrf.mxu1 }
 0x7cc   : > { %19582 = vst [vmem:[#allocation138_spill] sm:$0xff] %v11836_v17  ;;  %v2103_v8 = vrot.slane %v11838_v15, 5  ;;  %2726 = vrot.lane.b32.xlu0 %v11827_v50, %s10382_s6 }
 0x7cd   : > { %v9666_v39 = vpop.f32.mrf.mxu1 }
 0x7ce   : > { %v11849_v60 = vsel %vm330_vm2, %v2101_v53, %v2103_v8  ;;  %v11851_v24 = vpop.permute.xlu0 %4766  ;;  %v11853_v5 = vpop.permute.xlu1 %4037  ;;  %2728 = vrot.lane.b32.xlu1 %v11842_v33, %s10382_s6 }
 0x7cf   : > { %19584 = vst [vmem:[#allocation140_spill] sm:$0xff] %v11849_v60  ;;  %19585 = vst [vmem:[#allocation141_spill] sm:$0xff] %v11851_v24  ;;  %v11857_v18 = vpop.f32.mrf.mxu1 }
 0x7d0   : > { %19586 = vst [vmem:[#allocation142_spill] sm:$0xff] %v11853_v5  ;;  %v2105_v31 = vrot.slane %v11857_v18, 5  ;;  %2902 = vrot.lane.b32.xlu0 %v11827_v50, %s10381_s30 }
 0x7d1   : > { %v9669_v39 = vpop.f32.mrf.mxu1 }
 0x7d2   : > { %v11865_v53 = vpop.permute.xlu1 %4768  ;;  %v11867_v63 = vpop.permute.xlu0 %4039  ;;  %2904 = vrot.lane.b32.xlu1 %v11842_v33, %s10381_s30  ;;  %v11872_v5 = vsel %vm330_vm2, %v2103_v8, %v2105_v31  ;;  %v2081_v39 = vrot.slane %v11646_v54, 5 }
 0x7d3   : > { %19588 = vst [vmem:[#allocation144_spill] sm:$0xff] %v11865_v53  ;;  %19589 = vst [vmem:[#allocation145_spill] sm:$0xff] %v11867_v63  ;;  %v11874_v24 = vpop.f32.mrf.mxu1 }
 0x7d4   : > { %19590 = vst [vmem:[#allocation146_spill] sm:$0xff] %v11872_v5  ;;  %v2107_v41 = vrot.slane %v11874_v24, 5  ;;  %2464 = vrot.lane.b32.xlu0 %v11823_v32, %s10381_s30 }
 0x7d5   : > { %v9670_v63 = vpop.f32.mrf.mxu1 }
 0x7d6   : > { %v11885_v53 = vsel %vm330_vm2, %v2105_v31, %v2107_v41  ;;  %v11887_v33 = vpop.permute.xlu0 %4770  ;;  %v11889_v8 = vpop.permute.xlu1 %4041  ;;  %2466 = vrot.lane.b32.xlu1 %v11881_v48, %s10381_s30  ;;  %v11899_v63 = vsel %vm330_vm2, %v2079_v20, %v2081_v39 }
 0x7d7   : > { %19592 = vst [vmem:[#allocation148_spill] sm:$0xff] %v11885_v53  ;;  %19593 = vst [vmem:[#allocation149_spill] sm:$0xff] %v11887_v33  ;;  %v11893_v50 = vpop.f32.mrf.mxu1 }
 0x7d8   : > { %19594 = vst [vmem:[#allocation150_spill] sm:$0xff] %v11889_v8  ;;  %v2109_v32 = vrot.slane %v11893_v50, 5  ;;  %3554 = vrot.lane.b32.xlu0 %v11863_v22, %s10382_s6  ;;  %19595 = vst [vmem:[#allocation151_spill] sm:$0xff] %v11899_v63 }
 0x7d9   : > { %v9673_v44 = vpop.f32.mrf.mxu1 }
 0x7da   : > { %v11901_v31 = vpop.permute.xlu1 %4772  ;;  %v11903_v62 = vpop.permute.xlu0 %4043  ;;  %3556 = vrot.lane.b32.xlu1 %v11899_v63, %s10382_s6  ;;  %v11908_v8 = vsel %vm330_vm2, %v2107_v41, %v2109_v32 }
 0x7db   : > { %19596 = vst [vmem:[#allocation152_spill] sm:$0xff] %v11901_v31  ;;  %19597 = vst [vmem:[#allocation153_spill] sm:$0xff] %v11903_v62  ;;  %v11910_v33 = vpop.f32.mrf.mxu1 }
 0x7dc   : > { %19598 = vst [vmem:[#allocation154_spill] sm:$0xff] %v11908_v8  ;;  %v2111_v29 = vrot.slane %v11910_v33, 5  ;;  %4327 = vrot.lane.b32.xlu0 %v11863_v22, %s10381_s30  ;;  %v11935_v22 = vmul.f32 %v11646_v54, %v11646_v54 }
 0x7dd   : > { %v9674_v44 = vpop.f32.mrf.mxu1 }
 0x7de   : > { %v11916_v20 = vsel %vm330_vm2, %v2109_v32, %v2111_v29  ;;  %v11918_v31 = vpop.permute.xlu0 %4774  ;;  %v11920_v62 = vpop.permute.xlu1 %4045  ;;  %4329 = vrot.lane.b32.xlu1 %v11899_v63, %s10381_s30  ;;  %v11931_v44 = vmul.f32 %v11899_v63, %v11195_v45  ;;  %19603 = vst [vmem:[#allocation159_spill] sm:$0xff] %v11935_v22  ;;  %v11950_v63 = vmul.f32 %v11659_v28, %v11659_v28 }
 0x7df   : > { %19599 = vst [vmem:[#allocation155_spill] sm:$0xff] %v11916_v20  ;;  %19600 = vst [vmem:[#allocation156_spill] sm:$0xff] %v11918_v31  ;;  %v11924_v41 = vpop.f32.mrf.mxu1 }
 0x7e0   : > { %19601 = vst [vmem:[#allocation157_spill] sm:$0xff] %v11920_v62  ;;  %v2113_v59 = vrot.slane %v11924_v41, 5  ;;  %2294 = vrot.lane.b32.xlu0 %v11881_v48, %s10382_s6  ;;  %19602 = vst [vmem:[#allocation158_spill] sm:$0xff] %v11931_v44 }
 0x7e1   : > { %v9677_v32 = vpop.f32.mrf.mxu1  ;;  %19607 = vst [vmem:[#allocation163_spill] sm:$0xff] %v11950_v63 }
 0x7e2   : > { %v11937_v62 = vpop.permute.xlu1 %4776  ;;  %v11939_v31 = vpop.permute.xlu0 %4047  ;;  %2296 = vrot.lane.b32.xlu1 %v11931_v44, %s10382_s6  ;;  %v11944_v51 = vsel %vm330_vm2, %v2111_v29, %v2113_v59 }
 0x7e3   : > { %19604 = vst [vmem:[#allocation160_spill] sm:$0xff] %v11937_v62  ;;  %19605 = vst [vmem:[#allocation161_spill] sm:$0xff] %v11939_v31  ;;  %v11946_v48 = vpop.f32.mrf.mxu1 }
 0x7e4   : > { %19606 = vst [vmem:[#allocation162_spill] sm:$0xff] %v11944_v51  ;;  %v2115_v32 = vrot.slane %v11946_v48, 5  ;;  %2730 = vrot.lane.b32.xlu0 %v11935_v22, %s10382_s6 }
 0x7e5   : > { %v9678_v54 = vpop.f32.mrf.mxu1 }
 0x7e6   : > { %v11956_v31 = vsel %vm330_vm2, %v2113_v59, %v2115_v32  ;;  %v11958_v62 = vpop.permute.xlu0 %4778  ;;  %v11960_v45 = vpop.permute.xlu1 %4049  ;;  %2732 = vrot.lane.b32.xlu1 %v11950_v63, %s10382_s6  ;;  %v11972_v54 = vsel %vm330_vm2, %v2081_v39, %v19612_v47 }
 0x7e7   : > { %19608 = vst [vmem:[#allocation164_spill] sm:$0xff] %v11956_v31  ;;  %19609 = vst [vmem:[#allocation165_spill] sm:$0xff] %v11958_v62  ;;  %v11964_v29 = vpop.f32.mrf.mxu1  ;;  %v11990_v47 = vmul.f32 %v11972_v54, %v11204_v9 }
 0x7e8   : > { %19610 = vst [vmem:[#allocation166_spill] sm:$0xff] %v11960_v45  ;;  %19611 = vst [vmem:[#allocation167_spill] sm:$0xff] %v11964_v29  ;;  %v2117_v1 = vrot.slane %v11964_v29, 5  ;;  %2906 = vrot.lane.b32.xlu0 %v11935_v22, %s10381_s30 }
 0x7e9   : > { %19613 = vst [vmem:[#allocation168_spill] sm:$0xff] %v11972_v54  ;;  %v9681_v59 = vpop.f32.mrf.mxu1  ;;  %19617 = vst [vmem:[#allocation172_spill] sm:$0xff] %v11990_v47 }
 0x7ea   : > { %v11974_v38 = vpop.permute.xlu1 %4780  ;;  %v11976_v62 = vpop.permute.xlu0 %4051  ;;  %2908 = vrot.lane.b32.xlu1 %v11950_v63, %s10381_s30  ;;  %v11981_v45 = vsel %vm330_vm2, %v2115_v32, %v2117_v1 }
 0x7eb   : > { %19614 = vst [vmem:[#allocation169_spill] sm:$0xff] %v11974_v38  ;;  %19615 = vst [vmem:[#allocation170_spill] sm:$0xff] %v11976_v62  ;;  %v11983_v29 = vpop.f32.mrf.mxu1 }
 0x7ec   : > { %19616 = vst [vmem:[#allocation171_spill] sm:$0xff] %v11981_v45  ;;  %v2119_v22 = vrot.slane %v11983_v29, 5  ;;  %2468 = vrot.lane.b32.xlu0 %v11931_v44, %s10381_s30 }
 0x7ed   : > { %v9682_v28 = vpop.f32.mrf.mxu1 }
 0x7ee   : > { %v11993_v39 = vsel %vm330_vm2, %v2117_v1, %v2119_v22  ;;  %v11995_v59 = vpop.permute.xlu0 %4782  ;;  %v11997_v62 = vpop.permute.xlu1 %4053  ;;  %2470 = vrot.lane.b32.xlu1 %v11990_v47, %s10381_s30 }
 0x7ef   : > { %19618 = vst [vmem:[#allocation173_spill] sm:$0xff] %v11993_v39  ;;  %19619 = vst [vmem:[#allocation174_spill] sm:$0xff] %v11995_v59  ;;  %v12001_v32 = vpop.f32.mrf.mxu1 }
 0x7f0   : > { %19620 = vst [vmem:[#allocation175_spill] sm:$0xff] %v11997_v62  ;;  %19621 = vst [vmem:[#allocation176_spill] sm:$0xff] %v12001_v32  ;;  %v2121_v38 = vrot.slane %v12001_v32, 5  ;;  %3558 = vrot.lane.b32.xlu0 %v11972_v54, %s10382_s6 }
 0x7f1   : > { %v9685_v9 = vpop.f32.mrf.mxu1 }
 0x7f2   : > { %v12006_v44 = vpop.permute.xlu0 %4055  ;;  %3560 = vrot.lane.b32.xlu1 %v11692_v36, %s10382_s6  ;;  %v12011_v1 = vsel %vm330_vm2, %v2119_v22, %v2121_v38  ;;  %v12015_v62 = vpop.permute.xlu1 %4784 }
 0x7f3   : > { %19622 = vst [vmem:[#allocation177_spill] sm:$0xff] %v12006_v44  ;;  %19623 = vst [vmem:[#allocation178_spill] sm:$0xff] %v12011_v1  ;;  %v12013_v28 = vpop.f32.mrf.mxu1 }
 0x7f4   : > { %19624 = vst [vmem:[#allocation179_spill] sm:$0xff] %v12015_v62  ;;  %v2123_v59 = vrot.slane %v12013_v28, 5  ;;  %4331 = vrot.lane.b32.xlu0 %v11972_v54, %s10381_s30  ;;  %v12040_v54 = vmul.f32 %v11674_v37, %v11674_v37 }
 0x7f5   : > { %v9686_v63 = vpop.f32.mrf.mxu1 }
 0x7f6   : > { %v12021_v9 = vsel %vm330_vm2, %v2121_v38, %v2123_v59  ;;  %v12023_v44 = vpop.permute.xlu0 %4786  ;;  %4333 = vrot.lane.b32.xlu1 %v11692_v36, %s10381_s30  ;;  %v12036_v63 = vmul.f32 %v11692_v36, %v11213_v2  ;;  %19630 = vst [vmem:[#allocation185_spill] sm:$0xff] %v12040_v54 }
 0x7f7   : > { %19625 = vst [vmem:[#allocation180_spill] sm:$0xff] %v12021_v9  ;;  %19626 = vst [vmem:[#allocation181_spill] sm:$0xff] %v12023_v44  ;;  %v12027_v22 = vpop.f32.mrf.mxu1 }
 0x7f8   : > { %19627 = vst [vmem:[#allocation182_spill] sm:$0xff] %v12027_v22  ;;  %v2125_v32 = vrot.slane %v12027_v22, 5  ;;  %v12030_v1 = vpop.permute.xlu1 %2716  ;;  %2298 = vrot.lane.b32.xlu0 %v11990_v47, %s10382_s6  ;;  %19629 = vst [vmem:[#allocation184_spill] sm:$0xff] %v12036_v63  ;;  %v12053_v47 = vmul.f32 %v11694_v35, %v11694_v35 }
 0x7f9   : > { %19628 = vst [vmem:[#allocation183_spill] sm:$0xff] %v12030_v1  ;;  %v9689_v38 = vpop.f32.mrf.mxu1 }
 0x7fa   : > { %v12042_v44 = vpop.permute.xlu0 %2714  ;;  %2300 = vrot.lane.b32.xlu1 %v12036_v63, %s10382_s6  ;;  %v12047_v62 = vsel %vm330_vm2, %v2123_v59, %v2125_v32  ;;  %19634 = vst [vmem:[#allocation189_spill] sm:$0xff] %v12053_v47 }
 0x7fb   : > { %19631 = vst [vmem:[#allocation186_spill] sm:$0xff] %v12042_v44  ;;  %19632 = vst [vmem:[#allocation187_spill] sm:$0xff] %v12047_v62  ;;  %v12049_v1 = vpop.f32.mrf.mxu1 }
 0x7fc   : > { %19633 = vst [vmem:[#allocation188_spill] sm:$0xff] %v12049_v1  ;;  %v2127_v38 = vrot.slane %v12049_v1, 5  ;;  %v12056_v36 = vpop.permute.xlu1 %2892  ;;  %2734 = vrot.lane.b32.xlu0 %v12040_v54, %s10382_s6 }
 0x7fd   : > { %19635 = vst [vmem:[#allocation190_spill] sm:$0xff] %v12056_v36  ;;  %v9690_v37 = vpop.f32.mrf.mxu1 }
 0x7fe   : > { %v12061_v2 = vsel %vm330_vm2, %v2125_v32, %v2127_v38  ;;  %v12063_v44 = vpop.permute.xlu0 %2890  ;;  %2736 = vrot.lane.b32.xlu1 %v12053_v47, %s10382_s6 }
 0x7ff   : > { %19636 = vst [vmem:[#allocation191_spill] sm:$0xff] %v12061_v2  ;;  %19637 = vst [vmem:[#allocation192_spill] sm:$0xff] %v12063_v44  ;;  %v12067_v59 = vpop.f32.mrf.mxu1 }
 0x800   : > { %v2129_v35 = vrot.slane %v12067_v59, 5  ;;  %v12070_v22 = vpop.permute.xlu1 %2454  ;;  %2910 = vrot.lane.b32.xlu0 %v12040_v54, %s10381_s30 }
 0x801   : > { %19638 = vst [vmem:[#allocation193_spill] sm:$0xff] %v12070_v22  ;;  %v9693_v36 = vpop.f32.mrf.mxu1 }
 0x802   : > { %v12074_v1 = vpop.permute.xlu0 %3542  ;;  %2912 = vrot.lane.b32.xlu1 %v12053_v47, %s10381_s30  ;;  %v12079_v32 = vsel %vm330_vm2, %v2127_v38, %v2129_v35  ;;  %v12090_v36 = vmul.f32 %v11700_v6, %v11222_v58 }
 0x803   : > { %19639 = vst [vmem:[#allocation194_spill] sm:$0xff] %v12074_v1  ;;  %19640 = vst [vmem:[#allocation195_spill] sm:$0xff] %v12079_v32  ;;  %v12081_v37 = vpop.f32.mrf.mxu1 }
 0x804   : > { %v2131_v44 = vrot.slane %v12081_v37, 5  ;;  %v12084_v2 = vpop.permute.xlu1 %3544  ;;  %2472 = vrot.lane.b32.xlu0 %v12036_v63, %s10381_s30  ;;  %19642 = vst [vmem:[#allocation197_spill] sm:$0xff] %v12090_v36 }
 0x805   : > { %19641 = vst [vmem:[#allocation196_spill] sm:$0xff] %v12084_v2  ;;  %v9694_v54 = vpop.f32.mrf.mxu1 }
 0x806   : > { %v12093_v1 = vsel %vm330_vm2, %v2129_v35, %v2131_v44  ;;  %v12095_v47 = vpop.permute.xlu0 %4315  ;;  %2474 = vrot.lane.b32.xlu1 %v12090_v36, %s10381_s30 }
 0x807   : > { %19643 = vst [vmem:[#allocation198_spill] sm:$0xff] %v12093_v1  ;;  %19644 = vst [vmem:[#allocation199_spill] sm:$0xff] %v12095_v47  ;;  %v12099_v38 = vpop.f32.mrf.mxu1 }
 0x808   : > { %19645 = vst [vmem:[#allocation200_spill] sm:$0xff] %v12099_v38  ;;  %v2133_v2 = vrot.slane %v12099_v38, 5  ;;  %v12102_v22 = vpop.permute.xlu1 %4317  ;;  %3562 = vrot.lane.b32.xlu0 %v11700_v6, %s10382_s6 }
 0x809   : > { %19646 = vst [vmem:[#allocation201_spill] sm:$0xff] %v12102_v22  ;;  %v9697_v58 = vpop.f32.mrf.mxu1 }
 0x80a   : > { %v12106_v63 = vpop.permute.xlu0 %2282  ;;  %3564 = vrot.lane.b32.xlu1 %v11728_v0, %s10382_s6  ;;  %v12111_v54 = vsel %vm330_vm2, %v2131_v44, %v2133_v2 }
 0x80b   : > { %19647 = vst [vmem:[#allocation202_spill] sm:$0xff] %v12106_v63  ;;  %19648 = vst [vmem:[#allocation203_spill] sm:$0xff] %v12111_v54  ;;  %v12113_v35 = vpop.f32.mrf.mxu1 }
 0x80c   : > { %v2135_v47 = vrot.slane %v12113_v35, 5  ;;  %v12116_v1 = vpop.permute.xlu1 %2284  ;;  %4335 = vrot.lane.b32.xlu0 %v11700_v6, %s10381_s30  ;;  %v12140_v6 = vmul.f32 %v11708_v27, %v11708_v27 }
 0x80d   : > { %19649 = vst [vmem:[#allocation204_spill] sm:$0xff] %v12116_v1  ;;  %v9698_v22 = vpop.f32.mrf.mxu1 }
 0x80e   : > { %v12121_v58 = vsel %vm330_vm2, %v2133_v2, %v2135_v47  ;;  %v12123_v63 = vpop.permute.xlu0 %2718  ;;  %4337 = vrot.lane.b32.xlu1 %v11728_v0, %s10381_s30  ;;  %v12136_v22 = vmul.f32 %v11728_v0, %v11231_v56  ;;  %19654 = vst [vmem:[#allocation209_spill] sm:$0xff] %v12140_v6 }
 0x80f   : > { %19650 = vst [vmem:[#allocation205_spill] sm:$0xff] %v12121_v58  ;;  %v12127_v44 = vpop.f32.mrf.mxu1 }
 0x810   : > { %19651 = vst [vmem:[#allocation206_spill] sm:$0xff] %v12127_v44  ;;  %v2137_v38 = vrot.slane %v12127_v44, 5  ;;  %v12130_v54 = vpop.permute.xlu1 %2720  ;;  %2302 = vrot.lane.b32.xlu0 %v12090_v36, %s10382_s6  ;;  %19653 = vst [vmem:[#allocation208_spill] sm:$0xff] %v12136_v22  ;;  %v12153_v36 = vmul.f32 %v11730_v23, %v11730_v23 }
 0x811   : > { %19652 = vst [vmem:[#allocation207_spill] sm:$0xff] %v12130_v54  ;;  %v9701_v2 = vpop.f32.mrf.mxu1 }
 0x812   : > { %v12142_v1 = vpop.permute.xlu0 %2894  ;;  %2304 = vrot.lane.b32.xlu1 %v12136_v22, %s10382_s6  ;;  %v12147_v44 = vsel %vm330_vm2, %v2135_v47, %v2137_v38  ;;  %19657 = vst [vmem:[#allocation212_spill] sm:$0xff] %v12153_v36 }
 0x813   : > { %19655 = vst [vmem:[#allocation210_spill] sm:$0xff] %v12147_v44  ;;  %v12149_v54 = vpop.f32.mrf.mxu1 }
 0x814   : > { %19656 = vst [vmem:[#allocation211_spill] sm:$0xff] %v12149_v54  ;;  %v2139_v2 = vrot.slane %v12149_v54, 5  ;;  %v12156_v0 = vpop.permute.xlu1 %2896  ;;  %2738 = vrot.lane.b32.xlu0 %v12140_v6, %s10382_s6 }
 0x815   : > { %19658 = vst [vmem:[#allocation213_spill] sm:$0xff] %v12156_v0  ;;  %v9702_v27 = vpop.f32.mrf.mxu1 }
 0x816   : > { %v12160_v56 = vpop.permute.xlu0 %2456  ;;  %2740 = vrot.lane.b32.xlu1 %v12153_v36, %s10382_s6  ;;  %v12165_v47 = vsel %vm330_vm2, %v2137_v38, %v2139_v2 }
 0x817   : > { %19659 = vst [vmem:[#allocation214_spill] sm:$0xff] %v12160_v56  ;;  %19660 = vst [vmem:[#allocation215_spill] sm:$0xff] %v12165_v47  ;;  %v12167_v44 = vpop.f32.mrf.mxu1 }
 0x818   : > { %19661 = vst [vmem:[#allocation216_spill] sm:$0xff] %v12167_v44  ;;  %v2141_v23 = vrot.slane %v12167_v44, 5  ;;  %v12170_v58 = vpop.permute.xlu1 %2458  ;;  %2914 = vrot.lane.b32.xlu0 %v12140_v6, %s10381_s30 }
 0x819   : > { %v9705_v54 = vpop.f32.mrf.mxu1 }
 0x81a   : > { %v12174_v0 = vpop.permute.xlu0 %3546  ;;  %2916 = vrot.lane.b32.xlu1 %v12153_v36, %s10381_s30  ;;  %v12179_v27 = vsel %vm330_vm2, %v2139_v2, %v2141_v23  ;;  %v12190_v54 = vmul.f32 %v11741_v7, %v11240_v61 }
 0x81b   : > { %19662 = vst [vmem:[#allocation217_spill] sm:$0xff] %v12174_v0  ;;  %19663 = vst [vmem:[#allocation218_spill] sm:$0xff] %v12179_v27  ;;  %v12181_v38 = vpop.f32.mrf.mxu1 }
 0x81c   : > { %19664 = vst [vmem:[#allocation219_spill] sm:$0xff] %v12181_v38  ;;  %v2143_v47 = vrot.slane %v12181_v38, 5  ;;  %v12184_v56 = vpop.permute.xlu1 %3548  ;;  %2476 = vrot.lane.b32.xlu0 %v12136_v22, %s10381_s30  ;;  %19666 = vst [vmem:[#allocation221_spill] sm:$0xff] %v12190_v54 }
 0x81d   : > { %19665 = vst [vmem:[#allocation220_spill] sm:$0xff] %v12184_v56  ;;  %v9706_v6 = vpop.f32.mrf.mxu1 }
 0x81e   : > { %v12192_v44 = vpop.permute.xlu0 %4319  ;;  %2478 = vrot.lane.b32.xlu1 %v12190_v54, %s10381_s30  ;;  %v12197_v2 = vsel %vm330_vm2, %v2141_v23, %v2143_v47 }
 0x81f   : > { %19667 = vst [vmem:[#allocation222_spill] sm:$0xff] %v12192_v44  ;;  %19668 = vst [vmem:[#allocation223_spill] sm:$0xff] %v12197_v2  ;;  %v12199_v36 = vpop.f32.mrf.mxu1 }
 0x820   : > { %19669 = vst [vmem:[#allocation224_spill] sm:$0xff] %v12199_v36  ;;  %v2145_v56 = vrot.slane %v12199_v36, 5  ;;  %v12202_v38 = vpop.permute.xlu1 %4321  ;;  %3566 = vrot.lane.b32.xlu0 %v11741_v7, %s10382_s6 }
 0x821   : > { %19670 = vst [vmem:[#allocation225_spill] sm:$0xff] %v12202_v38  ;;  %v9709_v61 = vpop.f32.mrf.mxu1 }
 0x822   : > { %v12206_v22 = vpop.permute.xlu0 %2286  ;;  %3568 = vrot.lane.b32.xlu1 %v11764_v49, %s10382_s6  ;;  %v12211_v6 = vsel %vm330_vm2, %v2143_v47, %v2145_v56 }
 0x823   : > { %19671 = vst [vmem:[#allocation226_spill] sm:$0xff] %v12211_v6  ;;  %v12213_v23 = vpop.f32.mrf.mxu1 }
 0x824   : > { %19672 = vst [vmem:[#allocation227_spill] sm:$0xff] %v12213_v23  ;;  %v2147_v2 = vrot.slane %v12213_v23, 5  ;;  %v12216_v44 = vpop.permute.xlu1 %2288  ;;  %4339 = vrot.lane.b32.xlu0 %v11741_v7, %s10381_s30  ;;  %v12240_v23 = vmul.f32 %v11749_v13, %v11749_v13 }
 0x825   : > { %v9710_v36 = vpop.f32.mrf.mxu1 }
 0x826   : > { %v12220_v38 = vpop.permute.xlu0 %2722  ;;  %4341 = vrot.lane.b32.xlu1 %v11764_v49, %s10381_s30  ;;  %v12225_v61 = vsel %vm330_vm2, %v2145_v56, %v2147_v2  ;;  %v12236_v36 = vmul.f32 %v11764_v49, %v11249_v3  ;;  %19676 = vst [vmem:[#allocation231_spill] sm:$0xff] %v12240_v23 }
 0x827   : > { %19673 = vst [vmem:[#allocation228_spill] sm:$0xff] %v12225_v61  ;;  %v12227_v47 = vpop.f32.mrf.mxu1 }
 0x828   : > { %19674 = vst [vmem:[#allocation229_spill] sm:$0xff] %v12227_v47  ;;  %v2149_v6 = vrot.slane %v12227_v47, 5  ;;  %v12230_v0 = vpop.permute.xlu1 %2724  ;;  %2306 = vrot.lane.b32.xlu0 %v12190_v54, %s10382_s6  ;;  %19675 = vst [vmem:[#allocation230_spill] sm:$0xff] %v12236_v36  ;;  %v12253_v54 = vmul.f32 %v11766_v57, %v11766_v57 }
 0x829   : > { %v9713_v7 = vpop.f32.mrf.mxu1 }
 0x82a   : > { %v12242_v56 = vpop.permute.xlu0 %2898  ;;  %2308 = vrot.lane.b32.xlu1 %v12236_v36, %s10382_s6  ;;  %v12249_v61 = vsel %vm330_vm2, %v2147_v2, %v2149_v6  ;;  %19679 = vst [vmem:[#allocation234_spill] sm:$0xff] %v12253_v54 }
 0x82b   : > { %v12246_v47 = vpop.f32.mrf.mxu1  ;;  %19678 = vst [vmem:[#allocation233_spill] sm:$0xff] %v12249_v61 }
 0x82c   : > { %19677 = vst [vmem:[#allocation232_spill] sm:$0xff] %v12246_v47  ;;  %v2151_v7 = vrot.slane %v12246_v47, 5  ;;  %v12256_v49 = vpop.permute.xlu1 %2900  ;;  %2742 = vrot.lane.b32.xlu0 %v12240_v23, %s10382_s6 }
 0x82d   : > { %v9714_v13 = vpop.f32.mrf.mxu1 }
 0x82e   : > { %v12260_v3 = vpop.permute.xlu0 %2460  ;;  %2744 = vrot.lane.b32.xlu1 %v12253_v54, %s10382_s6  ;;  %v12265_v2 = vsel %vm330_vm2, %v2149_v6, %v2151_v7  ;;  %v12281_v13 = vmul.f32 %v11777_v10, %v11258_v46 }
 0x82f   : > { %19680 = vst [vmem:[#allocation235_spill] sm:$0xff] %v12265_v2 }
 0x830   : > { %v12267_v61 = vpop.permute.xlu1 %2462  ;;  %2918 = vrot.lane.b32.xlu0 %v12240_v23, %s10381_s30  ;;  %19682 = vst [vmem:[#allocation237_spill] sm:$0xff] %v12281_v13 }
 0x832   : > { %v12271_v57 = vpop.permute.xlu0 %3550  ;;  %2920 = vrot.lane.b32.xlu1 %v12253_v54, %s10381_s30  ;;  %v12309_v54 = vmul.f32 %v11800_v11, %v11267_v12 }
 0x834   : > { %v12275_v47 = vpop.permute.xlu1 %3552  ;;  %2480 = vrot.lane.b32.xlu0 %v12236_v36, %s10381_s30  ;;  %19685 = vst [vmem:[#allocation240_spill] sm:$0xff] %v12309_v54 }
 0x835   : > { %19681 = vst [vmem:[#allocation236_spill] sm:$0xff] %v12275_v47 }
 0x836   : > { %v12283_v6 = vpop.permute.xlu0 %4323  ;;  %2482 = vrot.lane.b32.xlu1 %v12281_v13, %s10381_s30 }
 0x838   : > { %v12287_v7 = vpop.permute.xlu1 %4325  ;;  %3570 = vrot.lane.b32.xlu0 %v11777_v10, %s10382_s6 }
 0x839   : > { %19683 = vst [vmem:[#allocation238_spill] sm:$0xff] %v12287_v7  ;;  %v12313_v7 = vmul.f32 %v11785_v4, %v11785_v4 }
 0x83a   : > { %v12291_v2 = vpop.permute.xlu0 %2290  ;;  %3572 = vrot.lane.b32.xlu1 %v11800_v11, %s10382_s6 }
 0x83b   : > { %19686 = vst [vmem:[#allocation241_spill] sm:$0xff] %v12313_v7 }
 0x83c   : > { %v12295_v36 = vpop.permute.xlu1 %2292  ;;  %4343 = vrot.lane.b32.xlu0 %v11777_v10, %s10381_s30  ;;  %v12321_v10 = vmul.f32 %v11802_v52, %v11802_v52 }
 0x83d   : > { %19684 = vst [vmem:[#allocation239_spill] sm:$0xff] %v12295_v36 }
 0x83e   : > { %v12299_v46 = vpop.permute.xlu0 %2726  ;;  %4345 = vrot.lane.b32.xlu1 %v11800_v11, %s10381_s30  ;;  %19687 = vst [vmem:[#allocation242_spill] sm:$0xff] %v12321_v10 }
 0x840   : > { %v12303_v23 = vpop.permute.xlu1 %2728  ;;  %2310 = vrot.lane.b32.xlu0 %v12281_v13, %s10382_s6  ;;  %v12345_v13 = vmul.f32 %v11808_v25, %v11276_v26 }
 0x842   : > { %v12315_v47 = vpop.permute.xlu0 %2902  ;;  %2312 = vrot.lane.b32.xlu1 %v12309_v54, %s10382_s6  ;;  %19691 = vst [vmem:[#allocation246_spill] sm:$0xff] %v12345_v13 }
 0x844   : > { %v12323_v36 = vpop.permute.xlu1 %2904  ;;  %2746 = vrot.lane.b32.xlu0 %v12313_v7, %s10382_s6 }
 0x846   : > { %v12327_v11 = vpop.permute.xlu0 %2464  ;;  %2748 = vrot.lane.b32.xlu1 %v12321_v10, %s10382_s6 }
 0x847   : > { %19688 = vst [vmem:[#allocation243_spill] sm:$0xff] %v12327_v11 }
 0x848   : > { %v12331_v4 = vpop.permute.xlu1 %2466  ;;  %2922 = vrot.lane.b32.xlu0 %v12313_v7, %s10381_s30 }
 0x84a   : > { %v12335_v12 = vpop.permute.xlu0 %3554  ;;  %2924 = vrot.lane.b32.xlu1 %v12321_v10, %s10381_s30 }
 0x84b   : > { %19689 = vst [vmem:[#allocation244_spill] sm:$0xff] %v12335_v12 }
 0x84c   : > { %v12339_v52 = vpop.permute.xlu1 %3556  ;;  %2484 = vrot.lane.b32.xlu0 %v12309_v54, %s10381_s30 }
 0x84d   : > { %19690 = vst [vmem:[#allocation245_spill] sm:$0xff] %v12339_v52 }
 0x84e   : > { %v12347_v11 = vpop.permute.xlu0 %4327  ;;  %2486 = vrot.lane.b32.xlu1 %v12345_v13, %s10381_s30 }
 0x84f   : > { %19692 = vst [vmem:[#allocation247_spill] sm:$0xff] %v12347_v11 }
 0x850   : > { %v12351_v7 = vpop.permute.xlu1 %4329  ;;  %3574 = vrot.lane.b32.xlu0 %v11808_v25, %s10382_s6 }
 0x851   : > { %19693 = vst [vmem:[#allocation248_spill] sm:$0xff] %v12351_v7  ;;  %v12373_v7 = vmul.f32 %v11836_v17, %v11285_v19 }
 0x852   : > { %v12355_v10 = vpop.permute.xlu0 %2294  ;;  %3576 = vrot.lane.b32.xlu1 %v11836_v17, %s10382_s6 }
 0x853   : > { %19695 = vst [vmem:[#allocation250_spill] sm:$0xff] %v12373_v7 }
 0x854   : > { %v12359_v54 = vpop.permute.xlu1 %2296  ;;  %4347 = vrot.lane.b32.xlu0 %v11808_v25, %s10381_s30  ;;  %v12385_v25 = vmul.f32 %v11838_v15, %v11838_v15 }
 0x855   : > { %19694 = vst [vmem:[#allocation249_spill] sm:$0xff] %v12359_v54  ;;  %v12377_v54 = vmul.f32 %v11816_v30, %v11816_v30 }
 0x856   : > { %v12363_v26 = vpop.permute.xlu0 %2730  ;;  %4349 = vrot.lane.b32.xlu1 %v11836_v17, %s10381_s30  ;;  %19697 = vst [vmem:[#allocation252_spill] sm:$0xff] %v12385_v25 }
 0x857   : > { %19696 = vst [vmem:[#allocation251_spill] sm:$0xff] %v12377_v54 }
 0x858   : > { %v12367_v52 = vpop.permute.xlu1 %2732  ;;  %2314 = vrot.lane.b32.xlu0 %v12345_v13, %s10382_s6  ;;  %v12409_v13 = vmul.f32 %v11849_v60, %v11294_v43 }
 0x85a   : > { %v12379_v11 = vpop.permute.xlu0 %2906  ;;  %2316 = vrot.lane.b32.xlu1 %v12373_v7, %s10382_s6  ;;  %19701 = vst [vmem:[#allocation256_spill] sm:$0xff] %v12409_v13 }
 0x85c   : > { %v12387_v12 = vpop.permute.xlu1 %2908  ;;  %2750 = vrot.lane.b32.xlu0 %v12377_v54, %s10382_s6 }
 0x85e   : > { %v12391_v17 = vpop.permute.xlu0 %2468  ;;  %2752 = vrot.lane.b32.xlu1 %v12385_v25, %s10382_s6 }
 0x85f   : > { %19698 = vst [vmem:[#allocation253_spill] sm:$0xff] %v12391_v17 }
 0x860   : > { %v12395_v30 = vpop.permute.xlu1 %2470  ;;  %2926 = vrot.lane.b32.xlu0 %v12377_v54, %s10381_s30 }
 0x862   : > { %v12399_v19 = vpop.permute.xlu0 %3558  ;;  %2928 = vrot.lane.b32.xlu1 %v12385_v25, %s10381_s30 }
 0x863   : > { %19699 = vst [vmem:[#allocation254_spill] sm:$0xff] %v12399_v19 }
 0x864   : > { %v12403_v15 = vpop.permute.xlu1 %3560  ;;  %2488 = vrot.lane.b32.xlu0 %v12373_v7, %s10381_s30 }
 0x865   : > { %19700 = vst [vmem:[#allocation255_spill] sm:$0xff] %v12403_v15 }
 0x866   : > { %v12411_v17 = vpop.permute.xlu0 %4331  ;;  %2490 = vrot.lane.b32.xlu1 %v12409_v13, %s10381_s30 }
 0x867   : > { %19702 = vst [vmem:[#allocation257_spill] sm:$0xff] %v12411_v17  ;;  %v12441_v17 = vmul.f32 %v11857_v18, %v11857_v18 }
 0x868   : > { %v12415_v54 = vpop.permute.xlu1 %4333  ;;  %3578 = vrot.lane.b32.xlu0 %v11849_v60, %s10382_s6 }
 0x869   : > { %19703 = vst [vmem:[#allocation258_spill] sm:$0xff] %v12415_v54  ;;  %v12437_v54 = vmul.f32 %v11872_v5, %v11303_v34  ;;  %19706 = vst [vmem:[#allocation261_spill] sm:$0xff] %v12441_v17 }
 0x86a   : > { %v12419_v25 = vpop.permute.xlu0 %2298  ;;  %3580 = vrot.lane.b32.xlu1 %v11872_v5, %s10382_s6 }
 0x86b   : > { %19705 = vst [vmem:[#allocation260_spill] sm:$0xff] %v12437_v54 }
 0x86c   : > { %v12423_v7 = vpop.permute.xlu1 %2300  ;;  %4351 = vrot.lane.b32.xlu0 %v11849_v60, %s10381_s30  ;;  %v12449_v60 = vmul.f32 %v11874_v24, %v11874_v24 }
 0x86d   : > { %19704 = vst [vmem:[#allocation259_spill] sm:$0xff] %v12423_v7 }
 0x86e   : > { %v12427_v43 = vpop.permute.xlu0 %2734  ;;  %4353 = vrot.lane.b32.xlu1 %v11872_v5, %s10381_s30  ;;  %19707 = vst [vmem:[#allocation262_spill] sm:$0xff] %v12449_v60 }
 0x870   : > { %v12431_v15 = vpop.permute.xlu1 %2736  ;;  %2318 = vrot.lane.b32.xlu0 %v12409_v13, %s10382_s6  ;;  %v12473_v13 = vmul.f32 %v11885_v53, %v11312_v40 }
 0x872   : > { %v12443_v7 = vpop.permute.xlu0 %2910  ;;  %2320 = vrot.lane.b32.xlu1 %v12437_v54, %s10382_s6  ;;  %19711 = vst [vmem:[#allocation266_spill] sm:$0xff] %v12473_v13 }
 0x874   : > { %v12451_v19 = vpop.permute.xlu1 %2912  ;;  %2754 = vrot.lane.b32.xlu0 %v12441_v17, %s10382_s6 }
 0x876   : > { %v12455_v5 = vpop.permute.xlu0 %2472  ;;  %2756 = vrot.lane.b32.xlu1 %v12449_v60, %s10382_s6 }
 0x877   : > { %19708 = vst [vmem:[#allocation263_spill] sm:$0xff] %v12455_v5 }
 0x878   : > { %v12459_v18 = vpop.permute.xlu1 %2474  ;;  %2930 = vrot.lane.b32.xlu0 %v12441_v17, %s10381_s30 }
 0x87a   : > { %v12463_v34 = vpop.permute.xlu0 %3562  ;;  %2932 = vrot.lane.b32.xlu1 %v12449_v60, %s10381_s30 }
 0x87b   : > { %19709 = vst [vmem:[#allocation264_spill] sm:$0xff] %v12463_v34 }
 0x87c   : > { %v12467_v24 = vpop.permute.xlu1 %3564  ;;  %2492 = vrot.lane.b32.xlu0 %v12437_v54, %s10381_s30 }
 0x87d   : > { %19710 = vst [vmem:[#allocation265_spill] sm:$0xff] %v12467_v24 }
 0x87e   : > { %v12475_v5 = vpop.permute.xlu0 %4335  ;;  %2494 = vrot.lane.b32.xlu1 %v12473_v13, %s10381_s30 }
 0x87f   : > { %19712 = vst [vmem:[#allocation267_spill] sm:$0xff] %v12475_v5  ;;  %v12505_v5 = vmul.f32 %v11893_v50, %v11893_v50 }
 0x880   : > { %v12479_v17 = vpop.permute.xlu1 %4337  ;;  %3582 = vrot.lane.b32.xlu0 %v11885_v53, %s10382_s6 }
 0x881   : > { %19713 = vst [vmem:[#allocation268_spill] sm:$0xff] %v12479_v17  ;;  %v12501_v17 = vmul.f32 %v11908_v8, %v11321_v42  ;;  %19716 = vst [vmem:[#allocation271_spill] sm:$0xff] %v12505_v5 }
 0x882   : > { %v12483_v60 = vpop.permute.xlu0 %2302  ;;  %3584 = vrot.lane.b32.xlu1 %v11908_v8, %s10382_s6 }
 0x883   : > { %19715 = vst [vmem:[#allocation270_spill] sm:$0xff] %v12501_v17 }
 0x884   : > { %v12487_v54 = vpop.permute.xlu1 %2304  ;;  %4355 = vrot.lane.b32.xlu0 %v11885_v53, %s10381_s30  ;;  %v12513_v53 = vmul.f32 %v11910_v33, %v11910_v33 }
 0x885   : > { %19714 = vst [vmem:[#allocation269_spill] sm:$0xff] %v12487_v54 }
 0x886   : > { %v12491_v40 = vpop.permute.xlu0 %2738  ;;  %4357 = vrot.lane.b32.xlu1 %v11908_v8, %s10381_s30  ;;  %19717 = vst [vmem:[#allocation272_spill] sm:$0xff] %v12513_v53 }
 0x888   : > { %v12495_v24 = vpop.permute.xlu1 %2740  ;;  %2322 = vrot.lane.b32.xlu0 %v12473_v13, %s10382_s6  ;;  %v12537_v13 = vmul.f32 %v11916_v20, %v11330_v21 }
 0x88a   : > { %v12507_v54 = vpop.permute.xlu0 %2914  ;;  %2324 = vrot.lane.b32.xlu1 %v12501_v17, %s10382_s6  ;;  %19722 = vst [vmem:[#allocation277_spill] sm:$0xff] %v12537_v13 }
 0x88c   : > { %v12515_v34 = vpop.permute.xlu1 %2916  ;;  %2758 = vrot.lane.b32.xlu0 %v12505_v5, %s10382_s6 }
 0x88e   : > { %v12519_v8 = vpop.permute.xlu0 %2476  ;;  %2760 = vrot.lane.b32.xlu1 %v12513_v53, %s10382_s6 }
 0x88f   : > { %19718 = vst [vmem:[#allocation273_spill] sm:$0xff] %v12519_v8 }
 0x890   : > { %v12523_v50 = vpop.permute.xlu1 %2478  ;;  %2934 = vrot.lane.b32.xlu0 %v12505_v5, %s10381_s30 }
 0x891   : > { %19719 = vst [vmem:[#allocation274_spill] sm:$0xff] %v12523_v50 }
 0x892   : > { %v12527_v42 = vpop.permute.xlu0 %3566  ;;  %2936 = vrot.lane.b32.xlu1 %v12513_v53, %s10381_s30 }
 0x893   : > { %19720 = vst [vmem:[#allocation275_spill] sm:$0xff] %v12527_v42 }
 0x894   : > { %v12531_v33 = vpop.permute.xlu1 %3568  ;;  %2496 = vrot.lane.b32.xlu0 %v12501_v17, %s10381_s30 }
 0x895   : > { %19721 = vst [vmem:[#allocation276_spill] sm:$0xff] %v12531_v33 }
 0x896   : > { %v12539_v8 = vpop.permute.xlu0 %4339  ;;  %2498 = vrot.lane.b32.xlu1 %v12537_v13, %s10381_s30 }
 0x897   : > { %19723 = vst [vmem:[#allocation278_spill] sm:$0xff] %v12539_v8  ;;  %v12569_v8 = vmul.f32 %v11924_v41, %v11924_v41 }
 0x898   : > { %v12543_v5 = vpop.permute.xlu1 %4341  ;;  %3586 = vrot.lane.b32.xlu0 %v11916_v20, %s10382_s6 }
 0x899   : > { %19724 = vst [vmem:[#allocation279_spill] sm:$0xff] %v12543_v5  ;;  %v12565_v5 = vmul.f32 %v11944_v51, %v11339_v14  ;;  %19728 = vst [vmem:[#allocation283_spill] sm:$0xff] %v12569_v8 }
 0x89a   : > { %v12547_v53 = vpop.permute.xlu0 %2306  ;;  %3588 = vrot.lane.b32.xlu1 %v11944_v51, %s10382_s6 }
 0x89b   : > { %19725 = vst [vmem:[#allocation280_spill] sm:$0xff] %v12547_v53  ;;  %19727 = vst [vmem:[#allocation282_spill] sm:$0xff] %v12565_v5 }
 0x89c   : > { %v12551_v17 = vpop.permute.xlu1 %2308  ;;  %4359 = vrot.lane.b32.xlu0 %v11916_v20, %s10381_s30  ;;  %v12577_v20 = vmul.f32 %v11946_v48, %v11946_v48 }
 0x89d   : > { %19726 = vst [vmem:[#allocation281_spill] sm:$0xff] %v12551_v17 }
 0x89e   : > { %v12555_v21 = vpop.permute.xlu0 %2742  ;;  %4361 = vrot.lane.b32.xlu1 %v11944_v51, %s10381_s30  ;;  %19729 = vst [vmem:[#allocation284_spill] sm:$0xff] %v12577_v20 }
 0x8a0   : > { %v12559_v33 = vpop.permute.xlu1 %2744  ;;  %2326 = vrot.lane.b32.xlu0 %v12537_v13, %s10382_s6  ;;  %v12601_v13 = vmul.f32 %v11956_v31, %v11348_v55 }
 0x8a2   : > { %v12571_v17 = vpop.permute.xlu0 %2918  ;;  %2328 = vrot.lane.b32.xlu1 %v12565_v5, %s10382_s6  ;;  %19734 = vst [vmem:[#allocation289_spill] sm:$0xff] %v12601_v13 }
 0x8a4   : > { %v12579_v42 = vpop.permute.xlu1 %2920  ;;  %2762 = vrot.lane.b32.xlu0 %v12569_v8, %s10382_s6 }
 0x8a6   : > { %v12583_v51 = vpop.permute.xlu0 %2480  ;;  %2764 = vrot.lane.b32.xlu1 %v12577_v20, %s10382_s6 }
 0x8a7   : > { %19730 = vst [vmem:[#allocation285_spill] sm:$0xff] %v12583_v51 }
 0x8a8   : > { %v12587_v41 = vpop.permute.xlu1 %2482  ;;  %2938 = vrot.lane.b32.xlu0 %v12569_v8, %s10381_s30 }
 0x8a9   : > { %19731 = vst [vmem:[#allocation286_spill] sm:$0xff] %v12587_v41 }
 0x8aa   : > { %v12591_v14 = vpop.permute.xlu0 %3570  ;;  %2940 = vrot.lane.b32.xlu1 %v12577_v20, %s10381_s30 }
 0x8ab   : > { %19732 = vst [vmem:[#allocation287_spill] sm:$0xff] %v12591_v14 }
 0x8ac   : > { %v12595_v48 = vpop.permute.xlu1 %3572  ;;  %2500 = vrot.lane.b32.xlu0 %v12565_v5, %s10381_s30 }
 0x8ad   : > { %19733 = vst [vmem:[#allocation288_spill] sm:$0xff] %v12595_v48 }
 0x8ae   : > { %v12603_v51 = vpop.permute.xlu0 %4343  ;;  %2502 = vrot.lane.b32.xlu1 %v12601_v13, %s10381_s30 }
 0x8af   : > { %19735 = vst [vmem:[#allocation290_spill] sm:$0xff] %v12603_v51  ;;  %v19740_v51 = vld [vmem:[#allocation167_spill] sm:$0xff] }
 0x8b0   : > { %v12607_v8 = vpop.permute.xlu1 %4345  ;;  %3590 = vrot.lane.b32.xlu0 %v11956_v31, %s10382_s6 }
 0x8b1   : > { %19736 = vst [vmem:[#allocation291_spill] sm:$0xff] %v12607_v8  ;;  %v12629_v8 = vmul.f32 %v11981_v45, %v11357_v16 }
 0x8b2   : > { %v12611_v20 = vpop.permute.xlu0 %2310  ;;  %3592 = vrot.lane.b32.xlu1 %v11981_v45, %s10382_s6 }
 0x8b3   : > { %19737 = vst [vmem:[#allocation292_spill] sm:$0xff] %v12611_v20  ;;  %19739 = vst [vmem:[#allocation294_spill] sm:$0xff] %v12629_v8 }
 0x8b4   : > { %v12615_v5 = vpop.permute.xlu1 %2312  ;;  %4363 = vrot.lane.b32.xlu0 %v11956_v31, %s10381_s30  ;;  %v12641_v31 = vmul.f32 %v11983_v29, %v11983_v29 }
 0x8b5   : > { %19738 = vst [vmem:[#allocation293_spill] sm:$0xff] %v12615_v5  ;;  %v12633_v5 = vmul.f32 %v19740_v51, %v19740_v51 }
 0x8b6   : > { %v12619_v55 = vpop.permute.xlu0 %2746  ;;  %4365 = vrot.lane.b32.xlu1 %v11981_v45, %s10381_s30  ;;  %19742 = vst [vmem:[#allocation295_spill] sm:$0xff] %v12641_v31 }
 0x8b7   : > { %19741 = vst [vmem:[#allocation167_spill] sm:$0xff] %v12633_v5 }
 0x8b8   : > { %v12623_v48 = vpop.permute.xlu1 %2748  ;;  %2330 = vrot.lane.b32.xlu0 %v12601_v13, %s10382_s6  ;;  %v19747_v13 = vld [vmem:[#allocation29_spill] sm:$0xff] }
 0x8ba   : > { %v12635_v14 = vpop.permute.xlu0 %2922  ;;  %2332 = vrot.lane.b32.xlu1 %v12629_v8, %s10382_s6 }
 0x8bc   : > { %v12643_v41 = vpop.permute.xlu1 %2924  ;;  %2766 = vrot.lane.b32.xlu0 %v12633_v5, %s10382_s6 }
 0x8be   : > { %v12647_v45 = vpop.permute.xlu0 %2484  ;;  %2768 = vrot.lane.b32.xlu1 %v12641_v31, %s10382_s6 }
 0x8bf   : > { %19743 = vst [vmem:[#allocation296_spill] sm:$0xff] %v12647_v45  ;;  %v12665_v45 = vmul.f32 %v11993_v39, %v19747_v13 }
 0x8c0   : > { %v12651_v51 = vpop.permute.xlu1 %2486  ;;  %2942 = vrot.lane.b32.xlu0 %v12633_v5, %s10381_s30 }
 0x8c1   : > { %19744 = vst [vmem:[#allocation297_spill] sm:$0xff] %v12651_v51  ;;  %19748 = vst [vmem:[#allocation300_spill] sm:$0xff] %v12665_v45  ;;  %v19756_v51 = vld [vmem:[#allocation176_spill] sm:$0xff] }
 0x8c2   : > { %v12655_v16 = vpop.permute.xlu0 %3574  ;;  %2944 = vrot.lane.b32.xlu1 %v12641_v31, %s10381_s30 }
 0x8c3   : > { %19745 = vst [vmem:[#allocation298_spill] sm:$0xff] %v12655_v16 }
 0x8c4   : > { %v12659_v29 = vpop.permute.xlu1 %3576  ;;  %2504 = vrot.lane.b32.xlu0 %v12629_v8, %s10381_s30 }
 0x8c5   : > { %19746 = vst [vmem:[#allocation299_spill] sm:$0xff] %v12659_v29  ;;  %v19752_v29 = vld [vmem:[#allocation178_spill] sm:$0xff] }
 0x8c6   : > { %v12667_v20 = vpop.permute.xlu0 %4347  ;;  %2506 = vrot.lane.b32.xlu1 %v12665_v45, %s10381_s30 }
 0x8c7   : > { %19749 = vst [vmem:[#allocation301_spill] sm:$0xff] %v12667_v20 }
 0x8c8   : > { %v12671_v5 = vpop.permute.xlu1 %4349  ;;  %3594 = vrot.lane.b32.xlu0 %v11993_v39, %s10382_s6 }
 0x8c9   : > { %19750 = vst [vmem:[#allocation302_spill] sm:$0xff] %v12671_v5  ;;  %v19754_v5 = vld [vmem:[#allocation30_spill] sm:$0xff] }
 0x8ca   : > { %v12675_v31 = vpop.permute.xlu0 %2314  ;;  %3596 = vrot.lane.b32.xlu1 %v19752_v29, %s10382_s6  ;;  %v12693_v16 = vmul.f32 %v19752_v29, %v19754_v5 }
 0x8cb   : > { %19751 = vst [vmem:[#allocation303_spill] sm:$0xff] %v12675_v31 }
 0x8cc   : > { %v12679_v8 = vpop.permute.xlu1 %2316  ;;  %4367 = vrot.lane.b32.xlu0 %v11993_v39, %s10381_s30  ;;  %19755 = vst [vmem:[#allocation305_spill] sm:$0xff] %v12693_v16  ;;  %v12705_v39 = vmul.f32 %v12013_v28, %v12013_v28 }
 0x8cd   : > { %19753 = vst [vmem:[#allocation304_spill] sm:$0xff] %v12679_v8  ;;  %v12697_v8 = vmul.f32 %v19756_v51, %v19756_v51 }
 0x8ce   : > { %v12683_v13 = vpop.permute.xlu0 %2750  ;;  %4369 = vrot.lane.b32.xlu1 %v19752_v29, %s10381_s30  ;;  %19759 = vst [vmem:[#allocation307_spill] sm:$0xff] %v12705_v39 }
 0x8cf   : > { %19757 = vst [vmem:[#allocation176_spill] sm:$0xff] %v12697_v8 }
 0x8d0   : > { %v12687_v20 = vpop.permute.xlu1 %2752  ;;  %2334 = vrot.lane.b32.xlu0 %v12665_v45, %s10382_s6  ;;  %v19764_v45 = vld [vmem:[#allocation31_spill] sm:$0xff] }
 0x8d2   : > { %v12699_v31 = vpop.permute.xlu0 %2926  ;;  %2336 = vrot.lane.b32.xlu1 %v12693_v16, %s10382_s6 }
 0x8d3   : > { %19758 = vst [vmem:[#allocation306_spill] sm:$0xff] %v12699_v31 }
 0x8d4   : > { %v12707_v50 = vpop.permute.xlu1 %2928  ;;  %2770 = vrot.lane.b32.xlu0 %v12697_v8, %s10382_s6 }
 0x8d6   : > { %v12711_v29 = vpop.permute.xlu0 %2488  ;;  %2772 = vrot.lane.b32.xlu1 %v12705_v39, %s10382_s6 }
 0x8d7   : > { %19760 = vst [vmem:[#allocation308_spill] sm:$0xff] %v12711_v29  ;;  %v12729_v29 = vmul.f32 %v12021_v9, %v19764_v45 }
 0x8d8   : > { %v12715_v51 = vpop.permute.xlu1 %2490  ;;  %2946 = vrot.lane.b32.xlu0 %v12697_v8, %s10381_s30 }
 0x8d9   : > { %19761 = vst [vmem:[#allocation309_spill] sm:$0xff] %v12715_v51  ;;  %19765 = vst [vmem:[#allocation312_spill] sm:$0xff] %v12729_v29 }
 0x8da   : > { %v12719_v5 = vpop.permute.xlu0 %3578  ;;  %2948 = vrot.lane.b32.xlu1 %v12705_v39, %s10381_s30 }
 0x8db   : > { %19762 = vst [vmem:[#allocation310_spill] sm:$0xff] %v12719_v5  ;;  %v19774_v5 = vld [vmem:[#allocation182_spill] sm:$0xff] }
 0x8dc   : > { %v12723_v28 = vpop.permute.xlu1 %3580  ;;  %2508 = vrot.lane.b32.xlu0 %v12693_v16, %s10381_s30 }
 0x8dd   : > { %19763 = vst [vmem:[#allocation311_spill] sm:$0xff] %v12723_v28 }
 0x8de   : > { %v12731_v31 = vpop.permute.xlu0 %4351  ;;  %2510 = vrot.lane.b32.xlu1 %v12729_v29, %s10381_s30 }
 0x8df   : > { %19766 = vst [vmem:[#allocation313_spill] sm:$0xff] %v12731_v31 }
 0x8e0   : > { %v12735_v8 = vpop.permute.xlu1 %4353  ;;  %3598 = vrot.lane.b32.xlu0 %v12021_v9, %s10382_s6 }
 0x8e1   : > { %19767 = vst [vmem:[#allocation314_spill] sm:$0xff] %v12735_v8  ;;  %v19772_v8 = vld [vmem:[#allocation33_spill] sm:$0xff] }
 0x8e2   : > { %v12739_v39 = vpop.permute.xlu0 %2318  ;;  %3600 = vrot.lane.b32.xlu1 %v12047_v62, %s10382_s6  ;;  %v12757_v31 = vmul.f32 %v12047_v62, %v19772_v8 }
 0x8e3   : > { %19768 = vst [vmem:[#allocation315_spill] sm:$0xff] %v12739_v39 }
 0x8e4   : > { %v12743_v16 = vpop.permute.xlu1 %2320  ;;  %4371 = vrot.lane.b32.xlu0 %v12021_v9, %s10381_s30  ;;  %19773 = vst [vmem:[#allocation319_spill] sm:$0xff] %v12757_v31  ;;  %v19777_v9 = vld [vmem:[#allocation188_spill] sm:$0xff] }
 0x8e5   : > { %19769 = vst [vmem:[#allocation316_spill] sm:$0xff] %v12743_v16  ;;  %v12761_v16 = vmul.f32 %v19774_v5, %v19774_v5  ;;  %v12769_v39 = vmul.f32 %v19777_v9, %v19777_v9 }
 0x8e6   : > { %v12747_v45 = vpop.permute.xlu0 %2754  ;;  %4373 = vrot.lane.b32.xlu1 %v12047_v62, %s10381_s30 }
 0x8e7   : > { %19770 = vst [vmem:[#allocation317_spill] sm:$0xff] %v12747_v45  ;;  %19775 = vst [vmem:[#allocation182_spill] sm:$0xff] %v12761_v16 }
 0x8e8   : > { %v12751_v28 = vpop.permute.xlu1 %2756  ;;  %2338 = vrot.lane.b32.xlu0 %v12729_v29, %s10382_s6  ;;  %19778 = vst [vmem:[#allocation188_spill] sm:$0xff] %v12769_v39  ;;  %v19784_v29 = vld [vmem:[#allocation36_spill] sm:$0xff] }
 0x8e9   : > { %19771 = vst [vmem:[#allocation318_spill] sm:$0xff] %v12751_v28  ;;  %v19810_v28 = vld [vmem:[#allocation192_spill] sm:$0xff] }
 0x8ea   : > { %v12763_v51 = vpop.permute.xlu0 %2930  ;;  %2340 = vrot.lane.b32.xlu1 %v12757_v31, %s10382_s6 }
 0x8eb   : > { %19776 = vst [vmem:[#allocation320_spill] sm:$0xff] %v12763_v51 }
 0x8ec   : > { %v12771_v45 = vpop.permute.xlu1 %2932  ;;  %2774 = vrot.lane.b32.xlu0 %v12761_v16, %s10382_s6 }
 0x8ed   : > { %19779 = vst [vmem:[#allocation321_spill] sm:$0xff] %v12771_v45 }
 0x8ee   : > { %v12775_v62 = vpop.permute.xlu0 %2492  ;;  %2776 = vrot.lane.b32.xlu1 %v12769_v39, %s10382_s6 }
 0x8ef   : > { %19780 = vst [vmem:[#allocation322_spill] sm:$0xff] %v12775_v62  ;;  %v19785_v62 = vld [vmem:[#allocation191_spill] sm:$0xff] }
 0x8f0   : > { %v12779_v5 = vpop.permute.xlu1 %2494  ;;  %2950 = vrot.lane.b32.xlu0 %v12761_v16, %s10381_s30  ;;  %v12793_v51 = vmul.f32 %v19785_v62, %v19784_v29 }
 0x8f1   : > { %19781 = vst [vmem:[#allocation323_spill] sm:$0xff] %v12779_v5 }
 0x8f2   : > { %v12783_v8 = vpop.permute.xlu0 %3582  ;;  %2952 = vrot.lane.b32.xlu1 %v12769_v39, %s10381_s30  ;;  %19786 = vst [vmem:[#allocation326_spill] sm:$0xff] %v12793_v51 }
 0x8f3   : > { %19782 = vst [vmem:[#allocation324_spill] sm:$0xff] %v12783_v8 }
 0x8f4   : > { %v12787_v9 = vpop.permute.xlu1 %3584  ;;  %2512 = vrot.lane.b32.xlu0 %v12757_v31, %s10381_s30 }
 0x8f5   : > { %19783 = vst [vmem:[#allocation325_spill] sm:$0xff] %v12787_v9 }
 0x8f6   : > { %v12795_v45 = vpop.permute.xlu0 %4355  ;;  %2514 = vrot.lane.b32.xlu1 %v12793_v51, %s10381_s30 }
 0x8f7   : > { %19787 = vst [vmem:[#allocation327_spill] sm:$0xff] %v12795_v45 }
 0x8f8   : > { %v12799_v16 = vpop.permute.xlu1 %4357  ;;  %3602 = vrot.lane.b32.xlu0 %v19785_v62, %s10382_s6 }
 0x8f9   : > { %19788 = vst [vmem:[#allocation328_spill] sm:$0xff] %v12799_v16  ;;  %v19793_v16 = vld [vmem:[#allocation39_spill] sm:$0xff] }
 0x8fa   : > { %v12803_v39 = vpop.permute.xlu0 %2322  ;;  %3604 = vrot.lane.b32.xlu1 %v12079_v32, %s10382_s6  ;;  %v12821_v45 = vmul.f32 %v12079_v32, %v19793_v16 }
 0x8fb   : > { %19789 = vst [vmem:[#allocation329_spill] sm:$0xff] %v12803_v39 }
 0x8fc   : > { %v12807_v31 = vpop.permute.xlu1 %2324  ;;  %4375 = vrot.lane.b32.xlu0 %v19785_v62, %s10381_s30  ;;  %19794 = vst [vmem:[#allocation333_spill] sm:$0xff] %v12821_v45  ;;  %v12833_v62 = vmul.f32 %v12081_v37, %v12081_v37  ;;  %v19802_v37 = vld [vmem:[#allocation78_spill] sm:$0xff] }
 0x8fd   : > { %19790 = vst [vmem:[#allocation330_spill] sm:$0xff] %v12807_v31  ;;  %v12825_v31 = vmul.f32 %v12067_v59, %v12067_v59 }
 0x8fe   : > { %v12811_v29 = vpop.permute.xlu0 %2758  ;;  %4377 = vrot.lane.b32.xlu1 %v12079_v32, %s10381_s30  ;;  %19797 = vst [vmem:[#allocation336_spill] sm:$0xff] %v12833_v62 }
 0x8ff   : > { %19791 = vst [vmem:[#allocation331_spill] sm:$0xff] %v12811_v29  ;;  %19795 = vst [vmem:[#allocation334_spill] sm:$0xff] %v12825_v31 }
 0x900   : > { %v12815_v9 = vpop.permute.xlu1 %2760  ;;  %2342 = vrot.lane.b32.xlu0 %v12793_v51, %s10382_s6  ;;  %v19803_v51 = vld [vmem:[#allocation186_spill] sm:$0xff] }
 0x901   : > { %19792 = vst [vmem:[#allocation332_spill] sm:$0xff] %v12815_v9  ;;  %v2846_v39 = vadd.f32 %v19803_v51, %v19802_v37  ;;  %v19809_v9 = vld [vmem:[#allocation183_spill] sm:$0xff]  ;;  %v19812_v51 = vld [vmem:[#allocation190_spill] sm:$0xff] }
 0x902   : > { %v12827_v8 = vpop.permute.xlu0 %2934  ;;  %2344 = vrot.lane.b32.xlu1 %v12821_v45, %s10382_s6 }
 0x903   : > { %19796 = vst [vmem:[#allocation335_spill] sm:$0xff] %v12827_v8 }
 0x904   : > { %v12835_v5 = vpop.permute.xlu1 %2936  ;;  %2778 = vrot.lane.b32.xlu0 %v12825_v31, %s10382_s6 }
 0x905   : > { %19798 = vst [vmem:[#allocation337_spill] sm:$0xff] %v12835_v5  ;;  %v19806_v5 = vld [vmem:[#allocation198_spill] sm:$0xff] }
 0x906   : > { %v12839_v32 = vpop.permute.xlu0 %2496  ;;  %2780 = vrot.lane.b32.xlu1 %v12833_v62, %s10382_s6 }
 0x907   : > { %19799 = vst [vmem:[#allocation338_spill] sm:$0xff] %v12839_v32  ;;  %v19805_v32 = vld [vmem:[#allocation42_spill] sm:$0xff] }
 0x908   : > { %v12843_v59 = vpop.permute.xlu1 %2498  ;;  %2954 = vrot.lane.b32.xlu0 %v12825_v31, %s10381_s30  ;;  %v12859_v29 = vmul.f32 %v19806_v5, %v19805_v32 }
 0x909   : > { %19800 = vst [vmem:[#allocation339_spill] sm:$0xff] %v12843_v59  ;;  %v19808_v59 = vld [vmem:[#allocation75_spill] sm:$0xff] }
 0x90a   : > { %v12847_v16 = vpop.permute.xlu0 %3586  ;;  %2956 = vrot.lane.b32.xlu1 %v12833_v62, %s10381_s30  ;;  %19807 = vst [vmem:[#allocation186_spill] sm:$0xff] %v12859_v29  ;;  %v2847_v31 = vadd.f32 %v19809_v9, %v19808_v59 }
 0x90b   : > { %19801 = vst [vmem:[#allocation340_spill] sm:$0xff] %v12847_v16  ;;  %v3022_v16 = vadd.f32 %v19810_v28, %v2846_v39 }
 0x90c   : > { %v12853_v8 = vpop.permute.xlu1 %3588  ;;  %2516 = vrot.lane.b32.xlu0 %v12821_v45, %s10381_s30  ;;  %v3023_v37 = vadd.f32 %v19812_v51, %v2847_v31 }
 0x90d   : > { %19804 = vst [vmem:[#allocation78_spill] sm:$0xff] %v12853_v8  ;;  %v3066_v45 = vadd.f32 1e-06, %v3022_v16  ;;  %v19815_v8 = vld [vmem:[#allocation203_spill] sm:$0xff]  ;;  %v19819_v16 = vld [vmem:[#allocation45_spill] sm:$0xff] }
 0x90e   : > { %v12864_v53 = vpop.permute.xlu0 %4359  ;;  %2518 = vrot.lane.b32.xlu1 %v12859_v29, %s10381_s30  ;;  %v3067_v9 = vadd.f32 1e-06, %v3023_v37  ;;  %v12891_v37 = vmul.f32 %v19815_v8, %v19819_v16 }
 0x90f   : > { %19811 = vst [vmem:[#allocation75_spill] sm:$0xff] %v12864_v53  ;;  %v3154_v28 = vrot.slane %v3066_v45, 5  ;;  %v19821_v53 = vld [vmem:[#allocation200_spill] sm:$0xff] }
 0x910   : > { %v12869_v62 = vpop.permute.xlu1 %4361  ;;  %3606 = vrot.lane.b32.xlu0 %v19806_v5, %s10382_s6  ;;  %v3155_v31 = vrot.slane %v3067_v9, 5  ;;  %19820 = vst [vmem:[#allocation343_spill] sm:$0xff] %v12891_v37  ;;  %v12896_v45 = vmul.f32 %v19821_v53, %v19821_v53  ;;  %v12904_v9 = vmul.f32 %v12113_v35, %v12113_v35 }
 0x911   : > { %19813 = vst [vmem:[#allocation183_spill] sm:$0xff] %v12869_v62 }
 0x912   : > { %v12873_v32 = vpop.permute.xlu0 %2326  ;;  %3608 = vrot.lane.b32.xlu1 %v19815_v8, %s10382_s6  ;;  %v3156_v62 = vsel %vm330_vm2, %v3154_v28, %v3155_v31  ;;  %19822 = vst [vmem:[#allocation200_spill] sm:$0xff] %v12896_v45  ;;  %19824 = vst [vmem:[#allocation345_spill] sm:$0xff] %v12904_v9 }
 0x913   : > { %19814 = vst [vmem:[#allocation192_spill] sm:$0xff] %v12873_v32  ;;  %10285 = vrcp.f32 %v3156_v62  ;;  %v19828_v62 = vld [vmem:[#allocation91_spill] sm:$0xff] }
 0x914   : > { %v12877_v39 = vpop.permute.xlu1 %2328  ;;  %4379 = vrot.lane.b32.xlu0 %v19806_v5, %s10381_s30 }
 0x915   : > { %19816 = vst [vmem:[#allocation190_spill] sm:$0xff] %v12877_v39 }
 0x916   : > { %v12881_v59 = vpop.permute.xlu0 %2762  ;;  %4381 = vrot.lane.b32.xlu1 %v19815_v8, %s10381_s30  ;;  %v2848_v8 = vadd.f32 %v12123_v63, %v19828_v62 }
 0x917   : > { %19817 = vst [vmem:[#allocation341_spill] sm:$0xff] %v12881_v59  ;;  %v19846_v59 = vld [vmem:[#allocation213_spill] sm:$0xff] }
 0x918   : > { %v12885_v51 = vpop.permute.xlu1 %2764  ;;  %2346 = vrot.lane.b32.xlu0 %v12859_v29, %s10382_s6  ;;  %v3024_v16 = vadd.f32 %v12142_v1, %v2848_v8  ;;  %v19838_v1 = vld [vmem:[#allocation193_spill] sm:$0xff] }
 0x919   : > { %19818 = vst [vmem:[#allocation342_spill] sm:$0xff] %v12885_v51 }
 0x91a   : > { %v12898_v5 = vpop.permute.xlu0 %2938  ;;  %2348 = vrot.lane.b32.xlu1 %v12891_v37, %s10382_s6  ;;  %v3068_v62 = vadd.f32 1e-06, %v3024_v16 }
 0x91b   : > { %19823 = vst [vmem:[#allocation344_spill] sm:$0xff] %v12898_v5  ;;  %v19835_v5 = vld [vmem:[#allocation202_spill] sm:$0xff] }
 0x91c   : > { %v12906_v29 = vpop.permute.xlu1 %2940  ;;  %2782 = vrot.lane.b32.xlu0 %v12896_v45, %s10382_s6 }
 0x91d   : > { %19825 = vst [vmem:[#allocation346_spill] sm:$0xff] %v12906_v29 }
 0x91e   : > { %v12910_v28 = vpop.permute.xlu0 %2500  ;;  %2784 = vrot.lane.b32.xlu1 %v12904_v9, %s10382_s6 }
 0x91f   : > { %19826 = vst [vmem:[#allocation347_spill] sm:$0xff] %v12910_v28  ;;  %v19831_v28 = vld [vmem:[#allocation48_spill] sm:$0xff] }
 0x920   : > { %v12914_v53 = vpop.permute.xlu1 %2502  ;;  %2958 = vrot.lane.b32.xlu0 %v12896_v45, %s10381_s30  ;;  %v19834_v45 = vld [vmem:[#allocation82_spill] sm:$0xff]  ;;  %v10286_v8 = vpop.eup %10285 }
 0x921   : > { %19827 = vst [vmem:[#allocation348_spill] sm:$0xff] %v12914_v53  ;;  %v19832_v53 = vld [vmem:[#allocation205_spill] sm:$0xff]  ;;  %v2411_v29 = vadd.f32 %v19835_v5, %v19834_v45  ;;  %v19842_v5 = vld [vmem:[#allocation94_spill] sm:$0xff]  ;;  %v19843_v45 = vld [vmem:[#allocation207_spill] sm:$0xff] }
 0x922   : > { %v12920_v35 = vpop.permute.xlu0 %3590  ;;  %2960 = vrot.lane.b32.xlu1 %v12904_v9, %s10381_s30  ;;  %v12931_v32 = vmul.f32 %v19832_v53, %v19831_v28 }
 0x923   : > { %19829 = vst [vmem:[#allocation91_spill] sm:$0xff] %v12920_v35  ;;  %v3157_v35 = vrot.slane %v3068_v62, 5  ;;  %v19847_v62 = vld [vmem:[#allocation194_spill] sm:$0xff] }
 0x924   : > { %v12925_v39 = vpop.permute.xlu1 %3592  ;;  %2520 = vrot.lane.b32.xlu0 %v12891_v37, %s10381_s30  ;;  %19833 = vst [vmem:[#allocation350_spill] sm:$0xff] %v12931_v32  ;;  %v12944_v37 = vadd.f32 %v19838_v1, %v2411_v29 }
 0x925   : > { %19830 = vst [vmem:[#allocation349_spill] sm:$0xff] %v12925_v39  ;;  %v19841_v39 = vld [vmem:[#allocation210_spill] sm:$0xff] }
 0x926   : > { %v12935_v63 = vpop.permute.xlu0 %4363  ;;  %2522 = vrot.lane.b32.xlu1 %v12931_v32, %s10381_s30  ;;  %19839 = vst [vmem:[#allocation193_spill] sm:$0xff] %v12944_v37  ;;  %v12953_v16 = vmul.f32 %v10286_v8, %v12944_v37 }
 0x927   : > { %19836 = vst [vmem:[#allocation82_spill] sm:$0xff] %v12935_v63  ;;  %v2849_v63 = vadd.f32 %v19843_v45, %v19842_v5  ;;  %v19848_v45 = vld [vmem:[#allocation206_spill] sm:$0xff] }
 0x928   : > { %v12939_v9 = vpop.permute.xlu1 %4365  ;;  %3610 = vrot.lane.b32.xlu0 %v19832_v53, %s10382_s6  ;;  %19844 = vst [vmem:[#allocation94_spill] sm:$0xff] %v12953_v16  ;;  %v3671_v8 = vmul.f32 %v19847_v62, %v12953_v16 }
 0x929   : > { %19837 = vst [vmem:[#allocation202_spill] sm:$0xff] %v12939_v9  ;;  %v3025_v29 = vadd.f32 %v19846_v59, %v2849_v63 }
 0x92a   : > { %v12946_v28 = vpop.permute.xlu0 %2330  ;;  %3612 = vrot.lane.b32.xlu1 %v19841_v39, %s10382_s6 }
 0x92b   : > { %19840 = vst [vmem:[#allocation351_spill] sm:$0xff] %v12946_v28  ;;  %v3158_v28 = vsel %vm330_vm2, %v3155_v31, %v3157_v35  ;;  %v3069_v5 = vadd.f32 1e-06, %v3025_v29  ;;  %v19850_v31 = vld [vmem:[#allocation199_spill] sm:$0xff] }
 0x92c   : > { %v12955_v9 = vpop.permute.xlu1 %2332  ;;  %4383 = vrot.lane.b32.xlu0 %v19832_v53, %s10381_s30  ;;  %v12973_v53 = vmul.f32 %v19848_v45, %v19848_v45  ;;  %10287 = vrcp.f32 %v3158_v28  ;;  %v4444_v37 = vmul.f32 %v19850_v31, %v12953_v16  ;;  %v19853_v28 = vld [vmem:[#allocation51_spill] sm:$0xff]  ;;  %v19859_v16 = vld [vmem:[#allocation90_spill] sm:$0xff] }
 0x92d   : > { %19845 = vst [vmem:[#allocation207_spill] sm:$0xff] %v12955_v9 }
 0x92e   : > { %v12960_v1 = vpop.permute.xlu0 %2766  ;;  %4385 = vrot.lane.b32.xlu1 %v19841_v39, %s10381_s30  ;;  %19849 = vst [vmem:[#allocation213_spill] sm:$0xff] %v12973_v53 }
 0x930   : > { %v12965_v51 = vpop.permute.xlu1 %2768  ;;  %2350 = vrot.lane.b32.xlu0 %v12931_v32, %s10382_s6  ;;  %v3159_v32 = vrot.slane %v3069_v5, 5  ;;  %v19856_v5 = vld [vmem:[#allocation211_spill] sm:$0xff] }
 0x931   : > { %v13002_v31 = vmul.f32 %v19856_v5, %v19856_v5 }
 0x932   : > { %v12975_v59 = vpop.permute.xlu0 %2942  ;;  %3757 = vrot.lane.b32.xlu1 %v3671_v8, %s10384_s8  ;;  %v12993_v8 = vmul.f32 %v19841_v39, %v19853_v28  ;;  %v3160_v45 = vsel %vm330_vm2, %v3157_v35, %v3159_v32  ;;  %v19860_v39 = vld [vmem:[#allocation204_spill] sm:$0xff] }
 0x933   : > { %19857 = vst [vmem:[#allocation211_spill] sm:$0xff] %v13002_v31  ;;  %10289 = vrcp.f32 %v3160_v45  ;;  %v2412_v28 = vadd.f32 %v19860_v39, %v19859_v16  ;;  %v19865_v45 = vld [vmem:[#allocation215_spill] sm:$0xff] }
 0x934   : > { %v12978_v63 = vpop.permute.xlu1 %2944  ;;  %2786 = vrot.lane.b32.xlu0 %v12973_v53, %s10382_s6  ;;  %19854 = vst [vmem:[#allocation199_spill] sm:$0xff] %v12993_v8 }
 0x936   : > { %v12984_v62 = vpop.permute.xlu0 %2504  ;;  %4530 = vrot.lane.b32.xlu1 %v4444_v37, %s10383_s7 }
 0x937   : > { %19851 = vst [vmem:[#allocation194_spill] sm:$0xff] %v12984_v62 }
 0x938   : > { %v12987_v29 = vpop.permute.xlu1 %2506  ;;  %2962 = vrot.lane.b32.xlu0 %v12973_v53, %s10381_s30 }
 0x939   : > { %19852 = vst [vmem:[#allocation206_spill] sm:$0xff] %v12987_v29  ;;  %v10288_v35 = vpop.eup %10287 }
 0x93a   : > { %v12996_v9 = vpop.permute.xlu0 %3594  ;;  %2352 = vrot.lane.b32.xlu1 %v12993_v8, %s10382_s6 }
 0x93b   : > { %19855 = vst [vmem:[#allocation352_spill] sm:$0xff] %v12996_v9  ;;  %v19862_v9 = vld [vmem:[#allocation214_spill] sm:$0xff] }
 0x93c   : > { %v13004_v37 = vpop.permute.xlu1 %3596  ;;  %2524 = vrot.lane.b32.xlu0 %v12993_v8, %s10381_s30  ;;  %v13015_v62 = vadd.f32 %v19862_v9, %v2412_v28  ;;  %v19870_v28 = vld [vmem:[#allocation54_spill] sm:$0xff] }
 0x93d   : > { %19858 = vst [vmem:[#allocation353_spill] sm:$0xff] %v13004_v37  ;;  %v19866_v37 = vld [vmem:[#allocation111_spill] sm:$0xff] }
 0x93e   : > { %v13010_v53 = vpop.permute.xlu0 %4367  ;;  %2788 = vrot.lane.b32.xlu1 %v13002_v31, %s10382_s6  ;;  %19863 = vst [vmem:[#allocation204_spill] sm:$0xff] %v13015_v62  ;;  %v2850_v8 = vadd.f32 %v12220_v38, %v19866_v37  ;;  %v13024_v29 = vmul.f32 %v10288_v35, %v13015_v62  ;;  %v19872_v38 = vld [vmem:[#allocation100_spill] sm:$0xff] }
 0x93f   : > { %19861 = vst [vmem:[#allocation90_spill] sm:$0xff] %v13010_v53  ;;  %v2413_v37 = vadd.f32 %v12206_v22, %v19872_v38  ;;  %v19873_v62 = vld [vmem:[#allocation196_spill] sm:$0xff]  ;;  %v19875_v22 = vld [vmem:[#allocation201_spill] sm:$0xff] }
 0x940   : > { %v13017_v5 = vpop.permute.xlu1 %4369  ;;  %3614 = vrot.lane.b32.xlu0 %v19865_v45, %s10382_s6  ;;  %19867 = vst [vmem:[#allocation111_spill] sm:$0xff] %v13024_v29  ;;  %v3026_v16 = vadd.f32 %v12242_v56, %v2850_v8  ;;  %v3672_v56 = vmul.f32 %v19873_v62, %v13024_v29  ;;  %v10290_v53 = vpop.eup %10289  ;;  %v4445_v38 = vmul.f32 %v19875_v22, %v13024_v29 }
 0x941   : > { %19864 = vst [vmem:[#allocation214_spill] sm:$0xff] %v13017_v5  ;;  %v13037_v5 = vmul.f32 %v19865_v45, %v19870_v28 }
 0x942   : > { %v13026_v39 = vpop.permute.xlu0 %2334  ;;  %2964 = vrot.lane.b32.xlu1 %v13002_v31, %s10381_s30  ;;  %v3070_v8 = vadd.f32 1e-06, %v3026_v16 }
 0x943   : > { %19868 = vst [vmem:[#allocation354_spill] sm:$0xff] %v13026_v39  ;;  %19871 = vst [vmem:[#allocation356_spill] sm:$0xff] %v13037_v5 }
 0x944   : > { %v13031_v9 = vpop.permute.xlu1 %2336  ;;  %4387 = vrot.lane.b32.xlu0 %v19865_v45, %s10381_s30  ;;  %v13051_v45 = vadd.f32 %v12170_v58, %v2413_v37  ;;  %v3161_v16 = vrot.slane %v3070_v8, 5  ;;  %v19880_v8 = vld [vmem:[#allocation216_spill] sm:$0xff] }
 0x945   : > { %19869 = vst [vmem:[#allocation355_spill] sm:$0xff] %v13031_v9  ;;  %v19876_v9 = vld [vmem:[#allocation115_spill] sm:$0xff] }
 0x946   : > { %v13041_v35 = vpop.permute.xlu0 %2770  ;;  %2526 = vrot.lane.b32.xlu1 %v13037_v5, %s10381_s30  ;;  %19874 = vst [vmem:[#allocation100_spill] sm:$0xff] %v13051_v45  ;;  %v2851_v62 = vadd.f32 %v12230_v0, %v19876_v9  ;;  %v13062_v39 = vmul.f32 %v10290_v53, %v13051_v45  ;;  %v3162_v22 = vsel %vm330_vm2, %v3159_v32, %v3161_v16  ;;  %v19879_v0 = vld [vmem:[#allocation217_spill] sm:$0xff]  ;;  %v19884_v32 = vld [vmem:[#allocation222_spill] sm:$0xff] }
 0x947   : > { %10291 = vrcp.f32 %v3162_v22  ;;  %v19887_v22 = vld [vmem:[#allocation57_spill] sm:$0xff] }
 0x948   : > { %v13047_v31 = vpop.permute.xlu1 %2772  ;;  %3759 = vrot.lane.b32.xlu0 %v3672_v56, %s10384_s8  ;;  %19877 = vst [vmem:[#allocation196_spill] sm:$0xff] %v13062_v39  ;;  %v3027_v58 = vadd.f32 %v12256_v49, %v2851_v62  ;;  %v3673_v53 = vmul.f32 %v19879_v0, %v13062_v39  ;;  %v4446_v45 = vmul.f32 %v19884_v32, %v13062_v39  ;;  %v19892_v39 = vld [vmem:[#allocation110_spill] sm:$0xff] }
 0x94a   : > { %v13053_v28 = vpop.permute.xlu0 %2946  ;;  %3616 = vrot.lane.b32.xlu1 %v12179_v27, %s10382_s6  ;;  %v3071_v9 = vadd.f32 1e-06, %v3027_v58 }
 0x94c   : > { %v13064_v56 = vpop.permute.xlu1 %2948  ;;  %4532 = vrot.lane.b32.xlu0 %v4445_v38, %s10383_s7  ;;  %v13081_v38 = vmul.f32 %v19880_v8, %v19880_v8 }
 0x94e   : > { %v13068_v37 = vpop.permute.xlu0 %2508  ;;  %4389 = vrot.lane.b32.xlu1 %v12179_v27, %s10381_s30  ;;  %19881 = vst [vmem:[#allocation115_spill] sm:$0xff] %v13081_v38 }
 0x94f   : > { %19878 = vst [vmem:[#allocation201_spill] sm:$0xff] %v13068_v37  ;;  %v19906_v37 = vld [vmem:[#allocation139_spill] sm:$0xff] }
 0x950   : > { %v13073_v29 = vpop.permute.xlu1 %2510  ;;  %2354 = vrot.lane.b32.xlu0 %v13037_v5, %s10382_s6  ;;  %v3163_v5 = vrot.slane %v3071_v9, 5  ;;  %v19889_v9 = vld [vmem:[#allocation219_spill] sm:$0xff] }
 0x951   : > { %v13110_v32 = vmul.f32 %v19889_v9, %v19889_v9 }
 0x952   : > { %v13083_v49 = vpop.permute.xlu0 %3598  ;;  %3761 = vrot.lane.b32.xlu1 %v3673_v53, %s10384_s8  ;;  %v13101_v53 = vmul.f32 %v12179_v27, %v19887_v22  ;;  %v3164_v8 = vsel %vm330_vm2, %v3161_v16, %v3163_v5  ;;  %v2414_v27 = vadd.f32 %v12216_v44, %v19892_v39 }
 0x953   : > { %19882 = vst [vmem:[#allocation217_spill] sm:$0xff] %v13083_v49  ;;  %19890 = vst [vmem:[#allocation219_spill] sm:$0xff] %v13110_v32  ;;  %10293 = vrcp.f32 %v3164_v8  ;;  %v19894_v8 = vld [vmem:[#allocation223_spill] sm:$0xff] }
 0x954   : > { %v13086_v62 = vpop.permute.xlu1 %3600  ;;  %2790 = vrot.lane.b32.xlu0 %v13081_v38, %s10382_s6  ;;  %19888 = vst [vmem:[#allocation358_spill] sm:$0xff] %v13101_v53  ;;  %v10292_v16 = vpop.eup %10291 }
 0x955   : > { %19883 = vst [vmem:[#allocation216_spill] sm:$0xff] %v13086_v62 }
 0x956   : > { %v13092_v0 = vpop.permute.xlu0 %4371  ;;  %4534 = vrot.lane.b32.xlu1 %v4446_v45, %s10383_s7 }
 0x957   : > { %19885 = vst [vmem:[#allocation222_spill] sm:$0xff] %v13092_v0 }
 0x958   : > { %v13095_v58 = vpop.permute.xlu1 %4373  ;;  %2966 = vrot.lane.b32.xlu0 %v13081_v38, %s10381_s30  ;;  %v13123_v38 = vadd.f32 %v12260_v3, %v2414_v27  ;;  %v19897_v27 = vld [vmem:[#allocation60_spill] sm:$0xff] }
 0x959   : > { %19886 = vst [vmem:[#allocation357_spill] sm:$0xff] %v13095_v58  ;;  %v19895_v58 = vld [vmem:[#allocation135_spill] sm:$0xff] }
 0x95a   : > { %v13104_v62 = vpop.permute.xlu0 %2338  ;;  %2356 = vrot.lane.b32.xlu1 %v13101_v53, %s10382_s6  ;;  %19893 = vst [vmem:[#allocation110_spill] sm:$0xff] %v13123_v38  ;;  %v13132_v0 = vmul.f32 %v10292_v16, %v13123_v38  ;;  %v19901_v38 = vld [vmem:[#allocation220_spill] sm:$0xff] }
 0x95c   : > { %v13112_v45 = vpop.permute.xlu1 %2340  ;;  %2528 = vrot.lane.b32.xlu0 %v13101_v53, %s10381_s30  ;;  %v2852_v53 = vadd.f32 %v12299_v46, %v19895_v58  ;;  %19896 = vst [vmem:[#allocation135_spill] sm:$0xff] %v13132_v0  ;;  %v19899_v46 = vld [vmem:[#allocation123_spill] sm:$0xff] }
 0x95d   : > { %19891 = vst [vmem:[#allocation359_spill] sm:$0xff] %v13112_v45  ;;  %v13145_v45 = vmul.f32 %v19894_v8, %v19897_v27  ;;  %v2415_v58 = vadd.f32 %v12291_v2, %v19899_v46  ;;  %v19904_v2 = vld [vmem:[#allocation226_spill] sm:$0xff]  ;;  %v19905_v46 = vld [vmem:[#allocation225_spill] sm:$0xff] }
 0x95e   : > { %v13118_v22 = vpop.permute.xlu0 %2774  ;;  %2792 = vrot.lane.b32.xlu1 %v13110_v32, %s10382_s6  ;;  %v3028_v39 = vadd.f32 %v12315_v47, %v2852_v53  ;;  %v3674_v47 = vmul.f32 %v19901_v38, %v13132_v0  ;;  %v2853_v38 = vadd.f32 %v12303_v23, %v19906_v37 }
 0x95f   : > { %19898 = vst [vmem:[#allocation360_spill] sm:$0xff] %v13145_v45 }
 0x960   : > { %v13125_v9 = vpop.permute.xlu1 %2776  ;;  %3618 = vrot.lane.b32.xlu0 %v19894_v8, %s10382_s6  ;;  %v3072_v53 = vadd.f32 1e-06, %v3028_v39  ;;  %v10294_v49 = vpop.eup %10293 }
 0x962   : > { %v13134_v44 = vpop.permute.xlu0 %2950  ;;  %2968 = vrot.lane.b32.xlu1 %v13110_v32, %s10381_s30  ;;  %v3165_v39 = vrot.slane %v3072_v53, 5 }
 0x964   : > { %v13139_v3 = vpop.permute.xlu1 %2952  ;;  %4391 = vrot.lane.b32.xlu0 %v19894_v8, %s10381_s30  ;;  %v13159_v8 = vadd.f32 %v12267_v61, %v2415_v58  ;;  %v3029_v61 = vadd.f32 %v12323_v36, %v2853_v38 }
 0x966   : > { %v13149_v16 = vpop.permute.xlu0 %2512  ;;  %2530 = vrot.lane.b32.xlu1 %v13145_v45, %s10381_s30  ;;  %19903 = vst [vmem:[#allocation361_spill] sm:$0xff] %v13159_v8  ;;  %v13187_v37 = vadd.f32 1e-06, %v3029_v61 }
 0x967   : > { %19900 = vst [vmem:[#allocation123_spill] sm:$0xff] %v13149_v16  ;;  %v4447_v16 = vmul.f32 %v19905_v46, %v13132_v0  ;;  %v3166_v46 = vsel %vm330_vm2, %v3163_v5, %v3165_v39 }
 0x968   : > { %v13155_v32 = vpop.permute.xlu1 %2514  ;;  %3763 = vrot.lane.b32.xlu0 %v3674_v47, %s10384_s8  ;;  %10295 = vrcp.f32 %v3166_v46  ;;  %v19913_v46 = vld [vmem:[#allocation63_spill] sm:$0xff] }
 0x969   : > { %19902 = vst [vmem:[#allocation220_spill] sm:$0xff] %v13155_v32  ;;  %v13170_v32 = vmul.f32 %v10294_v49, %v13159_v8  ;;  %v19911_v49 = vld [vmem:[#allocation224_spill] sm:$0xff] }
 0x96a   : > { %v13161_v27 = vpop.permute.xlu0 %3602  ;;  %3620 = vrot.lane.b32.xlu1 %v19904_v2, %s10382_s6  ;;  %v13191_v36 = vmul.f32 %v19911_v49, %v19911_v49 }
 0x96b   : > { %19907 = vst [vmem:[#allocation225_spill] sm:$0xff] %v13170_v32  ;;  %v3675_v23 = vmul.f32 %v12271_v57, %v13170_v32  ;;  %v4448_v53 = vmul.f32 %v12283_v6, %v13170_v32  ;;  %v3167_v57 = vrot.slane %v13187_v37, 5  ;;  %v19915_v6 = vld [vmem:[#allocation227_spill] sm:$0xff]  ;;  %v19917_v32 = vld [vmem:[#allocation134_spill] sm:$0xff] }
 0x96c   : > { %v13172_v47 = vpop.permute.xlu1 %3604  ;;  %4536 = vrot.lane.b32.xlu0 %v4447_v16, %s10383_s7  ;;  %19912 = vst [vmem:[#allocation224_spill] sm:$0xff] %v13191_v36  ;;  %v13221_v37 = vmul.f32 %v19915_v6, %v19915_v6 }
 0x96d   : > { %19908 = vst [vmem:[#allocation139_spill] sm:$0xff] %v13172_v47  ;;  %v3168_v49 = vsel %vm330_vm2, %v3165_v39, %v3167_v57  ;;  %v19924_v47 = vld [vmem:[#allocation159_spill] sm:$0xff] }
 0x96e   : > { %v13176_v58 = vpop.permute.xlu0 %4375  ;;  %4393 = vrot.lane.b32.xlu1 %v19904_v2, %s10381_s30  ;;  %19916 = vst [vmem:[#allocation227_spill] sm:$0xff] %v13221_v37  ;;  %10297 = vrcp.f32 %v3168_v49  ;;  %v19923_v49 = vld [vmem:[#allocation228_spill] sm:$0xff] }
 0x96f   : > { %19909 = vst [vmem:[#allocation362_spill] sm:$0xff] %v13176_v58 }
 0x970   : > { %v13181_v0 = vpop.permute.xlu1 %4377  ;;  %2358 = vrot.lane.b32.xlu0 %v13145_v45, %s10382_s6 }
 0x971   : > { %19910 = vst [vmem:[#allocation363_spill] sm:$0xff] %v13181_v0 }
 0x972   : > { %v13193_v16 = vpop.permute.xlu0 %2342  ;;  %3765 = vrot.lane.b32.xlu1 %v3675_v23, %s10384_s8  ;;  %v13212_v23 = vmul.f32 %v19904_v2, %v19913_v46  ;;  %v19918_v2 = vld [vmem:[#allocation239_spill] sm:$0xff] }
 0x973   : > { %v2416_v46 = vadd.f32 %v19918_v2, %v19917_v32  ;;  %v19927_v2 = vld [vmem:[#allocation163_spill] sm:$0xff] }
 0x974   : > { %v13196_v5 = vpop.permute.xlu1 %2344  ;;  %2794 = vrot.lane.b32.xlu0 %v13191_v36, %s10382_s6  ;;  %19914 = vst [vmem:[#allocation364_spill] sm:$0xff] %v13212_v23 }
 0x975   : > { %v10296_v39 = vpop.eup %10295 }
 0x976   : > { %v13203_v38 = vpop.permute.xlu0 %2778  ;;  %4538 = vrot.lane.b32.xlu1 %v4448_v53, %s10383_s7 }
 0x978   : > { %v13206_v61 = vpop.permute.xlu1 %2780  ;;  %2970 = vrot.lane.b32.xlu0 %v13191_v36, %s10381_s30  ;;  %v19920_v36 = vld [vmem:[#allocation243_spill] sm:$0xff] }
 0x979   : > { %v13234_v0 = vadd.f32 %v19920_v36, %v2416_v46  ;;  %v2855_v36 = vadd.f32 %v12367_v52, %v19927_v2 }
 0x97a   : > { %v13215_v8 = vpop.permute.xlu0 %2954  ;;  %2360 = vrot.lane.b32.xlu1 %v13212_v23, %s10382_s6 }
 0x97b   : > { %19921 = vst [vmem:[#allocation239_spill] sm:$0xff] %v13234_v0  ;;  %v13243_v58 = vmul.f32 %v10296_v39, %v13234_v0  ;;  %v19931_v39 = vld [vmem:[#allocation147_spill] sm:$0xff] }
 0x97c   : > { %v13223_v53 = vpop.permute.xlu1 %2956  ;;  %2532 = vrot.lane.b32.xlu0 %v13212_v23, %s10381_s30  ;;  %v2854_v23 = vadd.f32 %v12363_v26, %v19924_v47  ;;  %v3031_v47 = vadd.f32 %v12387_v12, %v2855_v36  ;;  %v2417_v0 = vadd.f32 %v12355_v10, %v19931_v39  ;;  %v19937_v10 = vld [vmem:[#allocation233_spill] sm:$0xff]  ;;  %v19938_v39 = vld [vmem:[#allocation238_spill] sm:$0xff] }
 0x97d   : > { %19925 = vst [vmem:[#allocation159_spill] sm:$0xff] %v13243_v58 }
 0x97e   : > { %v13229_v45 = vpop.permute.xlu0 %2516  ;;  %2796 = vrot.lane.b32.xlu1 %v13221_v37, %s10382_s6  ;;  %v3030_v46 = vadd.f32 %v12379_v11, %v2854_v23  ;;  %v19933_v11 = vld [vmem:[#allocation236_spill] sm:$0xff]  ;;  %v13273_v12 = vadd.f32 %v12331_v4, %v2417_v0  ;;  %v19941_v0 = vld [vmem:[#allocation185_spill] sm:$0xff] }
 0x97f   : > { %19919 = vst [vmem:[#allocation134_spill] sm:$0xff] %v13229_v45  ;;  %v19929_v45 = vld [vmem:[#allocation66_spill] sm:$0xff]  ;;  %v3676_v52 = vmul.f32 %v19933_v11, %v13243_v58  ;;  %v19939_v11 = vld [vmem:[#allocation189_spill] sm:$0xff] }
 0x980   : > { %v13236_v6 = vpop.permute.xlu1 %2518  ;;  %3622 = vrot.lane.b32.xlu0 %v19923_v49, %s10382_s6  ;;  %v13258_v26 = vmul.f32 %v19923_v49, %v19929_v45  ;;  %v3074_v23 = vadd.f32 1e-06, %v3030_v46  ;;  %v3075_v45 = vadd.f32 1e-06, %v3031_v47  ;;  %19935 = vst [vmem:[#allocation367_spill] sm:$0xff] %v13273_v12  ;;  %v2857_v46 = vadd.f32 %v12431_v15, %v19939_v11 }
 0x981   : > { %19922 = vst [vmem:[#allocation243_spill] sm:$0xff] %v13236_v6  ;;  %v2856_v47 = vadd.f32 %v12427_v43, %v19941_v0 }
 0x982   : > { %v13245_v32 = vpop.permute.xlu0 %3606  ;;  %2972 = vrot.lane.b32.xlu1 %v13221_v37, %s10381_s30  ;;  %19930 = vst [vmem:[#allocation366_spill] sm:$0xff] %v13258_v26  ;;  %v3171_v4 = vrot.slane %v3075_v45, 5  ;;  %v19942_v45 = vld [vmem:[#allocation244_spill] sm:$0xff] }
 0x983   : > { %19926 = vst [vmem:[#allocation365_spill] sm:$0xff] %v13245_v32  ;;  %v3033_v32 = vadd.f32 %v12451_v19, %v2857_v46 }
 0x984   : > { %v13252_v6 = vpop.permute.xlu1 %3608  ;;  %4395 = vrot.lane.b32.xlu0 %v19923_v49, %s10381_s30  ;;  %v10298_v49 = vpop.eup %10297 }
 0x985   : > { %19928 = vst [vmem:[#allocation163_spill] sm:$0xff] %v13252_v6  ;;  %v4449_v6 = vmul.f32 %v19938_v39, %v13243_v58  ;;  %v3077_v19 = vadd.f32 1e-06, %v3033_v32  ;;  %v19943_v39 = vld [vmem:[#allocation229_spill] sm:$0xff] }
 0x986   : > { %v13263_v37 = vpop.permute.xlu0 %4379  ;;  %2534 = vrot.lane.b32.xlu1 %v13258_v26, %s10381_s30  ;;  %v13307_v11 = vmul.f32 %v19943_v39, %v19943_v39  ;;  %v19947_v39 = vld [vmem:[#allocation209_spill] sm:$0xff] }
 0x987   : > { %19932 = vst [vmem:[#allocation147_spill] sm:$0xff] %v13263_v37  ;;  %v3169_v37 = vrot.slane %v3074_v23, 5 }
 0x988   : > { %v13269_v2 = vpop.permute.xlu1 %4381  ;;  %3767 = vrot.lane.b32.xlu0 %v3676_v52, %s10384_s8  ;;  %19944 = vst [vmem:[#allocation189_spill] sm:$0xff] %v13307_v11 }
 0x989   : > { %19934 = vst [vmem:[#allocation236_spill] sm:$0xff] %v13269_v2  ;;  %v13284_v2 = vmul.f32 %v10298_v49, %v13273_v12  ;;  %v3170_v15 = vsel %vm330_vm2, %v3167_v57, %v3169_v37  ;;  %v3032_v49 = vadd.f32 %v12443_v7, %v2856_v47  ;;  %v3172_v43 = vsel %vm330_vm2, %v3169_v37, %v3171_v4  ;;  %v19945_v57 = vld [vmem:[#allocation212_spill] sm:$0xff]  ;;  %v19946_v37 = vld [vmem:[#allocation247_spill] sm:$0xff] }
 0x98a   : > { %v13275_v36 = vpop.permute.xlu0 %2346  ;;  %3624 = vrot.lane.b32.xlu1 %v19937_v10, %s10382_s6  ;;  %10299 = vrcp.f32 %v3170_v15  ;;  %v2859_v0 = vadd.f32 %v12495_v24, %v19945_v57  ;;  %v2858_v15 = vadd.f32 %v12491_v40, %v19947_v39  ;;  %v19949_v57 = vld [vmem:[#allocation69_spill] sm:$0xff]  ;;  %v19953_v39 = vld [vmem:[#allocation232_spill] sm:$0xff] }
 0x98b   : > { %19936 = vst [vmem:[#allocation368_spill] sm:$0xff] %v13275_v36  ;;  %19940 = vst [vmem:[#allocation238_spill] sm:$0xff] %v13284_v2  ;;  %v3076_v7 = vadd.f32 1e-06, %v3032_v49  ;;  %10301 = vrcp.f32 %v3172_v43  ;;  %v4450_v32 = vmul.f32 %v19946_v37, %v13284_v2 }
 0x98c   : > { %v13286_v52 = vpop.permute.xlu1 %2348  ;;  %4540 = vrot.lane.b32.xlu0 %v4449_v6, %s10383_s7  ;;  %v3677_v6 = vmul.f32 %v19942_v45, %v13284_v2  ;;  %v3175_v45 = vrot.slane %v3077_v19, 5  ;;  %v3035_v58 = vadd.f32 %v12515_v34, %v2859_v0  ;;  %v3034_v49 = vadd.f32 %v12507_v54, %v2858_v15  ;;  %v19952_v0 = vld [vmem:[#allocation234_spill] sm:$0xff]  ;;  %v19956_v2 = vld [vmem:[#allocation231_spill] sm:$0xff] }
 0x98d   : > { %v3173_v24 = vrot.slane %v3076_v7, 5  ;;  %v13333_v19 = vmul.f32 %v19937_v10, %v19949_v57  ;;  %v13347_v15 = vmul.f32 %v19953_v39, %v19953_v39  ;;  %v2860_v57 = vadd.f32 %v12555_v21, %v19956_v2  ;;  %v19964_v2 = vld [vmem:[#allocation235_spill] sm:$0xff] }
 0x98e   : > { %v13292_v36 = vpop.permute.xlu0 %2782  ;;  %4397 = vrot.lane.b32.xlu1 %v19937_v10, %s10381_s30  ;;  %v13336_v37 = vadd.f32 1e-06, %v3035_v58  ;;  %v3078_v7 = vadd.f32 1e-06, %v3034_v49  ;;  %v19958_v49 = vld [vmem:[#allocation249_spill] sm:$0xff] }
 0x98f   : > { %19950 = vst [vmem:[#allocation244_spill] sm:$0xff] %v13333_v19  ;;  %v3176_v40 = vsel %vm330_vm2, %v3173_v24, %v3175_v45  ;;  %v3174_v54 = vsel %vm330_vm2, %v3171_v4, %v3173_v24  ;;  %19954 = vst [vmem:[#allocation212_spill] sm:$0xff] %v13347_v15  ;;  %v19957_v24 = vld [vmem:[#allocation158_spill] sm:$0xff] }
 0x990   : > { %v13298_v23 = vpop.permute.xlu1 %2784  ;;  %2362 = vrot.lane.b32.xlu0 %v13258_v26, %s10382_s6  ;;  %10303 = vrcp.f32 %v3176_v40  ;;  %v3179_v58 = vrot.slane %v13336_v37, 5  ;;  %v3036_v37 = vadd.f32 %v12571_v17, %v2860_v57  ;;  %v19961_v26 = vld [vmem:[#allocation253_spill] sm:$0xff] }
 0x991   : > { %10305 = vrcp.f32 %v3174_v54 }
 0x992   : > { %v13309_v46 = vpop.permute.xlu0 %2958  ;;  %3769 = vrot.lane.b32.xlu1 %v3677_v6, %s10384_s8  ;;  %v3080_v57 = vadd.f32 1e-06, %v3036_v37  ;;  %v19973_v37 = vld [vmem:[#allocation197_spill] sm:$0xff] }
 0x994   : > { %v13314_v47 = vpop.permute.xlu1 %2960  ;;  %2798 = vrot.lane.b32.xlu0 %v13307_v11, %s10382_s6 }
 0x996   : > { %v13323_v6 = vpop.permute.xlu0 %2520  ;;  %4542 = vrot.lane.b32.xlu1 %v4450_v32, %s10383_s7  ;;  %v2861_v32 = vadd.f32 %v12559_v33, %v19952_v0  ;;  %v2418_v33 = vadd.f32 %v19958_v49, %v19957_v24  ;;  %v19959_v0 = vld [vmem:[#allocation172_spill] sm:$0xff]  ;;  %v19968_v49 = vld [vmem:[#allocation242_spill] sm:$0xff] }
 0x997   : > { %v2419_v39 = vadd.f32 %v12419_v25, %v19959_v0  ;;  %v10300_v12 = vpop.eup %10299 }
 0x998   : > { %v13327_v43 = vpop.permute.xlu1 %2522  ;;  %2974 = vrot.lane.b32.xlu0 %v13307_v11, %s10381_s30  ;;  %v3037_v4 = vadd.f32 %v12579_v42, %v2861_v32  ;;  %v13367_v21 = vadd.f32 %v19961_v26, %v2418_v33  ;;  %v10302_v32 = vpop.eup %10301  ;;  %v2863_v33 = vadd.f32 %v12623_v48, %v19968_v49  ;;  %v19974_v49 = vld [vmem:[#allocation245_spill] sm:$0xff]  ;;  %v19980_v11 = vld [vmem:[#allocation252_spill] sm:$0xff] }
 0x999   : > { %19948 = vst [vmem:[#allocation185_spill] sm:$0xff] %v13327_v43  ;;  %v20065_v43 = vld [vmem:[#allocation308_spill] sm:$0xff] }
 0x99a   : > { %v13338_v34 = vpop.permute.xlu0 %3610  ;;  %2364 = vrot.lane.b32.xlu1 %v13333_v19, %s10382_s6  ;;  %19962 = vst [vmem:[#allocation234_spill] sm:$0xff] %v13367_v21  ;;  %v13374_v54 = vadd.f32 1e-06, %v3037_v4  ;;  %v13377_v24 = vmul.f32 %v10300_v12, %v13367_v21  ;;  %v3039_v48 = vadd.f32 %v12643_v41, %v2863_v33 }
 0x99b   : > { %19951 = vst [vmem:[#allocation229_spill] sm:$0xff] %v13338_v34  ;;  %v20046_v34 = vld [vmem:[#allocation296_spill] sm:$0xff] }
 0x99c   : > { %v13349_v10 = vpop.permute.xlu1 %3612  ;;  %2536 = vrot.lane.b32.xlu0 %v13333_v19, %s10381_s30  ;;  %v3177_v19 = vrot.slane %v3078_v7, 5  ;;  %19965 = vst [vmem:[#allocation231_spill] sm:$0xff] %v13377_v24  ;;  %v13380_v7 = vadd.f32 %v12395_v30, %v2419_v39  ;;  %v19970_v30 = vld [vmem:[#allocation72_spill] sm:$0xff]  ;;  %v3183_v39 = vrot.slane %v13374_v54, 5  ;;  %v13419_v33 = vadd.f32 1e-06, %v3039_v48 }
 0x99d   : > { %19955 = vst [vmem:[#allocation247_spill] sm:$0xff] %v13349_v10  ;;  %v13398_v0 = vmul.f32 %v19964_v2, %v19970_v30  ;;  %v3181_v30 = vrot.slane %v3080_v57, 5  ;;  %v2865_v48 = vadd.f32 %v12687_v20, %v19980_v11 }
 0x99e   : > { %v13361_v40 = vpop.permute.xlu0 %4383  ;;  %2800 = vrot.lane.b32.xlu1 %v13347_v15, %s10382_s6  ;;  %v3180_v25 = vsel %vm330_vm2, %v3177_v19, %v3179_v58  ;;  %19966 = vst [vmem:[#allocation158_spill] sm:$0xff] %v13380_v7  ;;  %v3178_v26 = vsel %vm330_vm2, %v3175_v45, %v3177_v19  ;;  %v13390_v4 = vmul.f32 %v10302_v32, %v13380_v7  ;;  %v19972_v45 = vld [vmem:[#allocation241_spill] sm:$0xff] }
 0x99f   : > { %19960 = vst [vmem:[#allocation209_spill] sm:$0xff] %v13361_v40  ;;  %10307 = vrcp.f32 %v3180_v25  ;;  %19971 = vst [vmem:[#allocation253_spill] sm:$0xff] %v13398_v0  ;;  %v2862_v19 = vadd.f32 %v12619_v55, %v19972_v45  ;;  %v2421_v32 = vadd.f32 %v12483_v60, %v19973_v37  ;;  %v19975_v55 = vld [vmem:[#allocation254_spill] sm:$0xff]  ;;  %v10304_v60 = vpop.eup %10303  ;;  %v19976_v45 = vld [vmem:[#allocation184_spill] sm:$0xff]  ;;  %v3041_v20 = vadd.f32 %v12707_v50, %v2865_v48 }
 0x9a0   : > { %v13369_v42 = vpop.permute.xlu1 %4385  ;;  %3626 = vrot.lane.b32.xlu0 %v19964_v2, %s10382_s6  ;;  %19969 = vst [vmem:[#allocation172_spill] sm:$0xff] %v13390_v4  ;;  %10309 = vrcp.f32 %v3178_v26  ;;  %v3679_v41 = vmul.f32 %v19975_v55, %v13390_v4  ;;  %v3184_v26 = vsel %vm330_vm2, %v3181_v30, %v3183_v39  ;;  %v19977_v37 = vld [vmem:[#allocation259_spill] sm:$0xff]  ;;  %v3182_v55 = vsel %vm330_vm2, %v3179_v58, %v3181_v30 }
 0x9a1   : > { %19963 = vst [vmem:[#allocation232_spill] sm:$0xff] %v13369_v42  ;;  %v3038_v54 = vadd.f32 %v12635_v14, %v2862_v19  ;;  %v2420_v21 = vadd.f32 %v19977_v37, %v19976_v45  ;;  %v19979_v14 = vld [vmem:[#allocation248_spill] sm:$0xff]  ;;  %v10306_v19 = vpop.eup %10305  ;;  %v19981_v42 = vld [vmem:[#allocation263_spill] sm:$0xff]  ;;  %10311 = vrcp.f32 %v3184_v26  ;;  %v3187_v58 = vrot.slane %v13419_v33, 5 }
 0x9a2   : > { %v13382_v17 = vpop.permute.xlu0 %2350  ;;  %2976 = vrot.lane.b32.xlu1 %v13347_v15, %s10381_s30  ;;  %v19986_v30 = vld [vmem:[#allocation251_spill] sm:$0xff]  ;;  %10313 = vrcp.f32 %v3182_v55  ;;  %v19993_v55 = vld [vmem:[#allocation208_spill] sm:$0xff] }
 0x9a3   : > { %19967 = vst [vmem:[#allocation249_spill] sm:$0xff] %v13382_v17  ;;  %v3082_v15 = vadd.f32 1e-06, %v3038_v54  ;;  %v13435_v10 = vadd.f32 %v19981_v42, %v2420_v21  ;;  %v2864_v54 = vadd.f32 %v12683_v13, %v19986_v30  ;;  %v19988_v21 = vld [vmem:[#allocation221_spill] sm:$0xff]  ;;  %v19989_v42 = vld [vmem:[#allocation280_spill] sm:$0xff] }
 0x9a4   : > { %v13392_v12 = vpop.permute.xlu1 %3757  ;;  %4399 = vrot.lane.b32.xlu0 %v19964_v2, %s10381_s30  ;;  %v3678_v2 = vmul.f32 %v19974_v49, %v13377_v24  ;;  %v13424_v49 = vadd.f32 %v12459_v18, %v2421_v32  ;;  %v19992_v13 = vld [vmem:[#allocation264_spill] sm:$0xff]  ;;  %v19994_v30 = vld [vmem:[#allocation269_spill] sm:$0xff] }
 0x9a5   : > { %19982 = vst [vmem:[#allocation241_spill] sm:$0xff] %v13435_v10  ;;  %v13450_v11 = vmul.f32 %v10306_v19, %v13435_v10  ;;  %v3185_v37 = vrot.slane %v3082_v15, 5 }
 0x9a6   : > { %v13406_v25 = vpop.permute.xlu0 %2786  ;;  %2538 = vrot.lane.b32.xlu1 %v13398_v0, %s10381_s30  ;;  %19978 = vst [vmem:[#allocation242_spill] sm:$0xff] %v13424_v49  ;;  %v13438_v18 = vmul.f32 %v10304_v60, %v13424_v49  ;;  %v2423_v60 = vadd.f32 %v19989_v42, %v19988_v21  ;;  %v2422_v21 = vadd.f32 %v19994_v30, %v19993_v55  ;;  %v19998_v42 = vld [vmem:[#allocation255_spill] sm:$0xff]  ;;  %v19999_v49 = vld [vmem:[#allocation262_spill] sm:$0xff] }
 0x9a7   : > { %19987 = vst [vmem:[#allocation254_spill] sm:$0xff] %v13450_v11  ;;  %v3188_v48 = vsel %vm330_vm2, %v3185_v37, %v3187_v58 }
 0x9a8   : > { %v13413_v7 = vpop.permute.xlu1 %4530  ;;  %3771 = vrot.lane.b32.xlu0 %v3678_v2, %s10384_s8  ;;  %v4451_v2 = vmul.f32 %v19979_v14, %v13377_v24  ;;  %19983 = vst [vmem:[#allocation197_spill] sm:$0xff] %v13438_v18  ;;  %v19991_v14 = vld [vmem:[#allocation306_spill] sm:$0xff]  ;;  %v3681_v50 = vmul.f32 %v19992_v13, %v13438_v18  ;;  %v3186_v13 = vsel %vm330_vm2, %v3183_v39, %v3185_v37  ;;  %10315 = vrcp.f32 %v3188_v48  ;;  %v20005_v37 = vld [vmem:[#allocation261_spill] sm:$0xff] }
 0x9a9   : > { %10317 = vrcp.f32 %v3186_v13 }
 0x9aa   : > { %v13426_v57 = vpop.permute.xlu0 %2962  ;;  %3773 = vrot.lane.b32.xlu1 %v3679_v41, %s10384_s8  ;;  %v19985_v41 = vld [vmem:[#allocation257_spill] sm:$0xff] }
 0x9ab   : > { %v4452_v45 = vmul.f32 %v19985_v41, %v13390_v4  ;;  %v13465_v41 = vadd.f32 1e-06, %v3041_v20  ;;  %v20000_v20 = vld [vmem:[#allocation318_spill] sm:$0xff] }
 0x9ac   : > { %v13440_v32 = vpop.permute.xlu1 %2352  ;;  %4544 = vrot.lane.b32.xlu0 %v4451_v2, %s10383_s7  ;;  %v3040_v2 = vadd.f32 %v19991_v14, %v2864_v54  ;;  %v10308_v19 = vpop.eup %10307  ;;  %v3680_v14 = vmul.f32 %v19998_v42, %v13450_v11  ;;  %v2867_v10 = vadd.f32 %v20000_v20, %v19999_v49  ;;  %v20007_v49 = vld [vmem:[#allocation321_spill] sm:$0xff] }
 0x9ad   : > { %19984 = vst [vmem:[#allocation245_spill] sm:$0xff] %v13440_v32  ;;  %v10310_v24 = vpop.eup %10309  ;;  %v3191_v39 = vrot.slane %v13465_v41, 5 }
 0x9ae   : > { %v13454_v26 = vpop.permute.xlu0 %2524  ;;  %4546 = vrot.lane.b32.xlu1 %v4452_v45, %s10383_s7  ;;  %v19995_v45 = vld [vmem:[#allocation274_spill] sm:$0xff]  ;;  %v3084_v4 = vadd.f32 1e-06, %v3040_v2  ;;  %v20006_v2 = vld [vmem:[#allocation317_spill] sm:$0xff]  ;;  %v3043_v42 = vadd.f32 %v20007_v49, %v2867_v10  ;;  %v20015_v10 = vld [vmem:[#allocation275_spill] sm:$0xff] }
 0x9af   : > { %19990 = vst [vmem:[#allocation184_spill] sm:$0xff] %v13454_v26  ;;  %v13470_v15 = vadd.f32 %v19995_v45, %v2423_v60  ;;  %v2866_v45 = vadd.f32 %v20006_v2, %v20005_v37  ;;  %v10312_v2 = vpop.eup %10311 }
 0x9b0   : > { %v13458_v33 = vpop.permute.xlu1 %2788  ;;  %2366 = vrot.lane.b32.xlu0 %v13398_v0, %s10382_s6  ;;  %v20001_v0 = vld [vmem:[#allocation273_spill] sm:$0xff]  ;;  %v3189_v41 = vrot.slane %v3084_v4, 5  ;;  %v13512_v49 = vadd.f32 1e-06, %v3043_v42  ;;  %v20022_v42 = vld [vmem:[#allocation332_spill] sm:$0xff] }
 0x9b1   : > { %19996 = vst [vmem:[#allocation259_spill] sm:$0xff] %v13470_v15  ;;  %v13481_v40 = vadd.f32 %v20001_v0, %v2422_v21  ;;  %v13484_v60 = vmul.f32 %v10308_v19, %v13470_v15  ;;  %v20009_v19 = vld [vmem:[#allocation237_spill] sm:$0xff]  ;;  %v20010_v21 = vld [vmem:[#allocation292_spill] sm:$0xff] }
 0x9b2   : > { %v13472_v54 = vpop.permute.xlu0 %3614  ;;  %3777 = vrot.lane.b32.xlu1 %v3681_v50, %s10384_s8  ;;  %v20004_v50 = vld [vmem:[#allocation267_spill] sm:$0xff]  ;;  %v2425_v48 = vadd.f32 %v20010_v21, %v20009_v19  ;;  %v3192_v13 = vsel %vm330_vm2, %v3189_v41, %v3191_v39  ;;  %v20016_v19 = vld [vmem:[#allocation230_spill] sm:$0xff] }
 0x9b3   : > { %19997 = vst [vmem:[#allocation248_spill] sm:$0xff] %v13472_v54  ;;  %20002 = vst [vmem:[#allocation252_spill] sm:$0xff] %v13481_v40  ;;  %v4454_v30 = vmul.f32 %v20004_v50, %v13438_v18  ;;  %v13496_v0 = vmul.f32 %v10310_v24, %v13481_v40  ;;  %v20013_v18 = vld [vmem:[#allocation320_spill] sm:$0xff]  ;;  %v3683_v24 = vmul.f32 %v20015_v10, %v13484_v60  ;;  %v20018_v40 = vld [vmem:[#allocation286_spill] sm:$0xff]  ;;  %10319 = vrcp.f32 %v3192_v13 }
 0x9b4   : > { %20003 = vst [vmem:[#allocation263_spill] sm:$0xff] %v13484_v60  ;;  %v13486_v55 = vpop.permute.xlu1 %2964  ;;  %3775 = vrot.lane.b32.xlu0 %v3680_v14, %s10384_s8  ;;  %v20012_v14 = vld [vmem:[#allocation258_spill] sm:$0xff]  ;;  %v3042_v15 = vadd.f32 %v20013_v18, %v2866_v45  ;;  %v20020_v18 = vld [vmem:[#allocation265_spill] sm:$0xff]  ;;  %v3190_v10 = vsel %vm330_vm2, %v3187_v58, %v3189_v41  ;;  %v3195_v58 = vrot.slane %v13512_v49, 5  ;;  %v20029_v41 = vld [vmem:[#allocation331_spill] sm:$0xff] }
 0x9b5   : > { %20008 = vst [vmem:[#allocation257_spill] sm:$0xff] %v13496_v0  ;;  %v4453_v50 = vmul.f32 %v20012_v14, %v13450_v11  ;;  %v13517_v14 = vadd.f32 %v20018_v40, %v2425_v48  ;;  %v3682_v45 = vmul.f32 %v20020_v18, %v13496_v0  ;;  %10321 = vrcp.f32 %v3190_v10 }
 0x9b6   : > { %v13500_v20 = vpop.permute.xlu0 %4387  ;;  %4550 = vrot.lane.b32.xlu1 %v4454_v30, %s10383_s7  ;;  %v20017_v30 = vld [vmem:[#allocation281_spill] sm:$0xff]  ;;  %v3086_v11 = vadd.f32 1e-06, %v3042_v15  ;;  %v20028_v15 = vld [vmem:[#allocation271_spill] sm:$0xff] }
 0x9b7   : > { %20011 = vst [vmem:[#allocation251_spill] sm:$0xff] %v13500_v20  ;;  %v2424_v21 = vadd.f32 %v20017_v30, %v20016_v19  ;;  %20019 = vst [vmem:[#allocation280_spill] sm:$0xff] %v13517_v14  ;;  %v20021_v20 = vld [vmem:[#allocation272_spill] sm:$0xff]  ;;  %v13531_v40 = vmul.f32 %v10312_v2, %v13517_v14  ;;  %v2868_v30 = vadd.f32 %v20029_v41, %v20028_v15  ;;  %v20032_v2 = vld [vmem:[#allocation246_spill] sm:$0xff] }
 0x9b8   : > { %v13506_v37 = vpop.permute.xlu1 %2526  ;;  %4548 = vrot.lane.b32.xlu0 %v4453_v50, %s10383_s7  ;;  %v10314_v50 = vpop.eup %10313  ;;  %v2869_v54 = vadd.f32 %v20022_v42, %v20021_v20  ;;  %v20030_v20 = vld [vmem:[#allocation337_spill] sm:$0xff]  ;;  %v3193_v49 = vrot.slane %v3086_v11, 5 }
 0x9b9   : > { %20014 = vst [vmem:[#allocation221_spill] sm:$0xff] %v13506_v37  ;;  %v20023_v37 = vld [vmem:[#allocation285_spill] sm:$0xff]  ;;  %20025 = vst [vmem:[#allocation264_spill] sm:$0xff] %v13531_v40  ;;  %v10316_v41 = vpop.eup %10315 }
 0x9ba   : > { %v13519_v4 = vpop.permute.xlu0 %3759  ;;  %3781 = vrot.lane.b32.xlu1 %v3683_v24, %s10384_s8  ;;  %v13528_v26 = vadd.f32 %v20023_v37, %v2424_v21  ;;  %v20027_v24 = vld [vmem:[#allocation278_spill] sm:$0xff]  ;;  %v3045_v18 = vadd.f32 %v20030_v20, %v2869_v54  ;;  %v20033_v21 = vld [vmem:[#allocation303_spill] sm:$0xff]  ;;  %v3196_v10 = vsel %vm330_vm2, %v3193_v49, %v3195_v58 }
 0x9bb   : > { %v4456_v19 = vmul.f32 %v20027_v24, %v13484_v60  ;;  %v2427_v13 = vadd.f32 %v20033_v21, %v20032_v2  ;;  %v20035_v60 = vld [vmem:[#allocation335_spill] sm:$0xff]  ;;  %v20038_v2 = vld [vmem:[#allocation240_spill] sm:$0xff]  ;;  %10323 = vrcp.f32 %v3196_v10 }
 0x9bc   : > { %20024 = vst [vmem:[#allocation306_spill] sm:$0xff] %v13528_v26  ;;  %v13533_v48 = vpop.permute.xlu1 %3616  ;;  %3779 = vrot.lane.b32.xlu0 %v3682_v45, %s10384_s8  ;;  %v13543_v37 = vmul.f32 %v10314_v50, %v13528_v26  ;;  %v20034_v45 = vld [vmem:[#allocation268_spill] sm:$0xff]  ;;  %v3044_v14 = vadd.f32 %v20035_v60, %v2868_v30  ;;  %v20037_v54 = vld [vmem:[#allocation287_spill] sm:$0xff]  ;;  %v13559_v20 = vadd.f32 1e-06, %v3045_v18  ;;  %v20040_v26 = vld [vmem:[#allocation297_spill] sm:$0xff] }
 0x9bd   : > { %20026 = vst [vmem:[#allocation208_spill] sm:$0xff] %v13533_v48  ;;  %v4455_v24 = vmul.f32 %v20034_v45, %v13496_v0  ;;  %v3685_v50 = vmul.f32 %v20037_v54, %v13531_v40  ;;  %v13564_v45 = vadd.f32 %v20040_v26, %v2427_v13  ;;  %v20043_v60 = vld [vmem:[#allocation276_spill] sm:$0xff]  ;;  %v3194_v54 = vsel %vm330_vm2, %v3191_v39, %v3193_v49  ;;  %v20045_v18 = vld [vmem:[#allocation342_spill] sm:$0xff]  ;;  %v20051_v49 = vld [vmem:[#allocation341_spill] sm:$0xff] }
 0x9be   : > { %20031 = vst [vmem:[#allocation269_spill] sm:$0xff] %v13543_v37  ;;  %v13547_v42 = vpop.permute.xlu0 %4532  ;;  %4554 = vrot.lane.b32.xlu1 %v4456_v19, %s10383_s7  ;;  %v20039_v19 = vld [vmem:[#allocation293_spill] sm:$0xff]  ;;  %v3684_v30 = vmul.f32 %v20043_v60, %v13543_v37  ;;  %v3088_v0 = vadd.f32 1e-06, %v3044_v14  ;;  %v3199_v39 = vrot.slane %v13559_v20, 5  ;;  %v20050_v14 = vld [vmem:[#allocation283_spill] sm:$0xff]  ;;  %10325 = vrcp.f32 %v3194_v54 }
 0x9bf   : > { %v2426_v21 = vadd.f32 %v20039_v19, %v20038_v2  ;;  %20041 = vst [vmem:[#allocation255_spill] sm:$0xff] %v13564_v45  ;;  %v13578_v26 = vmul.f32 %v10316_v41, %v13564_v45  ;;  %v2870_v19 = vadd.f32 %v20051_v49, %v20050_v14  ;;  %v20054_v41 = vld [vmem:[#allocation256_spill] sm:$0xff] }
 0x9c0   : > { %v13553_v15 = vpop.permute.xlu1 %4389  ;;  %4552 = vrot.lane.b32.xlu0 %v4455_v24, %s10383_s7  ;;  %v10318_v24 = vpop.eup %10317  ;;  %v3197_v20 = vrot.slane %v3088_v0, 5 }
 0x9c1   : > { %20036 = vst [vmem:[#allocation274_spill] sm:$0xff] %v13553_v15  ;;  %v20044_v15 = vld [vmem:[#allocation284_spill] sm:$0xff]  ;;  %v13575_v32 = vadd.f32 %v20046_v34, %v2426_v21  ;;  %20048 = vst [vmem:[#allocation273_spill] sm:$0xff] %v13578_v26  ;;  %v20055_v21 = vld [vmem:[#allocation315_spill] sm:$0xff]  ;;  %v10320_v49 = vpop.eup %10319 }
 0x9c2   : > { %v13566_v11 = vpop.permute.xlu0 %2354  ;;  %3785 = vrot.lane.b32.xlu1 %v3685_v50, %s10384_s8  ;;  %v2871_v48 = vadd.f32 %v20045_v18, %v20044_v15  ;;  %v20049_v50 = vld [vmem:[#allocation290_spill] sm:$0xff]  ;;  %v2429_v10 = vadd.f32 %v20055_v21, %v20054_v41  ;;  %v3200_v54 = vsel %vm330_vm2, %v3197_v20, %v3199_v39 }
 0x9c3   : > { %20042 = vst [vmem:[#allocation262_spill] sm:$0xff] %v13566_v11  ;;  %20047 = vst [vmem:[#allocation318_spill] sm:$0xff] %v13575_v32  ;;  %v4458_v2 = vmul.f32 %v20049_v50, %v13531_v40  ;;  %v20052_v15 = vld [vmem:[#allocation346_spill] sm:$0xff]  ;;  %v13590_v34 = vmul.f32 %v10318_v24, %v13575_v32  ;;  %v20057_v40 = vld [vmem:[#allocation344_spill] sm:$0xff]  ;;  %10327 = vrcp.f32 %v3200_v54 }
 0x9c4   : > { %v13580_v13 = vpop.permute.xlu1 %3761  ;;  %3783 = vrot.lane.b32.xlu0 %v3684_v30, %s10384_s8  ;;  %v3047_v60 = vadd.f32 %v20052_v15, %v2871_v48  ;;  %v20056_v30 = vld [vmem:[#allocation279_spill] sm:$0xff]  ;;  %v3046_v45 = vadd.f32 %v20057_v40, %v2870_v19  ;;  %v20058_v48 = vld [vmem:[#allocation298_spill] sm:$0xff]  ;;  %v20061_v32 = vld [vmem:[#allocation309_spill] sm:$0xff] }
 0x9c5   : > { %20053 = vst [vmem:[#allocation267_spill] sm:$0xff] %v13590_v34  ;;  %v4457_v50 = vmul.f32 %v20056_v30, %v13543_v37  ;;  %v3687_v24 = vmul.f32 %v20058_v48, %v13578_v26  ;;  %v20059_v41 = vld [vmem:[#allocation250_spill] sm:$0xff]  ;;  %v13611_v30 = vadd.f32 %v20061_v32, %v2429_v10  ;;  %v20063_v40 = vld [vmem:[#allocation288_spill] sm:$0xff]  ;;  %v3198_v48 = vsel %vm330_vm2, %v3195_v58, %v3197_v20  ;;  %v20064_v11 = vld [vmem:[#allocation295_spill] sm:$0xff] }
 0x9c6   : > { %v13594_v18 = vpop.permute.xlu0 %2790  ;;  %4558 = vrot.lane.b32.xlu1 %v4458_v2, %s10383_s7  ;;  %v13606_v15 = vadd.f32 1e-06, %v3047_v60  ;;  %v20060_v2 = vld [vmem:[#allocation304_spill] sm:$0xff]  ;;  %v3686_v19 = vmul.f32 %v20063_v40, %v13590_v34  ;;  %v3090_v37 = vadd.f32 1e-06, %v3046_v45  ;;  %v2873_v60 = vadd.f32 %v12965_v51, %v20064_v11  ;;  %v20069_v45 = vld [vmem:[#allocation167_spill] sm:$0xff] }
 0x9c7   : > { %v2428_v21 = vadd.f32 %v20060_v2, %v20059_v41  ;;  %20062 = vst [vmem:[#allocation261_spill] sm:$0xff] %v13611_v30  ;;  %v13625_v32 = vmul.f32 %v10320_v49, %v13611_v30  ;;  %v2872_v20 = vadd.f32 %v12960_v1, %v20069_v45  ;;  %v20071_v11 = vld [vmem:[#allocation266_spill] sm:$0xff]  ;;  %v20072_v49 = vld [vmem:[#allocation329_spill] sm:$0xff]  ;;  %10329 = vrcp.f32 %v3198_v48  ;;  %v20075_v45 = vld [vmem:[#allocation260_spill] sm:$0xff] }
 0x9c8   : > { %v13600_v14 = vpop.permute.xlu1 %4534  ;;  %4556 = vrot.lane.b32.xlu0 %v4457_v50, %s10383_s7  ;;  %v10322_v50 = vpop.eup %10321  ;;  %v3203_v58 = vrot.slane %v13606_v15, 5  ;;  %v3049_v51 = vadd.f32 %v12978_v63, %v2873_v60  ;;  %v2431_v54 = vadd.f32 %v20072_v49, %v20071_v11  ;;  %v3201_v15 = vrot.slane %v3090_v37, 5  ;;  %v20074_v63 = vld [vmem:[#allocation310_spill] sm:$0xff]  ;;  %v20077_v49 = vld [vmem:[#allocation323_spill] sm:$0xff] }
 0x9c9   : > { %v13622_v17 = vadd.f32 %v20065_v43, %v2428_v21  ;;  %20067 = vst [vmem:[#allocation321_spill] sm:$0xff] %v13625_v32  ;;  %v20073_v21 = vld [vmem:[#allocation291_spill] sm:$0xff]  ;;  %v10324_v60 = vpop.eup %10323  ;;  %v20081_v30 = vld [vmem:[#allocation322_spill] sm:$0xff] }
 0x9ca   : > { %v13613_v0 = vpop.permute.xlu0 %2966  ;;  %3789 = vrot.lane.b32.xlu1 %v3687_v24, %s10384_s8  ;;  %v20068_v24 = vld [vmem:[#allocation301_spill] sm:$0xff]  ;;  %v4459_v40 = vmul.f32 %v20073_v21, %v13590_v34  ;;  %v3204_v48 = vsel %vm330_vm2, %v3201_v15, %v3203_v58  ;;  %v13658_v21 = vadd.f32 %v20077_v49, %v2431_v54  ;;  %v20080_v34 = vld [vmem:[#allocation307_spill] sm:$0xff]  ;;  %v20089_v49 = vld [vmem:[#allocation302_spill] sm:$0xff] }
 0x9cb   : > { %20066 = vst [vmem:[#allocation317_spill] sm:$0xff] %v13622_v17  ;;  %v4460_v41 = vmul.f32 %v20068_v24, %v13578_v26  ;;  %v13637_v43 = vmul.f32 %v10322_v50, %v13622_v17  ;;  %v3689_v50 = vmul.f32 %v20074_v63, %v13625_v32  ;;  %v13653_v24 = vadd.f32 1e-06, %v3049_v51 }
 0x9cc   : > { %v13627_v10 = vpop.permute.xlu1 %2356  ;;  %3787 = vrot.lane.b32.xlu0 %v3686_v19, %s10384_s8  ;;  %v3048_v19 = vadd.f32 %v12975_v59, %v2872_v20  ;;  %20078 = vst [vmem:[#allocation292_spill] sm:$0xff] %v13658_v21  ;;  %v20079_v59 = vld [vmem:[#allocation299_spill] sm:$0xff]  ;;  %v3202_v63 = vsel %vm330_vm2, %v3199_v39, %v3201_v15  ;;  %v2875_v51 = vadd.f32 %v13047_v31, %v20080_v34  ;;  %10331 = vrcp.f32 %v3204_v48  ;;  %v20085_v15 = vld [vmem:[#allocation176_spill] sm:$0xff] }
 0x9cd   : > { %20070 = vst [vmem:[#allocation237_spill] sm:$0xff] %v13637_v43  ;;  %v3688_v20 = vmul.f32 %v20079_v59, %v13637_v43  ;;  %v13672_v54 = vmul.f32 %v10324_v60, %v13658_v21  ;;  %v3207_v39 = vrot.slane %v13653_v24, 5  ;;  %v20088_v60 = vld [vmem:[#allocation192_spill] sm:$0xff]  ;;  %10333 = vrcp.f32 %v3202_v63 }
 0x9ce   : > { %v13641_v2 = vpop.permute.xlu0 %2528  ;;  %4562 = vrot.lane.b32.xlu1 %v4460_v41, %s10383_s7  ;;  %v20076_v41 = vld [vmem:[#allocation316_spill] sm:$0xff]  ;;  %v3092_v26 = vadd.f32 1e-06, %v3048_v19  ;;  %v2874_v19 = vadd.f32 %v13041_v35, %v20085_v15  ;;  %v3051_v31 = vadd.f32 %v13064_v56, %v2875_v51  ;;  %v4461_v59 = vmul.f32 %v20089_v49, %v13637_v43  ;;  %v20091_v15 = vld [vmem:[#allocation270_spill] sm:$0xff] }
 0x9cf   : > { %v2430_v11 = vadd.f32 %v20076_v41, %v20075_v45  ;;  %20083 = vst [vmem:[#allocation320_spill] sm:$0xff] %v13672_v54  ;;  %v20090_v56 = vld [vmem:[#allocation324_spill] sm:$0xff]  ;;  %v20096_v43 = vld [vmem:[#allocation338_spill] sm:$0xff] }
 0x9d0   : > { %v13647_v1 = vpop.permute.xlu1 %2792  ;;  %4560 = vrot.lane.b32.xlu0 %v4459_v40, %s10383_s7  ;;  %v10326_v40 = vpop.eup %10325  ;;  %v3205_v24 = vrot.slane %v3092_v26, 5 }
 0x9d1   : > { %v13669_v17 = vadd.f32 %v20081_v30, %v2430_v11  ;;  %v20087_v30 = vld [vmem:[#allocation277_spill] sm:$0xff]  ;;  %v10328_v51 = vpop.eup %10327 }
 0x9d2   : > { %v13660_v37 = vpop.permute.xlu0 %3618  ;;  %3793 = vrot.lane.b32.xlu1 %v3689_v50, %s10384_s8  ;;  %v20084_v50 = vld [vmem:[#allocation313_spill] sm:$0xff]  ;;  %v2433_v48 = vadd.f32 %v20088_v60, %v20087_v30  ;;  %v3208_v63 = vsel %vm330_vm2, %v3205_v24, %v3207_v39  ;;  %v20093_v60 = vld [vmem:[#allocation339_spill] sm:$0xff] }
 0x9d3   : > { %20082 = vst [vmem:[#allocation258_spill] sm:$0xff] %v13669_v17  ;;  %v4462_v41 = vmul.f32 %v20084_v50, %v13625_v32  ;;  %v13684_v34 = vmul.f32 %v10326_v40, %v13669_v17  ;;  %v3691_v40 = vmul.f32 %v20090_v56, %v13672_v54  ;;  %v13700_v50 = vadd.f32 1e-06, %v3051_v31  ;;  %v20113_v17 = vld [vmem:[#allocation347_spill] sm:$0xff] }
 0x9d4   : > { %v13674_v45 = vpop.permute.xlu1 %2968  ;;  %3791 = vrot.lane.b32.xlu0 %v3688_v20, %s10384_s8  ;;  %v3050_v20 = vadd.f32 %v13053_v28, %v2874_v19  ;;  %v13705_v49 = vadd.f32 %v20093_v60, %v2433_v48  ;;  %v20095_v28 = vld [vmem:[#allocation311_spill] sm:$0xff]  ;;  %v3206_v56 = vsel %vm330_vm2, %v3203_v58, %v3205_v24  ;;  %10335 = vrcp.f32 %v3208_v63  ;;  %v20100_v60 = vld [vmem:[#allocation182_spill] sm:$0xff] }
 0x9d5   : > { %20086 = vst [vmem:[#allocation275_spill] sm:$0xff] %v13684_v34  ;;  %v3690_v19 = vmul.f32 %v20095_v28, %v13684_v34  ;;  %v2876_v58 = vadd.f32 %v13118_v22, %v20100_v60  ;;  %10337 = vrcp.f32 %v3206_v56  ;;  %v20106_v22 = vld [vmem:[#allocation340_spill] sm:$0xff] }
 0x9d6   : > { %v13688_v11 = vpop.permute.xlu0 %4391  ;;  %4566 = vrot.lane.b32.xlu1 %v4462_v41, %s10383_s7  ;;  %v20092_v41 = vld [vmem:[#allocation330_spill] sm:$0xff]  ;;  %20094 = vst [vmem:[#allocation230_spill] sm:$0xff] %v13705_v49  ;;  %v3094_v32 = vadd.f32 1e-06, %v3050_v20  ;;  %v13717_v21 = vmul.f32 %v10328_v51, %v13705_v49  ;;  %v20103_v20 = vld [vmem:[#allocation351_spill] sm:$0xff] }
 0x9d7   : > { %v2432_v30 = vadd.f32 %v20092_v41, %v20091_v15  ;;  %v3211_v41 = vrot.slane %v13700_v50, 5  ;;  %v3052_v50 = vadd.f32 %v13134_v44, %v2876_v58  ;;  %v20111_v44 = vld [vmem:[#allocation325_spill] sm:$0xff] }
 0x9d8   : > { %v13694_v35 = vpop.permute.xlu1 %2530  ;;  %4564 = vrot.lane.b32.xlu0 %v4461_v59, %s10383_s7  ;;  %v10330_v59 = vpop.eup %10329  ;;  %20098 = vst [vmem:[#allocation286_spill] sm:$0xff] %v13717_v21 }
 0x9d9   : > { %v13714_v31 = vadd.f32 %v20096_v43, %v2432_v30  ;;  %v20102_v43 = vld [vmem:[#allocation289_spill] sm:$0xff]  ;;  %v20104_v30 = vld [vmem:[#allocation314_spill] sm:$0xff]  ;;  %v10332_v60 = vpop.eup %10331 }
 0x9da   : > { %v13707_v26 = vpop.permute.xlu0 %3763  ;;  %3797 = vrot.lane.b32.xlu1 %v3691_v40, %s10384_s8  ;;  %v20099_v40 = vld [vmem:[#allocation327_spill] sm:$0xff]  ;;  %v2435_v51 = vadd.f32 %v20103_v20, %v20102_v43  ;;  %v4463_v28 = vmul.f32 %v20104_v30, %v13684_v34  ;;  %v20107_v43 = vld [vmem:[#allocation282_spill] sm:$0xff]  ;;  %v10334_v58 = vpop.eup %10333 }
 0x9db   : > { %20097 = vst [vmem:[#allocation281_spill] sm:$0xff] %v13714_v31  ;;  %v4464_v15 = vmul.f32 %v20099_v40, %v13672_v54  ;;  %v13728_v24 = vmul.f32 %v10330_v59, %v13714_v31  ;;  %v3693_v59 = vmul.f32 %v20106_v22, %v13717_v21  ;;  %v20108_v20 = vld [vmem:[#allocation190_spill] sm:$0xff]  ;;  %v20112_v22 = vld [vmem:[#allocation188_spill] sm:$0xff]  ;;  %v3096_v31 = vadd.f32 1e-06, %v3052_v50 }
 0x9dc   : > { %v13719_v48 = vpop.permute.xlu1 %3620  ;;  %3795 = vrot.lane.b32.xlu0 %v3690_v19, %s10384_s8  ;;  %v3209_v19 = vrot.slane %v3094_v32, 5  ;;  %v2434_v54 = vadd.f32 %v20108_v20, %v20107_v43  ;;  %v2877_v34 = vadd.f32 %v13125_v9, %v20112_v22  ;;  %v20118_v9 = vld [vmem:[#allocation300_spill] sm:$0xff]  ;;  %v20119_v50 = vld [vmem:[#allocation354_spill] sm:$0xff] }
 0x9dd   : > { %20101 = vst [vmem:[#allocation265_spill] sm:$0xff] %v13728_v24  ;;  %v3692_v32 = vmul.f32 %v20111_v44, %v13728_v24  ;;  %v20122_v22 = vld [vmem:[#allocation294_spill] sm:$0xff] }
 0x9de   : > { %v13732_v63 = vpop.permute.xlu0 %4536  ;;  %4570 = vrot.lane.b32.xlu1 %v4464_v15, %s10383_s7  ;;  %v3212_v56 = vsel %vm330_vm2, %v3209_v19, %v3211_v41  ;;  %v20109_v15 = vld [vmem:[#allocation348_spill] sm:$0xff] }
 0x9df   : > { %v13747_v49 = vadd.f32 %v20109_v15, %v2435_v51  ;;  %10339 = vrcp.f32 %v3212_v56  ;;  %v3213_v15 = vrot.slane %v3096_v31, 5  ;;  %v20126_v31 = vld [vmem:[#allocation78_spill] sm:$0xff] }
 0x9e0   : > { %v13738_v40 = vpop.permute.xlu1 %4393  ;;  %4568 = vrot.lane.b32.xlu0 %v4463_v28, %s10383_s7  ;;  %v3210_v28 = vsel %vm330_vm2, %v3207_v39, %v3209_v19  ;;  %v3053_v39 = vadd.f32 %v13139_v3, %v2877_v34  ;;  %v20121_v3 = vld [vmem:[#allocation91_spill] sm:$0xff] }
 0x9e1   : > { %20105 = vst [vmem:[#allocation272_spill] sm:$0xff] %v13738_v40  ;;  %20110 = vst [vmem:[#allocation332_spill] sm:$0xff] %v13747_v49  ;;  %v13758_v40 = vadd.f32 %v20113_v17, %v2434_v54  ;;  %v13761_v51 = vmul.f32 %v10332_v60, %v13747_v49  ;;  %v2437_v17 = vadd.f32 %v20119_v50, %v20118_v9  ;;  %10341 = vrcp.f32 %v3210_v28  ;;  %v20120_v60 = vld [vmem:[#allocation328_spill] sm:$0xff]  ;;  %v20124_v9 = vld [vmem:[#allocation206_spill] sm:$0xff] }
 0x9e2   : > { %v13749_v30 = vpop.permute.xlu0 %2358  ;;  %3801 = vrot.lane.b32.xlu1 %v3693_v59, %s10384_s8  ;;  %v20116_v59 = vld [vmem:[#allocation75_spill] sm:$0xff]  ;;  %v4465_v56 = vmul.f32 %v20120_v60, %v13728_v24  ;;  %v20127_v24 = vld [vmem:[#allocation194_spill] sm:$0xff] }
 0x9e3   : > { %20114 = vst [vmem:[#allocation285_spill] sm:$0xff] %v13758_v40  ;;  %20115 = vst [vmem:[#allocation278_spill] sm:$0xff] %v13761_v51  ;;  %v4466_v20 = vmul.f32 %v20116_v59, %v13717_v21  ;;  %v13770_v19 = vmul.f32 %v10334_v58, %v13758_v40  ;;  %v3695_v34 = vmul.f32 %v20121_v3, %v13761_v51  ;;  %v3097_v58 = vadd.f32 1e-06, %v3053_v39  ;;  %v20123_v59 = vld [vmem:[#allocation207_spill] sm:$0xff] }
 0x9e4   : > { %v13763_v43 = vpop.permute.xlu1 %3765  ;;  %3799 = vrot.lane.b32.xlu0 %v3692_v32, %s10384_s8  ;;  %v10336_v32 = vpop.eup %10335  ;;  %v2436_v28 = vadd.f32 %v20123_v59, %v20122_v22  ;;  %v13787_v50 = vadd.f32 %v20124_v9, %v2437_v17  ;;  %v20130_v17 = vld [vmem:[#allocation82_spill] sm:$0xff] }
 0x9e5   : > { %20117 = vst [vmem:[#allocation271_spill] sm:$0xff] %v13770_v19  ;;  %v3694_v60 = vmul.f32 %v20126_v31, %v13770_v19  ;;  %v10338_v21 = vpop.eup %10337  ;;  %v4468_v59 = vmul.f32 %v20130_v17, %v13761_v51  ;;  %v20131_v9 = vld [vmem:[#allocation334_spill] sm:$0xff] }
 0x9e6   : > { %v13774_v54 = vpop.permute.xlu0 %2794  ;;  %4574 = vrot.lane.b32.xlu1 %v4466_v20, %s10383_s7  ;;  %20125 = vst [vmem:[#allocation331_spill] sm:$0xff] %v13787_v50  ;;  %v13796_v3 = vadd.f32 %v20127_v24, %v2436_v28  ;;  %v13799_v39 = vmul.f32 %v10336_v32, %v13787_v50  ;;  %v2878_v31 = vadd.f32 %v13203_v38, %v20131_v9  ;;  %v20134_v28 = vld [vmem:[#allocation183_spill] sm:$0xff]  ;;  %v20135_v38 = vld [vmem:[#allocation352_spill] sm:$0xff] }
 0x9e8   : > { %v13779_v44 = vpop.permute.xlu1 %4538  ;;  %4572 = vrot.lane.b32.xlu0 %v4465_v56, %s10383_s7  ;;  %v3214_v56 = vsel %vm330_vm2, %v3211_v41, %v3213_v15  ;;  %20128 = vst [vmem:[#allocation337_spill] sm:$0xff] %v13796_v3  ;;  %20129 = vst [vmem:[#allocation246_spill] sm:$0xff] %v13799_v39  ;;  %v13809_v49 = vmul.f32 %v10338_v21, %v13796_v3  ;;  %v20133_v41 = vld [vmem:[#allocation312_spill] sm:$0xff]  ;;  %v3054_v17 = vadd.f32 %v13215_v8, %v2878_v31  ;;  %v20139_v8 = vld [vmem:[#allocation349_spill] sm:$0xff] }
 0x9e9   : > { %v2439_v24 = vadd.f32 %v13104_v62, %v20133_v41  ;;  %10343 = vrcp.f32 %v3214_v56  ;;  %v3697_v21 = vmul.f32 %v20135_v38, %v13799_v39  ;;  %v20136_v56 = vld [vmem:[#allocation305_spill] sm:$0xff]  ;;  %v20137_v41 = vld [vmem:[#allocation355_spill] sm:$0xff] }
 0x9ea   : > { %v13789_v20 = vpop.permute.xlu0 %2970  ;;  %3805 = vrot.lane.b32.xlu1 %v3695_v34, %s10384_s8  ;;  %v3215_v34 = vrot.slane %v3097_v58, 5  ;;  %20132 = vst [vmem:[#allocation303_spill] sm:$0xff] %v13809_v49  ;;  %v2438_v51 = vadd.f32 %v20137_v41, %v20136_v56  ;;  %v3696_v31 = vmul.f32 %v20139_v8, %v13809_v49  ;;  %v20141_v3 = vld [vmem:[#allocation201_spill] sm:$0xff] }
 0x9ec   : > { %v13801_v22 = vpop.permute.xlu1 %2360  ;;  %3803 = vrot.lane.b32.xlu0 %v3694_v60, %s10384_s8  ;;  %v4467_v60 = vmul.f32 %v20134_v28, %v13770_v19  ;;  %v10340_v9 = vpop.eup %10339  ;;  %v3216_v62 = vsel %vm330_vm2, %v3213_v15, %v3215_v34  ;;  %v3098_v19 = vadd.f32 1e-06, %v3054_v17  ;;  %v13838_v15 = vadd.f32 %v20141_v3, %v2438_v51  ;;  %v20146_v51 = vld [vmem:[#allocation202_spill] sm:$0xff] }
 0x9ed   : > { %10345 = vrcp.f32 %v3216_v62  ;;  %v4469_v3 = vmul.f32 %v20146_v51, %v13809_v49  ;;  %v20147_v62 = vld [vmem:[#allocation217_spill] sm:$0xff]  ;;  %v20151_v49 = vld [vmem:[#allocation123_spill] sm:$0xff] }
 0x9ee   : > { %v13813_v32 = vpop.permute.xlu0 %2532  ;;  %4578 = vrot.lane.b32.xlu1 %v4468_v59, %s10383_s7  ;;  %v13828_v59 = vadd.f32 %v13073_v29, %v2439_v24  ;;  %v10342_v28 = vpop.eup %10341  ;;  %20142 = vst [vmem:[#allocation335_spill] sm:$0xff] %v13838_v15  ;;  %v20144_v24 = vld [vmem:[#allocation90_spill] sm:$0xff]  ;;  %v3217_v17 = vrot.slane %v3098_v19, 5 }
 0x9ef   : > { %v13850_v8 = vmul.f32 %v10342_v28, %v13838_v15 }
 0x9f0   : > { %v13819_v58 = vpop.permute.xlu1 %2796  ;;  %4576 = vrot.lane.b32.xlu0 %v4467_v60, %s10383_s7  ;;  %20138 = vst [vmem:[#allocation268_spill] sm:$0xff] %v13828_v59  ;;  %v20140_v60 = vld [vmem:[#allocation336_spill] sm:$0xff]  ;;  %v13841_v56 = vmul.f32 %v10340_v9, %v13828_v59  ;;  %v3218_v19 = vsel %vm330_vm2, %v3215_v34, %v3217_v17 }
 0x9f1   : > { %v2879_v38 = vadd.f32 %v13206_v61, %v20140_v60  ;;  %20145 = vst [vmem:[#allocation240_spill] sm:$0xff] %v13850_v8  ;;  %10347 = vrcp.f32 %v3218_v19  ;;  %v20159_v19 = vld [vmem:[#allocation220_spill] sm:$0xff] }
 0x9f2   : > { %v13830_v50 = vpop.permute.xlu0 %3622  ;;  %3809 = vrot.lane.b32.xlu1 %v3697_v21, %s10384_s8  ;;  %20143 = vst [vmem:[#allocation287_spill] sm:$0xff] %v13841_v56  ;;  %v4470_v21 = vmul.f32 %v20144_v24, %v13799_v39 }
 0x9f3   : > { %v3055_v41 = vadd.f32 %v13223_v53, %v2879_v38  ;;  %v20148_v53 = vld [vmem:[#allocation319_spill] sm:$0xff] }
 0x9f4   : > { %v13843_v29 = vpop.permute.xlu1 %2972  ;;  %3807 = vrot.lane.b32.xlu0 %v3696_v31, %s10384_s8  ;;  %v3699_v31 = vmul.f32 %v20147_v62, %v13841_v56  ;;  %v20149_v38 = vld [vmem:[#allocation359_spill] sm:$0xff] }
 0x9f5   : > { %v3099_v60 = vadd.f32 1e-06, %v3055_v41  ;;  %v2440_v28 = vadd.f32 %v20149_v38, %v20148_v53  ;;  %v20153_v41 = vld [vmem:[#allocation222_spill] sm:$0xff]  ;;  %v20154_v38 = vld [vmem:[#allocation200_spill] sm:$0xff] }
 0x9f6   : > { %v13852_v61 = vpop.permute.xlu0 %4395  ;;  %4582 = vrot.lane.b32.xlu1 %v4470_v21, %s10383_s7  ;;  %v20150_v21 = vld [vmem:[#allocation353_spill] sm:$0xff]  ;;  %v10344_v51 = vpop.eup %10343  ;;  %v4472_v62 = vmul.f32 %v20153_v41, %v13841_v56 }
 0x9f7   : > { %v3698_v39 = vmul.f32 %v20150_v21, %v13850_v8  ;;  %v13871_v59 = vadd.f32 %v20151_v49, %v2440_v28  ;;  %v3219_v53 = vrot.slane %v3099_v60, 5  ;;  %v20156_v21 = vld [vmem:[#allocation326_spill] sm:$0xff]  ;;  %v20158_v60 = vld [vmem:[#allocation3_spill] sm:$0xff] }
 0x9f8   : > { %v13857_v9 = vpop.permute.xlu1 %2534  ;;  %4580 = vrot.lane.b32.xlu0 %v4469_v3, %s10383_s7  ;;  %v2441_v34 = vadd.f32 %v13193_v16, %v20156_v21  ;;  %v3886_v56 = vsub.f32 %v20158_v60, %v13392_v12 }
 0x9f9   : > { %20152 = vst [vmem:[#allocation293_spill] sm:$0xff] %v13871_v59  ;;  %v13881_v15 = vmul.f32 %v10344_v51, %v13871_v59  ;;  %v3220_v16 = vsel %vm330_vm2, %v3217_v17, %v3219_v53  ;;  %v4659_v17 = vsub.f32 %v20158_v60, %v13413_v7 }
 0x9fa   : > { %v13864_v24 = vpop.permute.xlu0 %3767  ;;  %3813 = vrot.lane.b32.xlu1 %v3699_v31, %s10384_s8  ;;  %v2880_v31 = vadd.f32 %v13292_v36, %v20154_v38  ;;  %v10346_v51 = vpop.eup %10345  ;;  %v13898_v38 = vadd.f32 %v20159_v19, %v2441_v34  ;;  %10349 = vrcp.f32 %v3220_v16 }
 0x9fb   : > { %20155 = vst [vmem:[#allocation297_spill] sm:$0xff] %v13881_v15 }
 0x9fc   : > { %v13873_v3 = vpop.permute.xlu1 %3624  ;;  %3811 = vrot.lane.b32.xlu0 %v3698_v39, %s10384_s8  ;;  %v20157_v39 = vld [vmem:[#allocation214_spill] sm:$0xff]  ;;  %v3056_v41 = vadd.f32 %v13309_v46, %v2880_v31  ;;  %20160 = vst [vmem:[#allocation276_spill] sm:$0xff] %v13898_v38  ;;  %v20162_v31 = vld [vmem:[#allocation345_spill] sm:$0xff] }
 0x9fd   : > { %v4471_v28 = vmul.f32 %v20157_v39, %v13850_v8  ;;  %v2881_v12 = vadd.f32 %v13298_v23, %v20162_v31  ;;  %v13908_v8 = vmul.f32 %v10346_v51, %v13898_v38  ;;  %v20164_v23 = vld [vmem:[#allocation357_spill] sm:$0xff]  ;;  %v20173_v38 = vld [vmem:[#allocation368_spill] sm:$0xff] }
 0x9fe   : > { %v13885_v49 = vpop.permute.xlu0 %4540  ;;  %4586 = vrot.lane.b32.xlu1 %v4472_v62, %s10383_s7  ;;  %v20161_v62 = vld [vmem:[#allocation216_spill] sm:$0xff]  ;;  %v3100_v39 = vadd.f32 1e-06, %v3056_v41  ;;  %v4473_v41 = vmul.f32 %v20164_v23, %v13881_v15  ;;  %v20167_v23 = vld [vmem:[#allocation134_spill] sm:$0xff] }
 0x9ff   : > { %v3700_v46 = vmul.f32 %v20161_v62, %v13881_v15  ;;  %20163 = vst [vmem:[#allocation284_spill] sm:$0xff] %v13908_v8  ;;  %v3701_v7 = vmul.f32 %v13161_v27, %v13908_v8  ;;  %v20165_v62 = vld [vmem:[#allocation333_spill] sm:$0xff]  ;;  %v20169_v27 = vld [vmem:[#allocation362_spill] sm:$0xff] }
 0xa00   : > { %v13893_v36 = vpop.permute.xlu1 %4397  ;;  %4584 = vrot.lane.b32.xlu0 %v4471_v28, %s10383_s7  ;;  %v3221_v19 = vrot.slane %v3100_v39, 5 }
 0xa02   : > { %v13900_v21 = vpop.permute.xlu0 %2362  ;;  %4143 = vrot.lane.b32.xlu1 %v3886_v56, %s10382_s6  ;;  %v3057_v56 = vadd.f32 %v13314_v47, %v2881_v12  ;;  %v20166_v47 = vld [vmem:[#allocation4_spill] sm:$0xff]  ;;  %v3222_v39 = vsel %vm330_vm2, %v3219_v53, %v3221_v19 }
 0xa03   : > { %v3887_v31 = vsub.f32 %v20166_v47, %v13519_v4  ;;  %10351 = vrcp.f32 %v3222_v39  ;;  %v20175_v39 = vld [vmem:[#allocation243_spill] sm:$0xff] }
 0xa04   : > { %v13912_v34 = vpop.permute.xlu1 %3769  ;;  %3815 = vrot.lane.b32.xlu0 %v3700_v46, %s10384_s8  ;;  %v3101_v16 = vadd.f32 1e-06, %v3057_v56  ;;  %v2442_v46 = vadd.f32 %v13196_v5, %v20165_v62  ;;  %v4474_v5 = vmul.f32 %v20169_v27, %v13908_v8  ;;  %v20170_v62 = vld [vmem:[#allocation213_spill] sm:$0xff] }
 0xa05   : > { %v2882_v4 = vadd.f32 %v13406_v25, %v20170_v62 }
 0xa06   : > { %v13916_v28 = vpop.permute.xlu0 %2798  ;;  %4874 = vrot.lane.b32.xlu1 %v4659_v17, %s10381_s30  ;;  %v10348_v17 = vpop.eup %10347  ;;  %v13935_v15 = vadd.f32 %v20167_v23, %v2442_v46  ;;  %v3223_v56 = vrot.slane %v3101_v16, 5  ;;  %v4660_v46 = vsub.f32 %v20166_v47, %v13547_v42  ;;  %v20174_v16 = vld [vmem:[#allocation5_spill] sm:$0xff] }
 0xa07   : > { %v3888_v27 = vsub.f32 %v20174_v16, %v13580_v13 }
 0xa08   : > { %v13921_v51 = vpop.permute.xlu1 %4542  ;;  %4588 = vrot.lane.b32.xlu0 %v4473_v41, %s10383_s7  ;;  %20168 = vst [vmem:[#allocation342_spill] sm:$0xff] %v13935_v15  ;;  %v13945_v60 = vmul.f32 %v10348_v17, %v13935_v15  ;;  %v10350_v17 = vpop.eup %10349 }
 0xa0a   : > { %v13930_v12 = vpop.permute.xlu0 %2974  ;;  %3817 = vrot.lane.b32.xlu1 %v3701_v7, %s10384_s8  ;;  %20171 = vst [vmem:[#allocation296_spill] sm:$0xff] %v13945_v60  ;;  %v20172_v7 = vld [vmem:[#allocation186_spill] sm:$0xff] }
 0xa0b   : > { %v2443_v53 = vadd.f32 %v20173_v38, %v20172_v7  ;;  %v3224_v38 = vsel %vm330_vm2, %v3221_v19, %v3223_v56  ;;  %v20178_v7 = vld [vmem:[#allocation211_spill] sm:$0xff]  ;;  %v4661_v19 = vsub.f32 %v20174_v16, %v13600_v14  ;;  %v20181_v14 = vld [vmem:[#allocation365_spill] sm:$0xff] }
 0xa0c   : > { %v13937_v41 = vpop.permute.xlu1 %2364  ;;  %4145 = vrot.lane.b32.xlu0 %v3887_v31, %s10382_s6  ;;  %v3058_v31 = vadd.f32 %v13426_v57, %v2882_v4  ;;  %v2883_v13 = vadd.f32 %v13458_v33, %v20178_v7  ;;  %10353 = vrcp.f32 %v3224_v38  ;;  %v20182_v7 = vld [vmem:[#allocation343_spill] sm:$0xff]  ;;  %v20189_v16 = vld [vmem:[#allocation249_spill] sm:$0xff] }
 0xa0d   : > { %v13962_v62 = vadd.f32 %v20175_v39, %v2443_v53 }
 0xa0e   : > { %v13951_v23 = vpop.permute.xlu0 %2536  ;;  %4590 = vrot.lane.b32.xlu1 %v4474_v5, %s10383_s7  ;;  %v20177_v5 = vld [vmem:[#allocation139_spill] sm:$0xff]  ;;  %v3102_v4 = vadd.f32 1e-06, %v3058_v31 }
 0xa0f   : > { %20176 = vst [vmem:[#allocation290_spill] sm:$0xff] %v13962_v62  ;;  %v3702_v57 = vmul.f32 %v20177_v5, %v13945_v60  ;;  %v13972_v8 = vmul.f32 %v10350_v17, %v13962_v62  ;;  %v20180_v31 = vld [vmem:[#allocation363_spill] sm:$0xff] }
 0xa10   : > { %v13957_v25 = vpop.permute.xlu1 %2800  ;;  %4876 = vrot.lane.b32.xlu0 %v4660_v46, %s10381_s30  ;;  %v3059_v46 = vadd.f32 %v13486_v55, %v2883_v13  ;;  %v4475_v33 = vmul.f32 %v20180_v31, %v13945_v60  ;;  %v3225_v39 = vrot.slane %v3102_v4, 5  ;;  %v20183_v55 = vld [vmem:[#allocation6_spill] sm:$0xff] }
 0xa11   : > { %20179 = vst [vmem:[#allocation283_spill] sm:$0xff] %v13972_v8  ;;  %v3703_v38 = vmul.f32 %v20181_v14, %v13972_v8  ;;  %v3889_v13 = vsub.f32 %v20183_v55, %v13707_v26 }
 0xa12   : > { %v13964_v42 = vpop.permute.xlu0 %3626  ;;  %4147 = vrot.lane.b32.xlu1 %v3888_v27, %s10382_s6  ;;  %v3103_v5 = vadd.f32 1e-06, %v3059_v46  ;;  %v3226_v4 = vsel %vm330_vm2, %v3223_v56, %v3225_v39  ;;  %v20185_v46 = vld [vmem:[#allocation147_spill] sm:$0xff] }
 0xa13   : > { %10355 = vrcp.f32 %v3226_v4  ;;  %v20191_v4 = vld [vmem:[#allocation185_spill] sm:$0xff] }
 0xa14   : > { %v13976_v53 = vpop.permute.xlu1 %2976  ;;  %3819 = vrot.lane.b32.xlu0 %v3702_v57, %s10384_s8  ;;  %v2444_v57 = vadd.f32 %v13286_v52, %v20182_v7  ;;  %v4476_v52 = vmul.f32 %v20185_v46, %v13972_v8  ;;  %v3227_v14 = vrot.slane %v3103_v5, 5  ;;  %v20186_v7 = vld [vmem:[#allocation115_spill] sm:$0xff] }
 0xa15   : > { %v2884_v26 = vadd.f32 %v13594_v18, %v20186_v7  ;;  %v20190_v5 = vld [vmem:[#allocation7_spill] sm:$0xff] }
 0xa16   : > { %v13980_v27 = vpop.permute.xlu0 %4399  ;;  %4878 = vrot.lane.b32.xlu1 %v4661_v19, %s10381_s30  ;;  %v10352_v19 = vpop.eup %10351  ;;  %v13999_v31 = vadd.f32 %v13323_v6, %v2444_v57  ;;  %v4662_v6 = vsub.f32 %v20183_v55, %v13732_v63  ;;  %v3890_v46 = vsub.f32 %v20190_v5, %v13763_v43 }
 0xa18   : > { %v13985_v17 = vpop.permute.xlu1 %2538  ;;  %4592 = vrot.lane.b32.xlu0 %v4475_v33, %s10383_s7  ;;  %20184 = vst [vmem:[#allocation341_spill] sm:$0xff] %v13999_v31  ;;  %v14009_v60 = vmul.f32 %v10352_v19, %v13999_v31  ;;  %v20207_v31 = vld [vmem:[#allocation262_spill] sm:$0xff] }
 0xa19   : > { %v10354_v19 = vpop.eup %10353 }
 0xa1a   : > { %v13994_v47 = vpop.permute.xlu0 %3771  ;;  %3821 = vrot.lane.b32.xlu1 %v3703_v38, %s10384_s8  ;;  %20187 = vst [vmem:[#allocation346_spill] sm:$0xff] %v14009_v60  ;;  %v20188_v38 = vld [vmem:[#allocation350_spill] sm:$0xff] }
 0xa1b   : > { %v2445_v56 = vadd.f32 %v20189_v16, %v20188_v38  ;;  %v3228_v16 = vsel %vm330_vm2, %v3225_v39, %v3227_v14  ;;  %v20194_v38 = vld [vmem:[#allocation219_spill] sm:$0xff]  ;;  %v4663_v39 = vsub.f32 %v20190_v5, %v13779_v44  ;;  %v20199_v44 = vld [vmem:[#allocation229_spill] sm:$0xff]  ;;  %v20204_v5 = vld [vmem:[#allocation224_spill] sm:$0xff] }
 0xa1c   : > { %v14001_v33 = vpop.permute.xlu1 %3773  ;;  %4149 = vrot.lane.b32.xlu0 %v3889_v13, %s10382_s6  ;;  %v3060_v13 = vadd.f32 %v13613_v0, %v2884_v26  ;;  %v2885_v43 = vadd.f32 %v13647_v1, %v20194_v38  ;;  %10357 = vrcp.f32 %v3228_v16 }
 0xa1d   : > { %v14026_v7 = vadd.f32 %v20191_v4, %v2445_v56 }
 0xa1e   : > { %v14015_v57 = vpop.permute.xlu0 %4544  ;;  %4594 = vrot.lane.b32.xlu1 %v4476_v52, %s10383_s7  ;;  %v20193_v52 = vld [vmem:[#allocation163_spill] sm:$0xff]  ;;  %v3104_v26 = vadd.f32 1e-06, %v3060_v13  ;;  %v20196_v13 = vld [vmem:[#allocation236_spill] sm:$0xff] }
 0xa1f   : > { %20192 = vst [vmem:[#allocation256_spill] sm:$0xff] %v14026_v7  ;;  %v3704_v0 = vmul.f32 %v20193_v52, %v14009_v60  ;;  %v14036_v8 = vmul.f32 %v10354_v19, %v14026_v7  ;;  %v4477_v1 = vmul.f32 %v20196_v13, %v14009_v60  ;;  %v20197_v19 = vld [vmem:[#allocation199_spill] sm:$0xff]  ;;  %v20198_v52 = vld [vmem:[#allocation245_spill] sm:$0xff]  ;;  %v20201_v60 = vld [vmem:[#allocation184_spill] sm:$0xff] }
 0xa20   : > { %v14021_v18 = vpop.permute.xlu1 %4546  ;;  %4880 = vrot.lane.b32.xlu0 %v4662_v6, %s10381_s30  ;;  %v3061_v6 = vadd.f32 %v13674_v45, %v2885_v43  ;;  %v3229_v4 = vrot.slane %v3104_v26, 5  ;;  %v2446_v16 = vadd.f32 %v20198_v52, %v20197_v19  ;;  %v20200_v45 = vld [vmem:[#allocation8_spill] sm:$0xff]  ;;  %v10356_v13 = vpop.eup %10355 }
 0xa21   : > { %20195 = vst [vmem:[#allocation315_spill] sm:$0xff] %v14036_v8  ;;  %v3891_v43 = vsub.f32 %v20200_v45, %v13864_v24  ;;  %v2886_v24 = vadd.f32 %v13774_v54, %v20204_v5  ;;  %v20206_v7 = vld [vmem:[#allocation356_spill] sm:$0xff] }
 0xa22   : > { %4151 = vrot.lane.b32.xlu1 %v3890_v46, %s10382_s6  ;;  %v14029_v63 = vpop.permute.xlu0 %2366  ;;  %v3105_v55 = vadd.f32 1e-06, %v3061_v6  ;;  %v3230_v26 = vsel %vm330_vm2, %v3227_v14, %v3229_v4  ;;  %v14063_v19 = vadd.f32 %v20201_v60, %v2446_v16  ;;  %v2447_v14 = vadd.f32 %v20207_v31, %v20206_v7  ;;  %v20209_v7 = vld [vmem:[#allocation221_spill] sm:$0xff] }
 0xa23   : > { %10359 = vrcp.f32 %v3230_v26  ;;  %v4664_v60 = vsub.f32 %v20200_v45, %v13885_v49  ;;  %v20211_v26 = vld [vmem:[#allocation247_spill] sm:$0xff]  ;;  %v20222_v45 = vld [vmem:[#allocation360_spill] sm:$0xff] }
 0xa24   : > { %v14040_v56 = vpop.permute.xlu1 %3777  ;;  %3823 = vrot.lane.b32.xlu0 %v3704_v0, %s10384_s8  ;;  %v3705_v0 = vmul.f32 %v20199_v44, %v14036_v8  ;;  %20202 = vst [vmem:[#allocation279_spill] sm:$0xff] %v14063_v19  ;;  %v3231_v44 = vrot.slane %v3105_v55, 5  ;;  %v20208_v55 = vld [vmem:[#allocation9_spill] sm:$0xff] }
 0xa26   : > { %4882 = vrot.lane.b32.xlu1 %v4663_v39, %s10381_s30  ;;  %v14045_v46 = vpop.permute.xlu0 %3775  ;;  %v3232_v31 = vsel %vm330_vm2, %v3229_v4, %v3231_v44  ;;  %v4665_v4 = vsub.f32 %v20208_v55, %v13921_v51  ;;  %v20216_v51 = vld [vmem:[#allocation248_spill] sm:$0xff] }
 0xa27   : > { %10361 = vrcp.f32 %v3232_v31 }
 0xa28   : > { %v14051_v38 = vpop.permute.xlu1 %4550  ;;  %4596 = vrot.lane.b32.xlu0 %v4477_v1, %s10383_s7  ;;  %v20203_v1 = vld [vmem:[#allocation209_spill] sm:$0xff] }
 0xa29   : > { %v4478_v6 = vmul.f32 %v20203_v1, %v14036_v8  ;;  %v3892_v1 = vsub.f32 %v20208_v55, %v13912_v34  ;;  %v10358_v5 = vpop.eup %10357 }
 0xa2a   : > { %3825 = vrot.lane.b32.xlu1 %v3705_v0, %s10384_s8  ;;  %v14059_v39 = vpop.permute.xlu0 %4548  ;;  %v14073_v0 = vmul.f32 %v10356_v13, %v14063_v19  ;;  %v14090_v13 = vadd.f32 %v20209_v7, %v2447_v14 }
 0xa2c   : > { %v14065_v52 = vpop.permute.xlu1 %3781  ;;  %4153 = vrot.lane.b32.xlu0 %v3891_v43, %s10382_s6  ;;  %20205 = vst [vmem:[#allocation344_spill] sm:$0xff] %v14073_v0  ;;  %v3062_v43 = vadd.f32 %v13789_v20, %v2886_v24  ;;  %20210 = vst [vmem:[#allocation298_spill] sm:$0xff] %v14090_v13  ;;  %v3706_v20 = vmul.f32 %v20211_v26, %v14073_v0  ;;  %v20212_v24 = vld [vmem:[#allocation227_spill] sm:$0xff]  ;;  %v14100_v8 = vmul.f32 %v10358_v5, %v14090_v13  ;;  %v20215_v5 = vld [vmem:[#allocation358_spill] sm:$0xff] }
 0xa2d   : > { %v2887_v34 = vadd.f32 %v13819_v58, %v20212_v24  ;;  %v2448_v31 = vadd.f32 %v13627_v10, %v20215_v5 }
 0xa2e   : > { %4598 = vrot.lane.b32.xlu1 %v4478_v6, %s10383_s7  ;;  %v14080_v16 = vpop.permute.xlu0 %3779  ;;  %v3106_v6 = vadd.f32 1e-06, %v3062_v43  ;;  %20213 = vst [vmem:[#allocation250_spill] sm:$0xff] %v14100_v8  ;;  %v20214_v43 = vld [vmem:[#allocation232_spill] sm:$0xff] }
 0xa2f   : > { %v4479_v58 = vmul.f32 %v20214_v43, %v14073_v0  ;;  %v14127_v10 = vadd.f32 %v13641_v2, %v2448_v31  ;;  %v20220_v0 = vld [vmem:[#allocation189_spill] sm:$0xff] }
 0xa30   : > { %v14085_v54 = vpop.permute.xlu1 %4554  ;;  %4884 = vrot.lane.b32.xlu0 %v4664_v60, %s10381_s30  ;;  %v3063_v60 = vadd.f32 %v13843_v29, %v2887_v34  ;;  %v3233_v7 = vrot.slane %v3106_v6, 5  ;;  %v20217_v29 = vld [vmem:[#allocation10_spill] sm:$0xff]  ;;  %v10360_v43 = vpop.eup %10359 }
 0xa31   : > { %v3893_v34 = vsub.f32 %v20217_v29, %v13994_v47  ;;  %20218 = vst [vmem:[#allocation304_spill] sm:$0xff] %v14127_v10  ;;  %v2888_v47 = vadd.f32 %v13916_v28, %v20220_v0  ;;  %v4666_v2 = vsub.f32 %v20217_v29, %v14015_v57  ;;  %v20328_v29 = vld [vmem:[#allocation86_spill] sm:$0xff] }
 0xa32   : > { %4155 = vrot.lane.b32.xlu1 %v3892_v1, %s10382_s6  ;;  %v14093_v49 = vpop.permute.xlu0 %4552  ;;  %v3107_v24 = vadd.f32 1e-06, %v3063_v60  ;;  %v3234_v6 = vsel %vm330_vm2, %v3231_v44, %v3233_v7  ;;  %v2449_v44 = vadd.f32 %v13749_v30, %v20222_v45 }
 0xa33   : > { %10363 = vrcp.f32 %v3234_v6 }
 0xa34   : > { %v14104_v14 = vpop.permute.xlu1 %3785  ;;  %3827 = vrot.lane.b32.xlu0 %v3706_v20, %s10384_s8  ;;  %v3707_v20 = vmul.f32 %v20216_v51, %v14100_v8  ;;  %v3235_v51 = vrot.slane %v3107_v24, 5  ;;  %v20223_v24 = vld [vmem:[#allocation11_spill] sm:$0xff]  ;;  %v10362_v0 = vpop.eup %10361  ;;  %v14154_v45 = vadd.f32 %v13694_v35, %v2449_v44 }
 0xa36   : > { %4886 = vrot.lane.b32.xlu1 %v4665_v4, %s10381_s30  ;;  %v14109_v1 = vpop.permute.xlu0 %3783  ;;  %v3236_v30 = vsel %vm330_vm2, %v3233_v7, %v3235_v51  ;;  %20224 = vst [vmem:[#allocation288_spill] sm:$0xff] %v14154_v45  ;;  %v4667_v7 = vsub.f32 %v20223_v24, %v14021_v18 }
 0xa37   : > { %10365 = vrcp.f32 %v3236_v30 }
 0xa38   : > { %v14115_v26 = vpop.permute.xlu1 %4558  ;;  %4600 = vrot.lane.b32.xlu0 %v4479_v58, %s10383_s7  ;;  %v20219_v58 = vld [vmem:[#allocation251_spill] sm:$0xff] }
 0xa39   : > { %v4480_v60 = vmul.f32 %v20219_v58, %v14100_v8  ;;  %v3894_v58 = vsub.f32 %v20223_v24, %v14001_v33 }
 0xa3a   : > { %3829 = vrot.lane.b32.xlu1 %v3707_v20, %s10384_s8  ;;  %v14123_v4 = vpop.permute.xlu0 %4556  ;;  %v14137_v20 = vmul.f32 %v10360_v43, %v14127_v10  ;;  %v20225_v43 = vld [vmem:[#allocation208_spill] sm:$0xff] }
 0xa3c   : > { %v14129_v5 = vpop.permute.xlu1 %3789  ;;  %4157 = vrot.lane.b32.xlu0 %v3893_v34, %s10382_s6  ;;  %20221 = vst [vmem:[#allocation309_spill] sm:$0xff] %v14137_v20  ;;  %v3064_v34 = vadd.f32 %v13930_v12, %v2888_v47  ;;  %v3708_v12 = vmul.f32 %v20225_v43, %v14137_v20  ;;  %v14164_v47 = vmul.f32 %v10362_v0, %v14154_v45  ;;  %v20229_v0 = vld [vmem:[#allocation364_spill] sm:$0xff] }
 0xa3d   : > { %v2450_v30 = vadd.f32 %v13801_v22, %v20229_v0 }
 0xa3e   : > { %4602 = vrot.lane.b32.xlu1 %v4480_v60, %s10383_s7  ;;  %v14144_v31 = vpop.permute.xlu0 %3787  ;;  %v3108_v6 = vadd.f32 1e-06, %v3064_v34  ;;  %v20226_v60 = vld [vmem:[#allocation212_spill] sm:$0xff]  ;;  %20227 = vst [vmem:[#allocation295_spill] sm:$0xff] %v14164_v47  ;;  %v20228_v34 = vld [vmem:[#allocation274_spill] sm:$0xff]  ;;  %v3709_v18 = vmul.f32 %v13660_v37, %v14164_v47  ;;  %v4482_v37 = vmul.f32 %v13688_v11, %v14164_v47 }
 0xa3f   : > { %v2889_v33 = vadd.f32 %v13957_v25, %v20226_v60  ;;  %v4481_v25 = vmul.f32 %v20228_v34, %v14137_v20  ;;  %v14191_v22 = vadd.f32 %v13813_v32, %v2450_v30  ;;  %v20234_v30 = vld [vmem:[#allocation13_spill] sm:$0xff] }
 0xa40   : > { %v14149_v28 = vpop.permute.xlu1 %4562  ;;  %4888 = vrot.lane.b32.xlu0 %v4666_v2, %s10381_s30 }
 0xa41   : > { %v3065_v44 = vadd.f32 %v13976_v53, %v2889_v33  ;;  %v20230_v53 = vld [vmem:[#allocation12_spill] sm:$0xff]  ;;  %20231 = vst [vmem:[#allocation308_spill] sm:$0xff] %v14191_v22 }
 0xa42   : > { %4159 = vrot.lane.b32.xlu1 %v3894_v58, %s10382_s6  ;;  %v14157_v57 = vpop.permute.xlu0 %4560  ;;  %v3237_v58 = vrot.slane %v3108_v6, 5  ;;  %v3895_v60 = vsub.f32 %v20230_v53, %v14045_v46 }
 0xa44   : > { %v14168_v35 = vpop.permute.xlu1 %3793  ;;  %3831 = vrot.lane.b32.xlu0 %v3708_v12, %s10384_s8  ;;  %v3109_v12 = vadd.f32 1e-06, %v3065_v44  ;;  %v3238_v6 = vsel %vm330_vm2, %v3235_v51, %v3237_v58  ;;  %v4668_v51 = vsub.f32 %v20230_v53, %v14059_v39 }
 0xa45   : > { %10367 = vrcp.f32 %v3238_v6 }
 0xa46   : > { %4890 = vrot.lane.b32.xlu1 %v4667_v7, %s10381_s30  ;;  %v14173_v2 = vpop.permute.xlu0 %3791  ;;  %v10364_v7 = vpop.eup %10363  ;;  %v3239_v44 = vrot.slane %v3109_v12, 5 }
 0xa47   : > { %v14199_v46 = vmul.f32 %v10364_v7, %v14191_v22  ;;  %v10366_v11 = vpop.eup %10365 }
 0xa48   : > { %v14179_v43 = vpop.permute.xlu1 %4566  ;;  %4604 = vrot.lane.b32.xlu0 %v4481_v25, %s10383_s7  ;;  %v20233_v25 = vld [vmem:[#allocation366_spill] sm:$0xff]  ;;  %v3240_v12 = vsel %vm330_vm2, %v3237_v58, %v3239_v44  ;;  %v20237_v58 = vld [vmem:[#allocation272_spill] sm:$0xff] }
 0xa49   : > { %20232 = vst [vmem:[#allocation301_spill] sm:$0xff] %v14199_v46  ;;  %v2451_v0 = vadd.f32 %v13900_v21, %v20233_v25  ;;  %v3710_v7 = vmul.f32 %v13719_v48, %v14199_v46  ;;  %10369 = vrcp.f32 %v3240_v12  ;;  %v4483_v44 = vmul.f32 %v20237_v58, %v14199_v46  ;;  %v20238_v25 = vld [vmem:[#allocation244_spill] sm:$0xff]  ;;  %v20242_v58 = vld [vmem:[#allocation253_spill] sm:$0xff] }
 0xa4a   : > { %3833 = vrot.lane.b32.xlu1 %v3709_v18, %s10384_s8  ;;  %v14187_v33 = vpop.permute.xlu0 %4564  ;;  %v3896_v18 = vsub.f32 %v20234_v30, %v14040_v56  ;;  %v4669_v56 = vsub.f32 %v20234_v30, %v14051_v38  ;;  %v2452_v48 = vadd.f32 %v13937_v41, %v20238_v25  ;;  %v20243_v25 = vld [vmem:[#allocation15_spill] sm:$0xff] }
 0xa4b   : > { %v14215_v21 = vadd.f32 %v13857_v9, %v2451_v0 }
 0xa4c   : > { %v14193_v34 = vpop.permute.xlu1 %3797  ;;  %4161 = vrot.lane.b32.xlu0 %v3895_v60, %s10382_s6 }
 0xa4d   : > { %20235 = vst [vmem:[#allocation167_spill] sm:$0xff] %v14215_v21  ;;  %v14223_v6 = vmul.f32 %v10366_v11, %v14215_v21 }
 0xa4e   : > { %4606 = vrot.lane.b32.xlu1 %v4482_v37, %s10383_s7  ;;  %v14206_v32 = vpop.permute.xlu0 %3795 }
 0xa4f   : > { %20236 = vst [vmem:[#allocation266_spill] sm:$0xff] %v14223_v6  ;;  %v3711_v38 = vmul.f32 %v13830_v50, %v14223_v6  ;;  %v4484_v41 = vmul.f32 %v13852_v61, %v14223_v6 }
 0xa50   : > { %v14210_v60 = vpop.permute.xlu1 %4570  ;;  %4892 = vrot.lane.b32.xlu0 %v4668_v51, %s10381_s30  ;;  %v20239_v51 = vld [vmem:[#allocation14_spill] sm:$0xff] }
 0xa52   : > { %4163 = vrot.lane.b32.xlu1 %v3896_v18, %s10382_s6  ;;  %v14218_v39 = vpop.permute.xlu0 %4568  ;;  %v3897_v18 = vsub.f32 %v20239_v51, %v14080_v16  ;;  %v10368_v12 = vpop.eup %10367  ;;  %v2453_v16 = vadd.f32 %v14029_v63, %v20242_v58 }
 0xa54   : > { %v14227_v37 = vpop.permute.xlu1 %3801  ;;  %3835 = vrot.lane.b32.xlu0 %v3710_v7, %s10384_s8  ;;  %v14248_v7 = vadd.f32 %v13951_v23, %v2452_v48  ;;  %v3898_v48 = vsub.f32 %v20243_v25, %v14065_v52  ;;  %v4671_v52 = vsub.f32 %v20243_v25, %v14085_v54  ;;  %v20246_v54 = vld [vmem:[#allocation16_spill] sm:$0xff] }
 0xa56   : > { %4894 = vrot.lane.b32.xlu1 %v4669_v56, %s10381_s30  ;;  %v14231_v9 = vpop.permute.xlu0 %3799  ;;  %20240 = vst [vmem:[#allocation329_spill] sm:$0xff] %v14248_v7  ;;  %v14256_v50 = vmul.f32 %v10368_v12, %v14248_v7  ;;  %v10370_v61 = vpop.eup %10369 }
 0xa58   : > { %v14237_v0 = vpop.permute.xlu1 %4574  ;;  %4608 = vrot.lane.b32.xlu0 %v4483_v44, %s10383_s7  ;;  %20241 = vst [vmem:[#allocation291_spill] sm:$0xff] %v14256_v50  ;;  %v4670_v44 = vsub.f32 %v20239_v51, %v14093_v49  ;;  %v3712_v49 = vmul.f32 %v13873_v3, %v14256_v50  ;;  %v4485_v58 = vmul.f32 %v13893_v36, %v14256_v50 }
 0xa5a   : > { %3837 = vrot.lane.b32.xlu1 %v3711_v38, %s10384_s8  ;;  %v14245_v11 = vpop.permute.xlu0 %4572 }
 0xa5c   : > { %v14250_v56 = vpop.permute.xlu1 %3805  ;;  %4165 = vrot.lane.b32.xlu0 %v3897_v18, %s10382_s6  ;;  %v14271_v18 = vadd.f32 %v13985_v17, %v2453_v16 }
 0xa5e   : > { %4610 = vrot.lane.b32.xlu1 %v4484_v41, %s10383_s7  ;;  %v14263_v23 = vpop.permute.xlu0 %3803  ;;  %20244 = vst [vmem:[#allocation310_spill] sm:$0xff] %v14271_v18  ;;  %v14279_v12 = vmul.f32 %v10370_v61, %v14271_v18 }
 0xa60   : > { %v14267_v38 = vpop.permute.xlu1 %4578  ;;  %4896 = vrot.lane.b32.xlu0 %v4670_v44, %s10381_s30  ;;  %20245 = vst [vmem:[#allocation260_spill] sm:$0xff] %v14279_v12  ;;  %v3713_v3 = vmul.f32 %v13964_v42, %v14279_v12  ;;  %v3899_v44 = vsub.f32 %v20246_v54, %v14109_v1  ;;  %v4486_v36 = vmul.f32 %v13980_v27, %v14279_v12  ;;  %v20247_v1 = vld [vmem:[#allocation17_spill] sm:$0xff] }
 0xa62   : > { %4167 = vrot.lane.b32.xlu1 %v3898_v48, %s10382_s6  ;;  %v14274_v63 = vpop.permute.xlu0 %4576 }
 0xa64   : > { %v14283_v41 = vpop.permute.xlu1 %3809  ;;  %3839 = vrot.lane.b32.xlu0 %v3712_v49, %s10384_s8  ;;  %v4672_v49 = vsub.f32 %v20246_v54, %v14123_v4  ;;  %v4673_v4 = vsub.f32 %v20247_v1, %v14115_v26  ;;  %v20250_v26 = vld [vmem:[#allocation20_spill] sm:$0xff] }
 0xa65   : > { %v3903_v47 = vsub.f32 %v20250_v26, %v14173_v2  ;;  %v20251_v2 = vld [vmem:[#allocation21_spill] sm:$0xff] }
 0xa66   : > { %4898 = vrot.lane.b32.xlu1 %v4671_v52, %s10381_s30  ;;  %v14287_v17 = vpop.permute.xlu0 %3807  ;;  %v3900_v52 = vsub.f32 %v20247_v1, %v14104_v14  ;;  %v3904_v20 = vsub.f32 %v20251_v2, %v14168_v35 }
 0xa68   : > { %v14291_v16 = vpop.permute.xlu1 %4582  ;;  %4612 = vrot.lane.b32.xlu0 %v4485_v58, %s10383_s7 }
 0xa6a   : > { %3841 = vrot.lane.b32.xlu1 %v3713_v3, %s10384_s8  ;;  %v14299_v48 = vpop.permute.xlu0 %4580  ;;  %v20248_v3 = vld [vmem:[#allocation18_spill] sm:$0xff] }
 0xa6b   : > { %v4674_v14 = vsub.f32 %v20248_v3, %v14157_v57 }
 0xa6c   : > { %v14301_v61 = vpop.permute.xlu1 %3813  ;;  %4169 = vrot.lane.b32.xlu0 %v3899_v44, %s10382_s6  ;;  %v3901_v44 = vsub.f32 %v20248_v3, %v14144_v31  ;;  %v20249_v31 = vld [vmem:[#allocation19_spill] sm:$0xff] }
 0xa6d   : > { %v3902_v8 = vsub.f32 %v20249_v31, %v14129_v5  ;;  %v4675_v57 = vsub.f32 %v20249_v31, %v14149_v28  ;;  %v4676_v5 = vsub.f32 %v20250_v26, %v14187_v33  ;;  %v20252_v28 = vld [vmem:[#allocation22_spill] sm:$0xff]  ;;  %v4677_v33 = vsub.f32 %v20251_v2, %v14179_v43  ;;  %v20254_v43 = vld [vmem:[#allocation24_spill] sm:$0xff] }
 0xa6e   : > { %4614 = vrot.lane.b32.xlu1 %v4486_v36, %s10383_s7  ;;  %v14309_v42 = vpop.permute.xlu0 %3811  ;;  %v3905_v6 = vsub.f32 %v20252_v28, %v14206_v32  ;;  %v4678_v35 = vsub.f32 %v20252_v28, %v14218_v39  ;;  %v20253_v32 = vld [vmem:[#allocation23_spill] sm:$0xff]  ;;  %v3907_v12 = vsub.f32 %v20254_v43, %v14231_v9  ;;  %v20255_v9 = vld [vmem:[#allocation25_spill] sm:$0xff] }
 0xa6f   : > { %v3906_v46 = vsub.f32 %v20253_v32, %v14193_v34  ;;  %v4679_v39 = vsub.f32 %v20253_v32, %v14210_v60  ;;  %v4680_v34 = vsub.f32 %v20254_v43, %v14245_v11  ;;  %v3908_v50 = vsub.f32 %v20255_v9, %v14227_v37  ;;  %v20256_v60 = vld [vmem:[#allocation26_spill] sm:$0xff] }
 0xa70   : > { %v14313_v58 = vpop.permute.xlu1 %4586  ;;  %4900 = vrot.lane.b32.xlu0 %v4672_v49, %s10381_s30  ;;  %v3909_v31 = vsub.f32 %v20256_v60, %v14263_v23  ;;  %v4681_v11 = vsub.f32 %v20255_v9, %v14237_v0  ;;  %v4682_v37 = vsub.f32 %v20256_v60, %v14274_v63  ;;  %v20257_v23 = vld [vmem:[#allocation27_spill] sm:$0xff]  ;;  %v20258_v0 = vld [vmem:[#allocation28_spill] sm:$0xff] }
 0xa71   : > { %v3910_v2 = vsub.f32 %v20257_v23, %v14250_v56  ;;  %v3911_v26 = vsub.f32 %v20258_v0, %v14287_v17  ;;  %v4683_v63 = vsub.f32 %v20257_v23, %v14267_v38  ;;  %v4684_v56 = vsub.f32 %v20258_v0, %v14299_v48  ;;  %v20259_v17 = vld [vmem:[#allocation29_spill] sm:$0xff]  ;;  %v20260_v38 = vld [vmem:[#allocation30_spill] sm:$0xff]  ;;  %v20266_v60 = vld [vmem:[#allocation36_spill] sm:$0xff] }
 0xa72   : > { %4171 = vrot.lane.b32.xlu1 %v3900_v52, %s10382_s6  ;;  %v14319_v27 = vpop.permute.xlu0 %4584  ;;  %v3912_v32 = vsub.f32 %v20259_v17, %v14283_v41  ;;  %v3913_v28 = vsub.f32 %v20260_v38, %v14309_v42  ;;  %v4685_v48 = vsub.f32 %v20259_v17, %v14291_v16  ;;  %v20261_v42 = vld [vmem:[#allocation31_spill] sm:$0xff]  ;;  %v20262_v16 = vld [vmem:[#allocation33_spill] sm:$0xff] }
 0xa73   : > { %v4686_v41 = vsub.f32 %v20260_v38, %v14319_v27  ;;  %v3914_v9 = vsub.f32 %v20261_v42, %v14301_v61  ;;  %v4687_v27 = vsub.f32 %v20261_v42, %v14313_v58  ;;  %v20263_v23 = vld [vmem:[#allocation193_spill] sm:$0xff] }
 0xa74   : > { %v14323_v36 = vpop.permute.xlu1 %4143  ;;  %4173 = vrot.lane.b32.xlu0 %v3901_v44, %s10382_s6  ;;  %vm19243_vm0 = vcmp.ge.f32.partialorder %v20263_v23, 0.0 }
 0xa76   : > { %4902 = vrot.lane.b32.xlu1 %v4673_v4, %s10381_s30  ;;  %v14329_v49 = vpop.permute.xlu0 %3815 }
 0xa77   : > { %v3915_v43 = vsub.f32 %v20262_v16, %v14329_v49 }
 0xa78   : > { %v14333_v52 = vpop.permute.xlu1 %4874  ;;  %4904 = vrot.lane.b32.xlu0 %v4674_v14, %s10381_s30 }
 0xa7a   : > { %4175 = vrot.lane.b32.xlu1 %v3902_v8, %s10382_s6  ;;  %v14339_v44 = vpop.permute.xlu0 %4588 }
 0xa7b   : > { %v4688_v61 = vsub.f32 %v20262_v16, %v14339_v44  ;;  %v20265_v44 = vld [vmem:[#allocation32_spill] sm:$0xff] }
 0xa7c   : > { %v14343_v4 = vpop.permute.xlu1 %3817  ;;  %4177 = vrot.lane.b32.xlu0 %v3903_v47, %s10382_s6 }
 0xa7d   : > { %v3916_v17 = vsub.f32 %v20266_v60, %v14343_v4  ;;  %v20269_v4 = vld [vmem:[#allocation39_spill] sm:$0xff] }
 0xa7e   : > { %4906 = vrot.lane.b32.xlu1 %v4675_v57, %s10381_s30  ;;  %v14349_v14 = vpop.permute.xlu0 %4145 }
 0xa80   : > { %v14353_v8 = vpop.permute.xlu1 %4590  ;;  %4908 = vrot.lane.b32.xlu0 %v4676_v5, %s10381_s30 }
 0xa82   : > { %4179 = vrot.lane.b32.xlu1 %v3904_v20, %s10382_s6  ;;  %v14359_v47 = vpop.permute.xlu0 %4876 }
 0xa84   : > { %v14363_v57 = vpop.permute.xlu1 %4147  ;;  %4181 = vrot.lane.b32.xlu0 %v3905_v6, %s10382_s6 }
 0xa86   : > { %4910 = vrot.lane.b32.xlu1 %v4677_v33, %s10381_s30  ;;  %v14369_v5 = vpop.permute.xlu0 %3819 }
 0xa88   : > { %v14373_v20 = vpop.permute.xlu1 %4878  ;;  %4912 = vrot.lane.b32.xlu0 %v4678_v35, %s10381_s30 }
 0xa8a   : > { %4183 = vrot.lane.b32.xlu1 %v3906_v46, %s10382_s6  ;;  %v14379_v6 = vpop.permute.xlu0 %4592 }
 0xa8c   : > { %v14383_v33 = vpop.permute.xlu1 %3821  ;;  %4185 = vrot.lane.b32.xlu0 %v3907_v12, %s10382_s6 }
 0xa8e   : > { %4914 = vrot.lane.b32.xlu1 %v4679_v39, %s10381_s30  ;;  %v14389_v35 = vpop.permute.xlu0 %4149 }
 0xa90   : > { %v14393_v46 = vpop.permute.xlu1 %4594  ;;  %4916 = vrot.lane.b32.xlu0 %v4680_v34, %s10381_s30 }
 0xa92   : > { %4187 = vrot.lane.b32.xlu1 %v3908_v50, %s10382_s6  ;;  %v14399_v12 = vpop.permute.xlu0 %4880 }
 0xa94   : > { %v14403_v39 = vpop.permute.xlu1 %4151  ;;  %4189 = vrot.lane.b32.xlu0 %v3909_v31, %s10382_s6 }
 0xa96   : > { %4918 = vrot.lane.b32.xlu1 %v4681_v11, %s10381_s30  ;;  %v14409_v34 = vpop.permute.xlu0 %3823 }
 0xa98   : > { %v14413_v50 = vpop.permute.xlu1 %4882  ;;  %4920 = vrot.lane.b32.xlu0 %v4682_v37, %s10381_s30 }
 0xa9a   : > { %4191 = vrot.lane.b32.xlu1 %v3910_v2, %s10382_s6  ;;  %v14419_v31 = vpop.permute.xlu0 %4596 }
 0xa9c   : > { %v14423_v11 = vpop.permute.xlu1 %3825  ;;  %4193 = vrot.lane.b32.xlu0 %v3911_v26, %s10382_s6 }
 0xa9e   : > { %4922 = vrot.lane.b32.xlu1 %v4683_v63, %s10381_s30  ;;  %v14429_v37 = vpop.permute.xlu0 %4153 }
 0xaa0   : > { %v14433_v2 = vpop.permute.xlu1 %4598  ;;  %4924 = vrot.lane.b32.xlu0 %v4684_v56, %s10381_s30 }
 0xaa2   : > { %4195 = vrot.lane.b32.xlu1 %v3912_v32, %s10382_s6  ;;  %v14439_v26 = vpop.permute.xlu0 %4884 }
 0xaa4   : > { %v14443_v63 = vpop.permute.xlu1 %4155  ;;  %4197 = vrot.lane.b32.xlu0 %v3913_v28, %s10382_s6 }
 0xaa6   : > { %4926 = vrot.lane.b32.xlu1 %v4685_v48, %s10381_s30  ;;  %v14449_v56 = vpop.permute.xlu0 %3827 }
 0xaa8   : > { %v14453_v32 = vpop.permute.xlu1 %4886  ;;  %4928 = vrot.lane.b32.xlu0 %v4686_v41, %s10381_s30 }
 0xaaa   : > { %4199 = vrot.lane.b32.xlu1 %v3914_v9, %s10382_s6  ;;  %v14459_v28 = vpop.permute.xlu0 %4600  ;;  %v20264_v9 = vld [vmem:[#allocation34_spill] sm:$0xff] }
 0xaab   : > { %v5003_v58 = vsel %vm19243_vm0, %v20264_v9, %v14333_v52  ;;  %v20268_v9 = vld [vmem:[#allocation37_spill] sm:$0xff] }
 0xaac   : > { %v14463_v48 = vpop.permute.xlu1 %3829  ;;  %4201 = vrot.lane.b32.xlu0 %v3915_v43, %s10382_s6 }
 0xaae   : > { %4930 = vrot.lane.b32.xlu1 %v4687_v27, %s10381_s30  ;;  %v14469_v41 = vpop.permute.xlu0 %4157  ;;  %v4272_v27 = vsel %vm19243_vm0, %v20265_v44, %v14323_v36  ;;  %v4689_v36 = vsub.f32 %v20266_v60, %v14353_v8 }
 0xab0   : > { %v14472_v49 = vpop.permute.xlu1 %4602  ;;  %4932 = vrot.lane.b32.xlu0 %v4688_v61, %s10381_s30  ;;  %v20267_v61 = vld [vmem:[#allocation204_spill] sm:$0xff] }
 0xab1   : > { %vm19246_vm2 = vcmp.ge.f32.partialorder %v20267_v61, 0.0 }
 0xab2   : > { %5261 = vrot.lane.b32.xlu1 %v5003_v58, %s10383_s7  ;;  %v14480_v43 = vpop.permute.xlu0 %4888  ;;  %v5004_v58 = vsel %vm19246_vm2, %v20268_v9, %v14359_v47  ;;  %v20270_v47 = vld [vmem:[#allocation35_spill] sm:$0xff]  ;;  %v4690_v9 = vsub.f32 %v20269_v4, %v14379_v6  ;;  %v20273_v6 = vld [vmem:[#allocation38_spill] sm:$0xff] }
 0xab3   : > { %v4273_v8 = vsel %vm19246_vm2, %v20270_v47, %v14349_v14 }
 0xab4   : > { %v14488_v0 = vpop.permute.xlu1 %4159  ;;  %5089 = vrot.lane.b32.xlu0 %v4272_v27, %s10384_s8  ;;  %v3917_v27 = vsub.f32 %v20269_v4, %v14369_v5  ;;  %v20271_v5 = vld [vmem:[#allocation100_spill] sm:$0xff] }
 0xab5   : > { %vm19249_vm5 = vcmp.ge.f32.partialorder %v20271_v5, 0.0 }
 0xab6   : > { %4203 = vrot.lane.b32.xlu1 %v3916_v17, %s10382_s6  ;;  %v14493_v52 = vpop.permute.xlu0 %3831  ;;  %v4274_v47 = vsel %vm19249_vm5, %v20273_v6, %v14363_v57 }
 0xab8   : > { %v14501_v44 = vpop.permute.xlu1 %4890  ;;  %5263 = vrot.lane.b32.xlu0 %v5004_v58, %s10383_s7 }
 0xaba   : > { %4934 = vrot.lane.b32.xlu1 %v4689_v36, %s10381_s30  ;;  %v14507_v17 = vpop.permute.xlu0 %4604 }
 0xabc   : > { %v14509_v42 = vpop.permute.xlu1 %3833  ;;  %4205 = vrot.lane.b32.xlu0 %v3917_v27, %s10382_s6  ;;  %v20272_v27 = vld [vmem:[#allocation40_spill] sm:$0xff] }
 0xabd   : > { %v5005_v38 = vsel %vm19249_vm5, %v20272_v27, %v14373_v20 }
 0xabe   : > { %5091 = vrot.lane.b32.xlu1 %v4273_v8, %s10384_s8  ;;  %v14519_v58 = vpop.permute.xlu0 %4161  ;;  %v20274_v8 = vld [vmem:[#allocation42_spill] sm:$0xff] }
 0xabf   : > { %v3918_v4 = vsub.f32 %v20274_v8, %v14383_v33  ;;  %v4691_v57 = vsub.f32 %v20274_v8, %v14393_v46  ;;  %v20277_v33 = vld [vmem:[#allocation45_spill] sm:$0xff] }
 0xac0   : > { %v14522_v36 = vpop.permute.xlu1 %4606  ;;  %4936 = vrot.lane.b32.xlu0 %v4690_v9, %s10381_s30  ;;  %v20275_v9 = vld [vmem:[#allocation110_spill] sm:$0xff] }
 0xac1   : > { %vm19251_vm6 = vcmp.ge.f32.partialorder %v20275_v9, 0.0 }
 0xac2   : > { %5265 = vrot.lane.b32.xlu1 %v5005_v38, %s10383_s7  ;;  %v14530_v14 = vpop.permute.xlu0 %4892  ;;  %v20276_v38 = vld [vmem:[#allocation43_spill] sm:$0xff] }
 0xac3   : > { %v5006_v27 = vsel %vm19251_vm6, %v20276_v38, %v14399_v12  ;;  %v20278_v12 = vld [vmem:[#allocation41_spill] sm:$0xff]  ;;  %v4692_v38 = vsub.f32 %v20277_v33, %v14419_v31  ;;  %v20281_v31 = vld [vmem:[#allocation44_spill] sm:$0xff] }
 0xac4   : > { %v14538_v16 = vpop.permute.xlu1 %4163  ;;  %5093 = vrot.lane.b32.xlu0 %v4274_v47, %s10384_s8  ;;  %v3919_v47 = vsub.f32 %v20277_v33, %v14409_v34  ;;  %v4275_v46 = vsel %vm19251_vm6, %v20278_v12, %v14389_v35  ;;  %v20279_v34 = vld [vmem:[#allocation361_spill] sm:$0xff] }
 0xac5   : > { %vm19253_vm7 = vcmp.ge.f32.partialorder %v20279_v34, 0.0 }
 0xac6   : > { %4207 = vrot.lane.b32.xlu1 %v3918_v4, %s10382_s6  ;;  %v14543_v20 = vpop.permute.xlu0 %3835  ;;  %v4276_v12 = vsel %vm19253_vm7, %v20281_v31, %v14403_v39 }
 0xac8   : > { %v14551_v6 = vpop.permute.xlu1 %4894  ;;  %5267 = vrot.lane.b32.xlu0 %v5006_v27, %s10383_s7 }
 0xaca   : > { %4938 = vrot.lane.b32.xlu1 %v4691_v57, %s10381_s30  ;;  %v14557_v4 = vpop.permute.xlu0 %4608 }
 0xacc   : > { %v14559_v60 = vpop.permute.xlu1 %3837  ;;  %4209 = vrot.lane.b32.xlu0 %v3919_v47, %s10382_s6  ;;  %v20280_v47 = vld [vmem:[#allocation46_spill] sm:$0xff] }
 0xacd   : > { %v5007_v8 = vsel %vm19253_vm7, %v20280_v47, %v14413_v50 }
 0xace   : > { %5095 = vrot.lane.b32.xlu1 %v4275_v46, %s10384_s8  ;;  %v14569_v27 = vpop.permute.xlu0 %4165  ;;  %v20282_v46 = vld [vmem:[#allocation48_spill] sm:$0xff] }
 0xacf   : > { %v3920_v33 = vsub.f32 %v20282_v46, %v14423_v11  ;;  %v4693_v39 = vsub.f32 %v20282_v46, %v14433_v2  ;;  %v20285_v11 = vld [vmem:[#allocation51_spill] sm:$0xff] }
 0xad0   : > { %v14572_v57 = vpop.permute.xlu1 %4610  ;;  %4940 = vrot.lane.b32.xlu0 %v4692_v38, %s10381_s30  ;;  %v20283_v38 = vld [vmem:[#allocation239_spill] sm:$0xff] }
 0xad1   : > { %vm19287_vm10 = vcmp.ge.f32.partialorder %v20283_v38, 0.0 }
 0xad2   : > { %5269 = vrot.lane.b32.xlu1 %v5007_v8, %s10383_s7  ;;  %v14580_v35 = vpop.permute.xlu0 %4896  ;;  %v20284_v8 = vld [vmem:[#allocation49_spill] sm:$0xff] }
 0xad3   : > { %v5008_v47 = vsel %vm19287_vm10, %v20284_v8, %v14439_v26  ;;  %v20286_v26 = vld [vmem:[#allocation47_spill] sm:$0xff]  ;;  %v4694_v8 = vsub.f32 %v20285_v11, %v14459_v28  ;;  %v20289_v28 = vld [vmem:[#allocation50_spill] sm:$0xff] }
 0xad4   : > { %v14588_v23 = vpop.permute.xlu1 %4167  ;;  %5097 = vrot.lane.b32.xlu0 %v4276_v12, %s10384_s8  ;;  %v3921_v12 = vsub.f32 %v20285_v11, %v14449_v56  ;;  %v4277_v2 = vsel %vm19287_vm10, %v20286_v26, %v14429_v37  ;;  %v20287_v56 = vld [vmem:[#allocation367_spill] sm:$0xff]  ;;  %vm19292_vm10 = vcmp.ge.f32.partialorder %v14154_v45, 0.0 }
 0xad5   : > { %vm3376_vm11 = vcmp.ge.f32.partialorder %v20287_v56, 0.0 }
 0xad6   : > { %4211 = vrot.lane.b32.xlu1 %v3920_v33, %s10382_s6  ;;  %v14593_v50 = vpop.permute.xlu0 %3839  ;;  %v4278_v26 = vsel %vm3376_vm11, %v20289_v28, %v14443_v63 }
 0xad8   : > { %v14601_v31 = vpop.permute.xlu1 %4898  ;;  %5271 = vrot.lane.b32.xlu0 %v5008_v47, %s10383_s7 }
 0xada   : > { %4942 = vrot.lane.b32.xlu1 %v4693_v39, %s10381_s30  ;;  %v14607_v33 = vpop.permute.xlu0 %4612 }
 0xadc   : > { %v14609_v61 = vpop.permute.xlu1 %3841  ;;  %4213 = vrot.lane.b32.xlu0 %v3921_v12, %s10382_s6  ;;  %v20288_v12 = vld [vmem:[#allocation52_spill] sm:$0xff] }
 0xadd   : > { %v5009_v46 = vsel %vm3376_vm11, %v20288_v12, %v14453_v32 }
 0xade   : > { %5099 = vrot.lane.b32.xlu1 %v4277_v2, %s10384_s8  ;;  %v14619_v47 = vpop.permute.xlu0 %4169  ;;  %v20290_v2 = vld [vmem:[#allocation54_spill] sm:$0xff] }
 0xadf   : > { %v3922_v11 = vsub.f32 %v20290_v2, %v14463_v48  ;;  %v4695_v63 = vsub.f32 %v20290_v2, %v14472_v49  ;;  %v20293_v48 = vld [vmem:[#allocation57_spill] sm:$0xff] }
 0xae0   : > { %v14622_v39 = vpop.permute.xlu1 %4614  ;;  %4944 = vrot.lane.b32.xlu0 %v4694_v8, %s10381_s30  ;;  %v20291_v8 = vld [vmem:[#allocation234_spill] sm:$0xff] }
 0xae1   : > { %vm3377_vm12 = vcmp.ge.f32.partialorder %v20291_v8, 0.0 }
 0xae2   : > { %5273 = vrot.lane.b32.xlu1 %v5009_v46, %s10383_s7  ;;  %v14630_v37 = vpop.permute.xlu0 %4900  ;;  %v20292_v46 = vld [vmem:[#allocation55_spill] sm:$0xff] }
 0xae3   : > { %v5010_v12 = vsel %vm3377_vm12, %v20292_v46, %v14480_v43  ;;  %v20294_v43 = vld [vmem:[#allocation53_spill] sm:$0xff]  ;;  %v4696_v46 = vsub.f32 %v20293_v48, %v14507_v17  ;;  %v20297_v17 = vld [vmem:[#allocation56_spill] sm:$0xff] }
 0xae4   : > { %v14638_v5 = vpop.permute.xlu1 %4171  ;;  %5101 = vrot.lane.b32.xlu0 %v4278_v26, %s10384_s8  ;;  %v3923_v26 = vsub.f32 %v20293_v48, %v14493_v52  ;;  %v4279_v49 = vsel %vm3377_vm12, %v20294_v43, %v14469_v41  ;;  %v20295_v52 = vld [vmem:[#allocation158_spill] sm:$0xff] }
 0xae5   : > { %vm3378_vm13 = vcmp.ge.f32.partialorder %v20295_v52, 0.0 }
 0xae6   : > { %4215 = vrot.lane.b32.xlu1 %v3922_v11, %s10382_s6  ;;  %v14643_v32 = vpop.permute.xlu0 %4173  ;;  %v4280_v43 = vsel %vm3378_vm13, %v20297_v17, %v14488_v0 }
 0xae8   : > { %v14651_v28 = vpop.permute.xlu1 %4902  ;;  %5275 = vrot.lane.b32.xlu0 %v5010_v12, %s10383_s7 }
 0xaea   : > { %4946 = vrot.lane.b32.xlu1 %v4695_v63, %s10381_s30  ;;  %v14657_v11 = vpop.permute.xlu0 %4904 }
 0xaec   : > { %v14659_v9 = vpop.permute.xlu1 %4175  ;;  %4217 = vrot.lane.b32.xlu0 %v3923_v26, %s10382_s6  ;;  %v20296_v26 = vld [vmem:[#allocation58_spill] sm:$0xff] }
 0xaed   : > { %v5011_v2 = vsel %vm3378_vm13, %v20296_v26, %v14501_v44 }
 0xaee   : > { %5103 = vrot.lane.b32.xlu1 %v4279_v49, %s10384_s8  ;;  %v14669_v12 = vpop.permute.xlu0 %4177  ;;  %v20298_v49 = vld [vmem:[#allocation60_spill] sm:$0xff] }
 0xaef   : > { %v3924_v48 = vsub.f32 %v20298_v49, %v14509_v42  ;;  %v4697_v0 = vsub.f32 %v20298_v49, %v14522_v36  ;;  %v20301_v42 = vld [vmem:[#allocation63_spill] sm:$0xff] }
 0xaf0   : > { %v14672_v63 = vpop.permute.xlu1 %4906  ;;  %4948 = vrot.lane.b32.xlu0 %v4696_v46, %s10381_s30  ;;  %v20299_v46 = vld [vmem:[#allocation241_spill] sm:$0xff] }
 0xaf1   : > { %vm3379_vm14 = vcmp.ge.f32.partialorder %v20299_v46, 0.0  ;;  %v19247_v46 = vmov 0  }
 0xaf2   : > { %5277 = vrot.lane.b32.xlu1 %v5011_v2, %s10383_s7  ;;  %v14680_v41 = vpop.permute.xlu0 %4908  ;;  %v20300_v2 = vld [vmem:[#allocation61_spill] sm:$0xff]  ;;  %5979 = vmatprep.subr.bf16.mxu0 %v19247_v46 }
 0xaf3   : > { %v5012_v26 = vsel %vm3379_vm14, %v20300_v2, %v14530_v14  ;;  %v20302_v14 = vld [vmem:[#allocation59_spill] sm:$0xff]  ;;  %v4698_v2 = vsub.f32 %v20301_v42, %v14557_v4  ;;  %v20305_v4 = vld [vmem:[#allocation62_spill] sm:$0xff] }
 0xaf4   : > { %v14688_v34 = vpop.permute.xlu1 %4179  ;;  %5105 = vrot.lane.b32.xlu0 %v4280_v43, %s10384_s8  ;;  %v3925_v43 = vsub.f32 %v20301_v42, %v14543_v20  ;;  %v4281_v36 = vsel %vm3379_vm14, %v20302_v14, %v14519_v58  ;;  %v20303_v20 = vld [vmem:[#allocation242_spill] sm:$0xff] }
 0xaf5   : > { %vm3380_vm15 = vcmp.ge.f32.partialorder %v20303_v20, 0.0 }
 0xaf6   : > { %4219 = vrot.lane.b32.xlu1 %v3924_v48, %s10382_s6  ;;  %v14693_v44 = vpop.permute.xlu0 %4181  ;;  %v4282_v14 = vsel %vm3380_vm15, %v20305_v4, %v14538_v16 }
 0xaf8   : > { %v14701_v17 = vpop.permute.xlu1 %4910  ;;  %5279 = vrot.lane.b32.xlu0 %v5012_v26, %s10383_s7 }
 0xafa   : > { %4950 = vrot.lane.b32.xlu1 %v4697_v0, %s10381_s30  ;;  %v14707_v48 = vpop.permute.xlu0 %4912 }
 0xafc   : > { %v14709_v38 = vpop.permute.xlu1 %4183  ;;  %4221 = vrot.lane.b32.xlu0 %v3925_v43, %s10382_s6  ;;  %v20304_v43 = vld [vmem:[#allocation64_spill] sm:$0xff] }
 0xafd   : > { %v5013_v49 = vsel %vm3380_vm15, %v20304_v43, %v14551_v6 }
 0xafe   : > { %5107 = vrot.lane.b32.xlu1 %v4281_v36, %s10384_s8  ;;  %v14719_v26 = vpop.permute.xlu0 %4185  ;;  %v20306_v36 = vld [vmem:[#allocation66_spill] sm:$0xff] }
 0xaff   : > { %v3926_v42 = vsub.f32 %v20306_v36, %v14559_v60  ;;  %v4699_v16 = vsub.f32 %v20306_v36, %v14572_v57  ;;  %v20309_v60 = vld [vmem:[#allocation69_spill] sm:$0xff] }
 0xb00   : > { %v14722_v0 = vpop.permute.xlu1 %4914  ;;  %4952 = vrot.lane.b32.xlu0 %v4698_v2, %s10381_s30  ;;  %v20307_v2 = vld [vmem:[#allocation252_spill] sm:$0xff] }
 0xb01   : > { %vm3381_vm1 = vcmp.ge.f32.partialorder %v20307_v2, 0.0  ;;  %v20418_v2 = vmov 0  }
 0xb02   : > { %5281 = vrot.lane.b32.xlu1 %v5013_v49, %s10383_s7  ;;  %v14730_v58 = vpop.permute.xlu0 %4916  ;;  %v20308_v49 = vld [vmem:[#allocation67_spill] sm:$0xff] }
 0xb03   : > { %v5014_v43 = vsel %vm3381_vm1, %v20308_v49, %v14580_v35  ;;  %v20310_v35 = vld [vmem:[#allocation65_spill] sm:$0xff]  ;;  %v4700_v49 = vsub.f32 %v20309_v60, %v14607_v33  ;;  %v20313_v33 = vld [vmem:[#allocation68_spill] sm:$0xff] }
 0xb04   : > { %v14738_v56 = vpop.permute.xlu1 %4187  ;;  %5109 = vrot.lane.b32.xlu0 %v4282_v14, %s10384_s8  ;;  %v3927_v14 = vsub.f32 %v20309_v60, %v14593_v50  ;;  %v4283_v57 = vsel %vm3381_vm1, %v20310_v35, %v14569_v27  ;;  %v20311_v50 = vld [vmem:[#allocation259_spill] sm:$0xff] }
 0xb05   : > { %vm3382_vm3 = vcmp.ge.f32.partialorder %v20311_v50, 0.0 }
 0xb06   : > { %4223 = vrot.lane.b32.xlu1 %v3926_v42, %s10382_s6  ;;  %v14743_v6 = vpop.permute.xlu0 %4189  ;;  %v4284_v35 = vsel %vm3382_vm3, %v20313_v33, %v14588_v23 }
 0xb08   : > { %v14751_v4 = vpop.permute.xlu1 %4918  ;;  %5283 = vrot.lane.b32.xlu0 %v5014_v43, %s10383_s7 }
 0xb0a   : > { %4954 = vrot.lane.b32.xlu1 %v4699_v16, %s10381_s30  ;;  %v14757_v42 = vpop.permute.xlu0 %4920 }
 0xb0c   : > { %v14759_v8 = vpop.permute.xlu1 %4191  ;;  %4225 = vrot.lane.b32.xlu0 %v3927_v14, %s10382_s6  ;;  %v20312_v14 = vld [vmem:[#allocation70_spill] sm:$0xff] }
 0xb0d   : > { %v5015_v36 = vsel %vm3382_vm3, %v20312_v14, %v14601_v31 }
 0xb0e   : > { %5111 = vrot.lane.b32.xlu1 %v4283_v57, %s10384_s8  ;;  %v14769_v43 = vpop.permute.xlu0 %4193  ;;  %v20314_v57 = vld [vmem:[#allocation72_spill] sm:$0xff] }
 0xb0f   : > { %v3928_v60 = vsub.f32 %v20314_v57, %v14609_v61  ;;  %v4701_v23 = vsub.f32 %v20314_v57, %v14622_v39  ;;  %v20317_v61 = vld [vmem:[#allocation280_spill] sm:$0xff]  ;;  %v20319_v39 = vld [vmem:[#allocation71_spill] sm:$0xff]  ;;  %v20324_v57 = vld [vmem:[#allocation81_spill] sm:$0xff] }
 0xb10   : > { %v14772_v16 = vpop.permute.xlu1 %4922  ;;  %4956 = vrot.lane.b32.xlu0 %v4700_v49, %s10381_s30  ;;  %v20315_v49 = vld [vmem:[#allocation306_spill] sm:$0xff]  ;;  %vm3384_vm0 = vcmp.ge.f32.partialorder %v20317_v61, 0.0 }
 0xb11   : > { %vm3383_vm4 = vcmp.ge.f32.partialorder %v20315_v49, 0.0 }
 0xb12   : > { %5285 = vrot.lane.b32.xlu1 %v5015_v36, %s10383_s7  ;;  %v14780_v27 = vpop.permute.xlu0 %4924  ;;  %v20316_v36 = vld [vmem:[#allocation73_spill] sm:$0xff] }
 0xb13   : > { %v5016_v14 = vsel %vm3383_vm4, %v20316_v36, %v14630_v37  ;;  %v4285_v36 = vsel %vm3383_vm4, %v20319_v39, %v14619_v47  ;;  %v20323_v39 = vld [vmem:[#allocation255_spill] sm:$0xff] }
 0xb14   : > { %v14788_v52 = vpop.permute.xlu1 %4195  ;;  %5113 = vrot.lane.b32.xlu0 %v4284_v35, %s10384_s8  ;;  %vm19254_vm5 = vcmp.ge.f32.partialorder %v20323_v39, 0.0  ;;  %v20334_v39 = vld [vmem:[#allocation92_spill] sm:$0xff] }
 0xb16   : > { %4227 = vrot.lane.b32.xlu1 %v3928_v60, %s10382_s6  ;;  %v14793_v31 = vpop.permute.xlu0 %4197  ;;  %v20318_v60 = vld [vmem:[#allocation74_spill] sm:$0xff] }
 0xb17   : > { %v4286_v55 = vsel %vm3384_vm0, %v20318_v60, %v14638_v5  ;;  %v20321_v5 = vld [vmem:[#allocation80_spill] sm:$0xff] }
 0xb18   : > { %v14801_v33 = vpop.permute.xlu1 %4926  ;;  %5287 = vrot.lane.b32.xlu0 %v5016_v14, %s10383_s7  ;;  %v20320_v14 = vld [vmem:[#allocation318_spill] sm:$0xff] }
 0xb19   : > { %vm3385_vm2 = vcmp.ge.f32.partialorder %v20320_v14, 0.0 }
 0xb1a   : > { %4958 = vrot.lane.b32.xlu1 %v4701_v23, %s10381_s30  ;;  %v14806_v35 = vpop.permute.xlu0 %4928  ;;  %v5018_v60 = vsel %vm3385_vm2, %v20321_v5, %v14657_v11  ;;  %v4288_v11 = vsel %vm19254_vm5, %v20324_v57, %v14659_v9 }
 0xb1c   : > { %v14813_v37 = vpop.permute.xlu1 %4199  ;;  %5117 = vrot.lane.b32.xlu0 %v4286_v55, %s10384_s8  ;;  %v20322_v55 = vld [vmem:[#allocation76_spill] sm:$0xff] }
 0xb1d   : > { %v5017_v47 = vsel %vm3384_vm0, %v20322_v55, %v14651_v28  ;;  %v20327_v55 = vld [vmem:[#allocation317_spill] sm:$0xff] }
 0xb1e   : > { %5115 = vrot.lane.b32.xlu1 %v4285_v36, %s10384_s8  ;;  %v14822_v23 = vpop.permute.xlu0 %4201  ;;  %vm19256_vm6 = vcmp.ge.f32.partialorder %v20327_v55, 0.0  ;;  %v20337_v55 = vld [vmem:[#allocation93_spill] sm:$0xff] }
 0xb1f   : > { %v5020_v9 = vsel %vm19256_vm6, %v20328_v29, %v14680_v41 }
 0xb20   : > { %v14828_v46 = vpop.permute.xlu1 %4930  ;;  %5291 = vrot.lane.b32.xlu0 %v5018_v60, %s10383_s7  ;;  %v20326_v60 = vld [vmem:[#allocation77_spill] sm:$0xff] }
 0xb21   : > { %v4287_v28 = vsel %vm3385_vm2, %v20326_v60, %v14643_v32  ;;  %v20330_v60 = vld [vmem:[#allocation261_spill] sm:$0xff] }
 0xb22   : > { %5289 = vrot.lane.b32.xlu1 %v5017_v47, %s10383_s7  ;;  %v14837_v36 = vpop.permute.xlu0 %4932  ;;  %vm19258_vm7 = vcmp.ge.f32.partialorder %v20330_v60, 0.0  ;;  %v20340_v60 = vld [vmem:[#allocation98_spill] sm:$0xff] }
 0xb24   : > { %v14843_v5 = vpop.permute.xlu1 %5261  ;;  %5121 = vrot.lane.b32.xlu0 %v4288_v11, %s10384_s8  ;;  %v20329_v11 = vld [vmem:[#allocation83_spill] sm:$0xff] }
 0xb25   : > { %20325 = vst [vmem:[#allocation316_spill] sm:$0xff] %v14843_v5  ;;  %v5019_v32 = vsel %vm19254_vm5, %v20329_v11, %v14672_v63  ;;  %v20331_v5 = vld [vmem:[#allocation87_spill] sm:$0xff]  ;;  %v20333_v11 = vld [vmem:[#allocation258_spill] sm:$0xff] }
 0xb26   : > { %5119 = vrot.lane.b32.xlu1 %v4287_v28, %s10384_s8  ;;  %v14852_v47 = vpop.permute.xlu0 %5089  ;;  %v4290_v29 = vsel %vm19258_vm7, %v20331_v5, %v14688_v34  ;;  %vm19260_vm5 = vcmp.ge.f32.partialorder %v20333_v11, 0.0  ;;  %v20343_v11 = vld [vmem:[#allocation99_spill] sm:$0xff] }
 0xb27   : > { %v5022_v34 = vsel %vm19260_vm5, %v20334_v39, %v14707_v48 }
 0xb28   : > { %v14858_v57 = vpop.permute.xlu1 %4203  ;;  %5295 = vrot.lane.b32.xlu0 %v5020_v9, %s10383_s7  ;;  %v20332_v9 = vld [vmem:[#allocation84_spill] sm:$0xff] }
 0xb29   : > { %v4289_v63 = vsel %vm19256_vm6, %v20332_v9, %v14669_v12  ;;  %v20336_v9 = vld [vmem:[#allocation292_spill] sm:$0xff] }
 0xb2a   : > { %5293 = vrot.lane.b32.xlu1 %v5019_v32, %s10383_s7  ;;  %v14867_v28 = vpop.permute.xlu0 %5263  ;;  %vm19262_vm6 = vcmp.ge.f32.partialorder %v20336_v9, 0.0  ;;  %v20348_v9 = vld [vmem:[#allocation105_spill] sm:$0xff] }
 0xb2b   : > { %v4292_v48 = vsel %vm19262_vm6, %v20337_v55, %v14709_v38 }
 0xb2c   : > { %v14873_v41 = vpop.permute.xlu1 %4934  ;;  %5125 = vrot.lane.b32.xlu0 %v4290_v29, %s10384_s8  ;;  %v20335_v29 = vld [vmem:[#allocation88_spill] sm:$0xff] }
 0xb2d   : > { %v5021_v12 = vsel %vm19258_vm7, %v20335_v29, %v14701_v17  ;;  %v20339_v29 = vld [vmem:[#allocation281_spill] sm:$0xff] }
 0xb2e   : > { %5123 = vrot.lane.b32.xlu1 %v4289_v63, %s10384_s8  ;;  %v14882_v32 = vpop.permute.xlu0 %4205  ;;  %vm19263_vm7 = vcmp.ge.f32.partialorder %v20339_v29, 0.0  ;;  %v20351_v29 = vld [vmem:[#allocation112_spill] sm:$0xff] }
 0xb2f   : > { %v5024_v38 = vsel %vm19263_vm7, %v20340_v60, %v14730_v58 }
 0xb30   : > { %v14888_v5 = vpop.permute.xlu1 %5091  ;;  %5299 = vrot.lane.b32.xlu0 %v5022_v34, %s10383_s7  ;;  %v20338_v34 = vld [vmem:[#allocation89_spill] sm:$0xff] }
 0xb31   : > { %v4291_v17 = vsel %vm19260_vm5, %v20338_v34, %v14693_v44  ;;  %v20342_v34 = vld [vmem:[#allocation230_spill] sm:$0xff] }
 0xb32   : > { %5297 = vrot.lane.b32.xlu1 %v5021_v12, %s10383_s7  ;;  %v14897_v63 = vpop.permute.xlu0 %4936  ;;  %vm19265_vm5 = vcmp.ge.f32.partialorder %v20342_v34, 0.0  ;;  %v20354_v34 = vld [vmem:[#allocation113_spill] sm:$0xff] }
 0xb33   : > { %v4294_v58 = vsel %vm19265_vm5, %v20343_v11, %v14738_v56 }
 0xb34   : > { %v14903_v39 = vpop.permute.xlu1 %5265  ;;  %5129 = vrot.lane.b32.xlu0 %v4292_v48, %s10384_s8  ;;  %v20341_v48 = vld [vmem:[#allocation95_spill] sm:$0xff] }
 0xb35   : > { %v5023_v44 = vsel %vm19262_vm6, %v20341_v48, %v14722_v0  ;;  %vm19267_vm6 = vcmp.ge.f32.partialorder %v13758_v40, 0.0  ;;  %v20357_v40 = vld [vmem:[#allocation120_spill] sm:$0xff] }
 0xb36   : > { %5127 = vrot.lane.b32.xlu1 %v4291_v17, %s10384_s8  ;;  %v14912_v12 = vpop.permute.xlu0 %5093 }
 0xb38   : > { %v14918_v55 = vpop.permute.xlu1 %4207  ;;  %5303 = vrot.lane.b32.xlu0 %v5024_v38, %s10383_s7  ;;  %v20344_v38 = vld [vmem:[#allocation96_spill] sm:$0xff] }
 0xb39   : > { %v4293_v0 = vsel %vm19263_vm7, %v20344_v38, %v14719_v26  ;;  %v20347_v38 = vld [vmem:[#allocation332_spill] sm:$0xff] }
 0xb3a   : > { %5301 = vrot.lane.b32.xlu1 %v5023_v44, %s10383_s7  ;;  %v14927_v17 = vpop.permute.xlu0 %5267  ;;  %v20345_v44 = vld [vmem:[#allocation104_spill] sm:$0xff]  ;;  %vm19269_vm7 = vcmp.ge.f32.partialorder %v20347_v38, 0.0  ;;  %v20360_v38 = vld [vmem:[#allocation121_spill] sm:$0xff] }
 0xb3b   : > { %v5026_v56 = vsel %vm19267_vm6, %v20345_v44, %v14757_v42  ;;  %v4296_v42 = vsel %vm19269_vm7, %v20348_v9, %v14759_v8 }
 0xb3c   : > { %v14933_v60 = vpop.permute.xlu1 %4938  ;;  %5133 = vrot.lane.b32.xlu0 %v4294_v58, %s10384_s8  ;;  %v20346_v58 = vld [vmem:[#allocation101_spill] sm:$0xff] }
 0xb3d   : > { %v5025_v26 = vsel %vm19265_vm5, %v20346_v58, %v14751_v4  ;;  %v20350_v58 = vld [vmem:[#allocation337_spill] sm:$0xff] }
 0xb3e   : > { %5131 = vrot.lane.b32.xlu1 %v4293_v0, %s10384_s8  ;;  %v14942_v48 = vpop.permute.xlu0 %4209  ;;  %vm19271_vm5 = vcmp.ge.f32.partialorder %v20350_v58, 0.0 }
 0xb3f   : > { %v5028_v8 = vsel %vm19271_vm5, %v20351_v29, %v14780_v27 }
 0xb40   : > { %v14948_v11 = vpop.permute.xlu1 %5095  ;;  %5307 = vrot.lane.b32.xlu0 %v5026_v56, %s10383_s7  ;;  %v20349_v56 = vld [vmem:[#allocation102_spill] sm:$0xff] }
 0xb41   : > { %v4295_v4 = vsel %vm19267_vm6, %v20349_v56, %v14743_v6  ;;  %v20353_v56 = vld [vmem:[#allocation331_spill] sm:$0xff] }
 0xb42   : > { %5305 = vrot.lane.b32.xlu1 %v5025_v26, %s10383_s7  ;;  %v14957_v0 = vpop.permute.xlu0 %4940  ;;  %vm19274_vm6 = vcmp.ge.f32.partialorder %v20353_v56, 0.0 }
 0xb43   : > { %v4298_v27 = vsel %vm19274_vm6, %v20354_v34, %v14788_v52 }
 0xb44   : > { %v14963_v44 = vpop.permute.xlu1 %5269  ;;  %5137 = vrot.lane.b32.xlu0 %v4296_v42, %s10384_s8  ;;  %v20352_v42 = vld [vmem:[#allocation108_spill] sm:$0xff] }
 0xb45   : > { %v5027_v6 = vsel %vm19269_vm7, %v20352_v42, %v14772_v16  ;;  %v20356_v42 = vld [vmem:[#allocation335_spill] sm:$0xff] }
 0xb46   : > { %5135 = vrot.lane.b32.xlu1 %v4295_v4, %s10384_s8  ;;  %v14972_v26 = vpop.permute.xlu0 %5097  ;;  %vm19275_vm7 = vcmp.ge.f32.partialorder %v20356_v42, 0.0 }
 0xb47   : > { %v5030_v52 = vsel %vm19275_vm7, %v20357_v40, %v14806_v35  ;;  %v20361_v35 = vld [vmem:[#allocation118_spill] sm:$0xff] }
 0xb48   : > { %v14978_v9 = vpop.permute.xlu1 %4211  ;;  %5311 = vrot.lane.b32.xlu0 %v5028_v8, %s10383_s7  ;;  %v20355_v8 = vld [vmem:[#allocation109_spill] sm:$0xff] }
 0xb49   : > { %v4297_v16 = vsel %vm19271_vm5, %v20355_v8, %v14769_v43  ;;  %v20359_v8 = vld [vmem:[#allocation268_spill] sm:$0xff] }
 0xb4a   : > { %5309 = vrot.lane.b32.xlu1 %v5027_v6, %s10383_s7  ;;  %v14987_v4 = vpop.permute.xlu0 %5271  ;;  %vm19277_vm5 = vcmp.ge.f32.partialorder %v20359_v8, 0.0 }
 0xb4b   : > { %v4300_v58 = vsel %vm19277_vm5, %v20360_v38, %v14813_v37 }
 0xb4c   : > { %v14993_v29 = vpop.permute.xlu1 %4942  ;;  %5141 = vrot.lane.b32.xlu0 %v4298_v27, %s10384_s8  ;;  %v20358_v27 = vld [vmem:[#allocation117_spill] sm:$0xff] }
 0xb4d   : > { %v5029_v43 = vsel %vm19274_vm6, %v20358_v27, %v14801_v33  ;;  %vm19279_vm6 = vcmp.ge.f32.partialorder %v13871_v59, 0.0  ;;  %v20362_v27 = vld [vmem:[#allocation128_spill] sm:$0xff] }
 0xb4e   : > { %5139 = vrot.lane.b32.xlu1 %v4297_v16, %s10384_s8  ;;  %v15002_v6 = vpop.permute.xlu0 %4213  ;;  %v5032_v37 = vsel %vm19279_vm6, %v20362_v27, %v14837_v36  ;;  %v20366_v27 = vld [vmem:[#allocation126_spill] sm:$0xff] }
 0xb50   : > { %v15008_v34 = vpop.permute.xlu1 %5099  ;;  %5315 = vrot.lane.b32.xlu0 %v5030_v52, %s10383_s7  ;;  %v4299_v52 = vsel %vm19275_vm7, %v20361_v35, %v14793_v31  ;;  %v20364_v31 = vld [vmem:[#allocation276_spill] sm:$0xff] }
 0xb51   : > { %vm19280_vm7 = vcmp.ge.f32.partialorder %v20364_v31, 0.0 }
 0xb52   : > { %5313 = vrot.lane.b32.xlu1 %v5029_v43, %s10383_s7  ;;  %v4945_v16 = vpop.permute.xlu0 %4944 }
 0xb54   : > { %v15021_v40 = vpop.permute.xlu1 %5273  ;;  %5145 = vrot.lane.b32.xlu0 %v4300_v58, %s10384_s8  ;;  %v20363_v58 = vld [vmem:[#allocation125_spill] sm:$0xff] }
 0xb55   : > { %v5031_v43 = vsel %vm19277_vm5, %v20363_v58, %v14828_v46  ;;  %vm19281_vm5 = vcmp.ge.f32.partialorder %v13935_v15, 0.0  ;;  %v20367_v58 = vld [vmem:[#allocation136_spill] sm:$0xff]  ;;  %v20405_v15 = vld [vmem:[#allocation197_spill] sm:$0xff] }
 0xb56   : > { %5143 = vrot.lane.b32.xlu1 %v4299_v52, %s10384_s8  ;;  %v15030_v33 = vpop.permute.xlu0 %5101  ;;  %v20365_v52 = vld [vmem:[#allocation129_spill] sm:$0xff] }
 0xb57   : > { %v4302_v56 = vsel %vm19280_vm7, %v20365_v52, %v14858_v57  ;;  %v20368_v57 = vld [vmem:[#allocation132_spill] sm:$0xff]  ;;  %v20369_v52 = vld [vmem:[#allocation137_spill] sm:$0xff] }
 0xb58   : > { %v4216_v38 = vpop.permute.xlu1 %4215  ;;  %5319 = vrot.lane.b32.xlu0 %v5032_v37, %s10383_s7  ;;  %v4301_v37 = vsel %vm19279_vm6, %v20366_v27, %v14822_v23  ;;  %vm19283_vm6 = vcmp.ge.f32.partialorder %v13962_v62, 0.0 }
 0xb59   : > { %v4304_v27 = vsel %vm19283_vm6, %v20369_v52, %v14918_v55  ;;  %v20373_v52 = vld [vmem:[#allocation141_spill] sm:$0xff] }
 0xb5a   : > { %5317 = vrot.lane.b32.xlu1 %v5031_v43, %s10383_s7  ;;  %v15043_v35 = vpop.permute.xlu0 %5275  ;;  %v5034_v43 = vsel %vm19281_vm5, %v20367_v58, %v14897_v63 }
 0xb5c   : > { %v4947_v36 = vpop.permute.xlu1 %4946  ;;  %5149 = vrot.lane.b32.xlu0 %v4302_v56, %s10384_s8  ;;  %v5033_v56 = vsel %vm19280_vm7, %v20368_v57, %v14873_v41  ;;  %v20371_v41 = vld [vmem:[#allocation341_spill] sm:$0xff]  ;;  %v20372_v57 = vld [vmem:[#allocation144_spill] sm:$0xff] }
 0xb5d   : > { %vm19285_vm7 = vcmp.ge.f32.partialorder %v20371_v41, 0.0 }
 0xb5e   : > { %5147 = vrot.lane.b32.xlu1 %v4301_v37, %s10384_s8  ;;  %v4218_v46 = vpop.permute.xlu0 %4217  ;;  %v20370_v37 = vld [vmem:[#allocation133_spill] sm:$0xff]  ;;  %v5036_v55 = vsel %vm19285_vm7, %v20372_v57, %v14957_v0  ;;  %v20376_v57 = vld [vmem:[#allocation142_spill] sm:$0xff] }
 0xb5f   : > { %v4303_v58 = vsel %vm19281_vm5, %v20370_v37, %v14882_v32  ;;  %v20374_v32 = vld [vmem:[#allocation256_spill] sm:$0xff] }
 0xb60   : > { %v15060_v42 = vpop.permute.xlu1 %5103  ;;  %5323 = vrot.lane.b32.xlu0 %v5034_v43, %s10383_s7  ;;  %vm19286_vm5 = vcmp.ge.f32.partialorder %v20374_v32, 0.0  ;;  %v20395_v32 = vld [vmem:[#allocation124_spill] sm:$0xff] }
 0xb62   : > { %5321 = vrot.lane.b32.xlu1 %v5033_v56, %s10383_s7  ;;  %v4949_v23 = vpop.permute.xlu0 %4948 }
 0xb64   : > { %v15073_v63 = vpop.permute.xlu1 %5277  ;;  %5153 = vrot.lane.b32.xlu0 %v4304_v27, %s10384_s8  ;;  %v5035_v27 = vsel %vm19283_vm6, %v20373_v52, %v14933_v60  ;;  %vm19288_vm6 = vcmp.ge.f32.partialorder %v14063_v19, 0.0  ;;  %v20377_v52 = vld [vmem:[#allocation152_spill] sm:$0xff] }
 0xb66   : > { %5151 = vrot.lane.b32.xlu1 %v4303_v58, %s10384_s8  ;;  %v15082_v43 = vpop.permute.xlu0 %5105  ;;  %v20375_v58 = vld [vmem:[#allocation145_spill] sm:$0xff] }
 0xb67   : > { %v4306_v8 = vsel %vm19286_vm5, %v20375_v58, %v14978_v9  ;;  %v20378_v9 = vld [vmem:[#allocation149_spill] sm:$0xff] }
 0xb68   : > { %v4220_v56 = vpop.permute.xlu1 %4219  ;;  %5327 = vrot.lane.b32.xlu0 %v5036_v55, %s10383_s7  ;;  %v4305_v55 = vsel %vm19285_vm7, %v20376_v57, %v14942_v48  ;;  %vm19290_vm7 = vcmp.ge.f32.partialorder %v14090_v13, 0.0  ;;  %v20379_v58 = vld [vmem:[#allocation153_spill] sm:$0xff]  ;;  %v20397_v13 = vld [vmem:[#allocation130_spill] sm:$0xff] }
 0xb69   : > { %v4308_v57 = vsel %vm19290_vm7, %v20379_v58, %v4216_v38 }
 0xb6a   : > { %5325 = vrot.lane.b32.xlu1 %v5035_v27, %s10383_s7  ;;  %v15095_v37 = vpop.permute.xlu0 %5279  ;;  %v5038_v27 = vsel %vm19288_vm6, %v20377_v52, %v4945_v16  ;;  %v20380_v16 = vld [vmem:[#allocation150_spill] sm:$0xff] }
 0xb6b   : > { %v4307_v52 = vsel %vm19288_vm6, %v20380_v16, %v15002_v6  ;;  %v20383_v16 = vld [vmem:[#allocation161_spill] sm:$0xff]  ;;  %vm3409_vm6 = vcmp.ge.f32.partialorder %v14191_v22, 0.0  ;;  %v20400_v22 = vld [vmem:[#allocation116_spill] sm:$0xff] }
 0xb6c   : > { %v4951_v0 = vpop.permute.xlu1 %4950  ;;  %5157 = vrot.lane.b32.xlu0 %v4306_v8, %s10384_s8  ;;  %v5037_v8 = vsel %vm19286_vm5, %v20378_v9, %v14993_v29  ;;  %vm19291_vm5 = vcmp.ge.f32.partialorder %v14127_v10, 0.0  ;;  %v20398_v10 = vld [vmem:[#allocation267_spill] sm:$0xff] }
 0xb6d   : > { %v3428_v45 = vmul.f32 %v20398_v10, %v20397_v13  ;;  %v20404_v10 = vld [vmem:[#allocation107_spill] sm:$0xff] }
 0xb6e   : > { %5155 = vrot.lane.b32.xlu1 %v4305_v55, %s10384_s8  ;;  %v4222_v60 = vpop.permute.xlu0 %4221 }
 0xb6f   : > { %v3471_v13 = vsub.f32 %v20248_v3, %v3428_v45 }
 0xb70   : > { %v15111_v62 = vpop.permute.xlu1 %5107  ;;  %5331 = vrot.lane.b32.xlu0 %v5038_v27, %s10383_s7  ;;  %v20381_v27 = vld [vmem:[#allocation160_spill] sm:$0xff] }
 0xb71   : > { %v5040_v9 = vsel %vm19291_vm5, %v20381_v27, %v4949_v23  ;;  %v4310_v23 = vsel %vm19292_vm10, %v20383_v16, %v4220_v56  ;;  %v20384_v27 = vld [vmem:[#allocation157_spill] sm:$0xff]  ;;  %v20387_v16 = vld [vmem:[#allocation170_spill] sm:$0xff] }
 0xb72   : > { %5329 = vrot.lane.b32.xlu1 %v5037_v8, %s10383_s7  ;;  %v4953_v48 = vpop.permute.xlu0 %4952  ;;  %v20382_v8 = vld [vmem:[#allocation156_spill] sm:$0xff]  ;;  %v20386_v56 = vld [vmem:[#allocation165_spill] sm:$0xff] }
 0xb73   : > { %v5039_v58 = vsel %vm19290_vm7, %v20382_v8, %v4947_v36  ;;  %v4309_v36 = vsel %vm19291_vm5, %v20384_v27, %v4218_v46  ;;  %v20385_v8 = vld [vmem:[#allocation169_spill] sm:$0xff]  ;;  %vm3410_vm7 = vcmp.ge.f32.partialorder %v14215_v21, 0.0  ;;  %vm3411_vm5 = vcmp.ge.f32.partialorder %v14248_v7, 0.0  ;;  %v20401_v21 = vld [vmem:[#allocation263_spill] sm:$0xff] }
 0xb74   : > { %v15123_v55 = vpop.permute.xlu1 %5281  ;;  %5161 = vrot.lane.b32.xlu0 %v4308_v57, %s10384_s8  ;;  %v10182_v57 = vld [vmem:[%s18850_s4 + $0x4] ss:$12 sps:$4 sm:$0xff]   ;;  %v20403_v7 = vld [vmem:[#allocation257_spill] sm:$0xff] }
 0xb75   : > { %6011 = vmatprep.mubr.bf16.mxu0 %v10182_v57  ;;  %v5041_v57 = vsel %vm19292_vm10, %v20386_v56, %v4951_v0  ;;  %vm3412_vm10 = vcmp.ge.f32.partialorder %v14271_v18, 0.0  ;;  %v3423_v18 = vmul.f32 %v20405_v15, %v20404_v10  ;;  %v3514_v15 = vsel %vm3385_vm2, %v20248_v3, %v3471_v13  ;;  %v20416_v13 = vld [vmem:[#allocation238_spill] sm:$0xff] }
 0xb76   : > { %5159 = vrot.lane.b32.xlu1 %v4307_v52, %s10384_s8  ;;  %v15132_v29 = vpop.permute.xlu0 %5109 }
 0xb78   : > { %v4224_v38 = vpop.permute.xlu1 %4223  ;;  %5335 = vrot.lane.b32.xlu0 %v5040_v9, %s10383_s7 }
 0xb7a   : > { %5333 = vrot.lane.b32.xlu1 %v5039_v58, %s10383_s7  ;;  %v15143_v6 = vpop.permute.xlu0 %5283  ;;  %v5042_v58 = vsel %vm3409_vm6, %v20385_v8, %v4953_v48  ;;  %v20388_v48 = vld [vmem:[#allocation166_spill] sm:$0xff]  ;;  %v20389_v8 = vld [vmem:[#allocation179_spill] sm:$0xff] }
 0xb7c   : > { %v4955_v52 = vpop.permute.xlu1 %4954  ;;  %5165 = vrot.lane.b32.xlu0 %v4310_v23, %s10384_s8  ;;  %v4312_v23 = vsel %vm3410_vm7, %v20387_v16, %v4224_v38  ;;  %v20390_v38 = vld [vmem:[#allocation174_spill] sm:$0xff]  ;;  %v20391_v16 = vld [vmem:[#allocation177_spill] sm:$0xff] }
 0xb7e   : > { %5163 = vrot.lane.b32.xlu1 %v4309_v36, %s10384_s8  ;;  %v4226_v9 = vpop.permute.xlu0 %4225  ;;  %v4311_v36 = vsel %vm3409_vm6, %v20388_v48, %v4222_v60 }
 0xb80   : > { %v15160_v41 = vpop.permute.xlu1 %5111  ;;  %5339 = vrot.lane.b32.xlu0 %v5042_v58, %s10383_s7 }
 0xb82   : > { %5337 = vrot.lane.b32.xlu1 %v5041_v57, %s10383_s7  ;;  %v4957_v46 = vpop.permute.xlu0 %4956  ;;  %v5043_v57 = vsel %vm3410_vm7, %v20390_v38, %v4955_v52  ;;  %v20393_v52 = vld [vmem:[#allocation122_spill] sm:$0xff] }
 0xb83   : > { %v5044_v58 = vsel %vm3411_vm5, %v20389_v8, %v4957_v46  ;;  %v20392_v46 = vld [vmem:[#allocation175_spill] sm:$0xff] }
 0xb84   : > { %v15171_v27 = vpop.permute.xlu1 %5285  ;;  %5169 = vrot.lane.b32.xlu0 %v4312_v23, %s10384_s8 }
 0xb86   : > { %5167 = vrot.lane.b32.xlu1 %v4311_v36, %s10384_s8  ;;  %v5114_v0 = vpop.permute.xlu0 %5113  ;;  %v4313_v36 = vsel %vm3411_vm5, %v20392_v46, %v4226_v9  ;;  %v3425_v9 = vmul.f32 %v20401_v21, %v20400_v22  ;;  %v20406_v22 = vld [vmem:[#allocation106_spill] sm:$0xff] }
 0xb87   : > { %v20407_v21 = vld [vmem:[#allocation254_spill] sm:$0xff] }
 0xb88   : > { %v4228_v56 = vpop.permute.xlu1 %4227  ;;  %5343 = vrot.lane.b32.xlu0 %v5044_v58, %s10383_s7  ;;  %v20394_v58 = vld [vmem:[#allocation269_spill] sm:$0xff] }
 0xb89   : > { %v4314_v23 = vsel %vm3412_vm10, %v20391_v16, %v4228_v56  ;;  %v3426_v38 = vmul.f32 %v20394_v58, %v20393_v52  ;;  %v20399_v16 = vld [vmem:[#allocation181_spill] sm:$0xff] }
 0xb8a   : > { %5341 = vrot.lane.b32.xlu1 %v5043_v57, %s10383_s7  ;;  %v5288_v60 = vpop.permute.xlu0 %5287  ;;  %v20396_v57 = vld [vmem:[#allocation264_spill] sm:$0xff] }
 0xb8b   : > { %v3427_v19 = vmul.f32 %v20396_v57, %v20395_v32  ;;  %v3469_v32 = vsub.f32 %v20246_v54, %v3426_v38  ;;  %v20408_v38 = vld [vmem:[#allocation168_spill] sm:$0xff] }
 0xb8c   : > { %v4959_v48 = vpop.permute.xlu1 %4958  ;;  %5173 = vrot.lane.b32.xlu0 %v4314_v23, %s10384_s8 }
 0xb8d   : > { %v5045_v23 = vsel %vm3412_vm10, %v20399_v16, %v4959_v48  ;;  %v3470_v58 = vsub.f32 %v20247_v1, %v3427_v19  ;;  %v3468_v48 = vsub.f32 %v20243_v25, %v3425_v9  ;;  %v3512_v45 = vsel %vm3383_vm4, %v20246_v54, %v3469_v32  ;;  %v20409_v9 = vld [vmem:[#allocation172_spill] sm:$0xff] }
 0xb8e   : > { %5171 = vrot.lane.b32.xlu1 %v4313_v36, %s10384_s8  ;;  %v5118_v8 = vpop.permute.xlu0 %5117  ;;  %v20402_v36 = vld [vmem:[#allocation114_spill] sm:$0xff] }
 0xb8f   : > { %v3424_v52 = vmul.f32 %v20403_v7, %v20402_v36  ;;  %v3513_v19 = vsel %vm3384_vm0, %v20247_v1, %v3470_v58  ;;  %v3421_v36 = vmul.f32 %v20409_v9, %v20408_v38  ;;  %v3466_v1 = vsub.f32 %v20234_v30, %v3423_v18  ;;  %v20413_v58 = vld [vmem:[#allocation231_spill] sm:$0xff] }
 0xb90   : > { %v5116_v56 = vpop.permute.xlu1 %5115  ;;  %v5404_v10 = vsel %vm575_vm8, %v3513_v19, %v5118_v8  ;;  %v3511_v54 = vsel %vm3382_vm3, %v20243_v25, %v3468_v48  ;;  %v20419_v19 = vld [vmem:[#allocation127_spill] sm:$0xff] }
 0xb91   : > { %v3467_v59 = vsub.f32 %v20239_v51, %v3424_v52  ;;  %v5403_v52 = vsel %vm575_vm8, %v3512_v45, %v5116_v56  ;;  %v5402_v14 = vsel %vm575_vm8, %v3511_v54, %v5114_v0  ;;  %v20412_v56 = vld [vmem:[#allocation151_spill] sm:$0xff] }
 0xb92   : > { %5345 = vrot.lane.b32.xlu1 %v5045_v23, %s10383_s7  ;;  %v5292_v46 = vpop.permute.xlu0 %5291  ;;  %v3422_v23 = vmul.f32 %v20407_v21, %v20406_v22  ;;  %v3420_v18 = vmul.f32 %v20413_v58, %v20412_v56  ;;  %v15257_v50 = vsel %vm579_vm9, %v5403_v52, %v5288_v60  ;;  %v3464_v21 = vsub.f32 %v20223_v24, %v3421_v36  ;;  %v20420_v45 = vld [vmem:[#allocation159_spill] sm:$0xff] }
 0xb93   : > { %v3510_v25 = vsel %vm3381_vm1, %v20239_v51, %v3467_v59  ;;  %20414 = vst [vmem:[#allocation307_spill] sm:$0xff] %v15257_v50  ;;  %v15271_v59 = vsel %vm579_vm9, %v5402_v14, %v15171_v27  ;;  %v20424_v36 = vld [vmem:[#allocation119_spill] sm:$0xff] }
 0xb94   : > { %v5290_v57 = vpop.permute.xlu1 %5289  ;;  %v3465_v32 = vsub.f32 %v20230_v53, %v3422_v23  ;;  %v5401_v0 = vsel %vm575_vm8, %v3510_v25, %v15160_v41  ;;  %v3509_v23 = vsel %vm3380_vm15, %v20234_v30, %v3466_v1  ;;  %20417 = vst [vmem:[#allocation322_spill] sm:$0xff] %v15271_v59  ;;  %v5568_v60 = vpack.c.bf16 %v15257_v50, %v15271_v59  ;;  %v20429_v56 = vld [vmem:[#allocation103_spill] sm:$0xff] }
 0xb95   : > { %v15240_v49 = vsel %vm579_vm9, %v5404_v10, %v5290_v57  ;;  %v20415_v57 = vld [vmem:[#allocation143_spill] sm:$0xff]  ;;  %v5400_v41 = vsel %vm575_vm8, %v3509_v23, %v15132_v29  ;;  %v15288_v38 = vsel %vm579_vm9, %v5401_v0, %v15143_v6  ;;  %v20425_v10 = vld [vmem:[#allocation225_spill] sm:$0xff]  ;;  %v3507_v14 = vsel %vm3378_vm13, %v20223_v24, %v3464_v21  ;;  %v20452_v24 = vld [vmem:[#allocation110_spill] sm:$0xff] }
 0xb96   : > { %v15216_v16 = vpop.permute.xlu0 %5121  ;;  %20410 = vst [vmem:[#allocation323_spill] sm:$0xff] %v15240_v49  ;;  %v3419_v48 = vmul.f32 %v20416_v13, %v20415_v57  ;;  %v3508_v27 = vsel %vm3379_vm14, %v20230_v53, %v3465_v32  ;;  %20423 = vst [vmem:[#allocation313_spill] sm:$0xff] %v15288_v38  ;;  %v3417_v52 = vmul.f32 %v20425_v10, %v20424_v36  ;;  %v20430_v58 = vld [vmem:[#allocation135_spill] sm:$0xff]  ;;  %v20431_v32 = vld [vmem:[#allocation8_spill] sm:$0xff]  ;;  %vm20487_vm15 = vcmp.ge.f32.partialorder %v20364_v31, 0.0 }
 0xb97   : > { %v5399_v29 = vsel %vm575_vm8, %v3508_v27, %v15111_v62  ;;  %v15302_v53 = vsel %vm579_vm9, %v5400_v41, %v15123_v55  ;;  %v5398_v62 = vsel %vm575_vm8, %v3507_v14, %v15082_v43  ;;  %v20434_v13 = vld [vmem:[#allocation97_spill] sm:$0xff]  ;;  %v20436_v23 = vld [vmem:[#allocation7_spill] sm:$0xff]  ;;  %v20441_v27 = vld [vmem:[#allocation6_spill] sm:$0xff] }
 0xb98   : > { %v5120_v7 = vpop.permute.xlu1 %5119  ;;  %20428 = vst [vmem:[#allocation176_spill] sm:$0xff] %v15302_v53  ;;  %v15319_v0 = vsel %vm579_vm9, %v5399_v29, %v15095_v37  ;;  %v3460_v41 = vsub.f32 %v20436_v23, %v3417_v52  ;;  %v20442_v36 = vld [vmem:[#allocation239_spill] sm:$0xff]  ;;  %v20447_v14 = vld [vmem:[#allocation5_spill] sm:$0xff] }
 0xb99   : > { %v5405_v22 = vsel %vm575_vm8, %v3514_v15, %v5120_v7  ;;  %v3418_v15 = vmul.f32 %v20420_v45, %v20419_v19  ;;  %v20421_v7 = vld [vmem:[#allocation10_spill] sm:$0xff]  ;;  %20433 = vst [vmem:[#allocation277_spill] sm:$0xff] %v15319_v0  ;;  %v15333_v45 = vsel %vm579_vm9, %v5398_v62, %v15073_v63  ;;  %vm20443_vm0 = vcmp.ge.f32.partialorder %v20442_v36, 0.0 }
 0xb9a   : > { %v15243_v3 = vsel %vm579_vm9, %v5405_v22, %v5292_v46  ;;  %v15245_v61 = vpop.permute.xlu0 %5295  ;;  %v3463_v20 = vsub.f32 %v20421_v7, %v3420_v18  ;;  %v20426_v22 = vld [vmem:[#allocation9_spill] sm:$0xff]  ;;  %v3416_v18 = vmul.f32 %v20430_v58, %v20429_v56  ;;  %20438 = vst [vmem:[#allocation192_spill] sm:$0xff] %v15333_v45 }
 0xb9b   : > { %20411 = vst [vmem:[#allocation299_spill] sm:$0xff] %v15243_v3  ;;  %v5569_v8 = vpack.c.bf16 %v15243_v3, %v15240_v49  ;;  %v3462_v1 = vsub.f32 %v20426_v22, %v3419_v48  ;;  %v3461_v25 = vsub.f32 %v20431_v32, %v3418_v15  ;;  %v20435_v48 = vld [vmem:[#allocation196_spill] sm:$0xff]  ;;  %v5566_v15 = vpack.c.bf16 %v15319_v0, %v15333_v45  ;;  %v20479_v3 = vld [vmem:[#allocation33_spill] sm:$0xff] }
 0xb9c   : > { %v15259_v46 = vpop.permute.xlu1 %5293  ;;  %v3506_v55 = vsel %vm3377_vm12, %v20421_v7, %v3463_v20  ;;  %v3415_v21 = vmul.f32 %v20435_v48, %v20434_v13  ;;  %v20439_v7 = vld [vmem:[#allocation85_spill] sm:$0xff]  ;;  %v20440_v20 = vld [vmem:[#allocation111_spill] sm:$0xff]  ;;  %v3459_v29 = vsub.f32 %v20441_v27, %v3416_v18 }
 0xb9d   : > { %5980 = vmatpush1.bf16.msra.mxu0 %v5569_v8  ;;  %v5567_v8 = vpack.c.bf16 %v15288_v38, %v15302_v53  ;;  %v5397_v43 = vsel %vm575_vm8, %v3506_v55, %v15060_v42  ;;  %v3505_v19 = vsel %vm3376_vm11, %v20426_v22, %v3462_v1  ;;  %v3414_v30 = vmul.f32 %v20440_v20, %v20439_v7  ;;  %v20445_v22 = vld [vmem:[#allocation79_spill] sm:$0xff]  ;;  %v20446_v1 = vld [vmem:[#allocation94_spill] sm:$0xff]  ;;  %v20462_v20 = vld [vmem:[#allocation193_spill] sm:$0xff] }
 0xb9e   : > { %v15273_v51 = vpop.permute.xlu0 %5125  ;;  %5981 = vmatprep.subr.bf16.mxu0 %v20418_v2  ;;  %v5396_v42 = vsel %vm575_vm8, %v3505_v19, %v15030_v33  ;;  %v3504_v63 = vsel %vm20443_vm0, %v20431_v32, %v3461_v25  ;;  %v15350_v10 = vsel %vm579_vm9, %v5397_v43, %v15043_v35  ;;  %v3413_v54 = vmul.f32 %v20446_v1, %v20445_v22  ;;  %v20451_v32 = vld [vmem:[#allocation4_spill] sm:$0xff]  ;;  %v20484_v38 = vld [vmem:[#allocation246_spill] sm:$0xff] }
 0xb9f   : > { %20444 = vst [vmem:[#allocation302_spill] sm:$0xff] %v15350_v10  ;;  %v5395_v33 = vsel %vm575_vm8, %v3504_v63, %v15008_v34  ;;  %v3458_v62 = vsub.f32 %v20447_v14, %v3415_v21  ;;  %v15364_v58 = vsel %vm579_vm9, %v5396_v42, %v15021_v40  ;;  %v3457_v25 = vsub.f32 %v20451_v32, %v3414_v30  ;;  %v20456_v21 = vld [vmem:[#allocation100_spill] sm:$0xff]  ;;  %v20485_v53 = vld [vmem:[#allocation30_spill] sm:$0xff] }
 0xba0   : > { %v15290_v9 = vpop.permute.xlu1 %5123  ;;  %20450 = vst [vmem:[#allocation324_spill] sm:$0xff] %v15364_v58  ;;  %v5565_v18 = vpack.c.bf16 %v15350_v10, %v15364_v58  ;;  %vm20453_vm11 = vcmp.ge.f32.partialorder %v20452_v24, 0.0  ;;  %v15379_v40 = vsel %vm579_vm9, %v5395_v33, %v14987_v4  ;;  %vm20457_vm12 = vcmp.ge.f32.partialorder %v20456_v21, 0.0  ;;  %v20459_v19 = vld [vmem:[#allocation204_spill] sm:$0xff]  ;;  %v20468_v24 = vld [vmem:[#allocation187_spill] sm:$0xff] }
 0xba1   : > { %5982 = vmatpush1.bf16.msra.mxu0 %v5568_v60  ;;  %v3502_v55 = vsel %vm20453_vm11, %v20441_v27, %v3459_v29  ;;  %20454 = vst [vmem:[#allocation270_spill] sm:$0xff] %v15379_v40  ;;  %vm20460_vm13 = vcmp.ge.f32.partialorder %v20459_v19, 0.0  ;;  %vm20463_vm14 = vcmp.ge.f32.partialorder %v20462_v20, 0.0  ;;  %v20466_v63 = vld [vmem:[#allocation316_spill] sm:$0xff] }
 0xba2   : > { %v15304_v6 = vpop.permute.xlu0 %5299  ;;  %5983 = vmatprep.subr.bf16.mxu0 %v20418_v2  ;;  %v5393_v13 = vsel %vm575_vm8, %v3502_v55, %v14948_v11  ;;  %v3500_v42 = vsel %vm20460_vm13, %v20451_v32, %v3457_v25  ;;  %v20469_v55 = vld [vmem:[#allocation297_spill] sm:$0xff]  ;;  %v20475_v20 = vld [vmem:[#allocation240_spill] sm:$0xff] }
 0xba3   : > { %v5391_v7 = vsel %vm575_vm8, %v3500_v42, %v14888_v5 }
 0xba4   : > { %v15321_v57 = vpop.permute.xlu1 %5297  ;;  %v15427_v5 = vsel %vm579_vm9, %v5391_v7, %v14867_v28  ;;  %v20474_v7 = vld [vmem:[#allocation178_spill] sm:$0xff] }
 0xba5   : > { %5984 = vmatpush1.bf16.msra.mxu0 %v5567_v8  ;;  %v20448_v8 = vld [vmem:[#allocation361_spill] sm:$0xff]  ;;  %20465 = vst [vmem:[#allocation338_spill] sm:$0xff] %v15427_v5 }
 0xba6   : > { %v15335_v37 = vpop.permute.xlu0 %5129  ;;  %5985 = vmatprep.subr.bf16.mxu0 %v20418_v2  ;;  %vm20449_vm2 = vcmp.ge.f32.partialorder %v20448_v8, 0.0 }
 0xba7   : > { %v3503_v56 = vsel %vm20449_vm2, %v20436_v23, %v3460_v41  ;;  %v3501_v23 = vsel %vm20457_vm12, %v20447_v14, %v3458_v62 }
 0xba8   : > { %v15352_v52 = vpop.permute.xlu1 %5127  ;;  %v5394_v34 = vsel %vm575_vm8, %v3503_v56, %v14972_v26  ;;  %v20455_v26 = vld [vmem:[#allocation3_spill] sm:$0xff]  ;;  %v5392_v4 = vsel %vm575_vm8, %v3501_v23, %v14912_v12 }
 0xba9   : > { %5986 = vmatpush1.bf16.msra.mxu0 %v5566_v15  ;;  %v3456_v48 = vsub.f32 %v20455_v26, %v3413_v54  ;;  %v15391_v41 = vsel %vm579_vm9, %v5394_v34, %v14963_v44  ;;  %v15405_v15 = vsel %vm579_vm9, %v5393_v13, %v14927_v17  ;;  %v15416_v30 = vsel %vm579_vm9, %v5392_v4, %v14903_v39  ;;  %v20472_v23 = vld [vmem:[#allocation195_spill] sm:$0xff]  ;;  %v20473_v4 = vld [vmem:[#allocation296_spill] sm:$0xff] }
 0xbaa   : > { %v15366_v35 = vpop.permute.xlu0 %5303  ;;  %5987 = vmatprep.subr.bf16.mxu0 %v20418_v2  ;;  %20458 = vst [vmem:[#allocation330_spill] sm:$0xff] %v15391_v41  ;;  %v5564_v11 = vpack.c.bf16 %v15379_v40, %v15391_v41  ;;  %20461 = vst [vmem:[#allocation339_spill] sm:$0xff] %v15405_v15  ;;  %v5563_v29 = vpack.c.bf16 %v15405_v15, %v15416_v30  ;;  %v3442_v13 = vmul.f32 %v20469_v55, %v20468_v24  ;;  %v20480_v24 = vld [vmem:[#allocation39_spill] sm:$0xff] }
 0xbab   : > { %v3499_v12 = vsel %vm20463_vm14, %v20455_v26, %v3456_v48  ;;  %20464 = vst [vmem:[#allocation311_spill] sm:$0xff] %v15416_v30  ;;  %v20470_v26 = vld [vmem:[#allocation191_spill] sm:$0xff]  ;;  %v20471_v48 = vld [vmem:[#allocation284_spill] sm:$0xff] }
 0xbac   : > { %v15381_v43 = vpop.permute.xlu1 %5301  ;;  %v5390_v17 = vsel %vm575_vm8, %v3499_v12, %v14852_v47  ;;  %v3443_v21 = vmul.f32 %v20471_v48, %v20470_v26  ;;  %v3440_v12 = vmul.f32 %v20475_v20, %v20474_v7  ;;  %v3485_v59 = vsub.f32 %v20479_v3, %v3442_v13  ;;  %v20481_v26 = vld [vmem:[#allocation171_spill] sm:$0xff]  ;;  %v20488_v13 = vld [vmem:[#allocation293_spill] sm:$0xff] }
 0xbad   : > { %5988 = vmatpush1.bf16.msra.mxu0 %v5565_v18  ;;  %v15433_v39 = vsel %vm579_vm9, %v5390_v17, %v20466_v63  ;;  %v20476_v17 = vld [vmem:[#allocation180_spill] sm:$0xff]  ;;  %v20482_v48 = vld [vmem:[#allocation303_spill] sm:$0xff]  ;;  %vm20489_vm1 = vcmp.ge.f32.partialorder %v20488_v13, 0.0 }
 0xbae   : > { %v15393_v60 = vpop.permute.xlu0 %5133  ;;  %5989 = vmatprep.subr.bf16.mxu0 %v20418_v2  ;;  %20467 = vst [vmem:[#allocation327_spill] sm:$0xff] %v15433_v39  ;;  %v5562_v47 = vpack.c.bf16 %v15427_v5, %v15433_v39  ;;  %v3483_v7 = vsub.f32 %v20485_v53, %v3440_v12  ;;  %v20486_v20 = vld [vmem:[#allocation31_spill] sm:$0xff]  ;;  %v20498_v13 = vld [vmem:[#allocation28_spill] sm:$0xff] }
 0xbb0   : > { %v15407_v44 = vpop.permute.xlu1 %5131 }
 0xbb1   : > { %5990 = vmatpush1.bf16.msra.mxu0 %v5564_v11  ;;  %v3444_v11 = vmul.f32 %v20473_v4, %v20472_v23  ;;  %v3438_v23 = vmul.f32 %v20482_v48, %v20481_v26  ;;  %v20483_v4 = vld [vmem:[#allocation173_spill] sm:$0xff] }
 0xbb2   : > { %v15418_v27 = vpop.permute.xlu0 %5307  ;;  %5991 = vmatprep.subr.bf16.mxu0 %v20418_v2  ;;  %v3439_v45 = vmul.f32 %v20484_v38, %v20483_v4  ;;  %v20496_v4 = vld [vmem:[#allocation164_spill] sm:$0xff] }
 0xbb3   : > { %v3487_v55 = vsub.f32 %v20480_v24, %v3444_v11  ;;  %v3528_v11 = vsel %vm20489_vm1, %v20479_v3, %v3485_v59  ;;  %v20494_v3 = vld [vmem:[#allocation162_spill] sm:$0xff]  ;;  %v20495_v59 = vld [vmem:[#allocation271_spill] sm:$0xff] }
 0xbb4   : > { %v15429_v36 = vpop.permute.xlu1 %5305 }
 0xbb5   : > { %5992 = vmatpush1.bf16.msra.mxu0 %v5563_v29  ;;  %v20477_v29 = vld [vmem:[#allocation287_spill] sm:$0xff] }
 0xbb6   : > { %v15435_v33 = vpop.permute.xlu0 %5137  ;;  %5993 = vmatprep.subr.bf16.mxu0 %v20418_v2  ;;  %v3441_v63 = vmul.f32 %v20477_v29, %v20476_v17  ;;  %v20490_v17 = vld [vmem:[#allocation342_spill] sm:$0xff] }
 0xbb7   : > { %vm20491_vm3 = vcmp.ge.f32.partialorder %v20490_v17, 0.0  ;;  %v20502_v17 = vld [vmem:[#allocation335_spill] sm:$0xff] }
 0xbb8   : > { %v15440_v22 = vpop.permute.xlu1 %5135  ;;  %v3484_v40 = vsub.f32 %v20486_v20, %v3441_v63  ;;  %v3530_v29 = vsel %vm20491_vm3, %v20480_v24, %v3487_v55  ;;  %v20497_v24 = vld [vmem:[#allocation278_spill] sm:$0xff]  ;;  %vm20503_vm0 = vcmp.ge.f32.partialorder %v20502_v17, 0.0 }
 0xbb9   : > { %5994 = vmatpush1.bf16.msra.mxu0 %v5562_v47  ;;  %v20478_v47 = vld [vmem:[#allocation36_spill] sm:$0xff]  ;;  %v3437_v55 = vmul.f32 %v20497_v24, %v20496_v4 }
 0xbba   : > { %v15442_v1 = vpop.permute.xlu0 %5311  ;;  %5995 = vmatprep.subr.bf16.mxu0 %v20418_v2  ;;  %v3486_v50 = vsub.f32 %v20478_v47, %v3443_v21 }
 0xbbc   : > { %v15445_v28 = vpop.permute.xlu1 %5309  ;;  %v3529_v21 = vsel %vm20487_vm15, %v20478_v47, %v3486_v50  ;;  %v3436_v47 = vmul.f32 %v20495_v59, %v20494_v3  ;;  %v20510_v59 = vld [vmem:[#allocation26_spill] sm:$0xff] }
 0xbbe   : > { %v5142_v54 = vpop.permute.xlu0 %5141  ;;  %v3479_v4 = vsub.f32 %v20510_v59, %v3436_v47 }
 0xbc0   : > { %v5140_v14 = vpop.permute.xlu1 %5139 }
 0xbc2   : > { %v5316_v62 = vpop.permute.xlu0 %5315 }
 0xbc4   : > { %v5314_v8 = vpop.permute.xlu1 %5313 }
 0xbc6   : > { %v5146_v56 = vpop.permute.xlu0 %5145 }
 0xbc8   : > { %v5144_v34 = vpop.permute.xlu1 %5143 }
 0xbca   : > { %v5320_v18 = vpop.permute.xlu0 %5319 }
 0xbcc   : > { %v5318_v32 = vpop.permute.xlu1 %5317 }
 0xbce   : > { %v5150_v25 = vpop.permute.xlu0 %5149 }
 0xbcf   : > { %v5420_v48 = vsel %vm575_vm8, %v3529_v21, %v5150_v25  ;;  %v3481_v25 = vsub.f32 %v20498_v13, %v3438_v23  ;;  %v20499_v21 = vld [vmem:[#allocation29_spill] sm:$0xff] }
 0xbd0   : > { %v5148_v19 = vpop.permute.xlu1 %5147 }
 0xbd1   : > { %v5419_v38 = vsel %vm575_vm8, %v3528_v11, %v5148_v19  ;;  %v3482_v11 = vsub.f32 %v20499_v21, %v3439_v45 }
 0xbd2   : > { %v5324_v42 = vpop.permute.xlu0 %5323 }
 0xbd4   : > { %v5322_v49 = vpop.permute.xlu1 %5321 }
 0xbd5   : > { %v15481_v63 = vsel %vm579_vm9, %v5420_v48, %v5322_v49  ;;  %v20500_v49 = vld [vmem:[#allocation268_spill] sm:$0xff] }
 0xbd6   : > { %v15460_v0 = vpop.permute.xlu0 %5153  ;;  %20492 = vst [vmem:[#allocation182_spill] sm:$0xff] %v15481_v63  ;;  %vm20501_vm4 = vcmp.ge.f32.partialorder %v20500_v49, 0.0  ;;  %v20514_v49 = vld [vmem:[#allocation337_spill] sm:$0xff] }
 0xbd7   : > { %vm20515_vm11 = vcmp.ge.f32.partialorder %v20514_v49, 0.0 }
 0xbd8   : > { %v5152_v26 = vpop.permute.xlu1 %5151 }
 0xbd9   : > { %v5421_v12 = vsel %vm575_vm8, %v3530_v29, %v5152_v26  ;;  %v3526_v29 = vsel %vm20503_vm0, %v20485_v53, %v3483_v7  ;;  %v15503_v26 = vsel %vm579_vm9, %v5419_v38, %v5320_v18  ;;  %v20508_v7 = vld [vmem:[#allocation155_spill] sm:$0xff]  ;;  %v20509_v18 = vld [vmem:[#allocation286_spill] sm:$0xff] }
 0xbda   : > { %v15484_v31 = vsel %vm579_vm9, %v5421_v12, %v5324_v42  ;;  %v15486_v50 = vpop.permute.xlu0 %5327  ;;  %v3527_v42 = vsel %vm20501_vm4, %v20486_v20, %v3484_v40  ;;  %20504 = vst [vmem:[#allocation351_spill] sm:$0xff] %v15503_v26  ;;  %v5417_v12 = vsel %vm575_vm8, %v3526_v29, %v5144_v34  ;;  %v20506_v40 = vld [vmem:[#allocation154_spill] sm:$0xff]  ;;  %v20507_v20 = vld [vmem:[#allocation265_spill] sm:$0xff]  ;;  %v3435_v38 = vmul.f32 %v20509_v18, %v20508_v7  ;;  %v20511_v34 = vld [vmem:[#allocation27_spill] sm:$0xff] }
 0xbdb   : > { %20493 = vst [vmem:[#allocation289_spill] sm:$0xff] %v15484_v31  ;;  %v5577_v19 = vpack.c.bf16 %v15484_v31, %v15481_v63  ;;  %v5418_v23 = vsel %vm575_vm8, %v3527_v42, %v5146_v56  ;;  %v3434_v53 = vmul.f32 %v20507_v20, %v20506_v40  ;;  %v3480_v24 = vsub.f32 %v20511_v34, %v3437_v55  ;;  %v20522_v20 = vld [vmem:[#allocation24_spill] sm:$0xff] }
 0xbdc   : > { %v15505_v48 = vpop.permute.xlu1 %5325  ;;  %v15510_v45 = vsel %vm579_vm9, %v5418_v23, %v5318_v32  ;;  %v20512_v32 = vld [vmem:[#allocation331_spill] sm:$0xff]  ;;  %v3524_v42 = vsel %vm20515_vm11, %v20498_v13, %v3481_v25  ;;  %v15530_v17 = vsel %vm579_vm9, %v5417_v12, %v5316_v62  ;;  %v20520_v25 = vld [vmem:[#allocation148_spill] sm:$0xff] }
 0xbdd   : > { %5996 = vmatpush2.bf16.msra.mxu0 %v5577_v19  ;;  %20505 = vst [vmem:[#allocation314_spill] sm:$0xff] %v15510_v45  ;;  %v5576_v56 = vpack.c.bf16 %v15503_v26, %v15510_v45  ;;  %vm20513_vm2 = vcmp.ge.f32.partialorder %v20512_v32, 0.0  ;;  %20516 = vst [vmem:[#allocation340_spill] sm:$0xff] %v15530_v17  ;;  %v5415_v23 = vsel %vm575_vm8, %v3524_v42, %v5140_v14  ;;  %v20521_v62 = vld [vmem:[#allocation320_spill] sm:$0xff]  ;;  %v20523_v14 = vld [vmem:[#allocation25_spill] sm:$0xff] }
 0xbde   : > { %v15512_v3 = vpop.permute.xlu0 %5157  ;;  %5997 = vmatprep.subr.bf16.mxu0 %v20418_v2  ;;  %v3525_v19 = vsel %vm20513_vm2, %v20499_v21, %v3482_v11  ;;  %v20518_v21 = vld [vmem:[#allocation146_spill] sm:$0xff]  ;;  %v20519_v11 = vld [vmem:[#allocation275_spill] sm:$0xff]  ;;  %v3433_v12 = vmul.f32 %v20521_v62, %v20520_v25  ;;  %v3477_v7 = vsub.f32 %v20522_v20, %v3434_v53  ;;  %v3478_v18 = vsub.f32 %v20523_v14, %v3435_v38  ;;  %v20526_v32 = vld [vmem:[#allocation285_spill] sm:$0xff] }
 0xbdf   : > { %v5416_v47 = vsel %vm575_vm8, %v3525_v19, %v5142_v54  ;;  %v3432_v13 = vmul.f32 %v20519_v11, %v20518_v21  ;;  %vm20527_vm13 = vcmp.ge.f32.partialorder %v20526_v32, 0.0  ;;  %v15558_v49 = vsel %vm579_vm9, %v5415_v23, %v15442_v1  ;;  %v20531_v1 = vld [vmem:[#allocation237_spill] sm:$0xff]  ;;  %v20534_v11 = vld [vmem:[#allocation22_spill] sm:$0xff]  ;;  %v20535_v25 = vld [vmem:[#allocation23_spill] sm:$0xff] }
 0xbe0   : > { %v15532_v29 = vpop.permute.xlu1 %5155  ;;  %v15537_v55 = vsel %vm579_vm9, %v5416_v47, %v5314_v8  ;;  %v20524_v8 = vld [vmem:[#allocation332_spill] sm:$0xff]  ;;  %v3522_v19 = vsel %vm20527_vm13, %v20510_v59, %v3479_v4  ;;  %20528 = vst [vmem:[#allocation190_spill] sm:$0xff] %v15558_v49  ;;  %v20530_v59 = vld [vmem:[#allocation138_spill] sm:$0xff]  ;;  %v20533_v23 = vld [vmem:[#allocation321_spill] sm:$0xff]  ;;  %v3476_v62 = vsub.f32 %v20535_v25, %v3433_v12 }
 0xbe1   : > { %5998 = vmatpush2.bf16.msra.mxu0 %v5576_v56  ;;  %20517 = vst [vmem:[#allocation282_spill] sm:$0xff] %v15537_v55  ;;  %v5575_v54 = vpack.c.bf16 %v15530_v17, %v15537_v55  ;;  %vm20525_vm12 = vcmp.ge.f32.partialorder %v20524_v8, 0.0  ;;  %v5413_v38 = vsel %vm575_vm8, %v3522_v19, %v15440_v22  ;;  %v3430_v4 = vmul.f32 %v20531_v1, %v20530_v59  ;;  %v20532_v47 = vld [vmem:[#allocation140_spill] sm:$0xff]  ;;  %v20538_v8 = vld [vmem:[#allocation281_spill] sm:$0xff] }
 0xbe2   : > { %v15539_v40 = vpop.permute.xlu0 %5331  ;;  %5999 = vmatprep.subr.bf16.mxu0 %v20418_v2  ;;  %v3523_v56 = vsel %vm20525_vm12, %v20511_v34, %v3480_v24  ;;  %v3431_v21 = vmul.f32 %v20533_v23, %v20532_v47  ;;  %vm20539_vm15 = vcmp.ge.f32.partialorder %v20538_v8, 0.0  ;;  %v15589_v32 = vsel %vm579_vm9, %v5413_v38, %v15418_v27  ;;  %v20543_v27 = vld [vmem:[#allocation273_spill] sm:$0xff] }
 0xbe3   : > { %v5414_v53 = vsel %vm575_vm8, %v3523_v56, %v15435_v33  ;;  %v3475_v33 = vsub.f32 %v20534_v11, %v3432_v13  ;;  %v3520_v56 = vsel %vm20539_vm15, %v20522_v20, %v3477_v7  ;;  %20540 = vst [vmem:[#allocation325_spill] sm:$0xff] %v15589_v32  ;;  %v20542_v20 = vld [vmem:[#allocation131_spill] sm:$0xff]  ;;  %v20545_v59 = vld [vmem:[#allocation21_spill] sm:$0xff] }
 0xbe4   : > { %v15560_v42 = vpop.permute.xlu1 %5329  ;;  %v15568_v34 = vsel %vm579_vm9, %v5414_v53, %v15445_v28  ;;  %v20536_v28 = vld [vmem:[#allocation230_spill] sm:$0xff]  ;;  %v5411_v12 = vsel %vm575_vm8, %v3520_v56, %v15407_v44  ;;  %v3429_v7 = vmul.f32 %v20543_v27, %v20542_v20  ;;  %v20544_v53 = vld [vmem:[#allocation20_spill] sm:$0xff]  ;;  %v3474_v1 = vsub.f32 %v20545_v59, %v3431_v21 }
 0xbe5   : > { %6000 = vmatpush2.bf16.msra.mxu0 %v5575_v54  ;;  %20529 = vst [vmem:[#allocation348_spill] sm:$0xff] %v15568_v34  ;;  %v5574_v22 = vpack.c.bf16 %v15558_v49, %v15568_v34  ;;  %vm20537_vm14 = vcmp.ge.f32.partialorder %v20536_v28, 0.0  ;;  %v3473_v38 = vsub.f32 %v20544_v53, %v3430_v4  ;;  %v20546_v44 = vld [vmem:[#allocation292_spill] sm:$0xff] }
 0xbe6   : > { %v15570_v24 = vpop.permute.xlu0 %5161  ;;  %6001 = vmatprep.subr.bf16.mxu0 %v20418_v2  ;;  %v3521_v54 = vsel %vm20537_vm14, %v20523_v14, %v3478_v18  ;;  %vm20547_vm1 = vcmp.ge.f32.partialorder %v20546_v44, 0.0  ;;  %v20563_v44 = vld [vmem:[#allocation233_spill] sm:$0xff]  ;;  %vm6951_vm14 = vcmask 126976  }
 0xbe7   : > { %v5412_v13 = vsel %vm575_vm8, %v3521_v54, %v15393_v60  ;;  %v3519_v47 = vsel %vm20547_vm1, %v20535_v25, %v3476_v62  ;;  %v20553_v54 = vld [vmem:[#allocation261_spill] sm:$0xff] }
 0xbe8   : > { %v15591_v19 = vpop.permute.xlu1 %5159  ;;  %v15599_v14 = vsel %vm579_vm9, %v5412_v13, %v15429_v36  ;;  %v20548_v36 = vld [vmem:[#allocation258_spill] sm:$0xff]  ;;  %v5410_v4 = vsel %vm575_vm8, %v3519_v47, %v15335_v37  ;;  %vm20554_vm4 = vcmp.ge.f32.partialorder %v20553_v54, 0.0  ;;  %v20564_v47 = vld [vmem:[#allocation291_spill] sm:$0xff]  ;;  %v20569_v54 = vld [vmem:[#allocation228_spill] sm:$0xff] }
 0xbe9   : > { %6002 = vmatpush2.bf16.msra.mxu0 %v5574_v22  ;;  %20541 = vst [vmem:[#allocation188_spill] sm:$0xff] %v15599_v14  ;;  %v5573_v60 = vpack.c.bf16 %v15589_v32, %v15599_v14  ;;  %vm20549_vm3 = vcmp.ge.f32.partialorder %v20548_v36, 0.0  ;;  %v15618_v22 = vsel %vm579_vm9, %v5411_v12, %v15366_v35  ;;  %v15628_v25 = vsel %vm579_vm9, %v5410_v4, %v15381_v43  ;;  %v20565_v36 = vld [vmem:[#allocation235_spill] sm:$0xff] }
 0xbea   : > { %v15601_v18 = vpop.permute.xlu0 %5335  ;;  %6003 = vmatprep.subr.bf16.mxu0 %v20418_v2  ;;  %v3518_v23 = vsel %vm20549_vm3, %v20534_v11, %v3475_v33  ;;  %20550 = vst [vmem:[#allocation347_spill] sm:$0xff] %v15618_v22  ;;  %20551 = vst [vmem:[#allocation75_spill] sm:$0xff] %v15628_v25  ;;  %v5572_v35 = vpack.c.bf16 %v15618_v22, %v15628_v25  ;;  %v20552_v11 = vld [vmem:[#allocation19_spill] sm:$0xff]  ;;  %v3517_v37 = vsel %vm20554_vm4, %v20545_v59, %v3474_v1 }
 0xbeb   : > { %v5409_v21 = vsel %vm575_vm8, %v3518_v23, %v15352_v52  ;;  %v3472_v33 = vsub.f32 %v20552_v11, %v3429_v7  ;;  %v20555_v52 = vld [vmem:[#allocation317_spill] sm:$0xff]  ;;  %v5408_v13 = vsel %vm575_vm8, %v3517_v37, %v15273_v51  ;;  %v20559_v7 = vld [vmem:[#allocation255_spill] sm:$0xff]  ;;  %v20566_v23 = vld [vmem:[#allocation260_spill] sm:$0xff] }
 0xbec   : > { %v15620_v28 = vpop.permute.xlu1 %5333  ;;  %vm20556_vm0 = vcmp.ge.f32.partialorder %v20555_v52, 0.0  ;;  %v15644_v43 = vsel %vm579_vm9, %v5409_v21, %v15304_v6  ;;  %v15654_v20 = vsel %vm579_vm9, %v5408_v13, %v15321_v57  ;;  %vm20560_vm2 = vcmp.ge.f32.partialorder %v20559_v7, 0.0  ;;  %v20570_v37 = vld [vmem:[#allocation266_spill] sm:$0xff] }
 0xbed   : > { %6004 = vmatpush2.bf16.msra.mxu0 %v5573_v60  ;;  %v3516_v8 = vsel %vm20556_vm0, %v20544_v53, %v3473_v38  ;;  %20557 = vst [vmem:[#allocation300_spill] sm:$0xff] %v15644_v43  ;;  %20558 = vst [vmem:[#allocation354_spill] sm:$0xff] %v15654_v20  ;;  %v5571_v6 = vpack.c.bf16 %v15644_v43, %v15654_v20  ;;  %v3515_v53 = vsel %vm20560_vm2, %v20552_v11, %v3472_v33  ;;  %v20568_v11 = vld [vmem:[#allocation301_spill] sm:$0xff] }
 0xbee   : > { %v15630_v62 = vpop.permute.xlu0 %5165  ;;  %6005 = vmatprep.subr.bf16.mxu0 %v20418_v2  ;;  %v5407_v12 = vsel %vm575_vm8, %v3516_v8, %v15290_v9  ;;  %v5406_v57 = vsel %vm575_vm8, %v3515_v53, %v15216_v16  ;;  %v10183_v16 = vld [vmem:[%s18850_s4 + $0x1c] ss:$12 sps:$4 sm:$0xff]   ;;  %v3455_v4 = vmul.f32 %v20566_v23, %v20565_v36  ;;  %v3453_v52 = vmul.f32 %v20570_v37, %v20569_v54  ;;  %v20571_v8 = vld [vmem:[#allocation72_spill] sm:$0xff]  ;;  %v10185_v53 = vld [vmem:[%s18850_s4 + $0x18] ss:$12 sps:$4 sm:$0xff]  }
 0xbef   : > { %v15666_v51 = vsel %vm579_vm9, %v5407_v12, %v15245_v61  ;;  %v15674_v38 = vsel %vm579_vm9, %v5406_v57, %v15259_v46  ;;  %v10180_v61 = vld [vmem:[%s18850_s4] ss:$12 sps:$4 sm:$0xff]   ;;  %v3454_v46 = vmul.f32 %v20564_v47, %v20563_v44  ;;  %v20572_v12 = vld [vmem:[#allocation69_spill] sm:$0xff] }
 0xbf0   : > { %v15646_v56 = vpop.permute.xlu1 %5163  ;;  %20561 = vst [vmem:[#allocation328_spill] sm:$0xff] %v15666_v51  ;;  %20562 = vst [vmem:[#allocation91_spill] sm:$0xff] %v15674_v38  ;;  %v5570_v59 = vpack.c.bf16 %v15666_v51, %v15674_v38  ;;  %v3498_v13 = vsub.f32 %v20571_v8, %v3455_v4  ;;  %v20575_v47 = vld [vmem:[#allocation223_spill] sm:$0xff]  ;;  %v20585_v54 = vld [vmem:[#allocation250_spill] sm:$0xff] }
 0xbf1   : > { %6006 = vmatpush2.bf16.msra.mxu0 %v5572_v35  ;;  %v20567_v35 = vld [vmem:[#allocation226_spill] sm:$0xff]  ;;  %v20576_v36 = vld [vmem:[#allocation295_spill] sm:$0xff] }
 0xbf2   : > { %v15656_v27 = vpop.permute.xlu0 %5339  ;;  %6007 = vmatprep.subr.bf16.mxu0 %v20418_v2  ;;  %v3452_v33 = vmul.f32 %v20568_v11, %v20567_v35  ;;  %v3451_v23 = vmul.f32 %v20576_v36, %v20575_v47  ;;  %v20577_v35 = vld [vmem:[#allocation66_spill] sm:$0xff]  ;;  %v20578_v11 = vld [vmem:[#allocation63_spill] sm:$0xff]  ;;  %v3541_v37 = vsel %vm3412_vm10, %v20571_v8, %v3498_v13  ;;  %v20586_v13 = vld [vmem:[#allocation57_spill] sm:$0xff] }
 0xbf3   : > { %v3496_v4 = vsub.f32 %v20577_v35, %v3453_v52  ;;  %v20582_v52 = vld [vmem:[#allocation210_spill] sm:$0xff]  ;;  %v20584_v36 = vld [vmem:[#allocation215_spill] sm:$0xff] }
 0xbf4   : > { %v15668_v9 = vpop.permute.xlu1 %5337  ;;  %v3449_v8 = vmul.f32 %v20585_v54, %v20584_v36  ;;  %v20598_v54 = vld [vmem:[#allocation54_spill] sm:$0xff] }
 0xbf5   : > { %6008 = vmatpush2.bf16.msra.mxu0 %v5571_v6  ;;  %v3497_v6 = vsub.f32 %v20572_v12, %v3454_v46  ;;  %v3495_v46 = vsub.f32 %v20578_v11, %v3452_v33  ;;  %v20583_v33 = vld [vmem:[#allocation344_spill] sm:$0xff] }
 0xbf6   : > { %v5170_v60 = vpop.permute.xlu0 %5169  ;;  %6009 = vmatprep.subr.bf16.mxu0 %v20418_v2  ;;  %v3448_v47 = vmul.f32 %v20583_v33, %v20582_v52 }
 0xbf7   : > { %v3540_v31 = vsel %vm3411_vm5, %v20572_v12, %v3497_v6  ;;  %v20587_v12 = vld [vmem:[#allocation60_spill] sm:$0xff] }
 0xbf8   : > { %v5168_v1 = vpop.permute.xlu1 %5167  ;;  %v3494_v6 = vsub.f32 %v20587_v12, %v3451_v23  ;;  %v10188_v23 = vld [vmem:[%s18850_s4 + $0x30] ss:$12 sps:$4 sm:$0xff]  }
 0xbf9   : > { %6010 = vmatpush2.bf16.msra.mxu0 %v5570_v59  ;;  %v10186_v59 = vld [vmem:[%s18850_s4 + $0x34] ss:$12 sps:$4 sm:$0xff]  }
 0xbfa   : > { %v5344_v2 = vpop.permute.xlu0 %5343 }
 0xbfc   : > { %v5342_v21 = vpop.permute.xlu1 %5341  ;;  %6012 = vmatmul.mubr.bf16.vlgmr.msra.gmra.mxu0 %v10180_v61  ;;  %v20573_v61 = vld [vmem:[#allocation218_spill] sm:$0xff] }
 0xbfd   : > { %6019 = vmatprep.mubr.bf16.mxu0 %v10183_v16  ;;  %v20574_v16 = vld [vmem:[#allocation309_spill] sm:$0xff] }
 0xbfe   : > { %v5174_v57 = vpop.permute.xlu0 %5173  ;;  %v3450_v44 = vmul.f32 %v20574_v16, %v20573_v61 }
 0xbff   : > { %v5432_v45 = vsel %vm575_vm8, %v3541_v37, %v5174_v57  ;;  %v20591_v37 = vld [vmem:[#allocation2_spill] sm:$0xff] }
 0xc00   : > { %v5172_v7 = vpop.permute.xlu1 %5171  ;;  %v3493_v49 = vsub.f32 %v20586_v13, %v3450_v44 }
 0xc01   : > { %v5431_v63 = vsel %vm575_vm8, %v3540_v31, %v5172_v7  ;;  %v3539_v7 = vsel %vm3410_vm7, %v20577_v35, %v3496_v4  ;;  %v10189_v35 = vld [vmem:[%s18850_s4 + $0x4c] ss:$12 sps:$4 sm:$0xff]  }
 0xc02   : > { %v15733_v57 = vsel %vm579_vm9, %v5431_v63, %v5344_v2  ;;  %v20593_v4 = vld [vmem:[#allocation203_spill] sm:$0xff]  ;;  %v20594_v63 = vld [vmem:[#allocation346_spill] sm:$0xff] }
 0xc03   : > { %20590 = vst [vmem:[#allocation207_spill] sm:$0xff] %v15733_v57  ;;  %v3446_v2 = vmul.f32 %v20594_v63, %v20593_v4 }
 0xc04   : > { %v5346_v61 = vpop.permute.xlu1 %5345  ;;  %6020 = vmatmul.mubr.bf16.gmra.mxu0 %v10185_v53  ;;  %v3538_v53 = vsel %vm3409_vm6, %v20578_v11, %v3495_v46  ;;  %v20595_v11 = vld [vmem:[#allocation205_spill] sm:$0xff] }
 0xc05   : > { %v15716_v16 = vsel %vm579_vm9, %v5432_v45, %v5346_v61  ;;  %6027 = vmatprep.mubr.bf16.mxu0 %v10186_v59  ;;  %v5430_v59 = vsel %vm575_vm8, %v3539_v7, %v5170_v60  ;;  %v5429_v44 = vsel %vm575_vm8, %v3538_v53, %v5168_v1  ;;  %v20596_v60 = vld [vmem:[#allocation315_spill] sm:$0xff]  ;;  %v20601_v7 = vld [vmem:[#allocation304_spill] sm:$0xff] }
 0xc06   : > { %20581 = vst [vmem:[#allocation294_spill] sm:$0xff] %v15716_v16  ;;  %v5583_v26 = vpack.c.bf16 %v15716_v16, %v15716_v16  ;;  %v15742_v52 = vsel %vm579_vm9, %v5430_v59, %v5342_v21  ;;  %v3447_v46 = vmul.f32 %v20596_v60, %v20595_v11  ;;  %v20597_v1 = vld [vmem:[#allocation51_spill] sm:$0xff]  ;;  %v20599_v21 = vld [vmem:[#allocation288_spill] sm:$0xff]  ;;  %vm20602_vm6 = vcmp.ge.f32.partialorder %v20601_v7, 0.0 }
 0xc07   : > { %20592 = vst [vmem:[#allocation206_spill] sm:$0xff] %v15742_v52  ;;  %v3491_v33 = vsub.f32 %v20597_v1, %v3448_v47  ;;  %v5582_v36 = vpack.c.bf16 %v15733_v57, %v15742_v52  ;;  %vm20600_vm5 = vcmp.ge.f32.partialorder %v20599_v21, 0.0  ;;  %v3536_v45 = vsel %vm20602_vm6, %v20586_v13, %v3493_v49  ;;  %v20606_v49 = vld [vmem:[#allocation283_spill] sm:$0xff] }
 0xc08   : > { %v5977_v61 = vand.u32 %v5583_v26, %v20591_v37  ;;  %v3492_v26 = vsub.f32 %v20598_v54, %v3449_v8  ;;  %v3537_v31 = vsel %vm20600_vm5, %v20587_v12, %v3494_v6  ;;  %v15763_v53 = vsel %vm579_vm9, %v5429_v44, %v15656_v27  ;;  %v20605_v12 = vld [vmem:[#allocation198_spill] sm:$0xff]  ;;  %v20607_v6 = vld [vmem:[#allocation45_spill] sm:$0xff]  ;;  %v20608_v37 = vld [vmem:[#allocation48_spill] sm:$0xff] }
 0xc09   : > { %20603 = vst [vmem:[#allocation78_spill] sm:$0xff] %v15763_v53  ;;  %v5428_v47 = vsel %vm575_vm8, %v3537_v31, %v15630_v62  ;;  %v5427_v59 = vsel %vm575_vm8, %v3536_v45, %v15646_v56  ;;  %v3445_v13 = vmul.f32 %v20606_v49, %v20605_v12  ;;  %v3489_v27 = vsub.f32 %v20607_v6, %v3446_v2  ;;  %v10191_v2 = vld [vmem:[%s18850_s4 + $0x48] ss:$12 sps:$4 sm:$0xff]   ;;  %v10201_v12 = vld [vmem:[%s18850_s4 + $0xac] ss:$12 sps:$4 sm:$0xff]  }
 0xc0a   : > { %9715 = vmatprep.subr.bf16.mxu0 %v5977_v61  ;;  %v15771_v8 = vsel %vm579_vm9, %v5428_v47, %v15668_v9  ;;  %v3490_v62 = vsub.f32 %v20608_v37, %v3447_v46  ;;  %v10195_v47 = vld [vmem:[%s18850_s4 + $0x7c] ss:$12 sps:$4 sm:$0xff]  }
 0xc0b   : > { %9716 = vmatpush3.bf16.msra.mxu0 %v5977_v61  ;;  %20604 = vst [vmem:[#allocation194_spill] sm:$0xff] %v15771_v8  ;;  %v5581_v44 = vpack.c.bf16 %v15763_v53, %v15771_v8  ;;  %v20609_v61 = vld [vmem:[#allocation298_spill] sm:$0xff]  ;;  %v10203_v49 = vld [vmem:[%s18850_s4 + $0xa8] ss:$12 sps:$4 sm:$0xff]  }
 0xc0c   : > { %6028 = vmatmul.mubr.bf16.gmra.mxu0 %v10188_v23  ;;  %9717 = vmatprep.subr.bf16.mxu0 %v5582_v36  ;;  %vm20610_vm7 = vcmp.ge.f32.partialorder %v20609_v61, 0.0  ;;  %v20611_v23 = vld [vmem:[#allocation279_spill] sm:$0xff] }
 0xc0d   : > { %6035 = vmatprep.mubr.bf16.mxu0 %v10189_v35  ;;  %v3535_v56 = vsel %vm20610_vm7, %v20598_v54, %v3492_v26  ;;  %vm20612_vm10 = vcmp.ge.f32.partialorder %v20611_v23, 0.0  ;;  %v15787_v35 = vsel %vm579_vm9, %v5427_v59, %v15601_v18  ;;  %v10192_v18 = vld [vmem:[%s18850_s4 + $0x64] ss:$12 sps:$4 sm:$0xff]   ;;  %v10213_v61 = vld [vmem:[%s18850_s4 + $0x10c] ss:$12 sps:$4 sm:$0xff]  }
 0xc0e   : > { %v3534_v9 = vsel %vm20612_vm10, %v20597_v1, %v3491_v33  ;;  %20613 = vst [vmem:[#allocation82_spill] sm:$0xff] %v15787_v35  ;;  %v5426_v4 = vsel %vm575_vm8, %v3535_v56, %v15570_v24  ;;  %v20615_v24 = vld [vmem:[#allocation42_spill] sm:$0xff]  ;;  %v20618_v33 = vld [vmem:[#allocation341_spill] sm:$0xff]  ;;  %v10215_v56 = vld [vmem:[%s18850_s4 + $0x108] ss:$12 sps:$4 sm:$0xff]  }
 0xc0f   : > { %9718 = vmatpush3.bf16.msra.mxu0 %v5582_v36  ;;  %v5425_v63 = vsel %vm575_vm8, %v3534_v9, %v15591_v19  ;;  %v15798_v11 = vsel %vm579_vm9, %v5426_v4, %v15620_v28  ;;  %v3488_v46 = vsub.f32 %v20615_v24, %v3445_v13  ;;  %v20616_v19 = vld [vmem:[#allocation256_spill] sm:$0xff]  ;;  %vm20619_vm12 = vcmp.ge.f32.partialorder %v20618_v33, 0.0  ;;  %v10218_v9 = vld [vmem:[%s18850_s4 + $0x120] ss:$12 sps:$4 sm:$0xff]   ;;  %v10219_v4 = vld [vmem:[%s18850_s4 + $0x13c] ss:$12 sps:$4 sm:$0xff]  }
 0xc10   : > { %9719 = vmatprep.subr.bf16.mxu0 %v5581_v44  ;;  %20614 = vst [vmem:[#allocation334_spill] sm:$0xff] %v15798_v11  ;;  %v5580_v60 = vpack.c.bf16 %v15787_v35, %v15798_v11  ;;  %vm20617_vm11 = vcmp.ge.f32.partialorder %v20616_v19, 0.0  ;;  %v3532_v36 = vsel %vm20619_vm12, %v20607_v6, %v3489_v27  ;;  %v15814_v28 = vsel %vm579_vm9, %v5425_v63, %v15539_v40  ;;  %v20622_v40 = vld [vmem:[#allocation290_spill] sm:$0xff]  ;;  %v10200_v59 = vld [vmem:[%s18850_s4 + $0x90] ss:$12 sps:$4 sm:$0xff]  }
 0xc11   : > { %v3533_v1 = vsel %vm20617_vm11, %v20608_v37, %v3490_v62  ;;  %20620 = vst [vmem:[#allocation312_spill] sm:$0xff] %v15814_v28  ;;  %v5423_v26 = vsel %vm575_vm8, %v3532_v36, %v15532_v29  ;;  %vm20623_vm13 = vcmp.ge.f32.partialorder %v20622_v40, 0.0  ;;  %v10204_v13 = vld [vmem:[%s18850_s4 + $0xc4] ss:$12 sps:$4 sm:$0xff]   ;;  %v10206_v6 = vld [vmem:[%s18850_s4 + $0xc0] ss:$12 sps:$4 sm:$0xff]  }
 0xc12   : > { %v5424_v54 = vsel %vm575_vm8, %v3533_v1, %v15512_v3  ;;  %v3531_v7 = vsel %vm20623_vm13, %v20615_v24, %v3488_v46  ;;  %v15831_v3 = vsel %vm579_vm9, %v5423_v26, %v15486_v50  ;;  %v10207_v27 = vld [vmem:[%s18850_s4 + $0xdc] ss:$12 sps:$4 sm:$0xff]   ;;  %v10210_v37 = vld [vmem:[%s18850_s4 + $0xf4] ss:$12 sps:$4 sm:$0xff]   ;;  %v10216_v23 = vld [vmem:[%s18850_s4 + $0x124] ss:$12 sps:$4 sm:$0xff]  }
 0xc13   : > { %9720 = vmatpush3.bf16.msra.mxu0 %v5581_v44  ;;  %v15822_v21 = vsel %vm579_vm9, %v5424_v54, %v15560_v42  ;;  %20624 = vst [vmem:[#allocation352_spill] sm:$0xff] %v15831_v3  ;;  %v5422_v29 = vsel %vm575_vm8, %v3531_v7, %v15460_v0  ;;  %v10194_v42 = vld [vmem:[%s18850_s4 + $0x60] ss:$12 sps:$4 sm:$0xff]   ;;  %v10197_v0 = vld [vmem:[%s18850_s4 + $0x78] ss:$12 sps:$4 sm:$0xff]  }
 0xc14   : > { %6036 = vmatmul.mubr.bf16.gmra.mxu0 %v10191_v2  ;;  %9721 = vmatprep.subr.bf16.mxu0 %v5580_v60  ;;  %20621 = vst [vmem:[#allocation183_spill] sm:$0xff] %v15822_v21  ;;  %v5579_v31 = vpack.c.bf16 %v15814_v28, %v15822_v21  ;;  %v15840_v45 = vsel %vm579_vm9, %v5422_v29, %v15505_v48  ;;  %v10198_v48 = vld [vmem:[%s18850_s4 + $0x94] ss:$12 sps:$4 sm:$0xff]   ;;  %v10209_v44 = vld [vmem:[%s18850_s4 + $0xd8] ss:$12 sps:$4 sm:$0xff]   ;;  %vm5909_vm9 = vcmask 695296  }
 0xc15   : > { %6043 = vmatprep.mubr.bf16.mxu0 %v10192_v18  ;;  %20625 = vst [vmem:[#allocation305_spill] sm:$0xff] %v15840_v45  ;;  %v5578_v50 = vpack.c.bf16 %v15831_v3, %v15840_v45  ;;  %v10212_v62 = vld [vmem:[%s18850_s4 + $0xf0] ss:$12 sps:$4 sm:$0xff]   ;;  %v10221_v63 = vld [vmem:[%s18850_s4 + $0x138] ss:$12 sps:$4 sm:$0xff]  }
 0xc16   : > { %v10222_v2 = vld [vmem:[%s18850_s4 + $0x154] ss:$12 sps:$4 sm:$0xff]   ;;  %v10224_v18 = vld [vmem:[%s18850_s4 + $0x150] ss:$12 sps:$4 sm:$0xff]   ;;  %v10233_v33 = vld [vmem:[%s18850_s4 + $0x198] ss:$12 sps:$4 sm:$0xff]  }
 0xc17   : > { %9722 = vmatpush3.bf16.msra.mxu0 %v5580_v60  ;;  %v10225_v60 = vld [vmem:[%s18850_s4 + $0x16c] ss:$12 sps:$4 sm:$0xff]   ;;  %v10227_v24 = vld [vmem:[%s18850_s4 + $0x168] ss:$12 sps:$4 sm:$0xff]   ;;  %v10228_v46 = vld [vmem:[%s18850_s4 + $0x184] ss:$12 sps:$4 sm:$0xff]  }
 0xc18   : > { %9723 = vmatprep.subr.bf16.mxu0 %v5579_v31  ;;  %v10230_v19 = vld [vmem:[%s18850_s4 + $0x180] ss:$12 sps:$4 sm:$0xff]   ;;  %v10231_v1 = vld [vmem:[%s18850_s4 + $0x19c] ss:$12 sps:$4 sm:$0xff]   ;;  %v10240_v40 = vld [vmem:[%s18850_s4 + $0x1e4] ss:$12 sps:$4 sm:$0xff]  }
 0xc19   : > { %v10234_v36 = vld [vmem:[%s18850_s4 + $0x1b4] ss:$12 sps:$4 sm:$0xff]   ;;  %v10236_v54 = vld [vmem:[%s18850_s4 + $0x1b0] ss:$12 sps:$4 sm:$0xff]   ;;  %v10237_v26 = vld [vmem:[%s18850_s4 + $0x1cc] ss:$12 sps:$4 sm:$0xff]  }
 0xc1a   : > { %v5560_v7 = vld [vmem:[%s18850_s4 + $0x1f8] sm:$0x77]  ;;  %v10242_v29 = vld [vmem:[%s18850_s4 + $0x1e0] ss:$12 sps:$4 sm:$0xff]  }
 0xc1b   : > { %9724 = vmatpush3.bf16.msra.mxu0 %v5579_v31  ;;  %v10239_v31 = vld [vmem:[%s18850_s4 + $0x1c8] ss:$12 sps:$4 sm:$0xff]  }
 0xc1c   : > { %6044 = vmatmul.mubr.bf16.gmra.mxu0 %v10194_v42  ;;  %9725 = vmatprep.subr.bf16.mxu0 %v5578_v50  ;;  %v9342_v42 = vcombine.high %v5560_v7, %v5560_v7 }
 0xc1d   : > { %6051 = vmatprep.mubr.bf16.mxu0 %v10195_v47  ;;  %v9341_v47 = vcombine.low %v5560_v7, %v5560_v7 }
 0xc1f   : > { %9726 = vmatpush3.bf16.msra.mxu0 %v5578_v50  ;;  %v10245_v50 = vld [vmem:[%s18850_s4 + $0x8] ss:$12 sps:$4 sm:$0xff]  }
 0xc24   : > { %6052 = vmatmul.mubr.bf16.gmra.mxu0 %v10197_v0  ;;  %v10246_v0 = vld [vmem:[%s18850_s4 + $0x20] ss:$12 sps:$4 sm:$0xff]  }
 0xc25   : > { %6059 = vmatprep.mubr.bf16.mxu0 %v10198_v48  ;;  %v10247_v48 = vld [vmem:[%s18850_s4 + $0x38] ss:$12 sps:$4 sm:$0xff]  }
 0xc2c   : > { %6060 = vmatmul.mubr.bf16.gmra.mxu0 %v10200_v59  ;;  %v10248_v59 = vld [vmem:[%s18850_s4 + $0x50] ss:$12 sps:$4 sm:$0xff]  }
 0xc2d   : > { %6067 = vmatprep.mubr.bf16.mxu0 %v10201_v12  ;;  %v10249_v12 = vld [vmem:[%s18850_s4 + $0x68] ss:$12 sps:$4 sm:$0xff]  }
 0xc34   : > { %6068 = vmatmul.mubr.bf16.gmra.mxu0 %v10203_v49  ;;  %v10250_v49 = vld [vmem:[%s18850_s4 + $0x80] ss:$12 sps:$4 sm:$0xff]  }
 0xc35   : > { %6075 = vmatprep.mubr.bf16.mxu0 %v10204_v13  ;;  %v10251_v13 = vld [vmem:[%s18850_s4 + $0x98] ss:$12 sps:$4 sm:$0xff]  }
 0xc3c   : > { %6076 = vmatmul.mubr.bf16.gmra.mxu0 %v10206_v6 }
 0xc3d   : > { %6083 = vmatprep.mubr.bf16.mxu0 %v10207_v27 }
 0xc44   : > { %6084 = vmatmul.mubr.bf16.gmra.mxu0 %v10209_v44 }
 0xc45   : > { %6091 = vmatprep.mubr.bf16.mxu0 %v10210_v37  ;;  %v10252_v37 = vld [vmem:[%s18850_s4 + $0xb0] ss:$12 sps:$4 sm:$0xff]  }
 0xc4c   : > { %6092 = vmatmul.mubr.bf16.gmra.mxu0 %v10212_v62  ;;  %v10253_v62 = vld [vmem:[%s18850_s4 + $0xc8] ss:$12 sps:$4 sm:$0xff]  }
 0xc4d   : > { %6099 = vmatprep.mubr.bf16.mxu0 %v10213_v61 }
 0xc54   : > { %6100 = vmatmul.mubr.bf16.gmra.mxu0 %v10215_v56 }
 0xc55   : > { %6107 = vmatprep.mubr.bf16.mxu0 %v10216_v23 }
 0xc5c   : > { %6108 = vmatmul.mubr.bf16.gmra.mxu0 %v10218_v9 }
 0xc5d   : > { %6115 = vmatprep.mubr.bf16.mxu0 %v10219_v4  ;;  %v10254_v4 = vld [vmem:[%s18850_s4 + $0xe0] ss:$12 sps:$4 sm:$0xff]  }
 0xc64   : > { %6116 = vmatmul.mubr.bf16.gmra.mxu0 %v10221_v63  ;;  %v10255_v63 = vld [vmem:[%s18850_s4 + $0xf8] ss:$12 sps:$4 sm:$0xff]  }
 0xc65   : > { %6123 = vmatprep.mubr.bf16.mxu0 %v10222_v2 }
 0xc6c   : > { %6124 = vmatmul.mubr.bf16.gmra.mxu0 %v10224_v18 }
 0xc6d   : > { %6131 = vmatprep.mubr.bf16.mxu0 %v10225_v60 }
 0xc74   : > { %6132 = vmatmul.mubr.bf16.gmra.mxu0 %v10227_v24 }
 0xc75   : > { %6139 = vmatprep.mubr.bf16.mxu0 %v10228_v46  ;;  %v10256_v46 = vld [vmem:[%s18850_s4 + $0x110] ss:$12 sps:$4 sm:$0xff]  }
 0xc7c   : > { %6140 = vmatmul.mubr.bf16.gmra.mxu0 %v10230_v19  ;;  %v10257_v19 = vld [vmem:[%s18850_s4 + $0x128] ss:$12 sps:$4 sm:$0xff]  }
 0xc7d   : > { %6147 = vmatprep.mubr.bf16.mxu0 %v10231_v1 }
 0xc84   : > { %6148 = vmatmul.mubr.bf16.gmra.mxu0 %v10233_v33 }
 0xc85   : > { %6155 = vmatprep.mubr.bf16.mxu0 %v10234_v36 }
 0xc8c   : > { %6156 = vmatmul.mubr.bf16.gmra.mxu0 %v10236_v54 }
 0xc8d   : > { %6163 = vmatprep.mubr.bf16.mxu0 %v10237_v26  ;;  %v10258_v26 = vld [vmem:[%s18850_s4 + $0x140] ss:$12 sps:$4 sm:$0xff]  }
 0xc94   : > { %6164 = vmatmul.mubr.bf16.gmra.mxu0 %v10239_v31  ;;  %v10259_v31 = vld [vmem:[%s18850_s4 + $0x158] ss:$12 sps:$4 sm:$0xff]  }
 0xc95   : > { %6171 = vmatprep.mubr.bf16.mxu0 %v10240_v40 }
 0xc9c   : > { %6172 = vmatmul.mubr.bf16.gmra.mxu0 %v10242_v29 }
 0xc9d   : > { %6179 = vmatprep.mubr.bf16.mxu0 %v9342_v42 }
 0xca4   : > { %6180 = vmatmul.mubr.bf16.gmra.mxu0 %v9341_v47  ;;  %v10260_v47 = vld [vmem:[%s18850_s4 + $0x170] ss:$12 sps:$4 sm:$0xff]  }
 0xca5   : > { %9727 = vmatprep.mubr.msk.bf16.mxu0 %vm5909_vm9, %v10245_v50  ;;  %v10261_v50 = vld [vmem:[%s18850_s4 + $0x188] ss:$12 sps:$4 sm:$0xff]  }
 0xcac   : > { %9728 = vmatmul.mubr.msk.bf16.vlgmr.msra.gmra.mxu0 %vm5909_vm9, %v10246_v0 }
 0xcad   : > { %9731 = vmatprep.mubr.msk.bf16.mxu0 %vm5909_vm9, %v10247_v48 }
 0xcb4   : > { %9732 = vmatmul.mubr.msk.bf16.gmra.mxu0 %vm5909_vm9, %v10248_v59 }
 0xcb5   : > { %9735 = vmatprep.mubr.msk.bf16.mxu0 %vm5909_vm9, %v10249_v12 }
 0xcbc   : > { %v15969_v6 = vpop.f32.mrf.mxu0  ;;  %9736 = vmatmul.mubr.msk.bf16.gmra.mxu0 %vm5909_vm9, %v10250_v49  ;;  %v10262_v49 = vld [vmem:[%s18850_s4 + $0x1a0] ss:$12 sps:$4 sm:$0xff]  }
 0xcbd   : > { %9739 = vmatprep.mubr.msk.bf16.mxu0 %vm5909_vm9, %v10251_v13  ;;  %v10263_v13 = vld [vmem:[%s18850_s4 + $0x1b8] ss:$12 sps:$4 sm:$0xff]  }
 0xcbe   : > { %v6015_v27 = vpop.f32.mrf.mxu0 }
 0xcc0   : > { %v15973_v44 = vpop.f32.mrf.mxu0 }
 0xcc2   : > { %v6018_v61 = vpop.f32.mrf.mxu0 }
 0xcc4   : > { %v15981_v56 = vpop.f32.mrf.mxu0  ;;  %9740 = vmatmul.mubr.msk.bf16.gmra.mxu0 %vm5909_vm9, %v10252_v37 }
 0xcc5   : > { %9743 = vmatprep.mubr.msk.bf16.mxu0 %vm5909_vm9, %v10253_v62 }
 0xcc6   : > { %v6023_v23 = vpop.f32.mrf.mxu0 }
 0xcc7   : > { %v10264_v23 = vld [vmem:[%s18850_s4 + $0x1d0] ss:$12 sps:$4 sm:$0xff]  }
 0xcc8   : > { %v15985_v9 = vpop.f32.mrf.mxu0 }
 0xcca   : > { %v6026_v2 = vpop.f32.mrf.mxu0 }
 0xccc   : > { %v15993_v18 = vpop.f32.mrf.mxu0  ;;  %9744 = vmatmul.mubr.msk.bf16.gmra.mxu0 %vm5909_vm9, %v10254_v4  ;;  %v10265_v4 = vld [vmem:[%s18850_s4 + $0x1e8] ss:$12 sps:$4 sm:$0xff]  }
 0xccd   : > { %9747 = vmatprep.mubr.msk.bf16.mxu0 %vm5909_vm9, %v10255_v63 }
 0xcce   : > { %v6031_v60 = vpop.f32.mrf.mxu0 }
 0xcd0   : > { %v15997_v24 = vpop.f32.mrf.mxu0 }
 0xcd2   : > { %v6034_v1 = vpop.f32.mrf.mxu0 }
 0xcd4   : > { %v16005_v33 = vpop.f32.mrf.mxu0  ;;  %9748 = vmatmul.mubr.msk.bf16.gmra.mxu0 %vm5909_vm9, %v10256_v46 }
 0xcd5   : > { %9751 = vmatprep.mubr.msk.bf16.mxu0 %vm5909_vm9, %v10257_v19  ;;  %v10266_v19 = vld [vmem:[%s18850_s4 + $0x200] ss:$0 sps:$4 sm:$0x77]  }
 0xcd6   : > { %v6039_v36 = vpop.f32.mrf.mxu0 }
 0xcd8   : > { %v16009_v54 = vpop.f32.mrf.mxu0 }
 0xcda   : > { %v6042_v40 = vpop.f32.mrf.mxu0 }
 0xcdc   : > { %v16017_v7 = vpop.f32.mrf.mxu0  ;;  %9752 = vmatmul.mubr.msk.bf16.gmra.mxu0 %vm5909_vm9, %v10258_v26 }
 0xcdd   : > { %9755 = vmatprep.mubr.msk.bf16.mxu0 %vm5909_vm9, %v10259_v31 }
 0xcde   : > { %v6047_v29 = vpop.f32.mrf.mxu0 }
 0xce0   : > { %v16021_v42 = vpop.f32.mrf.mxu0 }
 0xce2   : > { %v6050_v0 = vpop.f32.mrf.mxu0 }
 0xce4   : > { %v16029_v48 = vpop.f32.mrf.mxu0  ;;  %9756 = vmatmul.mubr.msk.bf16.gmra.mxu0 %vm5909_vm9, %v10260_v47 }
 0xce5   : > { %9759 = vmatprep.mubr.msk.bf16.mxu0 %vm5909_vm9, %v10261_v50 }
 0xce6   : > { %v6055_v59 = vpop.f32.mrf.mxu0 }
 0xce8   : > { %v16033_v12 = vpop.f32.mrf.mxu0 }
 0xcea   : > { %v6058_v27 = vpop.f32.mrf.mxu0 }
 0xcec   : > { %v16041_v37 = vpop.f32.mrf.mxu0  ;;  %9760 = vmatmul.mubr.msk.bf16.gmra.mxu0 %vm5909_vm9, %v10262_v49 }
 0xced   : > { %9763 = vmatprep.mubr.msk.bf16.mxu0 %vm5909_vm9, %v10263_v13 }
 0xcee   : > { %v6063_v62 = vpop.f32.mrf.mxu0 }
 0xcf0   : > { %v16045_v61 = vpop.f32.mrf.mxu0 }
 0xcf2   : > { %v6066_v63 = vpop.f32.mrf.mxu0 }
 0xcf4   : > { %v16053_v2 = vpop.f32.mrf.mxu0  ;;  %9764 = vmatmul.mubr.msk.bf16.gmra.mxu0 %vm5909_vm9, %v10264_v23 }
 0xcf5   : > { %9767 = vmatprep.mubr.msk.bf16.mxu0 %vm5909_vm9, %v10265_v4 }
 0xcf6   : > { %v6071_v60 = vpop.f32.mrf.mxu0 }
 0xcf8   : > { %v16057_v46 = vpop.f32.mrf.mxu0 }
 0xcfa   : > { %v6074_v1 = vpop.f32.mrf.mxu0 }
 0xcfc   : > { %v16062_v36 = vpop.f32.mrf.mxu0  ;;  %9768 = vmatmul.mubr.msk.bf16.gmra.mxu0 %vm5909_vm9, %v10266_v19 }
 0xcfe   : > { %v6079_v26 = vpop.f32.mrf.mxu0 }
 0xd00   : > { %v16065_v31 = vpop.f32.mrf.mxu0 }
 0xd02   : > { %v6082_v40 = vpop.f32.mrf.mxu0 }
 0xd04   : > { %v16067_v29 = vpop.f32.mrf.mxu0 }
 0xd06   : > { %v6087_v47 = vpop.f32.mrf.mxu0 }
 0xd08   : > { %v16069_v50 = vpop.f32.mrf.mxu0 }
 0xd0a   : > { %v6090_v0 = vpop.f32.mrf.mxu0 }
 0xd0c   : > { %v16071_v59 = vpop.f32.mrf.mxu0 }
 0xd0e   : > { %v6095_v49 = vpop.f32.mrf.mxu0 }
 0xd10   : > { %v16073_v13 = vpop.f32.mrf.mxu0 }
 0xd12   : > { %v6098_v27 = vpop.f32.mrf.mxu0 }
 0xd14   : > { %v16075_v62 = vpop.f32.mrf.mxu0 }
 0xd16   : > { %v6103_v23 = vpop.f32.mrf.mxu0 }
 0xd18   : > { %v16077_v4 = vpop.f32.mrf.mxu0 }
 0xd1a   : > { %v6106_v63 = vpop.f32.mrf.mxu0 }
 0xd1c   : > { %v16079_v60 = vpop.f32.mrf.mxu0 }
 0xd1e   : > { %v6111_v19 = vpop.f32.mrf.mxu0 }
 0xd20   : > { %v16081_v1 = vpop.f32.mrf.mxu0 }
 0xd22   : > { %v6114_v26 = vpop.f32.mrf.mxu0 }
 0xd24   : > { %v16083_v40 = vpop.f32.mrf.mxu0 }
 0xd26   : > { %v6119_v47 = vpop.f32.mrf.mxu0 }
 0xd28   : > { %v16085_v0 = vpop.f32.mrf.mxu0 }
 0xd2a   : > { %v6122_v49 = vpop.f32.mrf.mxu0 }
 0xd2c   : > { %v16087_v57 = vpop.f32.mrf.mxu0 }
 0xd2e   : > { %v6127_v27 = vpop.f32.mrf.mxu0 }
 0xd30   : > { %v16089_v52 = vpop.f32.mrf.mxu0 }
 0xd31   : > { %20626 = vst [vmem:[#allocation355_spill] sm:$0xff] %v16089_v52 }
 0xd32   : > { %v6130_v23 = vpop.f32.mrf.mxu0 }
 0xd34   : > { %v16091_v16 = vpop.f32.mrf.mxu0 }
 0xd36   : > { %v6135_v63 = vpop.f32.mrf.mxu0 }
 0xd38   : > { %v16093_v35 = vpop.f32.mrf.mxu0 }
 0xd3a   : > { %v6138_v19 = vpop.f32.mrf.mxu0 }
 0xd3c   : > { %v16095_v53 = vpop.f32.mrf.mxu0 }
 0xd3d   : > { %20627 = vst [vmem:[#allocation349_spill] sm:$0xff] %v16095_v53 }
 0xd3e   : > { %v6143_v26 = vpop.f32.mrf.mxu0 }
 0xd40   : > { %v16097_v11 = vpop.f32.mrf.mxu0 }
 0xd41   : > { %20628 = vst [vmem:[#allocation336_spill] sm:$0xff] %v16097_v11 }
 0xd42   : > { %v6146_v47 = vpop.f32.mrf.mxu0 }
 0xd44   : > { %v16099_v8 = vpop.f32.mrf.mxu0 }
 0xd45   : > { %20629 = vst [vmem:[#allocation201_spill] sm:$0xff] %v16099_v8 }
 0xd46   : > { %v6151_v49 = vpop.f32.mrf.mxu0 }
 0xd48   : > { %v16101_v3 = vpop.f32.mrf.mxu0 }
 0xd49   : > { %20630 = vst [vmem:[#allocation90_spill] sm:$0xff] %v16101_v3 }
 0xd4a   : > { %v6154_v27 = vpop.f32.mrf.mxu0 }
 0xd4c   : > { %v16103_v28 = vpop.f32.mrf.mxu0 }
 0xd4d   : > { %20631 = vst [vmem:[#allocation202_spill] sm:$0xff] %v16103_v28 }
 0xd4e   : > { %v6159_v23 = vpop.f32.mrf.mxu0 }
 0xd50   : > { %v16105_v45 = vpop.f32.mrf.mxu0 }
 0xd51   : > { %20632 = vst [vmem:[#allocation217_spill] sm:$0xff] %v16105_v45 }
 0xd52   : > { %v6162_v63 = vpop.f32.mrf.mxu0 }
 0xd54   : > { %v16107_v21 = vpop.f32.mrf.mxu0 }
 0xd56   : > { %v6167_v19 = vpop.f32.mrf.mxu0 }
 0xd58   : > { %v16109_v53 = vpop.f32.mrf.mxu0 }
 0xd59   : > { %20633 = vst [vmem:[#allocation319_spill] sm:$0xff] %v16109_v53 }
 0xd5a   : > { %v6170_v26 = vpop.f32.mrf.mxu0 }
 0xd5c   : > { %v16111_v11 = vpop.f32.mrf.mxu0 }
 0xd5e   : > { %v6175_v47 = vpop.f32.mrf.mxu0 }
 0xd60   : > { %v16113_v8 = vpop.f32.mrf.mxu0 }
 0xd62   : > { %v6178_v49 = vpop.f32.mrf.mxu0 }
 0xd64   : > { %v16115_v3 = vpop.f32.mrf.mxu0 }
 0xd66   : > { %v6183_v27 = vpop.f32.mrf.mxu0 }
 0xd68   : > { %v6184_v28 = vpop.f32.mrf.mxu0 }
 0xd6a   : > { %v6185_v23 = vpop.f32.mrf.mxu0 }
 0xd6c   : > { %v9729_v52 = vpop.f32.mrf.mxu0 }
 0xd6d   : > { %v6230_v63 = vadd.f32 %v9729_v52, %v15981_v56 }
 0xd6e   : > { %v6221_v45 = vpop.f32.mrf.mxu0 }
 0xd6f   : > { %v16119_v19 = vmul.f32 %v6230_v63, %v15416_v30  ;;  %v6222_v26 = vadd.f32 %v6221_v45, %v15969_v6 }
 0xd70   : > { %v9730_v53 = vpop.f32.mrf.mxu0 }
 0xd71   : > { %6657 = vrot.lane.b32.xlu1 %v16119_v19, %s10381_s30  ;;  %6485 = vrot.lane.b32.xlu0 %v16119_v19, %s10382_s6  ;;  %v16127_v28 = vmul.f32 %v6222_v26, %v15433_v39  ;;  %v6233_v49 = vadd.f32 %v9730_v53, %v15985_v9 }
 0xd72   : > { %v6224_v47 = vpop.f32.mrf.mxu0 }
 0xd73   : > { %v16135_v6 = vmul.f32 %v6233_v49, %v15405_v15  ;;  %v6225_v56 = vadd.f32 %v6224_v47, %v15973_v44 }
 0xd74   : > { %v9733_v52 = vpop.f32.mrf.mxu0 }
 0xd75   : > { %6653 = vrot.lane.b32.xlu1 %v16127_v28, %s10381_s30  ;;  %6481 = vrot.lane.b32.xlu0 %v16127_v28, %s10382_s6  ;;  %v16143_v9 = vmul.f32 %v6225_v56, %v15427_v5  ;;  %v6246_v23 = vadd.f32 %v9733_v52, %v16005_v33 }
 0xd76   : > { %v6237_v45 = vpop.f32.mrf.mxu0 }
 0xd77   : > { %v16151_v26 = vmul.f32 %v6246_v23, %v15364_v58  ;;  %v6238_v47 = vadd.f32 %v6237_v45, %v15993_v18 }
 0xd78   : > { %v9734_v27 = vpop.f32.mrf.mxu0 }
 0xd79   : > { %6487 = vrot.lane.b32.xlu1 %v16135_v6, %s10382_s6  ;;  %6659 = vrot.lane.b32.xlu0 %v16135_v6, %s10381_s30  ;;  %v16159_v52 = vmul.f32 %v6238_v47, %v15391_v41  ;;  %v6249_v56 = vadd.f32 %v9734_v27, %v16009_v54  ;;  %v20634_v27 = vld [vmem:[#allocation270_spill] sm:$0xff] }
 0xd7a   : > { %v6240_v53 = vpop.f32.mrf.mxu0 }
 0xd7b   : > { %v16167_v45 = vmul.f32 %v6249_v56, %v15350_v10  ;;  %v6241_v23 = vadd.f32 %v6240_v53, %v15997_v24  ;;  %v20635_v53 = vld [vmem:[#allocation176_spill] sm:$0xff] }
 0xd7c   : > { %v9737_v63 = vpop.f32.mrf.mxu0 }
 0xd7d   : > { %6483 = vrot.lane.b32.xlu1 %v16143_v9, %s10382_s6  ;;  %6655 = vrot.lane.b32.xlu0 %v16143_v9, %s10381_s30  ;;  %v16175_v47 = vmul.f32 %v6241_v23, %v20634_v27  ;;  %v6262_v41 = vadd.f32 %v9737_v63, %v16029_v48  ;;  %v20637_v63 = vld [vmem:[#allocation192_spill] sm:$0xff] }
 0xd7e   : > { %v6253_v44 = vpop.f32.mrf.mxu0 }
 0xd7f   : > { %v16183_v56 = vmul.f32 %v6262_v41, %v20635_v53  ;;  %v6254_v10 = vadd.f32 %v6253_v44, %v16017_v7  ;;  %v20639_v7 = vld [vmem:[#allocation313_spill] sm:$0xff] }
 0xd80   : > { %v9738_v49 = vpop.f32.mrf.mxu0 }
 0xd81   : > { %6665 = vrot.lane.b32.xlu1 %v16151_v26, %s10381_s30  ;;  %6493 = vrot.lane.b32.xlu0 %v16151_v26, %s10382_s6  ;;  %20636 = vst [vmem:[#allocation359_spill] sm:$0xff] %v16183_v56  ;;  %v16191_v23 = vmul.f32 %v6254_v10, %v20637_v63  ;;  %v6265_v27 = vadd.f32 %v9738_v49, %v16033_v12  ;;  %v20641_v12 = vld [vmem:[#allocation277_spill] sm:$0xff] }
 0xd82   : > { %v6256_v33 = vpop.f32.mrf.mxu0 }
 0xd83   : > { %20638 = vst [vmem:[#allocation353_spill] sm:$0xff] %v16191_v23  ;;  %v16199_v44 = vmul.f32 %v6265_v27, %v20639_v7  ;;  %v6257_v53 = vadd.f32 %v6256_v33, %v16021_v42  ;;  %v20643_v33 = vld [vmem:[#allocation323_spill] sm:$0xff] }
 0xd84   : > { %v9741_v5 = vpop.f32.mrf.mxu0 }
 0xd85   : > { %6661 = vrot.lane.b32.xlu1 %v16159_v52, %s10381_s30  ;;  %6489 = vrot.lane.b32.xlu0 %v16159_v52, %s10382_s6  ;;  %20640 = vst [vmem:[#allocation123_spill] sm:$0xff] %v16199_v44  ;;  %v16211_v49 = vmul.f32 %v6257_v53, %v20641_v12  ;;  %v6278_v63 = vadd.f32 %v9741_v5, %v16053_v2  ;;  %v20645_v2 = vld [vmem:[#allocation322_spill] sm:$0xff] }
 0xd86   : > { %v6269_v18 = vpop.f32.mrf.mxu0 }
 0xd87   : > { %20642 = vst [vmem:[#allocation222_spill] sm:$0xff] %v16211_v49  ;;  %v16223_v27 = vmul.f32 %v6278_v63, %v20643_v33  ;;  %v6270_v7 = vadd.f32 %v6269_v18, %v16041_v37  ;;  %v20647_v18 = vld [vmem:[#allocation299_spill] sm:$0xff] }
 0xd88   : > { %v9742_v15 = vpop.f32.mrf.mxu0 }
 0xd89   : > { %6495 = vrot.lane.b32.xlu1 %v16167_v45, %s10382_s6  ;;  %6667 = vrot.lane.b32.xlu0 %v16167_v45, %s10381_s30  ;;  %20644 = vst [vmem:[#allocation200_spill] sm:$0xff] %v16223_v27  ;;  %v16235_v53 = vmul.f32 %v6270_v7, %v20645_v2  ;;  %v6281_v12 = vadd.f32 %v9742_v15, %v16057_v46  ;;  %v20648_v46 = vld [vmem:[#allocation307_spill] sm:$0xff] }
 0xd8a   : > { %v6272_v54 = vpop.f32.mrf.mxu0 }
 0xd8b   : > { %20646 = vst [vmem:[#allocation326_spill] sm:$0xff] %v16235_v53  ;;  %v16247_v63 = vmul.f32 %v6281_v12, %v20647_v18  ;;  %v6273_v33 = vadd.f32 %v6272_v54, %v16045_v61 }
 0xd8c   : > { %v9745_v58 = vpop.f32.mrf.mxu0 }
 0xd8d   : > { %6491 = vrot.lane.b32.xlu1 %v16175_v47, %s10382_s6  ;;  %6663 = vrot.lane.b32.xlu0 %v16175_v47, %s10381_s30  ;;  %v16259_v7 = vmul.f32 %v6273_v33, %v20648_v46  ;;  %v6294_v2 = vadd.f32 %v9745_v58, %v16067_v29 }
 0xd8e   : > { %v6285_v24 = vpop.f32.mrf.mxu0 }
 0xd8f   : > { %v16271_v54 = vmul.f32 %v6294_v2, %v15654_v20  ;;  %v6286_v12 = vadd.f32 %v6285_v24, %v16062_v36 }
 0xd90   : > { %v9746_v39 = vpop.f32.mrf.mxu0 }
 0xd91   : > { %6673 = vrot.lane.b32.xlu1 %v16183_v56, %s10381_s30  ;;  %6501 = vrot.lane.b32.xlu0 %v16183_v56, %s10382_s6  ;;  %v16283_v29 = vmul.f32 %v6286_v12, %v15674_v38  ;;  %v6297_v33 = vadd.f32 %v9746_v39, %v16069_v50 }
 0xd92   : > { %v6288_v48 = vpop.f32.mrf.mxu0 }
 0xd93   : > { %v16295_v24 = vmul.f32 %v6297_v33, %v15644_v43  ;;  %v6289_v2 = vadd.f32 %v6288_v48, %v16065_v31 }
 0xd94   : > { %v9749_v30 = vpop.f32.mrf.mxu0 }
 0xd95   : > { %6669 = vrot.lane.b32.xlu1 %v16191_v23, %s10381_s30  ;;  %6497 = vrot.lane.b32.xlu0 %v16191_v23, %s10382_s6  ;;  %v16307_v50 = vmul.f32 %v6289_v2, %v15666_v51  ;;  %v6310_v12 = vadd.f32 %v9749_v30, %v16075_v62  ;;  %v20655_v2 = vld [vmem:[#allocation182_spill] sm:$0xff] }
 0xd96   : > { %v6301_v41 = vpop.f32.mrf.mxu0  ;;  %v20678_v51 = vld [vmem:[#allocation202_spill] sm:$0xff] }
 0xd97   : > { %v16319_v48 = vmul.f32 %v6310_v12, %v15599_v14  ;;  %v6302_v33 = vadd.f32 %v6301_v41, %v16071_v59  ;;  %v20657_v12 = vld [vmem:[#allocation314_spill] sm:$0xff]  ;;  %v20684_v14 = vld [vmem:[#allocation217_spill] sm:$0xff] }
 0xd98   : > { %v16202_v56 = vpop.f32.mrf.mxu0 }
 0xd99   : > { %6503 = vrot.lane.b32.xlu1 %v16199_v44, %s10382_s6  ;;  %6675 = vrot.lane.b32.xlu0 %v16199_v44, %s10381_s30  ;;  %v16327_v30 = vmul.f32 %v6302_v33, %v15628_v25  ;;  %v6313_v62 = vadd.f32 %v16202_v56, %v16077_v4 }
 0xd9a   : > { %v16208_v10 = vpop.f32.mrf.mxu0 }
 0xd9b   : > { %v6305_v59 = vadd.f32 %v16208_v10, %v16073_v13 }
 0xd9c   : > { %v16214_v23 = vpop.f32.mrf.mxu0 }
 0xd9d   : > { %6499 = vrot.lane.b32.xlu1 %v16211_v49, %s10382_s6  ;;  %6671 = vrot.lane.b32.xlu0 %v16211_v49, %s10381_s30  ;;  %v16345_v4 = vmul.f32 %v6305_v59, %v15618_v22  ;;  %v6326_v56 = vadd.f32 %v16214_v23, %v16083_v40  ;;  %v20661_v59 = vld [vmem:[#allocation355_spill] sm:$0xff] }
 0xd9e   : > { %v16220_v42 = vpop.f32.mrf.mxu0 }
 0xd9f   : > { %20649 = vst [vmem:[#allocation214_spill] sm:$0xff] %v16345_v4  ;;  %v16354_v13 = vmul.f32 %v6326_v56, %v15537_v55  ;;  %v6318_v41 = vadd.f32 %v16220_v42, %v16079_v60  ;;  %v20653_v42 = vld [vmem:[#allocation190_spill] sm:$0xff]  ;;  %v20681_v55 = vld [vmem:[#allocation319_spill] sm:$0xff] }
 0xda0   : > { %v16226_v44 = vpop.f32.mrf.mxu0 }
 0xda1   : > { %6681 = vrot.lane.b32.xlu1 %v16223_v27, %s10381_s30  ;;  %6509 = vrot.lane.b32.xlu0 %v16223_v27, %s10382_s6  ;;  %20650 = vst [vmem:[#allocation220_spill] sm:$0xff] %v16354_v13  ;;  %v16363_v40 = vmul.f32 %v6318_v41, %v15568_v34  ;;  %v6329_v23 = vadd.f32 %v16226_v44, %v16085_v0 }
 0xda2   : > { %v16232_v5 = vpop.f32.mrf.mxu0 }
 0xda3   : > { %20651 = vst [vmem:[#allocation216_spill] sm:$0xff] %v16363_v40  ;;  %v16372_v60 = vmul.f32 %v6329_v23, %v15530_v17  ;;  %v6321_v10 = vadd.f32 %v16232_v5, %v16081_v1  ;;  %v20670_v17 = vld [vmem:[#allocation90_spill] sm:$0xff] }
 0xda4   : > { %v16238_v49 = vpop.f32.mrf.mxu0 }
 0xda5   : > { %6677 = vrot.lane.b32.xlu1 %v16235_v53, %s10381_s30  ;;  %6505 = vrot.lane.b32.xlu0 %v16235_v53, %s10382_s6  ;;  %20652 = vst [vmem:[#allocation345_spill] sm:$0xff] %v16372_v60  ;;  %v16381_v0 = vmul.f32 %v6321_v10, %v20653_v42  ;;  %v6342_v44 = vadd.f32 %v16238_v49, %v16091_v16  ;;  %v20664_v10 = vld [vmem:[#allocation201_spill] sm:$0xff] }
 0xda6   : > { %v16244_v37 = vpop.f32.mrf.mxu0 }
 0xda7   : > { %20654 = vst [vmem:[#allocation357_spill] sm:$0xff] %v16381_v0  ;;  %v16390_v1 = vmul.f32 %v6342_v44, %v20655_v2  ;;  %v6334_v5 = vadd.f32 %v16244_v37, %v16087_v57  ;;  %v20659_v57 = vld [vmem:[#allocation289_spill] sm:$0xff] }
 0xda8   : > { %v16250_v27 = vpop.f32.mrf.mxu0 }
 0xda9   : > { %6511 = vrot.lane.b32.xlu1 %v16247_v63, %s10382_s6  ;;  %6683 = vrot.lane.b32.xlu0 %v16247_v63, %s10381_s30  ;;  %20656 = vst [vmem:[#allocation333_spill] sm:$0xff] %v16390_v1  ;;  %v16399_v16 = vmul.f32 %v6334_v5, %v20657_v12  ;;  %v6345_v49 = vadd.f32 %v16250_v27, %v16093_v35  ;;  %v20662_v35 = vld [vmem:[#allocation351_spill] sm:$0xff] }
 0xdaa   : > { %v16256_v15 = vpop.f32.mrf.mxu0 }
 0xdab   : > { %20658 = vst [vmem:[#allocation134_spill] sm:$0xff] %v16399_v16  ;;  %v16412_v37 = vmul.f32 %v6345_v49, %v20659_v57  ;;  %v6337_v56 = vadd.f32 %v16256_v15, %v20661_v59  ;;  %v20665_v15 = vld [vmem:[#allocation183_spill] sm:$0xff]  ;;  %v20667_v57 = vld [vmem:[#allocation349_spill] sm:$0xff] }
 0xdac   : > { %v16262_v53 = vpop.f32.mrf.mxu0 }
 0xdad   : > { %6507 = vrot.lane.b32.xlu1 %v16259_v7, %s10382_s6  ;;  %6679 = vrot.lane.b32.xlu0 %v16259_v7, %s10381_s30  ;;  %20660 = vst [vmem:[#allocation362_spill] sm:$0xff] %v16412_v37  ;;  %v16425_v27 = vmul.f32 %v6337_v56, %v20662_v35  ;;  %v6358_v44 = vadd.f32 %v16262_v53, %v20664_v10  ;;  %v20668_v53 = vld [vmem:[#allocation305_spill] sm:$0xff] }
 0xdae   : > { %v16268_v61 = vpop.f32.mrf.mxu0 }
 0xdaf   : > { %20663 = vst [vmem:[#allocation213_spill] sm:$0xff] %v16425_v27  ;;  %v16438_v59 = vmul.f32 %v6358_v44, %v20665_v15  ;;  %v6350_v56 = vadd.f32 %v16268_v61, %v20667_v57  ;;  %v20671_v61 = vld [vmem:[#allocation312_spill] sm:$0xff] }
 0xdb0   : > { %v16274_v18 = vpop.f32.mrf.mxu0 }
 0xdb1   : > { %6689 = vrot.lane.b32.xlu1 %v16271_v54, %s10381_s30  ;;  %6517 = vrot.lane.b32.xlu0 %v16271_v54, %s10382_s6  ;;  %20666 = vst [vmem:[#allocation186_spill] sm:$0xff] %v16438_v59  ;;  %v16451_v10 = vmul.f32 %v6350_v56, %v20668_v53  ;;  %v6361_v44 = vadd.f32 %v16274_v18, %v20670_v17  ;;  %v20674_v17 = vld [vmem:[#allocation352_spill] sm:$0xff] }
 0xdb2   : > { %v16280_v58 = vpop.f32.mrf.mxu0 }
 0xdb3   : > { %20669 = vst [vmem:[#allocation368_spill] sm:$0xff] %v16451_v10  ;;  %v16464_v57 = vmul.f32 %v6361_v44, %v20671_v61 }
 0xdb4   : > { %v16286_v46 = vpop.f32.mrf.mxu0 }
 0xdb5   : > { %6685 = vrot.lane.b32.xlu1 %v16283_v29, %s10381_s30  ;;  %6513 = vrot.lane.b32.xlu0 %v16283_v29, %s10382_s6  ;;  %20672 = vst [vmem:[#allocation243_spill] sm:$0xff] %v16464_v57  ;;  %v6374_v44 = vadd.f32 %v16286_v46, %v16107_v21  ;;  %v20679_v21 = vld [vmem:[#allocation334_spill] sm:$0xff] }
 0xdb6   : > { %v16292_v36 = vpop.f32.mrf.mxu0 }
 0xdb8   : > { %v16298_v20 = vpop.f32.mrf.mxu0 }
 0xdb9   : > { %6519 = vrot.lane.b32.xlu1 %v16295_v24, %s10382_s6  ;;  %6691 = vrot.lane.b32.xlu0 %v16295_v24, %s10381_s30 }
 0xdba   : > { %v16304_v39 = vpop.f32.mrf.mxu0 }
 0xdbc   : > { %v16310_v38 = vpop.f32.mrf.mxu0 }
 0xdbd   : > { %6515 = vrot.lane.b32.xlu1 %v16307_v50, %s10382_s6  ;;  %6687 = vrot.lane.b32.xlu0 %v16307_v50, %s10381_s30 }
 0xdbe   : > { %v16316_v31 = vpop.f32.mrf.mxu0 }
 0xdc0   : > { %v9770_v43 = vpop.f32.mrf.mxu0 }
 0xdc1   : > { %6697 = vrot.lane.b32.xlu1 %v16319_v48, %s10381_s30  ;;  %6525 = vrot.lane.b32.xlu0 %v16319_v48, %s10382_s6  ;;  %v16336_v43 = vmul.f32 %v6313_v62, %v15589_v32  ;;  %v20673_v32 = vld [vmem:[#allocation336_spill] sm:$0xff] }
 0xdc2   : > { %v6353_v56 = vadd.f32 %v16280_v58, %v20673_v32  ;;  %v20676_v32 = vld [vmem:[#allocation194_spill] sm:$0xff] }
 0xdc3   : > { %v16490_v58 = vmul.f32 %v6374_v44, %v20676_v32  ;;  %v6377_v44 = vadd.f32 %v16298_v20, %v20681_v55  ;;  %v20685_v55 = vld [vmem:[#allocation82_spill] sm:$0xff] }
 0xdc4   : > { %v16477_v18 = vmul.f32 %v6353_v56, %v20674_v17  ;;  %v6366_v56 = vadd.f32 %v16292_v36, %v20678_v51  ;;  %v20682_v51 = vld [vmem:[#allocation78_spill] sm:$0xff] }
 0xdc5   : > { %6693 = vrot.lane.b32.xlu1 %v16327_v30, %s10381_s30  ;;  %6521 = vrot.lane.b32.xlu0 %v16327_v30, %s10382_s6  ;;  %20677 = vst [vmem:[#allocation211_spill] sm:$0xff] %v16490_v58  ;;  %v16516_v36 = vmul.f32 %v6377_v44, %v20682_v51  ;;  %v6390_v44 = vadd.f32 %v16310_v38, %v16115_v3  ;;  %v6384_v38 = vpop.f32.mrf.mxu0  ;;  %v20689_v3 = vld [vmem:[#allocation206_spill] sm:$0xff] }
 0xdc6   : > { %20675 = vst [vmem:[#allocation139_spill] sm:$0xff] %v16477_v18  ;;  %v16503_v46 = vmul.f32 %v6366_v56, %v20679_v21  ;;  %v6369_v56 = vadd.f32 %v16304_v39, %v20684_v14  ;;  %v20687_v14 = vld [vmem:[#allocation294_spill] sm:$0xff] }
 0xdc7   : > { %20683 = vst [vmem:[#allocation365_spill] sm:$0xff] %v16516_v36  ;;  %v16542_v39 = vmul.f32 %v6390_v44, %v20687_v14  ;;  %v6385_v44 = vadd.f32 %v6384_v38, %v16113_v8 }
 0xdc8   : > { %20680 = vst [vmem:[#allocation363_spill] sm:$0xff] %v16503_v46  ;;  %v16529_v20 = vmul.f32 %v6369_v56, %v20685_v55  ;;  %v6382_v56 = vadd.f32 %v16316_v31, %v16111_v11  ;;  %v20691_v11 = vld [vmem:[#allocation207_spill] sm:$0xff] }
 0xdc9   : > { %6527 = vrot.lane.b32.xlu1 %v16336_v43, %s10382_s6  ;;  %6699 = vrot.lane.b32.xlu0 %v16336_v43, %s10381_s30  ;;  %20688 = vst [vmem:[#allocation147_spill] sm:$0xff] %v16542_v39  ;;  %v16567_v31 = vmul.f32 %v6385_v44, %v20691_v11 }
 0xdca   : > { %20686 = vst [vmem:[#allocation343_spill] sm:$0xff] %v16529_v20 }
 0xdcb   : > { %20692 = vst [vmem:[#allocation350_spill] sm:$0xff] %v16567_v31 }
 0xdcd   : > { %6523 = vrot.lane.b32.xlu1 %v16345_v4, %s10382_s6  ;;  %6695 = vrot.lane.b32.xlu0 %v16345_v4, %s10381_s30 }
 0xdd1   : > { %6705 = vrot.lane.b32.xlu1 %v16354_v13, %s10381_s30  ;;  %6533 = vrot.lane.b32.xlu0 %v16354_v13, %s10382_s6 }
 0xdd5   : > { %6701 = vrot.lane.b32.xlu1 %v16363_v40, %s10381_s30  ;;  %6529 = vrot.lane.b32.xlu0 %v16363_v40, %s10382_s6 }
 0xdd9   : > { %6535 = vrot.lane.b32.xlu1 %v16372_v60, %s10382_s6  ;;  %6707 = vrot.lane.b32.xlu0 %v16372_v60, %s10381_s30 }
 0xddd   : > { %6531 = vrot.lane.b32.xlu1 %v16381_v0, %s10382_s6  ;;  %6703 = vrot.lane.b32.xlu0 %v16381_v0, %s10381_s30 }
 0xde1   : > { %6713 = vrot.lane.b32.xlu1 %v16390_v1, %s10381_s30  ;;  %6541 = vrot.lane.b32.xlu0 %v16390_v1, %s10382_s6 }
 0xde3   : > { %v16403_v33 = vpop.permute.xlu1 %6657  ;;  %v16405_v62 = vpop.permute.xlu0 %6485 }
 0xde5   : > { %6709 = vrot.lane.b32.xlu1 %v16399_v16, %s10381_s30  ;;  %6537 = vrot.lane.b32.xlu0 %v16399_v16, %s10382_s6 }
 0xde7   : > { %v16416_v41 = vpop.permute.xlu1 %6653  ;;  %v16418_v23 = vpop.permute.xlu0 %6481 }
 0xde8   : > { %v6610_v1 = vadd.f32 %v16418_v23, %v16127_v28 }
 0xde9   : > { %6543 = vrot.lane.b32.xlu1 %v16412_v37, %s10382_s6  ;;  %6715 = vrot.lane.b32.xlu0 %v16412_v37, %s10381_s30 }
 0xdea   : > { %v16623_v23 = vadd.f32 %v16416_v41, %v6610_v1 }
 0xdeb   : > { %v16429_v5 = vpop.permute.xlu1 %6487  ;;  %v16431_v49 = vpop.permute.xlu0 %6659 }
 0xdec   : > { %v6825_v1 = vsel %vm575_vm8, %v16623_v23, -inf }
 0xded   : > { %6539 = vrot.lane.b32.xlu1 %v16425_v27, %s10382_s6  ;;  %6711 = vrot.lane.b32.xlu0 %v16425_v27, %s10381_s30 }
 0xdef   : > { %v16442_v35 = vpop.permute.xlu1 %6483  ;;  %v16444_v42 = vpop.permute.xlu0 %6655 }
 0xdf0   : > { %v6611_v13 = vadd.f32 %v16442_v35, %v16143_v9 }
 0xdf1   : > { %6721 = vrot.lane.b32.xlu1 %v16438_v59, %s10381_s30  ;;  %6549 = vrot.lane.b32.xlu0 %v16438_v59, %s10382_s6 }
 0xdf3   : > { %v16455_v15 = vpop.permute.xlu1 %6665  ;;  %v16457_v22 = vpop.permute.xlu0 %6493 }
 0xdf5   : > { %6717 = vrot.lane.b32.xlu1 %v16451_v10, %s10381_s30  ;;  %6545 = vrot.lane.b32.xlu0 %v16451_v10, %s10382_s6 }
 0xdf7   : > { %v16468_v53 = vpop.permute.xlu1 %6661  ;;  %v16470_v12 = vpop.permute.xlu0 %6489 }
 0xdf9   : > { %6551 = vrot.lane.b32.xlu1 %v16464_v57, %s10382_s6  ;;  %6723 = vrot.lane.b32.xlu0 %v16464_v57, %s10381_s30 }
 0xdfb   : > { %v16481_v61 = vpop.permute.xlu1 %6495  ;;  %v16483_v2 = vpop.permute.xlu0 %6667 }
 0xdfd   : > { %6547 = vrot.lane.b32.xlu1 %v16477_v18, %s10382_s6  ;;  %6719 = vrot.lane.b32.xlu0 %v16477_v18, %s10381_s30  ;;  %v16555_v18 = vmul.f32 %v6382_v56, %v20689_v3 }
 0xdff   : > { %v16494_v17 = vpop.permute.xlu1 %6491  ;;  %v16496_v34 = vpop.permute.xlu0 %6663  ;;  %20690 = vst [vmem:[#allocation115_spill] sm:$0xff] %v16555_v18 }
 0xe01   : > { %6729 = vrot.lane.b32.xlu1 %v16490_v58, %s10381_s30  ;;  %6557 = vrot.lane.b32.xlu0 %v16490_v58, %s10382_s6 }
 0xe03   : > { %v16507_v32 = vpop.permute.xlu1 %6673  ;;  %v16509_v25 = vpop.permute.xlu0 %6501 }
 0xe05   : > { %6725 = vrot.lane.b32.xlu1 %v16503_v46, %s10381_s30  ;;  %6553 = vrot.lane.b32.xlu0 %v16503_v46, %s10382_s6 }
 0xe07   : > { %v16520_v21 = vpop.permute.xlu1 %6669  ;;  %v16522_v58 = vpop.permute.xlu0 %6497 }
 0xe09   : > { %6559 = vrot.lane.b32.xlu1 %v16516_v36, %s10382_s6  ;;  %6731 = vrot.lane.b32.xlu0 %v16516_v36, %s10381_s30 }
 0xe0b   : > { %v16533_v51 = vpop.permute.xlu1 %6503  ;;  %v16535_v46 = vpop.permute.xlu0 %6675 }
 0xe0d   : > { %6555 = vrot.lane.b32.xlu1 %v16529_v20, %s10382_s6  ;;  %6727 = vrot.lane.b32.xlu0 %v16529_v20, %s10381_s30 }
 0xe0f   : > { %v16546_v55 = vpop.permute.xlu1 %6499  ;;  %v16548_v36 = vpop.permute.xlu0 %6671 }
 0xe11   : > { %6737 = vrot.lane.b32.xlu1 %v16542_v39, %s10381_s30  ;;  %6565 = vrot.lane.b32.xlu0 %v16542_v39, %s10382_s6 }
 0xe13   : > { %v16558_v14 = vpop.permute.xlu1 %6681  ;;  %v16560_v20 = vpop.permute.xlu0 %6509 }
 0xe15   : > { %6733 = vrot.lane.b32.xlu1 %v16555_v18, %s10381_s30  ;;  %6561 = vrot.lane.b32.xlu0 %v16555_v18, %s10382_s6 }
 0xe17   : > { %v16569_v10 = vpop.permute.xlu1 %6677  ;;  %v16571_v39 = vpop.permute.xlu0 %6505 }
 0xe19   : > { %6563 = vrot.lane.b32.xlu1 %v16567_v31, %s10382_s6  ;;  %6735 = vrot.lane.b32.xlu0 %v16567_v31, %s10381_s30  ;;  %v6612_v31 = vadd.f32 %v16405_v62, %v16119_v19  ;;  %v6613_v19 = vadd.f32 %v16429_v5, %v16135_v6  ;;  %v6617_v6 = vadd.f32 %v16481_v61, %v16167_v45 }
 0xe1b   : > { %v16577_v8 = vpop.permute.xlu1 %6511  ;;  %v16579_v56 = vpop.permute.xlu0 %6683  ;;  %v16610_v60 = vadd.f32 %v16403_v33, %v6612_v31  ;;  %v6616_v33 = vadd.f32 %v16457_v22, %v16151_v26  ;;  %v16631_v9 = vadd.f32 %v16431_v49, %v6613_v19  ;;  %v16649_v45 = vadd.f32 %v16483_v2, %v6617_v6 }
 0xe1d   : > { %v6831_v28 = vsel %vm575_vm8, %v16610_v60, -inf  ;;  %v16646_v26 = vadd.f32 %v16455_v15, %v6616_v33  ;;  %v20696_v33 = vld [vmem:[#allocation353_spill] sm:$0xff] }
 0xe1e   : > { %v6618_v6 = vadd.f32 %v16522_v58, %v20696_v33 }
 0xe1f   : > { %v16581_v38 = vpop.permute.xlu1 %6507  ;;  %v16583_v3 = vpop.permute.xlu0 %6679  ;;  %v6843_v15 = vsel %vm575_vm8, %v16646_v26, -inf }
 0xe23   : > { %v16585_v44 = vpop.permute.xlu1 %6689  ;;  %v16587_v11 = vpop.permute.xlu0 %6517 }
 0xe27   : > { %v16589_v18 = vpop.permute.xlu1 %6685  ;;  %v16591_v57 = vpop.permute.xlu0 %6513 }
 0xe2b   : > { %v16593_v59 = vpop.permute.xlu1 %6519  ;;  %v16595_v27 = vpop.permute.xlu0 %6691 }
 0xe2f   : > { %v16599_v16 = vpop.permute.xlu1 %6515  ;;  %v16601_v37 = vpop.permute.xlu0 %6687 }
 0xe33   : > { %v16605_v0 = vpop.permute.xlu1 %6697  ;;  %v16607_v40 = vpop.permute.xlu0 %6525 }
 0xe34   : > { %20693 = vst [vmem:[#allocation249_spill] sm:$0xff] %v16605_v0  ;;  %v16626_v0 = vadd.f32 %v16444_v42, %v6611_v13  ;;  %v6614_v13 = vadd.f32 %v16470_v12, %v16159_v52  ;;  %v6615_v42 = vadd.f32 %v16494_v17, %v16175_v47  ;;  %v6834_v52 = vsel %vm575_vm8, %v16631_v9, -inf  ;;  %v20694_v12 = vld [vmem:[#allocation359_spill] sm:$0xff] }
 0xe35   : > { %v6620_v61 = vadd.f32 %v16509_v25, %v20694_v12  ;;  %v20695_v17 = vld [vmem:[#allocation123_spill] sm:$0xff]  ;;  %v6846_v25 = vsel %vm575_vm8, %v16649_v45, -inf }
 0xe36   : > { %v6828_v22 = vsel %vm575_vm8, %v16626_v0, -inf  ;;  %v16664_v2 = vadd.f32 %v16468_v53, %v6614_v13  ;;  %v16667_v47 = vadd.f32 %v16496_v34, %v6615_v42  ;;  %v6621_v31 = vadd.f32 %v16533_v51, %v20695_v17 }
 0xe37   : > { %v16616_v62 = vpop.permute.xlu1 %6693  ;;  %v16618_v4 = vpop.permute.xlu0 %6521  ;;  %v16682_v34 = vadd.f32 %v16507_v32, %v6620_v61  ;;  %v6625_v61 = vadd.f32 %v16577_v8, %v16247_v63  ;;  %v6623_v63 = vadd.f32 %v16581_v38, %v16259_v7  ;;  %v6629_v7 = vadd.f32 %v16593_v59, %v16295_v24 }
 0xe38   : > { %6832 = vmax.xlane.f32.xlu0 %v6831_v28  ;;  %v6837_v53 = vsel %vm575_vm8, %v16664_v2, -inf  ;;  %v16685_v51 = vadd.f32 %v16535_v46, %v6621_v31  ;;  %v6840_v58 = vsel %vm575_vm8, %v16667_v47, -inf  ;;  %v16700_v46 = vadd.f32 %v16520_v21, %v6618_v6  ;;  %v20699_v31 = vld [vmem:[#allocation326_spill] sm:$0xff] }
 0xe39   : > { %v6855_v32 = vsel %vm575_vm8, %v16682_v34, -inf  ;;  %v6627_v24 = vadd.f32 %v16599_v16, %v16307_v50 }
 0xe3a   : > { %v6849_v21 = vsel %vm575_vm8, %v16700_v46, -inf }
 0xe3b   : > { %v16635_v35 = vpop.permute.xlu1 %6527  ;;  %v16637_v5 = vpop.permute.xlu0 %6699 }
 0xe3c   : > { %6826 = vmax.xlane.f32.xlu0 %v6825_v1  ;;  %v20697_v1 = vld [vmem:[#allocation222_spill] sm:$0xff]  ;;  %v6633_v50 = vadd.f32 %v16635_v35, %v16336_v43 }
 0xe3d   : > { %6829 = vmax.xlane.f32.xlu1 %v6828_v22  ;;  %v6619_v13 = vadd.f32 %v16546_v55, %v20697_v1  ;;  %v20701_v43 = vld [vmem:[#allocation214_spill] sm:$0xff] }
 0xe3f   : > { %v16653_v41 = vpop.permute.xlu1 %6523  ;;  %v16655_v49 = vpop.permute.xlu0 %6695  ;;  %v16703_v55 = vadd.f32 %v16548_v36, %v6619_v13  ;;  %v16719_v36 = vadd.f32 %v16579_v56, %v6625_v61  ;;  %v16735_v56 = vadd.f32 %v16583_v3, %v6623_v63  ;;  %v16751_v3 = vadd.f32 %v16595_v27, %v6629_v7 }
 0xe40   : > { %6835 = vmax.xlane.f32.xlu0 %v6834_v52  ;;  %v20698_v52 = vld [vmem:[#allocation200_spill] sm:$0xff]  ;;  %v16767_v27 = vadd.f32 %v16601_v37, %v6627_v24  ;;  %v16781_v37 = vadd.f32 %v16637_v5, %v6633_v50  ;;  %v6631_v35 = vadd.f32 %v16653_v41, %v20701_v43  ;;  %v20703_v41 = vld [vmem:[#allocation345_spill] sm:$0xff] }
 0xe41   : > { %6844 = vmax.xlane.f32.xlu1 %v6843_v15  ;;  %v6624_v12 = vadd.f32 %v16560_v20, %v20698_v52  ;;  %v6858_v20 = vsel %vm575_vm8, %v16685_v51, -inf  ;;  %v6882_v61 = vsel %vm575_vm8, %v16751_v3, -inf  ;;  %v20706_v50 = vld [vmem:[#allocation333_spill] sm:$0xff] }
 0xe42   : > { %v16795_v5 = vadd.f32 %v16655_v49, %v6631_v35  ;;  %v20708_v35 = vld [vmem:[#allocation134_spill] sm:$0xff] }
 0xe43   : > { %v16671_v19 = vpop.permute.xlu1 %6705  ;;  %v16673_v28 = vpop.permute.xlu0 %6533  ;;  %v16716_v33 = vadd.f32 %v16558_v14, %v6624_v12 }
 0xe44   : > { %6847 = vmax.xlane.f32.xlu0 %v6846_v25  ;;  %v6622_v25 = vadd.f32 %v16571_v39, %v20699_v31  ;;  %v6852_v39 = vsel %vm575_vm8, %v16703_v55, -inf }
 0xe45   : > { %6838 = vmax.xlane.f32.xlu1 %v6837_v53  ;;  %v6628_v53 = vadd.f32 %v16587_v11, %v16271_v54  ;;  %v6867_v14 = vsel %vm575_vm8, %v16716_v33, -inf  ;;  %v6870_v54 = vsel %vm575_vm8, %v16719_v36, -inf  ;;  %v6626_v11 = vadd.f32 %v16591_v57, %v16283_v29 }
 0xe46   : > { %v16732_v1 = vadd.f32 %v16569_v10, %v6622_v25  ;;  %v6864_v29 = vsel %vm575_vm8, %v16735_v56, -inf  ;;  %v6632_v57 = vadd.f32 %v16607_v40, %v16319_v48  ;;  %v6630_v48 = vadd.f32 %v16618_v4, %v16327_v30  ;;  %v20702_v30 = vld [vmem:[#allocation220_spill] sm:$0xff] }
 0xe47   : > { %v16689_v22 = vpop.permute.xlu1 %6701  ;;  %v16691_v42 = vpop.permute.xlu0 %6529  ;;  %v16764_v12 = vadd.f32 %v16589_v18, %v6626_v11  ;;  %v20700_v18 = vld [vmem:[#allocation249_spill] sm:$0xff]  ;;  %v6636_v4 = vadd.f32 %v16673_v28, %v20702_v30  ;;  %v20704_v11 = vld [vmem:[#allocation216_spill] sm:$0xff] }
 0xe48   : > { %6841 = vmax.xlane.f32.xlu0 %v6840_v58  ;;  %v6861_v10 = vsel %vm575_vm8, %v16732_v1, -inf  ;;  %v16748_v58 = vadd.f32 %v16585_v44, %v6628_v53  ;;  %v6634_v28 = vadd.f32 %v16691_v42, %v20704_v11 }
 0xe49   : > { %6856 = vmax.xlane.f32.xlu1 %v6855_v32  ;;  %v6873_v40 = vsel %vm575_vm8, %v16764_v12, -inf }
 0xe4a   : > { %v6879_v44 = vsel %vm575_vm8, %v16748_v58, -inf }
 0xe4b   : > { %v6536_v15 = vpop.permute.xlu1 %6535  ;;  %v16707_v17 = vpop.permute.xlu0 %6707 }
 0xe4c   : > { %6859 = vmax.xlane.f32.xlu0 %v6858_v20  ;;  %v16778_v20 = vadd.f32 %v20700_v18, %v6632_v57  ;;  %v6637_v53 = vadd.f32 %v6536_v15, %v20703_v41  ;;  %v20705_v15 = vld [vmem:[#allocation357_spill] sm:$0xff] }
 0xe4d   : > { %6850 = vmax.xlane.f32.xlu1 %v6849_v21  ;;  %v6876_v21 = vsel %vm575_vm8, %v16767_v27, -inf }
 0xe4e   : > { %v6891_v63 = vsel %vm575_vm8, %v16778_v20, -inf  ;;  %v16808_v49 = vadd.f32 %v16707_v17, %v6637_v53  ;;  %v20710_v53 = vld [vmem:[#allocation186_spill] sm:$0xff] }
 0xe4f   : > { %v6532_v8 = vpop.permute.xlu1 %6531  ;;  %v16723_v6 = vpop.permute.xlu0 %6703 }
 0xe50   : > { %6853 = vmax.xlane.f32.xlu0 %v6852_v39  ;;  %v16792_v39 = vadd.f32 %v16616_v62, %v6630_v48  ;;  %v16805_v62 = vadd.f32 %v16671_v19, %v6636_v4  ;;  %v6635_v24 = vadd.f32 %v6532_v8, %v20705_v15  ;;  %v16817_v19 = vadd.f32 %v16689_v22, %v6634_v28  ;;  %v20707_v48 = vld [vmem:[#allocation362_spill] sm:$0xff] }
 0xe51   : > { %6868 = vmax.xlane.f32.xlu1 %v6867_v14  ;;  %v6906_v43 = vsel %vm575_vm8, %v16808_v49, -inf }
 0xe52   : > { %v16820_v17 = vadd.f32 %v16723_v6, %v6635_v24  ;;  %v20709_v6 = vld [vmem:[#allocation213_spill] sm:$0xff]  ;;  %v20712_v24 = vld [vmem:[#allocation368_spill] sm:$0xff] }
 0xe53   : > { %v16739_v38 = vpop.permute.xlu1 %6713  ;;  %v6542_v13 = vpop.permute.xlu0 %6541 }
 0xe54   : > { %6871 = vmax.xlane.f32.xlu0 %v6870_v54  ;;  %v6894_v54 = vsel %vm575_vm8, %v16781_v37, -inf  ;;  %v6640_v42 = vadd.f32 %v6542_v13, %v20706_v50  ;;  %v6900_v41 = vsel %vm575_vm8, %v16820_v17, -inf }
 0xe55   : > { %6862 = vmax.xlane.f32.xlu1 %v6861_v10  ;;  %v6885_v10 = vsel %vm575_vm8, %v16792_v39, -inf }
 0xe56   : > { %v16829_v22 = vadd.f32 %v16739_v38, %v6640_v42 }
 0xe57   : > { %v16755_v59 = vpop.permute.xlu1 %6709  ;;  %v6538_v52 = vpop.permute.xlu0 %6537 }
 0xe58   : > { %6865 = vmax.xlane.f32.xlu0 %v6864_v29  ;;  %v6638_v13 = vadd.f32 %v6538_v52, %v20708_v35  ;;  %v6915_v52 = vsel %vm575_vm8, %v16829_v22, -inf }
 0xe59   : > { %6880 = vmax.xlane.f32.xlu1 %v6879_v44  ;;  %v6888_v44 = vsel %vm575_vm8, %v16795_v5, -inf }
 0xe5a   : > { %v16840_v11 = vadd.f32 %v16755_v59, %v6638_v13 }
 0xe5b   : > { %v6544_v16 = vpop.permute.xlu1 %6543  ;;  %v6716_v32 = vpop.permute.xlu0 %6715 }
 0xe5c   : > { %6883 = vmax.xlane.f32.xlu0 %v6882_v61  ;;  %v6903_v61 = vsel %vm575_vm8, %v16805_v62, -inf  ;;  %v6641_v8 = vadd.f32 %v6544_v16, %v20707_v48 }
 0xe5d   : > { %6874 = vmax.xlane.f32.xlu1 %v6873_v40 }
 0xe5e   : > { %v16831_v30 = vadd.f32 %v6716_v32, %v6641_v8  ;;  %v20711_v32 = vld [vmem:[#allocation243_spill] sm:$0xff] }
 0xe5f   : > { %v6540_v31 = vpop.permute.xlu1 %6539  ;;  %v6712_v25 = vpop.permute.xlu0 %6711 }
 0xe60   : > { %6877 = vmax.xlane.f32.xlu0 %v6876_v21  ;;  %v6897_v21 = vsel %vm575_vm8, %v16817_v19, -inf  ;;  %v6639_v4 = vadd.f32 %v6540_v31, %v20709_v6  ;;  %v6918_v15 = vsel %vm575_vm8, %v16831_v30, -inf  ;;  %v20715_v6 = vld [vmem:[#allocation363_spill] sm:$0xff] }
 0xe61   : > { %6892 = vmax.xlane.f32.xlu1 %v6891_v63 }
 0xe62   : > { %v16842_v38 = vadd.f32 %v6712_v25, %v6639_v4  ;;  %v20713_v25 = vld [vmem:[#allocation139_spill] sm:$0xff] }
 0xe63   : > { %v6722_v14 = vpop.permute.xlu1 %6721  ;;  %v6550_v7 = vpop.permute.xlu0 %6549 }
 0xe64   : > { %6895 = vmax.xlane.f32.xlu0 %v6894_v54  ;;  %v6644_v54 = vadd.f32 %v6550_v7, %v20710_v53  ;;  %v6909_v7 = vsel %vm575_vm8, %v16840_v11, -inf  ;;  %v6912_v8 = vsel %vm575_vm8, %v16842_v38, -inf }
 0xe65   : > { %6886 = vmax.xlane.f32.xlu1 %v6885_v10 }
 0xe66   : > { %v16850_v50 = vadd.f32 %v6722_v14, %v6644_v54 }
 0xe67   : > { %v6718_v29 = vpop.permute.xlu1 %6717  ;;  %v6546_v57 = vpop.permute.xlu0 %6545 }
 0xe68   : > { %6889 = vmax.xlane.f32.xlu0 %v6888_v44  ;;  %v6642_v44 = vadd.f32 %v6546_v57, %v20712_v24  ;;  %v6927_v57 = vsel %vm575_vm8, %v16850_v50, -inf }
 0xe69   : > { %6904 = vmax.xlane.f32.xlu1 %v6903_v61 }
 0xe6a   : > { %v16860_v35 = vadd.f32 %v6718_v29, %v6642_v44 }
 0xe6b   : > { %v6552_v40 = vpop.permute.xlu1 %6551  ;;  %v6724_v18 = vpop.permute.xlu0 %6723 }
 0xe6c   : > { %6907 = vmax.xlane.f32.xlu0 %v6906_v43  ;;  %v6645_v28 = vadd.f32 %v6552_v40, %v20711_v32  ;;  %v20714_v40 = vld [vmem:[#allocation211_spill] sm:$0xff]  ;;  %v6921_v53 = vsel %vm575_vm8, %v16860_v35, -inf }
 0xe6d   : > { %6898 = vmax.xlane.f32.xlu1 %v6897_v21 }
 0xe6e   : > { %v16852_v59 = vadd.f32 %v6724_v18, %v6645_v28  ;;  %v20717_v28 = vld [vmem:[#allocation343_spill] sm:$0xff] }
 0xe6f   : > { %v6548_v16 = vpop.permute.xlu1 %6547  ;;  %v6720_v63 = vpop.permute.xlu0 %6719 }
 0xe70   : > { %6901 = vmax.xlane.f32.xlu0 %v6900_v41  ;;  %v6643_v42 = vadd.f32 %v6548_v16, %v20713_v25  ;;  %v6930_v21 = vsel %vm575_vm8, %v16852_v59, -inf  ;;  %v20716_v16 = vld [vmem:[#allocation365_spill] sm:$0xff] }
 0xe71   : > { %6916 = vmax.xlane.f32.xlu1 %v6915_v52 }
 0xe72   : > { %v16862_v14 = vadd.f32 %v6720_v63, %v6643_v42  ;;  %v20718_v42 = vld [vmem:[#allocation147_spill] sm:$0xff] }
 0xe73   : > { %v6730_v31 = vpop.permute.xlu1 %6729  ;;  %v6558_v10 = vpop.permute.xlu0 %6557 }
 0xe74   : > { %6919 = vmax.xlane.f32.xlu0 %v6918_v15  ;;  %v6648_v43 = vadd.f32 %v6558_v10, %v20714_v40  ;;  %v6924_v32 = vsel %vm575_vm8, %v16862_v14, -inf }
 0xe75   : > { %6910 = vmax.xlane.f32.xlu1 %v6909_v7 }
 0xe76   : > { %v16870_v54 = vadd.f32 %v6730_v31, %v6648_v43 }
 0xe77   : > { %v6726_v61 = vpop.permute.xlu1 %6725  ;;  %v6554_v48 = vpop.permute.xlu0 %6553 }
 0xe78   : > { %6913 = vmax.xlane.f32.xlu0 %v6912_v8  ;;  %v6646_v4 = vadd.f32 %v6554_v48, %v20715_v6  ;;  %v6939_v15 = vsel %vm575_vm8, %v16870_v54, -inf }
 0xe79   : > { %6928 = vmax.xlane.f32.xlu1 %v6927_v57 }
 0xe7a   : > { %v16879_v24 = vadd.f32 %v6726_v61, %v6646_v4 }
 0xe7b   : > { %v6560_v18 = vpop.permute.xlu1 %6559  ;;  %v6732_v13 = vpop.permute.xlu0 %6731 }
 0xe7c   : > { %v6649_v41 = vadd.f32 %v6560_v18, %v20716_v16  ;;  %6931 = vmax.xlane.f32.xlu0 %v6930_v21  ;;  %v6933_v8 = vsel %vm575_vm8, %v16879_v24, -inf  ;;  %v20719_v18 = vld [vmem:[#allocation115_spill] sm:$0xff]  ;;  %v20720_v16 = vld [vmem:[#allocation350_spill] sm:$0xff] }
 0xe7d   : > { %6922 = vmax.xlane.f32.xlu1 %v6921_v53 }
 0xe7e   : > { %v16872_v29 = vadd.f32 %v6732_v13, %v6649_v41 }
 0xe7f   : > { %v6556_v63 = vpop.permute.xlu1 %6555  ;;  %v6728_v52 = vpop.permute.xlu0 %6727 }
 0xe80   : > { %v6647_v10 = vadd.f32 %v6556_v63, %v20717_v28  ;;  %6925 = vmax.xlane.f32.xlu0 %v6924_v32  ;;  %v6942_v25 = vsel %vm575_vm8, %v16872_v29, -inf  ;;  %v6955_v28 = vlaneseq }
 0xe81   : > { %6940 = vmax.xlane.f32.xlu1 %v6939_v15 }
 0xe82   : > { %v16881_v44 = vadd.f32 %v6728_v52, %v6647_v10  ;;  %v16904_v10 = vand.u32 127, %v6955_v28 }
 0xe83   : > { %v6738_v31 = vpop.permute.xlu1 %6737  ;;  %v6566_v7 = vpop.permute.xlu0 %6565 }
 0xe84   : > { %v6652_v48 = vadd.f32 %v6566_v7, %v20718_v42  ;;  %6943 = vmax.xlane.f32.xlu0 %v6942_v25  ;;  %v6936_v57 = vsel %vm575_vm8, %v16881_v44, -inf }
 0xe85   : > { %6934 = vmax.xlane.f32.xlu1 %v6933_v8 }
 0xe86   : > { %v16888_v40 = vadd.f32 %v6738_v31, %v6652_v48 }
 0xe87   : > { %v6734_v61 = vpop.permute.xlu1 %6733  ;;  %v6562_v43 = vpop.permute.xlu0 %6561 }
 0xe88   : > { %v6650_v13 = vadd.f32 %v6562_v43, %v20719_v18  ;;  %6937 = vmax.xlane.f32.xlu0 %v6936_v57  ;;  %v6952_v21 = vsel %vm6951_vm14, %v16888_v40, -inf }
 0xe89   : > { %6953 = vmax.xlane.f32.xlu1 %v6952_v21 }
 0xe8a   : > { %v16895_v6 = vadd.f32 %v6734_v61, %v6650_v13 }
 0xe8b   : > { %v6564_v4 = vpop.permute.xlu1 %6563  ;;  %v6736_v63 = vpop.permute.xlu0 %6735 }
 0xe8c   : > { %v6651_v41 = vadd.f32 %v6564_v4, %v20720_v16  ;;  %v6945_v53 = vsel %vm575_vm8, %v16895_v6, -inf }
 0xe8d   : > { %6946 = vmax.xlane.f32.xlu1 %v6945_v53 }
 0xe8e   : > { %v16900_v52 = vadd.f32 %v6736_v63, %v6651_v41 }
 0xe90   : > { %v6948_v32 = vsel %vm575_vm8, %v16900_v52, -inf }
 0xe91   : > { %6949 = vmax.xlane.f32.xlu0 %v6948_v32 }
 0xec1   : > { %v6833_v15 = vpop.xlane.xlu0 %6832 }
 0xec2   : > { %vm6959_vm15 = vcmp.eq.f32.partialorder %v16610_v60, %v6833_v15 }
 0xec3   : > { %v7002_v31 = vsel %vm6959_vm15, %v16904_v10, 16 }
 0xec4   : > { %v16909_v7 = vsel %vm575_vm8, %v7002_v31, 2147483647 }
 0xec5   : > { %v6827_v25 = vpop.xlane.xlu0 %6826  ;;  %v7075_v42 = vshra.s32 %v16909_v7, 16 }
 0xec6   : > { %vm6957_vm1 = vcmp.eq.f32.partialorder %v16623_v23, %v6827_v25  ;;  %v6830_v48 = vpop.xlane.xlu1 %6829 }
 0xec7   : > { %v7000_v8 = vsel %vm6957_vm1, %v16904_v10, 16  ;;  %vm6958_vm3 = vcmp.eq.f32.partialorder %v16626_v0, %v6830_v48  ;;  %v16915_v61 = vcvt.s32.f32 %v7075_v42 }
 0xec8   : > { %v16918_v43 = vsel %vm575_vm8, %v7000_v8, 2147483647  ;;  %v7001_v60 = vsel %vm6958_vm3, %v16904_v10, 16 }
 0xec9   : > { %7078 = vmin.xlane.f32.xlu0 %v16915_v61  ;;  %v6836_v57 = vpop.xlane.xlu0 %6835  ;;  %v7045_v18 = vshra.s32 %v16918_v43, 16  ;;  %v16929_v21 = vsel %vm575_vm8, %v7001_v60, 2147483647 }
 0xeca   : > { %vm6960_vm4 = vcmp.eq.f32.partialorder %v16631_v9, %v6836_v57  ;;  %v6845_v23 = vpop.xlane.xlu1 %6844 }
 0xecb   : > { %v7003_v13 = vsel %vm6960_vm4, %v16904_v10, 16  ;;  %vm6963_vm0 = vcmp.eq.f32.partialorder %v16646_v26, %v6845_v23  ;;  %v16926_v0 = vcvt.s32.f32 %v7045_v18  ;;  %v7060_v26 = vshra.s32 %v16929_v21, 16 }
 0xecc   : > { %v16932_v4 = vsel %vm575_vm8, %v7003_v13, 2147483647  ;;  %v7006_v16 = vsel %vm6963_vm0, %v16904_v10, 16 }
 0xecd   : > { %7048 = vmin.xlane.f32.xlu0 %v16926_v0  ;;  %v6848_v41 = vpop.xlane.xlu0 %6847  ;;  %v7090_v9 = vshra.s32 %v16932_v4, 16  ;;  %v16942_v32 = vsel %vm575_vm8, %v7006_v16, 2147483647  ;;  %v16947_v31 = vcvt.s32.f32 %v7060_v26 }
 0xece   : > { %v6839_v53 = vpop.xlane.xlu1 %6838  ;;  %vm6964_vm5 = vcmp.eq.f32.partialorder %v16649_v45, %v6848_v41  ;;  %v7135_v25 = vshra.s32 %v16942_v32, 16 }
 0xecf   : > { %vm6961_vm2 = vcmp.eq.f32.partialorder %v16664_v2, %v6839_v53  ;;  %v16938_v63 = vcvt.s32.f32 %v7090_v9  ;;  %v7007_v42 = vsel %vm6964_vm5, %v16904_v10, 16 }
 0xed0   : > { %v7004_v28 = vsel %vm6961_vm2, %v16904_v10, 16  ;;  %v16956_v8 = vcvt.s32.f32 %v7135_v25  ;;  %v16960_v45 = vsel %vm575_vm8, %v7007_v42, 2147483647 }
 0xed1   : > { %7093 = vmin.xlane.f32.xlu0 %v16938_v63  ;;  %v6842_v15 = vpop.xlane.xlu0 %6841  ;;  %v16951_v2 = vsel %vm575_vm8, %v7004_v28, 2147483647  ;;  %v7150_v13 = vshra.s32 %v16960_v45, 16 }
 0xed2   : > { %v6857_v48 = vpop.xlane.xlu1 %6856  ;;  %vm6962_vm6 = vcmp.eq.f32.partialorder %v16667_v47, %v6842_v15  ;;  %v7105_v60 = vshra.s32 %v16951_v2, 16 }
 0xed3   : > { %v7005_v57 = vsel %vm6962_vm6, %v16904_v10, 16  ;;  %vm6967_vm7 = vcmp.eq.f32.partialorder %v16682_v34, %v6857_v48  ;;  %v16974_v9 = vcvt.s32.f32 %v7150_v13 }
 0xed4   : > { %v16965_v23 = vcvt.s32.f32 %v7105_v60  ;;  %v16969_v47 = vsel %vm575_vm8, %v7005_v57, 2147483647  ;;  %v7010_v16 = vsel %vm6967_vm7, %v16904_v10, 16 }
 0xed5   : > { %7063 = vmin.xlane.f32.xlu0 %v16947_v31  ;;  %v6860_v41 = vpop.xlane.xlu0 %6859  ;;  %v7120_v53 = vshra.s32 %v16969_v47, 16  ;;  %v16978_v34 = vsel %vm575_vm8, %v7010_v16, 2147483647 }
 0xed6   : > { %v6851_v18 = vpop.xlane.xlu1 %6850  ;;  %vm6968_vm11 = vcmp.eq.f32.partialorder %v16685_v51, %v6860_v41  ;;  %v7195_v25 = vshra.s32 %v16978_v34, 16 }
 0xed7   : > { %vm6965_vm10 = vcmp.eq.f32.partialorder %v16700_v46, %v6851_v18  ;;  %v16983_v15 = vcvt.s32.f32 %v7120_v53  ;;  %v7011_v42 = vsel %vm6968_vm11, %v16904_v10, 16 }
 0xed8   : > { %v7008_v26 = vsel %vm6965_vm10, %v16904_v10, 16  ;;  %v16992_v60 = vcvt.s32.f32 %v7195_v25  ;;  %v16996_v51 = vsel %vm575_vm8, %v7011_v42, 2147483647 }
 0xed9   : > { %7138 = vmin.xlane.f32.xlu0 %v16956_v8  ;;  %v6854_v28 = vpop.xlane.xlu0 %6853  ;;  %v16987_v46 = vsel %vm575_vm8, %v7008_v26, 2147483647  ;;  %v7210_v41 = vshra.s32 %v16996_v51, 16 }
 0xeda   : > { %v6869_v48 = vpop.xlane.xlu1 %6868  ;;  %vm6966_vm12 = vcmp.eq.f32.partialorder %v16703_v55, %v6854_v28  ;;  %v7165_v57 = vshra.s32 %v16987_v46, 16 }
 0xedb   : > { %v7009_v18 = vsel %vm6966_vm12, %v16904_v10, 16  ;;  %vm6971_vm13 = vcmp.eq.f32.partialorder %v16716_v33, %v6869_v48  ;;  %v17010_v28 = vcvt.s32.f32 %v7210_v41 }
 0xedc   : > { %v17001_v16 = vcvt.s32.f32 %v7165_v57  ;;  %v17005_v55 = vsel %vm575_vm8, %v7009_v18, 2147483647  ;;  %v7014_v53 = vsel %vm6971_vm13, %v16904_v10, 16 }
 0xedd   : > { %7108 = vmin.xlane.f32.xlu0 %v16965_v23  ;;  %v6872_v26 = vpop.xlane.xlu0 %6871  ;;  %20721 = vst [vmem:[#allocation185_spill] sm:$0xff] %v17010_v28  ;;  %v7180_v25 = vshra.s32 %v17005_v55, 16  ;;  %v17014_v33 = vsel %vm575_vm8, %v7014_v53, 2147483647 }
 0xede   : > { %v6863_v13 = vpop.xlane.xlu1 %6862  ;;  %vm6972_vm15 = vcmp.eq.f32.partialorder %v16719_v36, %v6872_v26  ;;  %v7255_v18 = vshra.s32 %v17014_v33, 16 }
 0xedf   : > { %vm6969_vm9 = vcmp.eq.f32.partialorder %v16732_v1, %v6863_v13  ;;  %v17019_v57 = vcvt.s32.f32 %v7180_v25  ;;  %v7015_v13 = vsel %vm6972_vm15, %v16904_v10, 16 }
 0xee0   : > { %v7012_v42 = vsel %vm6969_vm9, %v16904_v10, 16  ;;  %v17028_v53 = vcvt.s32.f32 %v7255_v18  ;;  %v17032_v36 = vsel %vm575_vm8, %v7015_v13, 2147483647 }
 0xee1   : > { %7153 = vmin.xlane.f32.xlu0 %v16974_v9  ;;  %v6866_v48 = vpop.xlane.xlu0 %6865  ;;  %20722 = vst [vmem:[#allocation163_spill] sm:$0xff] %v17019_v57  ;;  %v17023_v1 = vsel %vm575_vm8, %v7012_v42, 2147483647 }
 0xee2   : > { %v6881_v41 = vpop.xlane.xlu1 %6880  ;;  %vm6970_vm1 = vcmp.eq.f32.partialorder %v16735_v56, %v6866_v48  ;;  %20723 = vst [vmem:[#allocation219_spill] sm:$0xff] %v17028_v53 }
 0xee3   : > { %v7013_v26 = vsel %vm6970_vm1, %v16904_v10, 16  ;;  %vm6975_vm3 = vcmp.eq.f32.partialorder %v16748_v58, %v6881_v41 }
 0xee4   : > { %v17041_v56 = vsel %vm575_vm8, %v7013_v26, 2147483647  ;;  %v7018_v48 = vsel %vm6975_vm3, %v16904_v10, 16 }
 0xee5   : > { %7123 = vmin.xlane.f32.xlu0 %v16983_v15  ;;  %v6884_v18 = vpop.xlane.xlu0 %6883  ;;  %v17050_v58 = vsel %vm575_vm8, %v7018_v48, 2147483647 }
 0xee6   : > { %v6875_v25 = vpop.xlane.xlu1 %6874  ;;  %vm6976_vm0 = vcmp.eq.f32.partialorder %v16751_v3, %v6884_v18 }
 0xee7   : > { %vm6973_vm4 = vcmp.eq.f32.partialorder %v16764_v12, %v6875_v25 }
 0xee9   : > { %7198 = vmin.xlane.f32.xlu0 %v16992_v60  ;;  %v6878_v41 = vpop.xlane.xlu0 %6877 }
 0xeea   : > { %v6893_v25 = vpop.xlane.xlu1 %6892  ;;  %vm6974_vm2 = vcmp.eq.f32.partialorder %v16767_v27, %v6878_v41 }
 0xeeb   : > { %vm6979_vm5 = vcmp.eq.f32.partialorder %v16778_v20, %v6893_v25 }
 0xeed   : > { %7168 = vmin.xlane.f32.xlu0 %v17001_v16  ;;  %v6896_v41 = vpop.xlane.xlu0 %6895 }
 0xeee   : > { %v6887_v18 = vpop.xlane.xlu1 %6886  ;;  %vm6980_vm7 = vcmp.eq.f32.partialorder %v16781_v37, %v6896_v41 }
 0xeef   : > { %vm6977_vm6 = vcmp.eq.f32.partialorder %v16792_v39, %v6887_v18 }
 0xef1   : > { %7213 = vmin.xlane.f32.xlu0 %v17010_v28  ;;  %v7225_v28 = vshra.s32 %v17023_v1, 16  ;;  %v6890_v25 = vpop.xlane.xlu0 %6889 }
 0xef2   : > { %v6905_v18 = vpop.xlane.xlu1 %6904  ;;  %vm6978_vm10 = vcmp.eq.f32.partialorder %v16795_v5, %v6890_v25 }
 0xef3   : > { %v17037_v42 = vcvt.s32.f32 %v7225_v28  ;;  %v7016_v28 = vsel %vm6973_vm4, %v16904_v10, 16  ;;  %vm6983_vm11 = vcmp.eq.f32.partialorder %v16805_v62, %v6905_v18 }
 0xef4   : > { %v17059_v12 = vsel %vm575_vm8, %v7016_v28, 2147483647 }
 0xef5   : > { %7183 = vmin.xlane.f32.xlu0 %v17019_v57  ;;  %20724 = vst [vmem:[#allocation236_spill] sm:$0xff] %v17037_v42  ;;  %v7270_v57 = vshra.s32 %v17032_v36, 16  ;;  %v6908_v25 = vpop.xlane.xlu0 %6907 }
 0xef6   : > { %v6899_v41 = vpop.xlane.xlu1 %6898  ;;  %vm6984_vm13 = vcmp.eq.f32.partialorder %v16808_v49, %v6908_v25 }
 0xef7   : > { %v17046_v13 = vcvt.s32.f32 %v7270_v57  ;;  %v7019_v57 = vsel %vm6976_vm0, %v16904_v10, 16  ;;  %vm6981_vm12 = vcmp.eq.f32.partialorder %v16817_v19, %v6899_v41 }
 0xef8   : > { %v17068_v3 = vsel %vm575_vm8, %v7019_v57, 2147483647 }
 0xef9   : > { %7258 = vmin.xlane.f32.xlu0 %v17028_v53  ;;  %20725 = vst [vmem:[#allocation199_spill] sm:$0xff] %v17046_v13  ;;  %v7240_v53 = vshra.s32 %v17041_v56, 16  ;;  %v6902_v18 = vpop.xlane.xlu0 %6901 }
 0xefa   : > { %v6917_v41 = vpop.xlane.xlu1 %6916  ;;  %vm6982_vm9 = vcmp.eq.f32.partialorder %v16820_v17, %v6902_v18 }
 0xefb   : > { %v17055_v26 = vcvt.s32.f32 %v7240_v53  ;;  %v7017_v53 = vsel %vm6974_vm2, %v16904_v10, 16  ;;  %vm6987_vm15 = vcmp.eq.f32.partialorder %v16829_v22, %v6917_v41 }
 0xefc   : > { %v17077_v27 = vsel %vm575_vm8, %v7017_v53, 2147483647  ;;  %v7030_v18 = vsel %vm6987_vm15, %v16904_v10, 16 }
 0xefd   : > { %7228 = vmin.xlane.f32.xlu0 %v17037_v42  ;;  %20726 = vst [vmem:[#allocation245_spill] sm:$0xff] %v17055_v26  ;;  %v7315_v42 = vshra.s32 %v17050_v58, 16  ;;  %v17158_v22 = vsel %vm575_vm8, %v7030_v18, 2147483647 }
 0xefe   : > { %v6911_v25 = vpop.xlane.xlu1 %6910  ;;  %20738 = vst [vmem:[#allocation248_spill] sm:$0xff] %v17158_v22 }
 0xeff   : > { %v17064_v48 = vcvt.s32.f32 %v7315_v42  ;;  %v7022_v42 = vsel %vm6979_vm5, %v16904_v10, 16  ;;  %vm6985_vm1 = vcmp.eq.f32.partialorder %v16840_v11, %v6911_v25 }
 0xf00   : > { %v17086_v20 = vsel %vm575_vm8, %v7022_v42, 2147483647 }
 0xf01   : > { %7273 = vmin.xlane.f32.xlu0 %v17046_v13  ;;  %20727 = vst [vmem:[#allocation229_spill] sm:$0xff] %v17064_v48  ;;  %v7285_v13 = vshra.s32 %v17059_v12, 16 }
 0xf02   : > { %v6929_v25 = vpop.xlane.xlu1 %6928 }
 0xf03   : > { %v17073_v28 = vcvt.s32.f32 %v7285_v13  ;;  %v7020_v13 = vsel %vm6977_vm6, %v16904_v10, 16  ;;  %vm6991_vm0 = vcmp.eq.f32.partialorder %v16850_v50, %v6929_v25 }
 0xf04   : > { %v17095_v39 = vsel %vm575_vm8, %v7020_v13, 2147483647 }
 0xf05   : > { %7243 = vmin.xlane.f32.xlu0 %v17055_v26  ;;  %20728 = vst [vmem:[#allocation184_spill] sm:$0xff] %v17073_v28  ;;  %v7330_v26 = vshra.s32 %v17068_v3, 16 }
 0xf07   : > { %v17082_v57 = vcvt.s32.f32 %v7330_v26  ;;  %v7023_v26 = vsel %vm6980_vm7, %v16904_v10, 16 }
 0xf08   : > { %v17104_v37 = vsel %vm575_vm8, %v7023_v26, 2147483647 }
 0xf09   : > { %7318 = vmin.xlane.f32.xlu0 %v17064_v48  ;;  %20729 = vst [vmem:[#allocation209_spill] sm:$0xff] %v17082_v57  ;;  %v7300_v48 = vshra.s32 %v17077_v27, 16 }
 0xf0b   : > { %v17091_v53 = vcvt.s32.f32 %v7300_v48  ;;  %v7021_v48 = vsel %vm6978_vm10, %v16904_v10, 16 }
 0xf0c   : > { %v17113_v5 = vsel %vm575_vm8, %v7021_v48, 2147483647 }
 0xf0d   : > { %7288 = vmin.xlane.f32.xlu0 %v17073_v28  ;;  %20730 = vst [vmem:[#allocation224_spill] sm:$0xff] %v17091_v53  ;;  %v7375_v28 = vshra.s32 %v17086_v20, 16 }
 0xf0f   : > { %v17100_v42 = vcvt.s32.f32 %v7375_v28  ;;  %v7026_v28 = vsel %vm6983_vm11, %v16904_v10, 16 }
 0xf10   : > { %v17122_v62 = vsel %vm575_vm8, %v7026_v28, 2147483647 }
 0xf11   : > { %7333 = vmin.xlane.f32.xlu0 %v17082_v57  ;;  %20731 = vst [vmem:[#allocation356_spill] sm:$0xff] %v17100_v42  ;;  %v7345_v57 = vshra.s32 %v17095_v39, 16 }
 0xf13   : > { %v17109_v13 = vcvt.s32.f32 %v7345_v57  ;;  %v7024_v57 = vsel %vm6981_vm12, %v16904_v10, 16 }
 0xf14   : > { %v17131_v19 = vsel %vm575_vm8, %v7024_v57, 2147483647 }
 0xf15   : > { %7303 = vmin.xlane.f32.xlu0 %v17091_v53  ;;  %20732 = vst [vmem:[#allocation262_spill] sm:$0xff] %v17109_v13  ;;  %v7390_v53 = vshra.s32 %v17104_v37, 16 }
 0xf17   : > { %v17118_v26 = vcvt.s32.f32 %v7390_v53  ;;  %v7027_v53 = vsel %vm6984_vm13, %v16904_v10, 16 }
 0xf18   : > { %v17140_v49 = vsel %vm575_vm8, %v7027_v53, 2147483647 }
 0xf19   : > { %7378 = vmin.xlane.f32.xlu0 %v17100_v42  ;;  %20733 = vst [vmem:[#allocation221_spill] sm:$0xff] %v17118_v26  ;;  %v7360_v42 = vshra.s32 %v17113_v5, 16 }
 0xf1b   : > { %v17127_v48 = vcvt.s32.f32 %v7360_v42  ;;  %v7025_v42 = vsel %vm6982_vm9, %v16904_v10, 16 }
 0xf1c   : > { %v17149_v17 = vsel %vm575_vm8, %v7025_v42, 2147483647 }
 0xf1d   : > { %7348 = vmin.xlane.f32.xlu0 %v17109_v13  ;;  %20734 = vst [vmem:[#allocation247_spill] sm:$0xff] %v17127_v48  ;;  %v7435_v13 = vshra.s32 %v17122_v62, 16 }
 0xf1f   : > { %v17136_v28 = vcvt.s32.f32 %v7435_v13  ;;  %v6920_v13 = vpop.xlane.xlu0 %6919 }
 0xf20   : > { %vm6988_vm3 = vcmp.eq.f32.partialorder %v16831_v30, %v6920_v13 }
 0xf21   : > { %7393 = vmin.xlane.f32.xlu0 %v17118_v26  ;;  %20735 = vst [vmem:[#allocation227_spill] sm:$0xff] %v17136_v28  ;;  %v7405_v26 = vshra.s32 %v17131_v19, 16 }
 0xf23   : > { %v17145_v57 = vcvt.s32.f32 %v7405_v26  ;;  %v7028_v26 = vsel %vm6985_vm1, %v16904_v10, 16  ;;  %v6914_v41 = vpop.xlane.xlu0 %6913 }
 0xf24   : > { %v17167_v11 = vsel %vm575_vm8, %v7028_v26, 2147483647  ;;  %vm6986_vm4 = vcmp.eq.f32.partialorder %v16842_v38, %v6914_v41  ;;  %v6923_v26 = vpop.xlane.xlu1 %6922 }
 0xf25   : > { %7363 = vmin.xlane.f32.xlu0 %v17127_v48  ;;  %20736 = vst [vmem:[#allocation232_spill] sm:$0xff] %v17145_v57  ;;  %v7450_v48 = vshra.s32 %v17140_v49, 16  ;;  %v7029_v13 = vsel %vm6986_vm4, %v16904_v10, 16  ;;  %vm6989_vm2 = vcmp.eq.f32.partialorder %v16860_v35, %v6923_v26 }
 0xf26   : > { %v17185_v38 = vsel %vm575_vm8, %v7029_v13, 2147483647 }
 0xf27   : > { %v17154_v53 = vcvt.s32.f32 %v7450_v48  ;;  %v7031_v48 = vsel %vm6988_vm3, %v16904_v10, 16  ;;  %20741 = vst [vmem:[#allocation360_spill] sm:$0xff] %v17185_v38 }
 0xf28   : > { %v17176_v30 = vsel %vm575_vm8, %v7031_v48, 2147483647 }
 0xf29   : > { %7438 = vmin.xlane.f32.xlu0 %v17136_v28  ;;  %20737 = vst [vmem:[#allocation358_spill] sm:$0xff] %v17154_v53  ;;  %v7420_v28 = vshra.s32 %v17149_v17, 16 }
 0xf2b   : > { %v17163_v42 = vcvt.s32.f32 %v7420_v28  ;;  %v6932_v28 = vpop.xlane.xlu0 %6931 }
 0xf2c   : > { %vm6992_vm5 = vcmp.eq.f32.partialorder %v16852_v59, %v6932_v28 }
 0xf2d   : > { %7408 = vmin.xlane.f32.xlu0 %v17145_v57  ;;  %20739 = vst [vmem:[#allocation251_spill] sm:$0xff] %v17163_v42  ;;  %v7495_v57 = vshra.s32 %v17158_v22, 16  ;;  %v7035_v26 = vsel %vm6992_vm5, %v16904_v10, 16 }
 0xf2e   : > { %v17212_v59 = vsel %vm575_vm8, %v7035_v26, 2147483647  ;;  %v7074_v26 = vand.u32 65535, %v16909_v7 }
 0xf2f   : > { %v17172_v18 = vcvt.s32.f32 %v7495_v57  ;;  %v7034_v57 = vsel %vm6991_vm0, %v16904_v10, 16  ;;  %v6926_v41 = vpop.xlane.xlu0 %6925  ;;  %20745 = vst [vmem:[#allocation274_spill] sm:$0xff] %v17212_v59 }
 0xf30   : > { %v17194_v50 = vsel %vm575_vm8, %v7034_v57, 2147483647  ;;  %vm6990_vm6 = vcmp.eq.f32.partialorder %v16862_v14, %v6926_v41 }
 0xf31   : > { %7453 = vmin.xlane.f32.xlu0 %v17154_v53  ;;  %20740 = vst [vmem:[#allocation189_spill] sm:$0xff] %v17172_v18  ;;  %v7465_v53 = vshra.s32 %v17167_v11, 16  ;;  %20743 = vst [vmem:[#allocation208_spill] sm:$0xff] %v17194_v50  ;;  %v7555_v13 = vshra.s32 %v17194_v50, 16 }
 0xf33   : > { %v17181_v22 = vcvt.s32.f32 %v7465_v53  ;;  %v7032_v53 = vsel %vm6989_vm2, %v16904_v10, 16  ;;  %v17208_v57 = vcvt.s32.f32 %v7555_v13 }
 0xf34   : > { %v17203_v35 = vsel %vm575_vm8, %v7032_v53, 2147483647 }
 0xf35   : > { %7423 = vmin.xlane.f32.xlu0 %v17163_v42  ;;  %v7510_v42 = vshra.s32 %v17176_v30, 16 }
 0xf37   : > { %v17190_v48 = vcvt.s32.f32 %v7510_v42  ;;  %v6944_v42 = vpop.xlane.xlu0 %6943 }
 0xf38   : > { %vm6996_vm11 = vcmp.eq.f32.partialorder %v16872_v29, %v6944_v42  ;;  %v7089_v42 = vand.u32 65535, %v16932_v4 }
 0xf39   : > { %7498 = vmin.xlane.f32.xlu0 %v17172_v18  ;;  %20742 = vst [vmem:[#allocation11_spill] sm:$0xff] %v17190_v48  ;;  %v7480_v18 = vshra.s32 %v17185_v38, 16  ;;  %v6941_v38 = vpop.xlane.xlu1 %6940 }
 0xf3a   : > { %vm6995_vm7 = vcmp.eq.f32.partialorder %v16870_v54, %v6941_v38  ;;  %v7091_v4 = vcvt.s32.f32 %v7089_v42 }
 0xf3b   : > { %v17199_v25 = vcvt.s32.f32 %v7480_v18  ;;  %v7033_v18 = vsel %vm6990_vm6, %v16904_v10, 16  ;;  %v6938_v28 = vpop.xlane.xlu0 %6937  ;;  %v7038_v41 = vsel %vm6995_vm7, %v16904_v10, 16 }
 0xf3c   : > { %v17221_v14 = vsel %vm575_vm8, %v7033_v18, 2147483647  ;;  %vm6994_vm13 = vcmp.eq.f32.partialorder %v16881_v44, %v6938_v28  ;;  %v7059_v28 = vand.u32 65535, %v16929_v21 }
 0xf3d   : > { %7468 = vmin.xlane.f32.xlu0 %v17181_v22  ;;  %20744 = vst [vmem:[#allocation212_spill] sm:$0xff] %v17199_v25  ;;  %v6935_v53 = vpop.xlane.xlu1 %6934  ;;  %20747 = vst [vmem:[#allocation12_spill] sm:$0xff] %v17221_v14  ;;  %v7540_v38 = vshra.s32 %v17221_v14, 16 }
 0xf3e   : > { %vm6993_vm10 = vcmp.eq.f32.partialorder %v16879_v24, %v6935_v53  ;;  %v7076_v24 = vcvt.s32.f32 %v7074_v26  ;;  %v7044_v53 = vand.u32 65535, %v16918_v43  ;;  %v7061_v21 = vcvt.s32.f32 %v7059_v28 }
 0xf3f   : > { %v17226_v13 = vpop.xlane.xlu0 %6949  ;;  %v7036_v18 = vsel %vm6993_vm10, %v16904_v10, 16 }
 0xf40   : > { %v7046_v43 = vcvt.s32.f32 %v7044_v53  ;;  %vm6998_vm0 = vcmp.eq.f32.partialorder %v16900_v52, %v17226_v13 }
 0xf41   : > { %7513 = vmin.xlane.f32.xlu0 %v17190_v48  ;;  %v7525_v48 = vshra.s32 %v17203_v35, 16  ;;  %v6954_v14 = vpop.xlane.xlu1 %6953 }
 0xf42   : > { %vm6999_vm15 = vcmp.eq.f32.partialorder %v16888_v40, %v6954_v14  ;;  %v7134_v14 = vand.u32 65535, %v16942_v32 }
 0xf43   : > { %v17217_v50 = vcvt.s32.f32 %v7525_v48  ;;  %v17233_v48 = vsel %vm575_vm8, %v7038_v41, 2147483647 }
 0xf44   : > { %v7615_v7 = vshra.s32 %v17233_v48, 16  ;;  %v7136_v32 = vcvt.s32.f32 %v7134_v14 }
 0xf45   : > { %7483 = vmin.xlane.f32.xlu0 %v17199_v25  ;;  %20746 = vst [vmem:[#allocation364_spill] sm:$0xff] %v17217_v50  ;;  %v7570_v25 = vshra.s32 %v17212_v59, 16  ;;  %v17241_v59 = vcvt.s32.f32 %v7540_v38  ;;  %v6947_v53 = vpop.xlane.xlu1 %6946 }
 0xf46   : > { %vm6997_vm3 = vcmp.eq.f32.partialorder %v16895_v6, %v6947_v53 }
 0xf47   : > { %v17229_v54 = vcvt.s32.f32 %v7570_v25  ;;  %v17247_v25 = vsel %vm575_vm8, %v7036_v18, 2147483647 }
 0xf48   : > { %v7585_v26 = vshra.s32 %v17247_v25, 16 }
 0xf49   : > { %7558 = vmin.xlane.f32.xlu0 %v17208_v57  ;;  %20748 = vst [vmem:[#allocation366_spill] sm:$0xff] %v17229_v54 }
 0xf4d   : > { %7528 = vmin.xlane.f32.xlu0 %v17217_v50 }
 0xf51   : > { %7573 = vmin.xlane.f32.xlu0 %v17229_v54  ;;  %v7039_v54 = vsel %vm6996_vm11, %v16904_v10, 16 }
 0xf52   : > { %v17238_v50 = vpop.xlane.xlu0 %7078  ;;  %v17261_v38 = vsel %vm575_vm8, %v7039_v54, 2147483647 }
 0xf53   : > { %vm7080_vm12 = vcmp.eq.f32.partialorder %v16915_v61, %v17238_v50  ;;  %v17255_v61 = vcvt.s32.f32 %v7615_v7  ;;  %v7630_v54 = vshra.s32 %v17261_v38, 16 }
 0xf54   : > { %v7081_v41 = vsel %vm7080_vm12, %v7076_v24, inf  ;;  %v7037_v24 = vsel %vm6994_vm13, %v16904_v10, 16 }
 0xf55   : > { %7543 = vmin.xlane.f32.xlu0 %v17241_v59  ;;  %7082 = vmin.xlane.f32.xlu1 %v7081_v41  ;;  %v17275_v7 = vsel %vm575_vm8, %v7037_v24, 2147483647  ;;  %v17283_v42 = vcvt.s32.f32 %v7630_v54  ;;  %v7040_v24 = vsel %vm6997_vm3, %v16904_v10, 16 }
 0xf56   : > { %v17252_v29 = vpop.xlane.xlu0 %7048  ;;  %v17304_v53 = vsel %vm575_vm8, %v7040_v24, 2147483647  ;;  %v7119_v24 = vand.u32 65535, %v16969_v47 }
 0xf57   : > { %vm7050_vm9 = vcmp.eq.f32.partialorder %v16926_v0, %v17252_v29  ;;  %v17269_v0 = vcvt.s32.f32 %v7585_v26 }
 0xf58   : > { %v7051_v18 = vsel %vm7050_vm9, %v7046_v43, inf  ;;  %v7042_v43 = vsel %vm6999_vm15, %v16904_v10, 16 }
 0xf59   : > { %7618 = vmin.xlane.f32.xlu0 %v17255_v61  ;;  %7052 = vmin.xlane.f32.xlu1 %v7051_v18  ;;  %v17289_v26 = vsel %vm6951_vm14, %v7042_v43, 2147483647 }
 0xf5a   : > { %v17266_v44 = vpop.xlane.xlu0 %7093  ;;  %v7675_v28 = vshra.s32 %v17289_v26, 16 }
 0xf5b   : > { %vm7095_vm1 = vcmp.eq.f32.partialorder %v16938_v63, %v17266_v44  ;;  %v7600_v63 = vshra.s32 %v17275_v7, 16 }
 0xf5c   : > { %v7096_v41 = vsel %vm7095_vm1, %v7091_v4, inf  ;;  %v7104_v4 = vand.u32 65535, %v16951_v2  ;;  %v7149_v2 = vand.u32 65535, %v16960_v45  ;;  %v17311_v43 = vcvt.s32.f32 %v7675_v28 }
 0xf5d   : > { %7588 = vmin.xlane.f32.xlu0 %v17269_v0  ;;  %7097 = vmin.xlane.f32.xlu1 %v7096_v41  ;;  %v7041_v41 = vsel %vm6998_vm0, %v16904_v10, 16  ;;  %v7121_v28 = vcvt.s32.f32 %v7119_v24 }
 0xf5e   : > { %v17280_v40 = vpop.xlane.xlu0 %7063  ;;  %v7106_v13 = vcvt.s32.f32 %v7104_v4 }
 0xf5f   : > { %vm7065_vm4 = vcmp.eq.f32.partialorder %v16947_v31, %v17280_v40  ;;  %v17298_v31 = vcvt.s32.f32 %v7600_v63 }
 0xf60   : > { %v7066_v18 = vsel %vm7065_vm4, %v7061_v21, inf  ;;  %v17317_v21 = vsel %vm575_vm8, %v7041_v41, 2147483647 }
 0xf61   : > { %7633 = vmin.xlane.f32.xlu0 %v17283_v42  ;;  %7067 = vmin.xlane.f32.xlu1 %v7066_v18  ;;  %v7151_v18 = vcvt.s32.f32 %v7149_v2  ;;  %v7164_v2 = vand.u32 65535, %v16987_v46  ;;  %v7179_v46 = vand.u32 65535, %v17005_v55  ;;  %v7224_v55 = vand.u32 65535, %v17023_v1 }
 0xf62   : > { %v17295_v6 = vpop.xlane.xlu0 %7138  ;;  %v7239_v1 = vand.u32 65535, %v17041_v56  ;;  %v7284_v56 = vand.u32 65535, %v17059_v12  ;;  %v7299_v12 = vand.u32 65535, %v17077_v27  ;;  %v7344_v27 = vand.u32 65535, %v17095_v39 }
 0xf63   : > { %vm7140_vm2 = vcmp.eq.f32.partialorder %v16956_v8, %v17295_v6  ;;  %v7645_v8 = vshra.s32 %v17304_v53, 16  ;;  %v7359_v39 = vand.u32 65535, %v17113_v5  ;;  %v7404_v5 = vand.u32 65535, %v17131_v19 }
 0xf64   : > { %v7141_v54 = vsel %vm7140_vm2, %v7136_v32, inf  ;;  %v7419_v19 = vand.u32 65535, %v17149_v17  ;;  %v7464_v17 = vand.u32 65535, %v17167_v11 }
 0xf65   : > { %7603 = vmin.xlane.f32.xlu0 %v17298_v31  ;;  %7142 = vmin.xlane.f32.xlu1 %v7141_v54  ;;  %v17323_v45 = vcvt.s32.f32 %v7645_v8  ;;  %v7194_v54 = vand.u32 65535, %v16978_v34 }
 0xf66   : > { %v17308_v52 = vpop.xlane.xlu0 %7108 }
 0xf67   : > { %vm7110_vm5 = vcmp.eq.f32.partialorder %v16965_v23, %v17308_v52  ;;  %v7660_v23 = vshra.s32 %v17317_v21, 16 }
 0xf68   : > { %v7111_v14 = vsel %vm7110_vm5, %v7106_v13, inf  ;;  %v7196_v13 = vcvt.s32.f32 %v7194_v54  ;;  %v7181_v54 = vcvt.s32.f32 %v7179_v46 }
 0xf69   : > { %7678 = vmin.xlane.f32.xlu0 %v17311_v43  ;;  %7112 = vmin.xlane.f32.xlu1 %v7111_v14  ;;  %v17332_v41 = vcvt.s32.f32 %v7660_v23  ;;  %v7166_v14 = vcvt.s32.f32 %v7164_v2 }
 0xf6a   : > { %v17320_v63 = vpop.xlane.xlu0 %7153 }
 0xf6b   : > { %vm7155_vm6 = vcmp.eq.f32.partialorder %v16974_v9, %v17320_v63 }
 0xf6c   : > { %v7156_v32 = vsel %vm7155_vm6, %v7151_v18, inf  ;;  %v7209_v18 = vand.u32 65535, %v16996_v51  ;;  %v7254_v51 = vand.u32 65535, %v17014_v33  ;;  %v7269_v33 = vand.u32 65535, %v17032_v36 }
 0xf6d   : > { %7648 = vmin.xlane.f32.xlu0 %v17323_v45  ;;  %7157 = vmin.xlane.f32.xlu1 %v7156_v32  ;;  %v20749_v32 = vld [vmem:[#allocation185_spill] sm:$0xff]  ;;  %v7314_v36 = vand.u32 65535, %v17050_v58  ;;  %v7329_v58 = vand.u32 65535, %v17068_v3  ;;  %v7374_v3 = vand.u32 65535, %v17086_v20  ;;  %v7389_v20 = vand.u32 65535, %v17104_v37 }
 0xf6e   : > { %v17329_v4 = vpop.xlane.xlu0 %7123  ;;  %v7211_v23 = vcvt.s32.f32 %v7209_v18  ;;  %v7256_v2 = vcvt.s32.f32 %v7254_v51  ;;  %v7434_v37 = vand.u32 65535, %v17122_v62  ;;  %v7449_v62 = vand.u32 65535, %v17140_v49 }
 0xf6f   : > { %vm7125_vm7 = vcmp.eq.f32.partialorder %v16983_v15, %v17329_v4 }
 0xf70   : > { %v7126_v47 = vsel %vm7125_vm7, %v7121_v28, inf }
 0xf71   : > { %7663 = vmin.xlane.f32.xlu0 %v17332_v41  ;;  %7127 = vmin.xlane.f32.xlu1 %v7126_v47  ;;  %v20750_v47 = vld [vmem:[#allocation163_spill] sm:$0xff] }
 0xf72   : > { %v17337_v9 = vpop.xlane.xlu0 %7198 }
 0xf73   : > { %vm7200_vm10 = vcmp.eq.f32.partialorder %v16992_v60, %v17337_v9 }
 0xf74   : > { %v7201_v8 = vsel %vm7200_vm10, %v7196_v13, inf }
 0xf75   : > { %7202 = vmin.xlane.f32.xlu1 %v7201_v8  ;;  %v20751_v8 = vld [vmem:[#allocation219_spill] sm:$0xff] }
 0xf76   : > { %v17342_v34 = vpop.xlane.xlu0 %7168 }
 0xf77   : > { %vm7170_vm11 = vcmp.eq.f32.partialorder %v17001_v16, %v17342_v34 }
 0xf78   : > { %v7171_v15 = vsel %vm7170_vm11, %v7166_v14, inf }
 0xf79   : > { %7172 = vmin.xlane.f32.xlu1 %v7171_v15  ;;  %v7226_v15 = vcvt.s32.f32 %v7224_v55 }
 0xf7a   : > { %v17347_v24 = vpop.xlane.xlu0 %7213 }
 0xf7b   : > { %vm7215_vm12 = vcmp.eq.f32.partialorder %v20749_v32, %v17347_v24 }
 0xf7c   : > { %v7216_v60 = vsel %vm7215_vm12, %v7211_v23, inf  ;;  %v20752_v23 = vld [vmem:[#allocation236_spill] sm:$0xff] }
 0xf7d   : > { %7217 = vmin.xlane.f32.xlu1 %v7216_v60  ;;  %v7271_v60 = vcvt.s32.f32 %v7269_v33 }
 0xf7e   : > { %v17352_v28 = vpop.xlane.xlu0 %7183 }
 0xf7f   : > { %vm7185_vm13 = vcmp.eq.f32.partialorder %v20750_v47, %v17352_v28 }
 0xf80   : > { %v7186_v16 = vsel %vm7185_vm13, %v7181_v54, inf  ;;  %v20753_v54 = vld [vmem:[#allocation199_spill] sm:$0xff] }
 0xf81   : > { %7187 = vmin.xlane.f32.xlu1 %v7186_v16  ;;  %v7241_v16 = vcvt.s32.f32 %v7239_v1 }
 0xf82   : > { %v17357_v13 = vpop.xlane.xlu0 %7258 }
 0xf83   : > { %vm7260_vm9 = vcmp.eq.f32.partialorder %v20751_v8, %v17357_v13 }
 0xf84   : > { %v7261_v14 = vsel %vm7260_vm9, %v7256_v2, inf  ;;  %v20754_v2 = vld [vmem:[#allocation245_spill] sm:$0xff] }
 0xf85   : > { %7262 = vmin.xlane.f32.xlu1 %v7261_v14  ;;  %v7316_v14 = vcvt.s32.f32 %v7314_v36 }
 0xf86   : > { %v17362_v18 = vpop.xlane.xlu0 %7228 }
 0xf87   : > { %vm7230_vm15 = vcmp.eq.f32.partialorder %v20752_v23, %v17362_v18 }
 0xf88   : > { %v7231_v46 = vsel %vm7230_vm15, %v7226_v15, inf  ;;  %v20755_v15 = vld [vmem:[#allocation229_spill] sm:$0xff] }
 0xf89   : > { %7232 = vmin.xlane.f32.xlu1 %v7231_v46  ;;  %v7286_v46 = vcvt.s32.f32 %v7284_v56 }
 0xf8a   : > { %v17367_v32 = vpop.xlane.xlu0 %7273 }
 0xf8b   : > { %vm7275_vm1 = vcmp.eq.f32.partialorder %v20753_v54, %v17367_v32 }
 0xf8c   : > { %v7276_v51 = vsel %vm7275_vm1, %v7271_v60, inf  ;;  %v20756_v60 = vld [vmem:[#allocation184_spill] sm:$0xff] }
 0xf8d   : > { %7277 = vmin.xlane.f32.xlu1 %v7276_v51  ;;  %v7331_v51 = vcvt.s32.f32 %v7329_v58 }
 0xf8e   : > { %v17372_v47 = vpop.xlane.xlu0 %7243 }
 0xf8f   : > { %vm7245_vm3 = vcmp.eq.f32.partialorder %v20754_v2, %v17372_v47 }
 0xf90   : > { %v7246_v55 = vsel %vm7245_vm3, %v7241_v16, inf  ;;  %v20757_v16 = vld [vmem:[#allocation209_spill] sm:$0xff] }
 0xf91   : > { %7247 = vmin.xlane.f32.xlu1 %v7246_v55  ;;  %v7301_v55 = vcvt.s32.f32 %v7299_v12 }
 0xf92   : > { %v17377_v8 = vpop.xlane.xlu0 %7318 }
 0xf93   : > { %vm7320_vm4 = vcmp.eq.f32.partialorder %v20755_v15, %v17377_v8 }
 0xf94   : > { %v7321_v33 = vsel %vm7320_vm4, %v7316_v14, inf  ;;  %v20758_v14 = vld [vmem:[#allocation224_spill] sm:$0xff] }
 0xf95   : > { %7322 = vmin.xlane.f32.xlu1 %v7321_v33  ;;  %v7376_v33 = vcvt.s32.f32 %v7374_v3 }
 0xf96   : > { %v17382_v23 = vpop.xlane.xlu0 %7288 }
 0xf97   : > { %vm7290_vm0 = vcmp.eq.f32.partialorder %v20756_v60, %v17382_v23 }
 0xf98   : > { %v7291_v1 = vsel %vm7290_vm0, %v7286_v46, inf  ;;  %v20759_v46 = vld [vmem:[#allocation356_spill] sm:$0xff] }
 0xf99   : > { %7292 = vmin.xlane.f32.xlu1 %v7291_v1  ;;  %v7346_v1 = vcvt.s32.f32 %v7344_v27 }
 0xf9a   : > { %v17387_v54 = vpop.xlane.xlu0 %7333 }
 0xf9b   : > { %vm7335_vm2 = vcmp.eq.f32.partialorder %v20757_v16, %v17387_v54 }
 0xf9c   : > { %v7336_v36 = vsel %vm7335_vm2, %v7331_v51, inf  ;;  %v20760_v51 = vld [vmem:[#allocation262_spill] sm:$0xff] }
 0xf9d   : > { %7337 = vmin.xlane.f32.xlu1 %v7336_v36  ;;  %v7391_v36 = vcvt.s32.f32 %v7389_v20 }
 0xf9e   : > { %v17392_v2 = vpop.xlane.xlu0 %7303 }
 0xf9f   : > { %vm7305_vm5 = vcmp.eq.f32.partialorder %v20758_v14, %v17392_v2 }
 0xfa0   : > { %v7306_v56 = vsel %vm7305_vm5, %v7301_v55, inf  ;;  %v20761_v55 = vld [vmem:[#allocation221_spill] sm:$0xff] }
 0xfa1   : > { %7307 = vmin.xlane.f32.xlu1 %v7306_v56  ;;  %v7361_v56 = vcvt.s32.f32 %v7359_v39 }
 0xfa2   : > { %v17397_v15 = vpop.xlane.xlu0 %7378 }
 0xfa3   : > { %vm7380_vm6 = vcmp.eq.f32.partialorder %v20759_v46, %v17397_v15 }
 0xfa4   : > { %v7381_v58 = vsel %vm7380_vm6, %v7376_v33, inf  ;;  %v20762_v33 = vld [vmem:[#allocation247_spill] sm:$0xff] }
 0xfa5   : > { %7382 = vmin.xlane.f32.xlu1 %v7381_v58  ;;  %v7436_v58 = vcvt.s32.f32 %v7434_v37 }
 0xfa6   : > { %v17402_v60 = vpop.xlane.xlu0 %7348 }
 0xfa7   : > { %vm7350_vm7 = vcmp.eq.f32.partialorder %v20760_v51, %v17402_v60 }
 0xfa8   : > { %v7351_v12 = vsel %vm7350_vm7, %v7346_v1, inf  ;;  %v20763_v1 = vld [vmem:[#allocation227_spill] sm:$0xff] }
 0xfa9   : > { %7352 = vmin.xlane.f32.xlu1 %v7351_v12  ;;  %v7406_v12 = vcvt.s32.f32 %v7404_v5  ;;  %v20767_v5 = vld [vmem:[#allocation251_spill] sm:$0xff] }
 0xfaa   : > { %v17407_v16 = vpop.xlane.xlu0 %7393 }
 0xfab   : > { %vm7395_vm10 = vcmp.eq.f32.partialorder %v20761_v55, %v17407_v16 }
 0xfac   : > { %v7396_v3 = vsel %vm7395_vm10, %v7391_v36, inf  ;;  %v20764_v36 = vld [vmem:[#allocation232_spill] sm:$0xff] }
 0xfad   : > { %7397 = vmin.xlane.f32.xlu1 %v7396_v3  ;;  %v7451_v3 = vcvt.s32.f32 %v7449_v62  ;;  %v20768_v62 = vld [vmem:[#allocation189_spill] sm:$0xff] }
 0xfae   : > { %v17412_v14 = vpop.xlane.xlu0 %7363 }
 0xfaf   : > { %vm7365_vm11 = vcmp.eq.f32.partialorder %v20762_v33, %v17412_v14 }
 0xfb0   : > { %v7366_v27 = vsel %vm7365_vm11, %v7361_v56, inf  ;;  %v20765_v56 = vld [vmem:[#allocation358_spill] sm:$0xff] }
 0xfb1   : > { %7367 = vmin.xlane.f32.xlu1 %v7366_v27  ;;  %v7421_v27 = vcvt.s32.f32 %v7419_v19  ;;  %v7509_v19 = vand.u32 65535, %v17176_v30 }
 0xfb2   : > { %v17417_v46 = vpop.xlane.xlu0 %7438 }
 0xfb3   : > { %vm7440_vm12 = vcmp.eq.f32.partialorder %v20763_v1, %v17417_v46 }
 0xfb4   : > { %v7441_v20 = vsel %vm7440_vm12, %v7436_v58, inf  ;;  %v20766_v58 = vld [vmem:[#allocation248_spill] sm:$0xff] }
 0xfb5   : > { %7442 = vmin.xlane.f32.xlu1 %v7441_v20  ;;  %v7494_v49 = vand.u32 65535, %v20766_v58  ;;  %v20770_v58 = vld [vmem:[#allocation360_spill] sm:$0xff] }
 0xfb6   : > { %v17422_v51 = vpop.xlane.xlu0 %7408  ;;  %v7479_v11 = vand.u32 65535, %v20770_v58 }
 0xfb7   : > { %vm7410_vm13 = vcmp.eq.f32.partialorder %v20764_v36, %v17422_v51 }
 0xfb8   : > { %v7411_v39 = vsel %vm7410_vm13, %v7406_v12, inf  ;;  %v7496_v12 = vcvt.s32.f32 %v7494_v49  ;;  %v20771_v49 = vld [vmem:[#allocation11_spill] sm:$0xff] }
 0xfb9   : > { %7412 = vmin.xlane.f32.xlu1 %v7411_v39 }
 0xfba   : > { %v17427_v55 = vpop.xlane.xlu0 %7453 }
 0xfbb   : > { %vm7455_vm9 = vcmp.eq.f32.partialorder %v20765_v56, %v17427_v55 }
 0xfbc   : > { %v7456_v37 = vsel %vm7455_vm9, %v7451_v3, inf  ;;  %v7466_v3 = vcvt.s32.f32 %v7464_v17  ;;  %v20772_v17 = vld [vmem:[#allocation208_spill] sm:$0xff] }
 0xfbd   : > { %7457 = vmin.xlane.f32.xlu1 %v7456_v37  ;;  %v7554_v30 = vand.u32 65535, %v20772_v17 }
 0xfbe   : > { %v17432_v33 = vpop.xlane.xlu0 %7423 }
 0xfbf   : > { %vm7425_vm15 = vcmp.eq.f32.partialorder %v20767_v5, %v17432_v33 }
 0xfc0   : > { %v7426_v1 = vsel %vm7425_vm15, %v7421_v27, inf  ;;  %v7511_v27 = vcvt.s32.f32 %v7509_v19  ;;  %v7524_v19 = vand.u32 65535, %v17203_v35 }
 0xfc1   : > { %7427 = vmin.xlane.f32.xlu1 %v7426_v1 }
 0xfc2   : > { %v17437_v20 = vpop.xlane.xlu0 %7498  ;;  %v7526_v58 = vcvt.s32.f32 %v7524_v19 }
 0xfc3   : > { %vm7500_vm1 = vcmp.eq.f32.partialorder %v20768_v62, %v17437_v20  ;;  %v20773_v62 = vld [vmem:[#allocation212_spill] sm:$0xff] }
 0xfc4   : > { %v7501_v36 = vsel %vm7500_vm1, %v7496_v12, inf  ;;  %v7481_v12 = vcvt.s32.f32 %v7479_v11  ;;  %v20774_v11 = vld [vmem:[#allocation274_spill] sm:$0xff] }
 0xfc5   : > { %7502 = vmin.xlane.f32.xlu1 %v7501_v36 }
 0xfc6   : > { %v17442_v39 = vpop.xlane.xlu0 %7468 }
 0xfc7   : > { %vm7470_vm3 = vcmp.eq.f32.partialorder %v17181_v22, %v17442_v39 }
 0xfc8   : > { %v7471_v56 = vsel %vm7470_vm3, %v7466_v3, inf  ;;  %v7556_v3 = vcvt.s32.f32 %v7554_v30 }
 0xfc9   : > { %7472 = vmin.xlane.f32.xlu1 %v7471_v56 }
 0xfca   : > { %v17447_v37 = vpop.xlane.xlu0 %7513 }
 0xfcb   : > { %20769 = vst [vmem:[#allocation13_spill] sm:$0xff] %v17447_v37  ;;  %vm7515_vm4 = vcmp.eq.f32.partialorder %v20771_v49, %v17447_v37  ;;  %v7569_v49 = vand.u32 65535, %v20774_v11 }
 0xfcc   : > { %v7516_v5 = vsel %vm7515_vm4, %v7511_v27, inf }
 0xfcd   : > { %7517 = vmin.xlane.f32.xlu1 %v7516_v5  ;;  %v20775_v5 = vld [vmem:[#allocation364_spill] sm:$0xff]  ;;  %v7571_v30 = vcvt.s32.f32 %v7569_v49 }
 0xfce   : > { %v17452_v1 = vpop.xlane.xlu0 %7483 }
 0xfcf   : > { %vm7485_vm0 = vcmp.eq.f32.partialorder %v20773_v62, %v17452_v1  ;;  %v20776_v62 = vld [vmem:[#allocation12_spill] sm:$0xff] }
 0xfd0   : > { %v7486_v22 = vsel %vm7485_vm0, %v7481_v12, inf  ;;  %v7539_v35 = vand.u32 65535, %v20776_v62 }
 0xfd1   : > { %7487 = vmin.xlane.f32.xlu1 %v7486_v22  ;;  %v7085_v22 = vcvt.f32.s32 %v17238_v50 }
 0xfd2   : > { %v17457_v36 = vpop.xlane.xlu0 %7558  ;;  %v7541_v11 = vcvt.s32.f32 %v7539_v35 }
 0xfd3   : > { %vm7560_vm2 = vcmp.eq.f32.partialorder %v17208_v57, %v17457_v36  ;;  %v20777_v57 = vld [vmem:[#allocation366_spill] sm:$0xff] }
 0xfd4   : > { %v7561_v56 = vsel %vm7560_vm2, %v7556_v3, inf }
 0xfd5   : > { %7562 = vmin.xlane.f32.xlu1 %v7561_v56 }
 0xfd6   : > { %v17462_v27 = vpop.xlane.xlu0 %7528 }
 0xfd7   : > { %vm7530_vm5 = vcmp.eq.f32.partialorder %v20775_v5, %v17462_v27  ;;  %v7614_v5 = vand.u32 65535, %v17233_v48  ;;  %v20778_v48 = vmov 0.0  }
 0xfd8   : > { %v7531_v12 = vsel %vm7530_vm5, %v7526_v58, inf  ;;  %v7086_v58 = vshll.u32 %v7085_v22, 16 }
 0xfd9   : > { %7532 = vmin.xlane.f32.xlu1 %v7531_v12  ;;  %v7616_v37 = vcvt.s32.f32 %v7614_v5 }
 0xfda   : > { %v17467_v17 = vpop.xlane.xlu0 %7573 }
 0xfdb   : > { %vm7575_vm6 = vcmp.eq.f32.partialorder %v20777_v57, %v17467_v17 }
 0xfdc   : > { %v7576_v3 = vsel %vm7575_vm6, %v7571_v30, inf  ;;  %v7584_v30 = vand.u32 65535, %v17247_v25 }
 0xfdd   : > { %7577 = vmin.xlane.f32.xlu1 %v7576_v3  ;;  %v20779_v3 = vld [vmem:[#allocation311_spill] sm:$0xff] }
 0xfde   : > { %v7083_v19 = vpop.xlane.xlu1 %7082  ;;  %v17473_v56 = vpop.xlane.xlu0 %7543 }
 0xfdf   : > { %v7084_v12 = vcvt.f32.s32 %v7083_v19  ;;  %vm7545_vm7 = vcmp.eq.f32.partialorder %v17241_v59, %v17473_v56 }
 0xfe0   : > { %v7546_v49 = vsel %vm7545_vm7, %v7541_v11, inf  ;;  %v7629_v11 = vand.u32 65535, %v17261_v38  ;;  %v7100_v38 = vcvt.f32.s32 %v17266_v44  ;;  %v7644_v44 = vand.u32 65535, %v17304_v53 }
 0xfe1   : > { %v7087_v62 = vadd.s32 %v7086_v58, %v7084_v12  ;;  %7547 = vmin.xlane.f32.xlu1 %v7546_v49  ;;  %v7586_v58 = vcvt.s32.f32 %v7584_v30  ;;  %v7599_v12 = vand.u32 65535, %v17275_v7 }
 0xfe2   : > { %v17478_v50 = vpop.xlane.xlu0 %7618  ;;  %v7053_v57 = vpop.xlane.xlu1 %7052 }
 0xfe3   : > { %vm7690_vm10 = vcmp.eq.s32.totalorder %v16904_v10, %v7087_v62  ;;  %vm7620_vm11 = vcmp.eq.f32.partialorder %v17255_v61, %v17478_v50 }
 0xfe4   : > { %v7621_v35 = vsel %vm7620_vm11, %v7616_v37, inf  ;;  %v9368_v22 = vsel %vm7690_vm10, 1.0, %v20778_v48  ;;  %v7631_v37 = vcvt.s32.f32 %v7629_v11  ;;  %v7101_v11 = vshll.u32 %v7100_v38, 16 }
 0xfe5   : > { %7622 = vmin.xlane.f32.xlu1 %v7621_v35  ;;  %v7819_v59 = vmul.f32 %v9368_v22, %v20779_v3 }
 0xfe6   : > { %v17486_v19 = vpop.xlane.xlu0 %7588  ;;  %v7098_v49 = vpop.xlane.xlu1 %7097 }
 0xfe7   : > { %v7866_v5 = vsel %vm575_vm8, %v7819_v59, 0.0  ;;  %vm7590_vm12 = vcmp.eq.f32.partialorder %v17269_v0, %v17486_v19  ;;  %v7099_v35 = vcvt.f32.s32 %v7098_v49  ;;  %v7601_v59 = vcvt.s32.f32 %v7599_v12 }
 0xfe8   : > { %7867 = vadd.xlane.f32.xlu0 %v7866_v5  ;;  %v7591_v61 = vsel %vm7590_vm12, %v7586_v58, inf  ;;  %v7674_v0 = vand.u32 65535, %v17289_v26 }
 0xfe9   : > { %7592 = vmin.xlane.f32.xlu1 %v7591_v61  ;;  %v7102_v7 = vadd.s32 %v7101_v11, %v7099_v35 }
 0xfea   : > { %v17492_v25 = vpop.xlane.xlu0 %7633  ;;  %v7068_v12 = vpop.xlane.xlu1 %7067 }
 0xfeb   : > { %vm7635_vm13 = vcmp.eq.f32.partialorder %v17283_v42, %v17492_v25  ;;  %v7676_v42 = vcvt.s32.f32 %v7674_v0  ;;  %vm7691_vm1 = vcmp.eq.s32.totalorder %v16904_v10, %v7102_v7  ;;  %v7069_v0 = vcvt.f32.s32 %v7068_v12 }
 0xfec   : > { %v7636_v62 = vsel %vm7635_vm13, %v7631_v37, inf  ;;  %v7646_v37 = vcvt.s32.f32 %v7644_v44  ;;  %v17515_v38 = vsel %vm7691_vm1, 1.0, %v20778_v48 }
 0xfed   : > { %7637 = vmin.xlane.f32.xlu1 %v7636_v62  ;;  %v9918_v35 = vpack.i.bf16 %v17515_v38, %v9368_v22 }
 0xfee   : > { %v17498_v30 = vpop.xlane.xlu0 %7603 }
 0xfef   : > { %vm7605_vm9 = vcmp.eq.f32.partialorder %v17298_v31, %v17498_v30  ;;  %v7659_v31 = vand.u32 65535, %v17317_v21  ;;  %v7070_v21 = vcvt.f32.s32 %v17280_v40 }
 0xff0   : > { %v7606_v5 = vsel %vm7605_vm9, %v7601_v59, inf  ;;  %v7143_v59 = vpop.xlane.xlu1 %7142 }
 0xff1   : > { %7607 = vmin.xlane.f32.xlu1 %v7606_v5  ;;  %v7071_v11 = vshll.u32 %v7070_v21, 16  ;;  %v7054_v5 = vcvt.f32.s32 %v7053_v57  ;;  %v7145_v57 = vcvt.f32.s32 %v17295_v6  ;;  %v7175_v6 = vcvt.f32.s32 %v17342_v34 }
 0xff2   : > { %v17503_v58 = vpop.xlane.xlu0 %7678 }
 0xff3   : > { %vm7680_vm15 = vcmp.eq.f32.partialorder %v17311_v43, %v17503_v58  ;;  %v7661_v43 = vcvt.s32.f32 %v7659_v31  ;;  %v7144_v31 = vcvt.f32.s32 %v7143_v59  ;;  %v7146_v12 = vshll.u32 %v7145_v57, 16  ;;  %v20780_v59 = vld [vmem:[#allocation327_spill] sm:$0xff] }
 0xff4   : > { %v7681_v61 = vsel %vm7680_vm15, %v7676_v42, inf  ;;  %v7072_v42 = vadd.s32 %v7071_v11, %v7069_v0  ;;  %v7113_v44 = vpop.xlane.xlu1 %7112 }
 0xff5   : > { %7682 = vmin.xlane.f32.xlu1 %v7681_v61 }
 0xff6   : > { %v17509_v26 = vpop.xlane.xlu0 %7648  ;;  %vm7689_vm0 = vcmp.eq.s32.totalorder %v16904_v10, %v7072_v42 }
 0xff7   : > { %vm7650_vm3 = vcmp.eq.f32.partialorder %v17323_v45, %v17509_v26  ;;  %v7055_v45 = vcvt.f32.s32 %v17252_v29  ;;  %v9367_v22 = vsel %vm7689_vm0, 1.0, %v20778_v48 }
 0xff8   : > { %v7651_v49 = vsel %vm7650_vm3, %v7646_v37, inf  ;;  %v17528_v40 = vpop.xlane.xlu1 %7157 }
 0xff9   : > { %7652 = vmin.xlane.f32.xlu1 %v7651_v49  ;;  %v7056_v7 = vshll.u32 %v7055_v45, 16  ;;  %v7115_v49 = vcvt.f32.s32 %v17308_v52  ;;  %v7205_v45 = vcvt.f32.s32 %v17337_v9  ;;  %v20781_v9 = vld [vmem:[#allocation324_spill] sm:$0xff] }
 0xffa   : > { %v17517_v53 = vpop.xlane.xlu0 %7663 }
 0xffb   : > { %vm7665_vm4 = vcmp.eq.f32.partialorder %v17332_v41, %v17517_v53  ;;  %v7057_v41 = vadd.s32 %v7056_v7, %v7054_v5  ;;  %v7116_v21 = vshll.u32 %v7115_v49, 16  ;;  %v7206_v7 = vshll.u32 %v7205_v45, 16 }
 0xffc   : > { %v7666_v62 = vsel %vm7665_vm4, %v7661_v43, inf  ;;  %v17532_v37 = vpop.xlane.xlu1 %7127 }
 0xffd   : > { %7667 = vmin.xlane.f32.xlu1 %v7666_v62  ;;  %vm7688_vm2 = vcmp.eq.s32.totalorder %v16904_v10, %v7057_v41  ;;  %v7147_v62 = vadd.s32 %v7146_v12, %v7144_v31 }
 0xffe   : > { %9919 = vrot.lane.b32.xlu0 %v9918_v35, %s10384_s8  ;;  %v9366_v61 = vsel %vm7688_vm2, 1.0, %v20778_v48 }
 0xfff   : > { %v9928_v29 = vpack.i.bf16 %v9367_v22, %v9366_v61  ;;  %vm7694_vm5 = vcmp.eq.s32.totalorder %v16904_v10, %v7147_v62  ;;  %v7817_v42 = vmul.f32 %v9366_v61, %v20780_v59  ;;  %v20782_v61 = vld [vmem:[#allocation330_spill] sm:$0xff] }
0x1000   : > { %v7203_v43 = vpop.xlane.xlu1 %7202  ;;  %v9372_v41 = vsel %vm7694_vm5, 1.0, %v20778_v48 }
0x1001   : > { %v7204_v11 = vcvt.f32.s32 %v7203_v43  ;;  %v7860_v57 = vsel %vm575_vm8, %v7817_v42, 0.0  ;;  %v7823_v31 = vmul.f32 %v9372_v41, %v20781_v9 }
0x1002   : > { %9924 = vrot.lane.b32.xlu0 %v9918_v35, %s10383_s7  ;;  %v7114_v35 = vcvt.f32.s32 %v7113_v44  ;;  %v7176_v44 = vshll.u32 %v7175_v6, 16 }
0x1003   : > { %v7207_v52 = vadd.s32 %v7206_v7, %v7204_v11  ;;  %v7878_v34 = vsel %vm575_vm8, %v7823_v31, 0.0 }
0x1004   : > { %v7117_v0 = vadd.s32 %v7116_v21, %v7114_v35  ;;  %v7173_v5 = vpop.xlane.xlu1 %7172  ;;  %v20783_v21 = vld [vmem:[#allocation176_spill] sm:$0xff] }
0x1005   : > { %vm7698_vm7 = vcmp.eq.s32.totalorder %v16904_v10, %v7207_v52  ;;  %v20785_v52 = vld [vmem:[#allocation339_spill] sm:$0xff] }
0x1006   : > { %vm7692_vm6 = vcmp.eq.s32.totalorder %v16904_v10, %v7117_v0  ;;  %v17551_v62 = vsel %vm7698_vm7, 1.0, %v20778_v48 }
0x1007   : > { %v9370_v12 = vsel %vm7692_vm6, 1.0, %v20778_v48  ;;  %v7827_v45 = vmul.f32 %v17551_v62, %v20783_v21 }
0x1008   : > { %v7821_v43 = vmul.f32 %v9370_v12, %v20782_v61  ;;  %v17560_v6 = vpop.xlane.xlu1 %7217 }
0x1009   : > { %v7890_v11 = vsel %vm575_vm8, %v7827_v45, 0.0  ;;  %v7160_v45 = vcvt.f32.s32 %v17320_v63 }
0x100a   : > { %v7872_v35 = vsel %vm575_vm8, %v7821_v43, 0.0 }
0x100e   : > { %9929 = vrot.lane.b32.xlu1 %v9928_v29, %s10384_s8 }
0x1012   : > { %9934 = vrot.lane.b32.xlu1 %v9928_v29, %s10383_s7  ;;  %v7174_v29 = vcvt.f32.s32 %v7173_v5  ;;  %v20784_v5 = vld [vmem:[#allocation192_spill] sm:$0xff] }
0x1014   : > { %v7177_v49 = vadd.s32 %v7176_v44, %v7174_v29  ;;  %v7820_v29 = vmul.f32 %v17515_v38, %v20785_v52  ;;  %v7188_v44 = vpop.xlane.xlu1 %7187 }
0x1015   : > { %v7189_v43 = vcvt.f32.s32 %v7188_v44 }
0x1016   : > { %vm7696_vm10 = vcmp.eq.s32.totalorder %v16904_v10, %v7177_v49  ;;  %v7869_v31 = vsel %vm575_vm8, %v7820_v29, 0.0  ;;  %v20786_v49 = vld [vmem:[#allocation338_spill] sm:$0xff] }
0x1017   : > { %v9374_v0 = vsel %vm7696_vm10, 1.0, %v20778_v48 }
0x1018   : > { %v7825_v7 = vmul.f32 %v9374_v0, %v20784_v5 }
0x101a   : > { %v7884_v42 = vsel %vm575_vm8, %v7825_v7, 0.0  ;;  %v7159_v7 = vcvt.f32.s32 %v17528_v40 }
0x1021   : > { %7861 = vadd.xlane.f32.xlu0 %v7860_v57  ;;  %v7190_v57 = vcvt.f32.s32 %v17352_v28  ;;  %v7130_v28 = vcvt.f32.s32 %v17329_v4 }
0x1023   : > { %v7131_v44 = vshll.u32 %v7130_v28, 16 }
0x1025   : > { %7879 = vadd.xlane.f32.xlu0 %v7878_v34  ;;  %v7818_v34 = vmul.f32 %v9367_v22, %v20786_v49  ;;  %v7129_v22 = vcvt.f32.s32 %v17532_v37  ;;  %v7263_v37 = vpop.xlane.xlu1 %7262 }
0x1027   : > { %v7132_v40 = vadd.s32 %v7131_v44, %v7129_v22 }
0x1029   : > { %7873 = vadd.xlane.f32.xlu0 %v7872_v35  ;;  %v7191_v35 = vshll.u32 %v7190_v57, 16  ;;  %vm7693_vm13 = vcmp.eq.s32.totalorder %v16904_v10, %v7132_v40 }
0x102a   : > { %v9371_v4 = vsel %vm7693_vm13, 1.0, %v20778_v48 }
0x102b   : > { %v7192_v5 = vadd.s32 %v7191_v35, %v7189_v43  ;;  %v7233_v43 = vpop.xlane.xlu1 %7232  ;;  %v7235_v35 = vcvt.f32.s32 %v17362_v18 }
0x102d   : > { %7891 = vadd.xlane.f32.xlu0 %v7890_v11  ;;  %v7863_v11 = vsel %vm575_vm8, %v7818_v34, 0.0  ;;  %vm7697_vm11 = vcmp.eq.s32.totalorder %v16904_v10, %v7192_v5  ;;  %v9948_v5 = vpack.i.bf16 %v9371_v4, %v9370_v12  ;;  %v7264_v34 = vcvt.f32.s32 %v7263_v37  ;;  %v20787_v12 = vld [vmem:[#allocation323_spill] sm:$0xff] }
0x102e   : > { %v17574_v29 = vsel %vm7697_vm11, 1.0, %v20778_v48  ;;  %v7250_v37 = vcvt.f32.s32 %v17372_v47  ;;  %v7219_v47 = vcvt.f32.s32 %v17560_v6 }
0x102f   : > { %v9968_v63 = vpack.i.bf16 %v17574_v29, %v9374_v0  ;;  %v7265_v0 = vcvt.f32.s32 %v17357_v13  ;;  %v17600_v44 = vpop.xlane.xlu1 %7277 }
0x1031   : > { %7885 = vadd.xlane.f32.xlu0 %v7884_v42  ;;  %v7161_v42 = vshll.u32 %v7160_v45, 16 }
0x1033   : > { %v7162_v38 = vadd.s32 %v7161_v42, %v7159_v7  ;;  %v7236_v7 = vshll.u32 %v7235_v35, 16 }
0x1035   : > { %vm7695_vm12 = vcmp.eq.s32.totalorder %v16904_v10, %v7162_v38 }
0x1036   : > { %7870 = vadd.xlane.f32.xlu1 %v7869_v31  ;;  %v9373_v57 = vsel %vm7695_vm12, 1.0, %v20778_v48 }
0x1037   : > { %v9938_v31 = vpack.i.bf16 %v9373_v57, %v9372_v41  ;;  %v7266_v41 = vshll.u32 %v7265_v0, 16  ;;  %v7251_v0 = vshll.u32 %v7250_v37, 16 }
0x1039   : > { %v7267_v45 = vadd.s32 %v7266_v41, %v7264_v34  ;;  %v20789_v34 = vld [vmem:[#allocation302_spill] sm:$0xff] }
0x103a   : > { %7864 = vadd.xlane.f32.xlu1 %v7863_v11  ;;  %v7234_v11 = vcvt.f32.s32 %v7233_v43  ;;  %v7824_v43 = vmul.f32 %v9373_v57, %v20789_v34 }
0x103b   : > { %vm7702_vm9 = vcmp.eq.s32.totalorder %v16904_v10, %v7267_v45  ;;  %v20790_v45 = vld [vmem:[#allocation270_spill] sm:$0xff] }
0x103c   : > { %v7237_v42 = vadd.s32 %v7236_v7, %v7234_v11  ;;  %v17592_v38 = vsel %vm7702_vm9, 1.0, %v20778_v48  ;;  %v7881_v35 = vsel %vm575_vm8, %v7824_v43, 0.0  ;;  %v7822_v11 = vmul.f32 %v9371_v4, %v20790_v45 }
0x103d   : > { %v7831_v13 = vmul.f32 %v17592_v38, %v20787_v12  ;;  %v7220_v7 = vcvt.f32.s32 %v17347_v24 }
0x103e   : > { %vm7700_vm15 = vcmp.eq.s32.totalorder %v16904_v10, %v7237_v42 }
0x103f   : > { %v9378_v28 = vsel %vm7700_vm15, 1.0, %v20778_v48  ;;  %v7902_v22 = vsel %vm575_vm8, %v7831_v13, 0.0  ;;  %v7875_v13 = vsel %vm575_vm8, %v7822_v11, 0.0 }
0x1047   : > { %9969 = vrot.lane.b32.xlu0 %v9968_v63, %s10384_s8 }
0x104b   : > { %9974 = vrot.lane.b32.xlu0 %v9968_v63, %s10383_s7  ;;  %9939 = vrot.lane.b32.xlu1 %v9938_v31, %s10384_s8  ;;  %v20788_v63 = vld [vmem:[#allocation322_spill] sm:$0xff] }
0x104c   : > { %v7829_v18 = vmul.f32 %v9378_v28, %v20788_v63 }
0x104e   : > { %v7896_v40 = vsel %vm575_vm8, %v7829_v18, 0.0 }
0x104f   : > { %9944 = vrot.lane.b32.xlu1 %v9938_v31, %s10383_s7  ;;  %v7248_v31 = vpop.xlane.xlu1 %7247 }
0x1053   : > { %9949 = vrot.lane.b32.xlu1 %v9948_v5, %s10384_s8  ;;  %v7323_v4 = vpop.xlane.xlu1 %7322 }
0x1054   : > { %v7324_v6 = vcvt.f32.s32 %v7323_v4  ;;  %v7310_v4 = vcvt.f32.s32 %v17392_v2 }
0x1057   : > { %9954 = vrot.lane.b32.xlu1 %v9948_v5, %s10383_s7  ;;  %v7249_v5 = vcvt.f32.s32 %v7248_v31  ;;  %v7325_v31 = vcvt.f32.s32 %v17377_v8  ;;  %v7293_v37 = vpop.xlane.xlu1 %7292 }
0x1058   : > { %v7294_v43 = vcvt.f32.s32 %v7293_v37 }
0x1059   : > { %v7252_v41 = vadd.s32 %v7251_v0, %v7249_v5  ;;  %v7295_v5 = vcvt.f32.s32 %v17382_v23 }
0x105b   : > { %vm7701_vm1 = vcmp.eq.s32.totalorder %v16904_v10, %v7252_v41  ;;  %v7296_v41 = vshll.u32 %v7295_v5, 16 }
0x105c   : > { %v17610_v42 = vsel %vm7701_vm1, 1.0, %v20778_v48 }
0x105d   : > { %v9988_v57 = vpack.i.bf16 %v17610_v42, %v9378_v28  ;;  %v7326_v28 = vshll.u32 %v7325_v31, 16  ;;  %v7311_v31 = vshll.u32 %v7310_v4, 16 }
0x105f   : > { %v7327_v0 = vadd.s32 %v7326_v28, %v7324_v6  ;;  %v20793_v6 = vld [vmem:[#allocation313_spill] sm:$0xff] }
0x1061   : > { %vm7706_vm4 = vcmp.eq.s32.totalorder %v16904_v10, %v7327_v0  ;;  %v20794_v0 = vld [vmem:[#allocation277_spill] sm:$0xff] }
0x1062   : > { %v17626_v11 = vsel %vm7706_vm4, 1.0, %v20778_v48 }
0x106a   : > { %7903 = vadd.xlane.f32.xlu0 %v7902_v22  ;;  %v7221_v22 = vshll.u32 %v7220_v7, 16 }
0x106c   : > { %v7222_v18 = vadd.s32 %v7221_v22, %v7219_v47  ;;  %v20792_v47 = vld [vmem:[#allocation91_spill] sm:$0xff] }
0x106e   : > { %7897 = vadd.xlane.f32.xlu0 %v7896_v40  ;;  %vm7699_vm3 = vcmp.eq.s32.totalorder %v16904_v10, %v7222_v18 }
0x106f   : > { %v9377_v24 = vsel %vm7699_vm3, 1.0, %v20778_v48 }
0x1070   : > { %v9958_v40 = vpack.i.bf16 %v9377_v24, %v17551_v62  ;;  %v20791_v62 = vld [vmem:[#allocation354_spill] sm:$0xff]  ;;  %v7828_v37 = vmul.f32 %v9377_v24, %v20793_v6 }
0x1071   : > { %v7835_v8 = vmul.f32 %v17626_v11, %v20791_v62 }
0x1072   : > { %v7893_v5 = vsel %vm575_vm8, %v7828_v37, 0.0 }
0x107b   : > { %7882 = vadd.xlane.f32.xlu1 %v7881_v35  ;;  %v7297_v35 = vadd.s32 %v7296_v41, %v7294_v43  ;;  %v7826_v43 = vmul.f32 %v17574_v29, %v20794_v0  ;;  %v7280_v41 = vcvt.f32.s32 %v17367_v32 }
0x107d   : > { %vm7704_vm0 = vcmp.eq.s32.totalorder %v16904_v10, %v7297_v35  ;;  %v7887_v2 = vsel %vm575_vm8, %v7826_v43, 0.0 }
0x107e   : > { %v9382_v7 = vsel %vm7704_vm0, 1.0, %v20778_v48 }
0x107f   : > { %7876 = vadd.xlane.f32.xlu1 %v7875_v13  ;;  %v7914_v13 = vsel %vm575_vm8, %v7835_v8, 0.0  ;;  %v7833_v23 = vmul.f32 %v9382_v7, %v20792_v47  ;;  %v7279_v8 = vcvt.f32.s32 %v17600_v44 }
0x1081   : > { %v7908_v22 = vsel %vm575_vm8, %v7833_v23, 0.0 }
0x1084   : > { %9989 = vrot.lane.b32.xlu0 %v9988_v57, %s10384_s8 }
0x1088   : > { %9994 = vrot.lane.b32.xlu0 %v9988_v57, %s10383_s7  ;;  %v17634_v57 = vpop.xlane.xlu1 %7337 }
0x108c   : > { %v7308_v18 = vpop.xlane.xlu1 %7307 }
0x1090   : > { %9959 = vrot.lane.b32.xlu1 %v9958_v40, %s10384_s8  ;;  %v7383_v29 = vpop.xlane.xlu1 %7382 }
0x1091   : > { %v7384_v44 = vcvt.f32.s32 %v7383_v29  ;;  %v7370_v29 = vcvt.f32.s32 %v17412_v14 }
0x1094   : > { %9964 = vrot.lane.b32.xlu1 %v9958_v40, %s10383_s7  ;;  %v7309_v40 = vcvt.f32.s32 %v7308_v18  ;;  %v7385_v18 = vcvt.f32.s32 %v17397_v15  ;;  %v7353_v4 = vpop.xlane.xlu1 %7352 }
0x1095   : > { %v7354_v37 = vcvt.f32.s32 %v7353_v4 }
0x1096   : > { %v7312_v28 = vadd.s32 %v7311_v31, %v7309_v40  ;;  %v7355_v40 = vcvt.f32.s32 %v17402_v60 }
0x1098   : > { %vm7705_vm2 = vcmp.eq.s32.totalorder %v16904_v10, %v7312_v28  ;;  %v7356_v28 = vshll.u32 %v7355_v40, 16 }
0x1099   : > { %v17645_v35 = vsel %vm7705_vm2, 1.0, %v20778_v48 }
0x109a   : > { %v10008_v24 = vpack.i.bf16 %v17645_v35, %v9382_v7  ;;  %v7386_v7 = vshll.u32 %v7385_v18, 16  ;;  %v7371_v18 = vshll.u32 %v7370_v29, 16 }
0x109c   : > { %v7387_v31 = vadd.s32 %v7386_v7, %v7384_v44  ;;  %v20797_v44 = vld [vmem:[#allocation299_spill] sm:$0xff] }
0x109e   : > { %vm7710_vm6 = vcmp.eq.s32.totalorder %v16904_v10, %v7387_v31  ;;  %v20798_v31 = vld [vmem:[#allocation307_spill] sm:$0xff] }
0x109f   : > { %v17661_v43 = vsel %vm7710_vm6, 1.0, %v20778_v48 }
0x10a7   : > { %7915 = vadd.xlane.f32.xlu0 %v7914_v13  ;;  %v7281_v13 = vshll.u32 %v7280_v41, 16 }
0x10a9   : > { %v7282_v23 = vadd.s32 %v7281_v13, %v7279_v8  ;;  %v20796_v8 = vld [vmem:[#allocation75_spill] sm:$0xff] }
0x10ab   : > { %7909 = vadd.xlane.f32.xlu0 %v7908_v22  ;;  %vm7703_vm5 = vcmp.eq.s32.totalorder %v16904_v10, %v7282_v23 }
0x10ac   : > { %v9381_v32 = vsel %vm7703_vm5, 1.0, %v20778_v48 }
0x10ad   : > { %v9978_v22 = vpack.i.bf16 %v9381_v32, %v17592_v38  ;;  %v20795_v38 = vld [vmem:[#allocation188_spill] sm:$0xff]  ;;  %v7832_v4 = vmul.f32 %v9381_v32, %v20797_v44 }
0x10ae   : > { %v7839_v15 = vmul.f32 %v17661_v43, %v20795_v38 }
0x10af   : > { %v7905_v40 = vsel %vm575_vm8, %v7832_v4, 0.0 }
0x10b8   : > { %7894 = vadd.xlane.f32.xlu1 %v7893_v5  ;;  %v7357_v5 = vadd.s32 %v7356_v28, %v7354_v37  ;;  %v7830_v37 = vmul.f32 %v17610_v42, %v20798_v31  ;;  %v7340_v28 = vcvt.f32.s32 %v17387_v54 }
0x10ba   : > { %vm7708_vm7 = vcmp.eq.s32.totalorder %v16904_v10, %v7357_v5  ;;  %v7899_v14 = vsel %vm575_vm8, %v7830_v37, 0.0 }
0x10bb   : > { %v9386_v41 = vsel %vm7708_vm7, 1.0, %v20778_v48 }
0x10bc   : > { %7888 = vadd.xlane.f32.xlu1 %v7887_v2  ;;  %v7926_v2 = vsel %vm575_vm8, %v7839_v15, 0.0  ;;  %v7837_v60 = vmul.f32 %v9386_v41, %v20796_v8  ;;  %v7339_v15 = vcvt.f32.s32 %v17634_v57 }
0x10be   : > { %v7920_v13 = vsel %vm575_vm8, %v7837_v60, 0.0 }
0x10c1   : > { %10009 = vrot.lane.b32.xlu0 %v10008_v24, %s10384_s8 }
0x10c5   : > { %10014 = vrot.lane.b32.xlu0 %v10008_v24, %s10383_s7  ;;  %v17669_v24 = vpop.xlane.xlu1 %7397 }
0x10c9   : > { %v7368_v23 = vpop.xlane.xlu1 %7367 }
0x10cd   : > { %9979 = vrot.lane.b32.xlu1 %v9978_v22, %s10384_s8  ;;  %v7443_v42 = vpop.xlane.xlu1 %7442 }
0x10ce   : > { %v7444_v57 = vcvt.f32.s32 %v7443_v42  ;;  %v7430_v42 = vcvt.f32.s32 %v17432_v33 }
0x10d1   : > { %9984 = vrot.lane.b32.xlu1 %v9978_v22, %s10383_s7  ;;  %v7369_v22 = vcvt.f32.s32 %v7368_v23  ;;  %v7445_v23 = vcvt.f32.s32 %v17417_v46  ;;  %v7413_v29 = vpop.xlane.xlu1 %7412 }
0x10d2   : > { %v7414_v4 = vcvt.f32.s32 %v7413_v29 }
0x10d3   : > { %v7372_v7 = vadd.s32 %v7371_v18, %v7369_v22  ;;  %v7415_v22 = vcvt.f32.s32 %v17422_v51 }
0x10d5   : > { %vm7709_vm10 = vcmp.eq.s32.totalorder %v16904_v10, %v7372_v7  ;;  %v7416_v7 = vshll.u32 %v7415_v22, 16 }
0x10d6   : > { %v17680_v5 = vsel %vm7709_vm10, 1.0, %v20778_v48 }
0x10d7   : > { %v10028_v32 = vpack.i.bf16 %v17680_v5, %v9386_v41  ;;  %v7446_v41 = vshll.u32 %v7445_v23, 16  ;;  %v7431_v23 = vshll.u32 %v7430_v42, 16 }
0x10d9   : > { %v7447_v18 = vadd.s32 %v7446_v41, %v7444_v57  ;;  %v20801_v57 = vld [vmem:[#allocation300_spill] sm:$0xff] }
0x10db   : > { %vm7714_vm12 = vcmp.eq.s32.totalorder %v16904_v10, %v7447_v18  ;;  %v20802_v18 = vld [vmem:[#allocation328_spill] sm:$0xff] }
0x10dc   : > { %v17696_v37 = vsel %vm7714_vm12, 1.0, %v20778_v48 }
0x10e4   : > { %7927 = vadd.xlane.f32.xlu0 %v7926_v2  ;;  %v7341_v2 = vshll.u32 %v7340_v28, 16 }
0x10e6   : > { %v7342_v60 = vadd.s32 %v7341_v2, %v7339_v15  ;;  %v20800_v15 = vld [vmem:[#allocation348_spill] sm:$0xff] }
0x10e8   : > { %7921 = vadd.xlane.f32.xlu0 %v7920_v13  ;;  %vm7707_vm11 = vcmp.eq.s32.totalorder %v16904_v10, %v7342_v60 }
0x10e9   : > { %v9385_v54 = vsel %vm7707_vm11, 1.0, %v20778_v48 }
0x10ea   : > { %v9998_v13 = vpack.i.bf16 %v9385_v54, %v17626_v11  ;;  %v20799_v11 = vld [vmem:[#allocation282_spill] sm:$0xff]  ;;  %v7836_v29 = vmul.f32 %v9385_v54, %v20801_v57 }
0x10eb   : > { %v7843_v46 = vmul.f32 %v17696_v37, %v20799_v11 }
0x10ec   : > { %v7917_v22 = vsel %vm575_vm8, %v7836_v29, 0.0 }
0x10f5   : > { %7906 = vadd.xlane.f32.xlu1 %v7905_v40  ;;  %v7417_v40 = vadd.s32 %v7416_v7, %v7414_v4  ;;  %v7834_v4 = vmul.f32 %v17645_v35, %v20802_v18  ;;  %v7400_v7 = vcvt.f32.s32 %v17407_v16 }
0x10f7   : > { %vm7712_vm13 = vcmp.eq.s32.totalorder %v16904_v10, %v7417_v40  ;;  %v7911_v33 = vsel %vm575_vm8, %v7834_v4, 0.0 }
0x10f8   : > { %v9390_v28 = vsel %vm7712_vm13, 1.0, %v20778_v48 }
0x10f9   : > { %7900 = vadd.xlane.f32.xlu1 %v7899_v14  ;;  %v7938_v14 = vsel %vm575_vm8, %v7843_v46, 0.0  ;;  %v7841_v51 = vmul.f32 %v9390_v28, %v20800_v15  ;;  %v7399_v46 = vcvt.f32.s32 %v17669_v24 }
0x10fb   : > { %v7932_v2 = vsel %vm575_vm8, %v7841_v51, 0.0 }
0x10fe   : > { %10029 = vrot.lane.b32.xlu0 %v10028_v32, %s10384_s8 }
0x1102   : > { %10034 = vrot.lane.b32.xlu0 %v10028_v32, %s10383_s7  ;;  %v17704_v32 = vpop.xlane.xlu1 %7457 }
0x1106   : > { %v7428_v60 = vpop.xlane.xlu1 %7427 }
0x110a   : > { %9999 = vrot.lane.b32.xlu1 %v9998_v13, %s10384_s8  ;;  %v7503_v35 = vpop.xlane.xlu1 %7502 }
0x110b   : > { %v7504_v24 = vcvt.f32.s32 %v7503_v35  ;;  %v7490_v35 = vcvt.f32.s32 %v17452_v1 }
0x110e   : > { %10004 = vrot.lane.b32.xlu1 %v9998_v13, %s10383_s7  ;;  %v7429_v13 = vcvt.f32.s32 %v7428_v60  ;;  %v7505_v60 = vcvt.f32.s32 %v17437_v20  ;;  %v7473_v42 = vpop.xlane.xlu1 %7472 }
0x110f   : > { %v7474_v29 = vcvt.f32.s32 %v7473_v42 }
0x1110   : > { %v7432_v41 = vadd.s32 %v7431_v23, %v7429_v13  ;;  %v7475_v13 = vcvt.f32.s32 %v17442_v39 }
0x1112   : > { %vm7713_vm9 = vcmp.eq.s32.totalorder %v16904_v10, %v7432_v41  ;;  %v7476_v41 = vshll.u32 %v7475_v13, 16 }
0x1113   : > { %v17715_v40 = vsel %vm7713_vm9, 1.0, %v20778_v48 }
0x1114   : > { %v10048_v54 = vpack.i.bf16 %v17715_v40, %v9390_v28  ;;  %v7506_v28 = vshll.u32 %v7505_v60, 16  ;;  %v7491_v60 = vshll.u32 %v7490_v35, 16 }
0x1116   : > { %v7507_v23 = vadd.s32 %v7506_v28, %v7504_v24  ;;  %v20805_v24 = vld [vmem:[#allocation325_spill] sm:$0xff] }
0x1118   : > { %vm7718_vm1 = vcmp.eq.s32.totalorder %v16904_v10, %v7507_v23  ;;  %v20806_v23 = vld [vmem:[#allocation347_spill] sm:$0xff] }
0x1119   : > { %v17731_v4 = vsel %vm7718_vm1, 1.0, %v20778_v48 }
0x1121   : > { %7939 = vadd.xlane.f32.xlu0 %v7938_v14  ;;  %v7401_v14 = vshll.u32 %v7400_v7, 16 }
0x1123   : > { %v7402_v51 = vadd.s32 %v7401_v14, %v7399_v46  ;;  %v20804_v46 = vld [vmem:[#allocation314_spill] sm:$0xff] }
0x1125   : > { %7933 = vadd.xlane.f32.xlu0 %v7932_v2  ;;  %vm7711_vm15 = vcmp.eq.s32.totalorder %v16904_v10, %v7402_v51 }
0x1126   : > { %v9389_v16 = vsel %vm7711_vm15, 1.0, %v20778_v48 }
0x1127   : > { %v10018_v2 = vpack.i.bf16 %v9389_v16, %v17661_v43  ;;  %v20803_v43 = vld [vmem:[#allocation182_spill] sm:$0xff]  ;;  %v7840_v42 = vmul.f32 %v9389_v16, %v20805_v24 }
0x1128   : > { %v7847_v20 = vmul.f32 %v17731_v4, %v20803_v43 }
0x1129   : > { %v7929_v13 = vsel %vm575_vm8, %v7840_v42, 0.0 }
0x1132   : > { %7918 = vadd.xlane.f32.xlu1 %v7917_v22  ;;  %v7477_v22 = vadd.s32 %v7476_v41, %v7474_v29  ;;  %v7838_v29 = vmul.f32 %v17680_v5, %v20806_v23  ;;  %v7460_v41 = vcvt.f32.s32 %v17427_v55 }
0x1134   : > { %vm7716_vm3 = vcmp.eq.s32.totalorder %v16904_v10, %v7477_v22  ;;  %v7923_v1 = vsel %vm575_vm8, %v7838_v29, 0.0 }
0x1135   : > { %v9394_v7 = vsel %vm7716_vm3, 1.0, %v20778_v48 }
0x1136   : > { %7912 = vadd.xlane.f32.xlu1 %v7911_v33  ;;  %v7950_v33 = vsel %vm575_vm8, %v7847_v20, 0.0  ;;  %v7845_v39 = vmul.f32 %v9394_v7, %v20804_v46  ;;  %v7459_v20 = vcvt.f32.s32 %v17704_v32 }
0x1138   : > { %v7944_v14 = vsel %vm575_vm8, %v7845_v39, 0.0 }
0x113b   : > { %10049 = vrot.lane.b32.xlu0 %v10048_v54, %s10384_s8 }
0x113f   : > { %10054 = vrot.lane.b32.xlu0 %v10048_v54, %s10383_s7  ;;  %v17739_v54 = vpop.xlane.xlu1 %7517 }
0x1143   : > { %v7488_v51 = vpop.xlane.xlu1 %7487 }
0x1147   : > { %10019 = vrot.lane.b32.xlu1 %v10018_v2, %s10384_s8  ;;  %v7563_v5 = vpop.xlane.xlu1 %7562 }
0x1148   : > { %v7564_v32 = vcvt.f32.s32 %v7563_v5  ;;  %v7550_v5 = vcvt.f32.s32 %v17473_v56 }
0x114b   : > { %10024 = vrot.lane.b32.xlu1 %v10018_v2, %s10383_s7  ;;  %v7489_v2 = vcvt.f32.s32 %v7488_v51  ;;  %v7565_v51 = vcvt.f32.s32 %v17457_v36  ;;  %v7533_v35 = vpop.xlane.xlu1 %7532 }
0x114c   : > { %v7534_v42 = vcvt.f32.s32 %v7533_v35 }
0x114d   : > { %v7492_v28 = vadd.s32 %v7491_v60, %v7489_v2  ;;  %v7535_v2 = vcvt.f32.s32 %v17462_v27 }
0x114f   : > { %vm7717_vm4 = vcmp.eq.s32.totalorder %v16904_v10, %v7492_v28  ;;  %v7536_v28 = vshll.u32 %v7535_v2, 16 }
0x1150   : > { %v17750_v22 = vsel %vm7717_vm4, 1.0, %v20778_v48  ;;  %vm8978_vm4 = vcmask 7168  }
0x1151   : > { %v10068_v16 = vpack.i.bf16 %v17750_v22, %v9394_v7  ;;  %v7566_v7 = vshll.u32 %v7565_v51, 16  ;;  %v7551_v51 = vshll.u32 %v7550_v5, 16 }
0x1153   : > { %v7567_v60 = vadd.s32 %v7566_v7, %v7564_v32  ;;  %v20809_v32 = vld [vmem:[#allocation340_spill] sm:$0xff] }
0x1155   : > { %vm7722_vm2 = vcmp.eq.s32.totalorder %v16904_v10, %v7567_v60  ;;  %v20810_v60 = vld [vmem:[#allocation190_spill] sm:$0xff] }
0x1156   : > { %v17766_v29 = vsel %vm7722_vm2, 1.0, %v20778_v48  ;;  %vm9066_vm2 = vcmask 23552  }
0x115e   : > { %7951 = vadd.xlane.f32.xlu0 %v7950_v33  ;;  %v7461_v33 = vshll.u32 %v7460_v41, 16 }
0x1160   : > { %v7462_v39 = vadd.s32 %v7461_v33, %v7459_v20  ;;  %v20808_v20 = vld [vmem:[#allocation305_spill] sm:$0xff] }
0x1162   : > { %7945 = vadd.xlane.f32.xlu0 %v7944_v14  ;;  %vm7715_vm0 = vcmp.eq.s32.totalorder %v16904_v10, %v7462_v39 }
0x1163   : > { %v9393_v55 = vsel %vm7715_vm0, 1.0, %v20778_v48  ;;  %vm9022_vm0 = vcmask 15360  }
0x1164   : > { %v10038_v14 = vpack.i.bf16 %v9393_v55, %v17696_v37  ;;  %v20807_v37 = vld [vmem:[#allocation183_spill] sm:$0xff]  ;;  %v7844_v35 = vmul.f32 %v9393_v55, %v20809_v32 }
0x1165   : > { %v7851_v36 = vmul.f32 %v17766_v29, %v20807_v37 }
0x1166   : > { %v7941_v2 = vsel %vm575_vm8, %v7844_v35, 0.0  ;;  %v7595_v35 = vcvt.f32.s32 %v17486_v19 }
0x116f   : > { %7930 = vadd.xlane.f32.xlu1 %v7929_v13  ;;  %v7537_v13 = vadd.s32 %v7536_v28, %v7534_v42  ;;  %v7842_v42 = vmul.f32 %v17715_v40, %v20810_v60  ;;  %v20811_v28 = vld [vmem:[#allocation13_spill] sm:$0xff] }
0x1171   : > { %vm7720_vm5 = vcmp.eq.s32.totalorder %v16904_v10, %v7537_v13  ;;  %v7520_v13 = vcvt.f32.s32 %v20811_v28  ;;  %v7935_v56 = vsel %vm575_vm8, %v7842_v42, 0.0  ;;  %v7596_v42 = vshll.u32 %v7595_v35, 16  ;;  %v17799_v28 = vpop.xlane.xlu0 %7867 }
0x1172   : > { %v9398_v41 = vsel %vm7720_vm5, 1.0, %v20778_v48  ;;  %20812 = vst [vmem:[#allocation272_spill] sm:$0xff] %v17799_v28 }
0x1173   : > { %7924 = vadd.xlane.f32.xlu1 %v7923_v1  ;;  %v7962_v1 = vsel %vm575_vm8, %v7851_v36, 0.0  ;;  %v7849_v27 = vmul.f32 %v9398_v41, %v20808_v20 }
0x1175   : > { %v7956_v33 = vsel %vm575_vm8, %v7849_v27, 0.0  ;;  %v7521_v27 = vshll.u32 %v7520_v13, 16 }
0x1178   : > { %10069 = vrot.lane.b32.xlu0 %v10068_v16, %s10384_s8 }
0x117c   : > { %10074 = vrot.lane.b32.xlu0 %v10068_v16, %s10383_s7  ;;  %v17774_v16 = vpop.xlane.xlu1 %7577 }
0x1180   : > { %v7548_v39 = vpop.xlane.xlu1 %7547 }
0x1184   : > { %10039 = vrot.lane.b32.xlu1 %v10038_v14, %s10384_s8 }
0x1188   : > { %10044 = vrot.lane.b32.xlu1 %v10038_v14, %s10383_s7  ;;  %v7549_v14 = vcvt.f32.s32 %v7548_v39  ;;  %v7623_v39 = vpop.xlane.xlu1 %7622 }
0x118a   : > { %v7552_v7 = vadd.s32 %v7551_v51, %v7549_v14  ;;  %v7625_v14 = vcvt.f32.s32 %v17478_v50  ;;  %v17808_v50 = vpop.permute.xlu0 %9919 }
0x118c   : > { %vm7721_vm6 = vcmp.eq.s32.totalorder %v16904_v10, %v7552_v7  ;;  %v7593_v51 = vpop.xlane.xlu1 %7592 }
0x118d   : > { %v17785_v36 = vsel %vm7721_vm6, 1.0, %v20778_v48 }
0x118e   : > { %v10088_v55 = vpack.i.bf16 %v17785_v36, %v9398_v41  ;;  %v7626_v41 = vshll.u32 %v7625_v14, 16  ;;  %v17815_v14 = vpop.permute.xlu0 %9924 }
0x1190   : > { %v17801_v13 = vpop.xlane.xlu1 %7637 }
0x119b   : > { %7963 = vadd.xlane.f32.xlu0 %v7962_v1  ;;  %v7519_v1 = vcvt.f32.s32 %v17739_v54  ;;  %v7624_v54 = vcvt.f32.s32 %v7623_v39  ;;  %v20814_v39 = vld [vmem:[#allocation334_spill] sm:$0xff] }
0x119d   : > { %v7627_v7 = vadd.s32 %v7626_v41, %v7624_v54  ;;  %v17818_v41 = vpop.xlane.xlu0 %7861 }
0x119e   : > { %20815 = vst [vmem:[#allocation244_spill] sm:$0xff] %v17818_v41 }
0x119f   : > { %7957 = vadd.xlane.f32.xlu0 %v7956_v33  ;;  %v7522_v33 = vadd.s32 %v7521_v27, %v7519_v1  ;;  %vm7726_vm10 = vcmp.eq.s32.totalorder %v16904_v10, %v7627_v7  ;;  %v7608_v1 = vpop.xlane.xlu1 %7607  ;;  %v7610_v7 = vcvt.f32.s32 %v17498_v30  ;;  %v7580_v30 = vcvt.f32.s32 %v17467_v17 }
0x11a1   : > { %vm7719_vm7 = vcmp.eq.s32.totalorder %v16904_v10, %v7522_v33 }
0x11a2   : > { %v9397_v40 = vsel %vm7719_vm7, 1.0, %v20778_v48 }
0x11a3   : > { %v10058_v5 = vpack.i.bf16 %v9397_v40, %v17731_v4  ;;  %v7683_v54 = vpop.xlane.xlu1 %7682 }
0x11a7   : > { %v7653_v35 = vpop.xlane.xlu1 %7652 }
0x11ab   : > { %v17823_v28 = vpop.xlane.xlu1 %7667 }
0x11ac   : > { %7942 = vadd.xlane.f32.xlu1 %v7941_v2  ;;  %v7594_v2 = vcvt.f32.s32 %v7593_v51  ;;  %v7669_v24 = vcvt.f32.s32 %v17823_v28  ;;  %v7640_v28 = vcvt.f32.s32 %v17492_v25  ;;  %v9921_v25 = vunpack.i.l.bf16 %v17808_v50 }
0x11ae   : > { %v7597_v4 = vadd.s32 %v7596_v42, %v7594_v2  ;;  %v7609_v2 = vcvt.f32.s32 %v7608_v1  ;;  %v17821_v42 = vpop.xlane.xlu0 %7879 }
0x11af   : > { %20816 = vst [vmem:[#allocation14_spill] sm:$0xff] %v17821_v42 }
0x11b0   : > { %7936 = vadd.xlane.f32.xlu1 %v7935_v56  ;;  %v17805_v56 = vsel %vm7726_vm10, 1.0, %v20778_v48  ;;  %vm7724_vm11 = vcmp.eq.s32.totalorder %v16904_v10, %v7597_v4  ;;  %v7611_v4 = vshll.u32 %v7610_v7, 16 }
0x11b1   : > { %v9402_v27 = vsel %vm7724_vm11, 1.0, %v20778_v48 }
0x11b2   : > { %v7612_v32 = vadd.s32 %v7611_v4, %v7609_v2  ;;  %v17826_v23 = vpop.xlane.xlu0 %7873 }
0x11b3   : > { %20818 = vst [vmem:[#allocation253_spill] sm:$0xff] %v17826_v23  ;;  %v7654_v23 = vcvt.f32.s32 %v7653_v35 }
0x11b4   : > { %vm7725_vm12 = vcmp.eq.s32.totalorder %v16904_v10, %v7612_v32  ;;  %v7581_v32 = vshll.u32 %v7580_v30, 16  ;;  %v7685_v30 = vcvt.f32.s32 %v17503_v58 }
0x11b5   : > { %10089 = vrot.lane.b32.xlu0 %v10088_v55, %s10384_s8  ;;  %v17836_v1 = vsel %vm7725_vm12, 1.0, %v20778_v48 }
0x11b6   : > { %v17839_v7 = vpop.xlane.xlu0 %7891 }
0x11b7   : > { %20820 = vst [vmem:[#allocation15_spill] sm:$0xff] %v17839_v7 }
0x11b9   : > { %10094 = vrot.lane.b32.xlu0 %v10088_v55, %s10383_s7  ;;  %v20813_v55 = vld [vmem:[#allocation194_spill] sm:$0xff] }
0x11ba   : > { %v7855_v19 = vmul.f32 %v17805_v56, %v20813_v55 }
0x11bc   : > { %v7974_v33 = vsel %vm575_vm8, %v7855_v19, 0.0  ;;  %v20817_v19 = vld [vmem:[#allocation289_spill] sm:$0xff] }
0x11bd   : > { %v7848_v60 = vmul.f32 %v9397_v40, %v20817_v19  ;;  %v7670_v19 = vcvt.f32.s32 %v17517_v53 }
0x11c1   : > { %10059 = vrot.lane.b32.xlu1 %v10058_v5, %s10384_s8 }
0x11c5   : > { %10064 = vrot.lane.b32.xlu1 %v10058_v5, %s10383_s7  ;;  %v7853_v5 = vmul.f32 %v9402_v27, %v20814_v39 }
0x11c7   : > { %v7968_v51 = vsel %vm575_vm8, %v7853_v5, 0.0  ;;  %v20819_v5 = vld [vmem:[#allocation351_spill] sm:$0xff] }
0x11c8   : > { %v7846_v41 = vmul.f32 %v17750_v22, %v20819_v5  ;;  %v10108_v22 = vpack.i.bf16 %v17836_v1, %v9402_v27 }
0x11ca   : > { %v7947_v40 = vsel %vm575_vm8, %v7846_v41, 0.0 }
0x11d8   : > { %7975 = vadd.xlane.f32.xlu0 %v7974_v33  ;;  %v7953_v33 = vsel %vm575_vm8, %v7848_v60, 0.0  ;;  %v7579_v60 = vcvt.f32.s32 %v17774_v16 }
0x11da   : > { %v7582_v4 = vadd.s32 %v7581_v32, %v7579_v60 }
0x11dc   : > { %7969 = vadd.xlane.f32.xlu0 %v7968_v51  ;;  %v17832_v51 = vpop.permute.xlu1 %9929  ;;  %vm7723_vm13 = vcmp.eq.s32.totalorder %v16904_v10, %v7582_v4  ;;  %v7655_v4 = vcvt.f32.s32 %v17509_v26 }
0x11dd   : > { %v9401_v41 = vsel %vm7723_vm13, 1.0, %v20778_v48 }
0x11de   : > { %v10078_v27 = vpack.i.bf16 %v9401_v41, %v17766_v29  ;;  %v7656_v29 = vshll.u32 %v7655_v4, 16 }
0x11e0   : > { %v17842_v2 = vpop.permute.xlu1 %9934  ;;  %v7657_v58 = vadd.s32 %v7656_v29, %v7654_v23 }
0x11e2   : > { %vm7728_vm15 = vcmp.eq.s32.totalorder %v16904_v10, %v7657_v58 }
0x11e4   : > { %v17848_v17 = vpop.xlane.xlu1 %7870 }
0x11e5   : > { %20822 = vst [vmem:[#allocation17_spill] sm:$0xff] %v17848_v17  ;;  %v7684_v17 = vcvt.f32.s32 %v7683_v54 }
0x11e8   : > { %v17855_v16 = vpop.xlane.xlu1 %7864 }
0x11e9   : > { %7954 = vadd.xlane.f32.xlu1 %v7953_v33  ;;  %v17846_v33 = vpop.xlane.xlu0 %7885  ;;  %20823 = vst [vmem:[#allocation18_spill] sm:$0xff] %v17855_v16 }
0x11ea   : > { %20821 = vst [vmem:[#allocation16_spill] sm:$0xff] %v17846_v33 }
0x11ec   : > { %v17862_v32 = vpop.permute.xlu1 %9939 }
0x11ed   : > { %7948 = vadd.xlane.f32.xlu1 %v7947_v40  ;;  %v17853_v40 = vpop.permute.xlu0 %9969 }
0x11f0   : > { %v17868_v42 = vpop.permute.xlu1 %9944 }
0x11f1   : > { %v17860_v60 = vpop.permute.xlu0 %9974 }
0x11f2   : > { %10109 = vrot.lane.b32.xlu0 %v10108_v22, %s10384_s8 }
0x11f4   : > { %v17873_v5 = vpop.permute.xlu1 %9949 }
0x11f5   : > { %v17866_v33 = vpop.xlane.xlu0 %7903 }
0x11f6   : > { %10114 = vrot.lane.b32.xlu0 %v10108_v22, %s10383_s7  ;;  %v7686_v22 = vshll.u32 %v7685_v30, 16  ;;  %20824 = vst [vmem:[#allocation34_spill] sm:$0xff] %v17866_v33 }
0x11f8   : > { %v7687_v7 = vadd.s32 %v7686_v22, %v7684_v17  ;;  %v9406_v17 = vsel %vm7728_vm15, 1.0, %v20778_v48  ;;  %v17884_v30 = vpop.permute.xlu1 %9954 }
0x11f9   : > { %v17871_v16 = vpop.xlane.xlu0 %7897 }
0x11fa   : > { %vm7730_vm9 = vcmp.eq.s32.totalorder %v16904_v10, %v7687_v7  ;;  %20825 = vst [vmem:[#allocation32_spill] sm:$0xff] %v17871_v16  ;;  %v20827_v7 = vld [vmem:[#allocation206_spill] sm:$0xff] }
0x11fb   : > { %v17876_v54 = vsel %vm7730_vm9, 1.0, %v20778_v48  ;;  %v7857_v22 = vmul.f32 %v9406_v17, %v20827_v7 }
0x11fc   : > { %v17890_v29 = vpop.xlane.xlu1 %7882 }
0x11fd   : > { %v17879_v26 = vpop.permute.xlu0 %9989  ;;  %20828 = vst [vmem:[#allocation37_spill] sm:$0xff] %v17890_v29  ;;  %v7980_v58 = vsel %vm575_vm8, %v7857_v22, 0.0 }
0x11fe   : > { %10079 = vrot.lane.b32.xlu1 %v10078_v27, %s10384_s8 }
0x1200   : > { %v17895_v33 = vpop.xlane.xlu1 %7876 }
0x1201   : > { %v17888_v4 = vpop.permute.xlu0 %9994  ;;  %20830 = vst [vmem:[#allocation40_spill] sm:$0xff] %v17895_v33 }
0x1202   : > { %10084 = vrot.lane.b32.xlu1 %v10078_v27, %s10383_s7  ;;  %v20826_v27 = vld [vmem:[#allocation294_spill] sm:$0xff] }
0x1203   : > { %v7859_v35 = vmul.f32 %v17876_v54, %v20826_v27 }
0x1204   : > { %v17901_v7 = vpop.permute.xlu1 %9959 }
0x1205   : > { %v7986_v23 = vsel %vm6951_vm14, %v7859_v35, 0.0  ;;  %v17893_v16 = vpop.xlane.xlu0 %7915  ;;  %v7671_v35 = vshll.u32 %v7670_v19, 16 }
0x1206   : > { %20829 = vst [vmem:[#allocation35_spill] sm:$0xff] %v17893_v16 }
0x1207   : > { %v7672_v57 = vadd.s32 %v7671_v35, %v7669_v24  ;;  %v7639_v24 = vcvt.f32.s32 %v17801_v13  ;;  %v8163_v13 = vmul.f32 %v9921_v25, %v20779_v3 }
0x1208   : > { %v17910_v53 = vpop.permute.xlu1 %9964 }
0x1209   : > { %v17899_v18 = vpop.xlane.xlu0 %7909  ;;  %vm7729_vm1 = vcmp.eq.s32.totalorder %v16904_v10, %v7672_v57  ;;  %v7641_v57 = vshll.u32 %v7640_v28, 16 }
0x120a   : > { %20831 = vst [vmem:[#allocation38_spill] sm:$0xff] %v17899_v18  ;;  %v17914_v19 = vsel %vm7729_vm1, 1.0, %v20778_v48 }
0x120d   : > { %v17904_v29 = vpop.permute.xlu0 %10009 }
0x1211   : > { %v17918_v35 = vpop.permute.xlu0 %10014 }
0x1215   : > { %7987 = vadd.xlane.f32.xlu0 %v7986_v23  ;;  %v20832_v23 = vld [vmem:[#allocation312_spill] sm:$0xff]  ;;  %v17924_v33 = vpop.xlane.xlu0 %7927 }
0x1216   : > { %v7852_v27 = vmul.f32 %v9401_v41, %v20832_v23  ;;  %20835 = vst [vmem:[#allocation41_spill] sm:$0xff] %v17924_v33 }
0x1218   : > { %v7965_v22 = vsel %vm575_vm8, %v7852_v27, 0.0  ;;  %v17920_v27 = vpop.xlane.xlu1 %7894 }
0x1219   : > { %7981 = vadd.xlane.f32.xlu0 %v7980_v58  ;;  %v20833_v58 = vld [vmem:[#allocation352_spill] sm:$0xff]  ;;  %20834 = vst [vmem:[#allocation43_spill] sm:$0xff] %v17920_v27 }
0x121a   : > { %v7850_v16 = vmul.f32 %v17785_v36, %v20833_v58  ;;  %v10118_v36 = vpack.i.bf16 %v17914_v19, %v9406_v17 }
0x121c   : > { %v7959_v41 = vsel %vm575_vm8, %v7850_v16, 0.0  ;;  %v17927_v18 = vpop.xlane.xlu1 %7888  ;;  %v9926_v16 = vunpack.i.l.bf16 %v17815_v14 }
0x121d   : > { %20836 = vst [vmem:[#allocation46_spill] sm:$0xff] %v17927_v18 }
0x1220   : > { %v17937_v28 = vpop.permute.xlu1 %9979 }
0x1221   : > { %v9981_v58 = vunpack.i.l.bf16 %v17937_v28 }
0x1224   : > { %v17948_v25 = vpop.permute.xlu1 %9984 }
0x1226   : > { %7966 = vadd.xlane.f32.xlu1 %v7965_v22  ;;  %v7642_v22 = vadd.s32 %v7641_v57, %v7639_v24  ;;  %v8636_v24 = vmul.f32 %v9926_v16, %v20779_v3  ;;  %v9931_v57 = vunpack.i.l.bf16 %v17832_v51 }
0x1228   : > { %vm7727_vm3 = vcmp.eq.s32.totalorder %v16904_v10, %v7642_v22  ;;  %v8161_v22 = vmul.f32 %v9931_v57, %v20780_v59  ;;  %v17956_v16 = vpop.xlane.xlu1 %7906  ;;  %v9946_v57 = vunpack.i.l.bf16 %v17868_v42 }
0x1229   : > { %v9405_v17 = vsel %vm7727_vm3, 1.0, %v20778_v48  ;;  %v9936_v48 = vunpack.i.l.bf16 %v17842_v2  ;;  %20838 = vst [vmem:[#allocation49_spill] sm:$0xff] %v17956_v16 }
0x122a   : > { %7960 = vadd.xlane.f32.xlu1 %v7959_v41  ;;  %v17933_v41 = vpop.xlane.xlu0 %7921 }
0x122b   : > { %20837 = vst [vmem:[#allocation44_spill] sm:$0xff] %v17933_v41  ;;  %v8634_v3 = vmul.f32 %v9936_v48, %v20780_v59  ;;  %v8640_v59 = vmul.f32 %v9946_v57, %v20781_v9 }
0x122e   : > { %v17943_v10 = vpop.permute.xlu0 %10029 }
0x122f   : > { %10119 = vrot.lane.b32.xlu0 %v10118_v36, %s10384_s8 }
0x1233   : > { %10124 = vrot.lane.b32.xlu0 %v10118_v36, %s10383_s7  ;;  %v10098_v36 = vpack.i.bf16 %v9405_v17, %v17805_v56  ;;  %v9941_v56 = vunpack.i.l.bf16 %v17862_v32 }
0x1237   : > { %8251 = vrot.lane.b32.xlu0 %v8163_v13, %s10382_s6  ;;  %v17954_v13 = vpop.permute.xlu0 %10034 }
0x123b   : > { %8724 = vrot.lane.b32.xlu0 %v8636_v24, %s10381_s30  ;;  %10099 = vrot.lane.b32.xlu1 %v10098_v36, %s10384_s8  ;;  %v8167_v24 = vmul.f32 %v9941_v56, %v20781_v9  ;;  %v17961_v18 = vpop.xlane.xlu0 %7939  ;;  %v9956_v56 = vunpack.i.l.bf16 %v17884_v30 }
0x123c   : > { %20839 = vst [vmem:[#allocation47_spill] sm:$0xff] %v17961_v18 }
0x123f   : > { %8247 = vrot.lane.b32.xlu0 %v8161_v22, %s10382_s6  ;;  %10104 = vrot.lane.b32.xlu1 %v10098_v36, %s10383_s7  ;;  %v17964_v22 = vpop.xlane.xlu1 %7900  ;;  %v9951_v36 = vunpack.i.l.bf16 %v17873_v5  ;;  %v17969_v48 = vpop.xlane.xlu0 %7933 }
0x1240   : > { %20840 = vst [vmem:[#allocation52_spill] sm:$0xff] %v17964_v22  ;;  %20841 = vst [vmem:[#allocation50_spill] sm:$0xff] %v17969_v48  ;;  %v9961_v22 = vunpack.i.l.bf16 %v17901_v7 }
0x1242   : > { %v8171_v57 = vmul.f32 %v9961_v22, %v20783_v21  ;;  %v9976_v22 = vunpack.i.l.bf16 %v17860_v60 }
0x1243   : > { %8720 = vrot.lane.b32.xlu0 %v8634_v3, %s10381_s30  ;;  %v8165_v3 = vmul.f32 %v9951_v36, %v20782_v61  ;;  %v17973_v16 = vpop.permute.xlu1 %9999  ;;  %v17978_v27 = vpop.permute.xlu0 %10049 }
0x1247   : > { %8259 = vrot.lane.b32.xlu0 %v8167_v24, %s10382_s6  ;;  %v8638_v24 = vmul.f32 %v9956_v56, %v20782_v61  ;;  %v17981_v9 = vpop.permute.xlu1 %10004  ;;  %v17986_v36 = vpop.permute.xlu0 %10054  ;;  %v9971_v61 = vunpack.i.l.bf16 %v17853_v40 }
0x124b   : > { %8732 = vrot.lane.b32.xlu0 %v8640_v59, %s10381_s30  ;;  %v9966_v59 = vunpack.i.l.bf16 %v17910_v53  ;;  %v17988_v48 = vpop.xlane.xlu1 %7918  ;;  %v17993_v56 = vpop.xlane.xlu0 %7951 }
0x124c   : > { %20842 = vst [vmem:[#allocation55_spill] sm:$0xff] %v17988_v48  ;;  %20843 = vst [vmem:[#allocation53_spill] sm:$0xff] %v17993_v56  ;;  %v20859_v56 = vld [vmem:[#allocation207_spill] sm:$0xff] }
0x124f   : > { %8255 = vrot.lane.b32.xlu0 %v8165_v3, %s10382_s6  ;;  %v8644_v3 = vmul.f32 %v9966_v59, %v20783_v21  ;;  %v17997_v41 = vpop.xlane.xlu1 %7912  ;;  %v18003_v23 = vpop.xlane.xlu0 %7945 }
0x1250   : > { %20845 = vst [vmem:[#allocation58_spill] sm:$0xff] %v17997_v41  ;;  %20847 = vst [vmem:[#allocation56_spill] sm:$0xff] %v18003_v23  ;;  %v10001_v41 = vunpack.i.l.bf16 %v17973_v16 }
0x1253   : > { %8728 = vrot.lane.b32.xlu0 %v8638_v24, %s10381_s30  ;;  %v20844_v24 = vld [vmem:[#allocation192_spill] sm:$0xff]  ;;  %v18007_v59 = vpop.permute.xlu1 %10019 }
0x1254   : > { %v8169_v18 = vmul.f32 %v9971_v61, %v20844_v24  ;;  %v8642_v48 = vmul.f32 %v9976_v22, %v20844_v24  ;;  %v8175_v61 = vmul.f32 %v9981_v58, %v20787_v12 }
0x1257   : > { %8267 = vrot.lane.b32.xlu0 %v8171_v57, %s10382_s6  ;;  %v20846_v57 = vld [vmem:[#allocation78_spill] sm:$0xff]  ;;  %v18016_v22 = vpop.permute.xlu1 %10024 }
0x1258   : > { %v7856_v33 = vmul.f32 %v9405_v17, %v20846_v57  ;;  %v9991_v17 = vunpack.i.l.bf16 %v17879_v26  ;;  %v7858_v57 = vmul.f32 %v17914_v19, %v20859_v56 }
0x125a   : > { %v7977_v21 = vsel %vm575_vm8, %v7856_v33, 0.0  ;;  %v8173_v33 = vmul.f32 %v9991_v17, %v20788_v63  ;;  %v10006_v17 = vunpack.i.l.bf16 %v17981_v9 }
0x125b   : > { %8740 = vrot.lane.b32.xlu0 %v8644_v3, %s10381_s30  ;;  %v9986_v3 = vunpack.i.l.bf16 %v17948_v25  ;;  %v18023_v58 = vpop.xlane.xlu1 %7930 }
0x125c   : > { %20848 = vst [vmem:[#allocation61_spill] sm:$0xff] %v18023_v58 }
0x125d   : > { %v8648_v24 = vmul.f32 %v9986_v3, %v20787_v12  ;;  %v8179_v3 = vmul.f32 %v10001_v41, %v20791_v62 }
0x125f   : > { %8263 = vrot.lane.b32.xlu0 %v8169_v18, %s10382_s6  ;;  %v18012_v18 = vpop.permute.xlu0 %10069  ;;  %v18031_v12 = vpop.xlane.xlu1 %7924 }
0x1260   : > { %20850 = vst [vmem:[#allocation242_spill] sm:$0xff] %v18031_v12 }
0x1263   : > { %8736 = vrot.lane.b32.xlu0 %v8642_v48, %s10381_s30  ;;  %7978 = vadd.xlane.f32.xlu1 %v7977_v21  ;;  %v9996_v48 = vunpack.i.l.bf16 %v17888_v4  ;;  %v18021_v21 = vpop.permute.xlu0 %10074 }
0x1267   : > { %8275 = vrot.lane.b32.xlu0 %v8175_v61, %s10382_s6  ;;  %v8646_v61 = vmul.f32 %v9996_v48, %v20788_v63  ;;  %v18028_v23 = vpop.xlane.xlu0 %7963  ;;  %v10011_v63 = vunpack.i.l.bf16 %v17904_v29  ;;  %v18044_v48 = vpop.permute.xlu1 %10039 }
0x1268   : > { %20849 = vst [vmem:[#allocation59_spill] sm:$0xff] %v18028_v23 }
0x1269   : > { %v8177_v41 = vmul.f32 %v10011_v63, %v20792_v47 }
0x126b   : > { %8748 = vrot.lane.b32.xlu0 %v8648_v24, %s10381_s30  ;;  %v18038_v24 = vpop.xlane.xlu0 %7957 }
0x126c   : > { %20851 = vst [vmem:[#allocation64_spill] sm:$0xff] %v18038_v24 }
0x126f   : > { %8271 = vrot.lane.b32.xlu0 %v8173_v33, %s10382_s6  ;;  %v8652_v33 = vmul.f32 %v10006_v17, %v20791_v62  ;;  %v18049_v12 = vpop.permute.xlu0 %10089  ;;  %v10021_v62 = vunpack.i.l.bf16 %v18007_v59 }
0x1271   : > { %v8183_v63 = vmul.f32 %v10021_v62, %v20795_v38 }
0x1273   : > { %8744 = vrot.lane.b32.xlu0 %v8646_v61, %s10381_s30  ;;  %v10016_v61 = vunpack.i.l.bf16 %v17918_v35 }
0x1274   : > { %8116 = vrot.lane.b32.xlu1 %v17876_v54, %s10384_s8 }
0x1275   : > { %v8650_v58 = vmul.f32 %v10016_v61, %v20792_v47 }
0x1277   : > { %8283 = vrot.lane.b32.xlu0 %v8179_v3, %s10382_s6  ;;  %v18052_v3 = vpop.permute.xlu1 %10044 }
0x1278   : > { %8589 = vrot.lane.b32.xlu1 %v17876_v54, %s10383_s7  ;;  %20852 = vst [vmem:[#allocation62_spill] sm:$0xff] %v18052_v3  ;;  %v18057_v54 = vpop.permute.xlu0 %10094 }
0x127b   : > { %8756 = vrot.lane.b32.xlu0 %v8652_v33, %s10381_s30  ;;  %v18059_v17 = vpop.xlane.xlu1 %7942  ;;  %v10026_v33 = vunpack.i.l.bf16 %v18016_v22 }
0x127c   : > { %20853 = vst [vmem:[#allocation252_spill] sm:$0xff] %v18059_v17  ;;  %v18064_v24 = vpop.xlane.xlu0 %7975  ;;  %v10036_v17 = vunpack.i.l.bf16 %v17954_v13 }
0x127d   : > { %20854 = vst [vmem:[#allocation67_spill] sm:$0xff] %v18064_v24  ;;  %v8656_v47 = vmul.f32 %v10026_v33, %v20795_v38  ;;  %v10041_v24 = vunpack.i.l.bf16 %v18044_v48 }
0x127f   : > { %8279 = vrot.lane.b32.xlu0 %v8177_v41, %s10382_s6  ;;  %v10031_v41 = vunpack.i.l.bf16 %v17943_v10  ;;  %v18068_v61 = vpop.xlane.xlu1 %7936  ;;  %v8187_v33 = vmul.f32 %v10041_v24, %v20799_v11 }
0x1280   : > { %20855 = vst [vmem:[#allocation65_spill] sm:$0xff] %v18068_v61  ;;  %v18073_v23 = vpop.xlane.xlu0 %7969  ;;  %v20857_v61 = vld [vmem:[#allocation82_spill] sm:$0xff] }
0x1281   : > { %20856 = vst [vmem:[#allocation259_spill] sm:$0xff] %v18073_v23  ;;  %v10051_v23 = vunpack.i.l.bf16 %v17978_v27 }
0x1283   : > { %8752 = vrot.lane.b32.xlu0 %v8650_v58, %s10381_s30  ;;  %v8181_v58 = vmul.f32 %v10031_v41, %v20796_v8  ;;  %v18076_v62 = vpop.permute.xlu1 %10059  ;;  %v10046_v41 = vunpack.i.l.bf16 %v18052_v3  ;;  %v10056_v3 = vunpack.i.l.bf16 %v17986_v36 }
0x1284   : > { %v18081_v38 = vpop.permute.xlu0 %10109 }
0x1287   : > { %8291 = vrot.lane.b32.xlu0 %v8183_v63, %s10382_s6  ;;  %v8654_v63 = vmul.f32 %v10036_v17, %v20796_v8  ;;  %v8660_v8 = vmul.f32 %v10046_v41, %v20799_v11  ;;  %v7983_v41 = vsel %vm575_vm8, %v7858_v57, 0.0  ;;  %v10071_v57 = vunpack.i.l.bf16 %v18012_v18 }
0x1288   : > { %v18092_v17 = vpop.permute.xlu0 %10114 }
0x128b   : > { %8764 = vrot.lane.b32.xlu0 %v8656_v47, %s10381_s30  ;;  %v18085_v47 = vpop.permute.xlu1 %10064 }
0x128c   : > { %v10066_v19 = vunpack.i.l.bf16 %v18085_v47 }
0x128f   : > { %8287 = vrot.lane.b32.xlu0 %v8181_v58, %s10382_s6  ;;  %v7854_v58 = vmul.f32 %v17836_v1, %v20857_v61 }
0x1291   : > { %v7971_v24 = vsel %vm575_vm8, %v7854_v58, 0.0  ;;  %v10061_v58 = vunpack.i.l.bf16 %v18076_v62 }
0x1293   : > { %8760 = vrot.lane.b32.xlu0 %v8654_v63, %s10381_s30  ;;  %v18094_v63 = vpop.xlane.xlu1 %7954 }
0x1294   : > { %20858 = vst [vmem:[#allocation70_spill] sm:$0xff] %v18094_v63 }
0x1297   : > { %8299 = vrot.lane.b32.xlu0 %v8187_v33, %s10382_s6  ;;  %v8185_v33 = vmul.f32 %v10051_v23, %v20800_v15  ;;  %v18105_v11 = vpop.xlane.xlu1 %7948  ;;  %v8191_v23 = vmul.f32 %v10061_v58, %v20803_v43  ;;  %v8189_v58 = vmul.f32 %v10071_v57, %v20804_v46 }
0x1298   : > { %20861 = vst [vmem:[#allocation306_spill] sm:$0xff] %v18105_v11  ;;  %v10076_v11 = vunpack.i.l.bf16 %v18021_v21 }
0x129b   : > { %8772 = vrot.lane.b32.xlu0 %v8660_v8, %s10381_s30  ;;  %v8658_v8 = vmul.f32 %v10056_v3, %v20800_v15  ;;  %v8664_v15 = vmul.f32 %v10066_v19, %v20803_v43  ;;  %v9927_v43 = vunpack.i.h.bf16 %v17815_v14 }
0x129c   : > { %7972 = vadd.xlane.f32.xlu1 %v7971_v24  ;;  %v18115_v24 = vpop.permute.xlu1 %10079 }
0x129d   : > { %v8637_v57 = vmul.f32 %v9927_v43, %v20785_v52 }
0x129e   : > { %v18102_v1 = vpop.xlane.xlu0 %7987 }
0x129f   : > { %20860 = vst [vmem:[#allocation68_spill] sm:$0xff] %v18102_v1  ;;  %8295 = vrot.lane.b32.xlu0 %v8185_v33, %s10382_s6 }
0x12a0   : > { %7984 = vadd.xlane.f32.xlu1 %v7983_v41  ;;  %v9922_v41 = vunpack.i.h.bf16 %v17808_v50  ;;  %v10081_v50 = vunpack.i.l.bf16 %v18115_v24 }
0x12a2   : > { %v18110_v63 = vpop.xlane.xlu0 %7981 }
0x12a3   : > { %20862 = vst [vmem:[#allocation73_spill] sm:$0xff] %v18110_v63  ;;  %8768 = vrot.lane.b32.xlu0 %v8658_v8, %s10381_s30  ;;  %v18126_v8 = vpop.permute.xlu1 %10084 }
0x12a4   : > { %v10086_v14 = vunpack.i.l.bf16 %v18126_v8 }
0x12a6   : > { %v18117_v33 = vpop.permute.xlu0 %10119 }
0x12a7   : > { %8307 = vrot.lane.b32.xlu0 %v8191_v23, %s10382_s6  ;;  %v8164_v23 = vmul.f32 %v9922_v41, %v20785_v52  ;;  %v8195_v41 = vmul.f32 %v10081_v50, %v20807_v37  ;;  %v10091_v52 = vunpack.i.l.bf16 %v18049_v12  ;;  %v9942_v50 = vunpack.i.h.bf16 %v17862_v32 }
0x12aa   : > { %v18122_v3 = vpop.permute.xlu0 %10124 }
0x12ab   : > { %8780 = vrot.lane.b32.xlu0 %v8664_v15, %s10381_s30  ;;  %v8662_v15 = vmul.f32 %v10076_v11, %v20804_v46 }
0x12ae   : > { %v18130_v1 = vpop.permute.xlu0 %8251 }
0x12af   : > { %8303 = vrot.lane.b32.xlu0 %v8189_v58, %s10382_s6  ;;  %v18135_v19 = vpop.xlane.xlu1 %7966  ;;  %v9932_v58 = vunpack.i.h.bf16 %v17832_v51  ;;  %v8668_v51 = vmul.f32 %v10086_v14, %v20807_v37  ;;  %v8168_v37 = vmul.f32 %v9942_v50, %v20789_v34  ;;  %v9947_v14 = vunpack.i.h.bf16 %v17868_v42 }
0x12b0   : > { %v9957_v50 = vunpack.i.h.bf16 %v17884_v30  ;;  %v9967_v30 = vunpack.i.h.bf16 %v17910_v53  ;;  %v9982_v53 = vunpack.i.h.bf16 %v17937_v28  ;;  %v9997_v28 = vunpack.i.h.bf16 %v17888_v4  ;;  %v20864_v4 = vld [vmem:[#allocation294_spill] sm:$0xff] }
0x12b1   : > { %8253 = vrot.lane.b32.xlu1 %v8164_v23, %s10382_s6  ;;  %v8162_v11 = vmul.f32 %v9932_v58, %v20786_v49  ;;  %v9937_v23 = vunpack.i.h.bf16 %v17842_v2  ;;  %v8193_v58 = vmul.f32 %v10091_v52, %v20808_v20  ;;  %v10096_v2 = vunpack.i.l.bf16 %v18057_v54 }
0x12b2   : > { %v18140_v63 = vpop.permute.xlu0 %8724  ;;  %v8641_v52 = vmul.f32 %v9947_v14, %v20789_v34 }
0x12b3   : > { %8776 = vrot.lane.b32.xlu0 %v8662_v15, %s10381_s30  ;;  %v18147_v56 = vpop.xlane.xlu1 %7960  ;;  %v8635_v15 = vmul.f32 %v9937_v23, %v20786_v49  ;;  %v8666_v49 = vmul.f32 %v10096_v2, %v20808_v20  ;;  %v10111_v2 = vunpack.i.l.bf16 %v18081_v38 }
0x12b5   : > { %8726 = vrot.lane.b32.xlu1 %v8637_v57, %s10381_s30  ;;  %v8197_v14 = vmul.f32 %v10111_v2, %v20814_v39 }
0x12b6   : > { %v18150_v46 = vpop.permute.xlu0 %8247 }
0x12b7   : > { %8315 = vrot.lane.b32.xlu0 %v8195_v41, %s10382_s6  ;;  %v18163_v57 = vpop.permute.xlu1 %10099 }
0x12b8   : > { %v10101_v32 = vunpack.i.l.bf16 %v18163_v57 }
0x12b9   : > { %8249 = vrot.lane.b32.xlu1 %v8162_v11, %s10382_s6 }
0x12ba   : > { %v18158_v43 = vpop.permute.xlu0 %8720 }
0x12bb   : > { %8788 = vrot.lane.b32.xlu0 %v8668_v51, %s10381_s30  ;;  %v18175_v11 = vpop.permute.xlu1 %10104  ;;  %v9952_v51 = vunpack.i.h.bf16 %v17873_v5  ;;  %v8639_v5 = vmul.f32 %v9957_v50, %v20790_v45 }
0x12bc   : > { %v10106_v42 = vunpack.i.l.bf16 %v18175_v11 }
0x12bd   : > { %8722 = vrot.lane.b32.xlu1 %v8635_v15, %s10381_s30  ;;  %v8199_v15 = vmul.f32 %v10101_v32, %v20813_v55  ;;  %v8166_v20 = vmul.f32 %v9952_v51, %v20790_v45  ;;  %v9972_v45 = vunpack.i.h.bf16 %v17853_v40  ;;  %v9987_v40 = vunpack.i.h.bf16 %v17948_v25 }
0x12be   : > { %v18168_v41 = vpop.permute.xlu0 %8259  ;;  %v8672_v34 = vmul.f32 %v10106_v42, %v20813_v55  ;;  %v9977_v42 = vunpack.i.h.bf16 %v17860_v60  ;;  %v9992_v60 = vunpack.i.h.bf16 %v17879_v26  ;;  %v8647_v25 = vmul.f32 %v9997_v28, %v20798_v31 }
0x12bf   : > { %8311 = vrot.lane.b32.xlu0 %v8193_v58, %s10382_s6  ;;  %v8649_v2 = vmul.f32 %v9987_v40, %v20797_v44  ;;  %v10126_v40 = vunpack.i.l.bf16 %v18122_v3 }
0x12c1   : > { %8261 = vrot.lane.b32.xlu1 %v8168_v37, %s10382_s6  ;;  %v9962_v37 = vunpack.i.h.bf16 %v17901_v7  ;;  %v8645_v7 = vmul.f32 %v9967_v30, %v20793_v6 }
0x12c2   : > { %v18178_v23 = vpop.permute.xlu0 %8732 }
0x12c3   : > { %8784 = vrot.lane.b32.xlu0 %v8666_v49, %s10381_s30  ;;  %v10116_v49 = vunpack.i.l.bf16 %v18092_v17  ;;  %v8172_v55 = vmul.f32 %v9962_v37, %v20793_v6  ;;  %v8176_v6 = vmul.f32 %v9982_v53, %v20797_v44  ;;  %v20863_v44 = vld [vmem:[#allocation300_spill] sm:$0xff] }
0x12c5   : > { %8734 = vrot.lane.b32.xlu1 %v8641_v52, %s10381_s30  ;;  %v8670_v52 = vmul.f32 %v10116_v49, %v20814_v39  ;;  %v8643_v39 = vmul.f32 %v9977_v42, %v20794_v0  ;;  %v10007_v49 = vunpack.i.h.bf16 %v17981_v9  ;;  %v20865_v9 = vld [vmem:[#allocation328_spill] sm:$0xff] }
0x12c6   : > { %v18189_v58 = vpop.permute.xlu0 %8255 }
0x12c7   : > { %8323 = vrot.lane.b32.xlu0 %v8199_v15, %s10382_s6  ;;  %v8170_v15 = vmul.f32 %v9972_v45, %v20794_v0  ;;  %v8174_v0 = vmul.f32 %v9992_v60, %v20798_v31  ;;  %v10012_v31 = vunpack.i.h.bf16 %v17904_v29  ;;  %v20866_v29 = vld [vmem:[#allocation206_spill] sm:$0xff] }
0x12c9   : > { %8257 = vrot.lane.b32.xlu1 %v8166_v20, %s10382_s6  ;;  %v8178_v42 = vmul.f32 %v10012_v31, %v20865_v9  ;;  %v10042_v31 = vunpack.i.h.bf16 %v18044_v48 }
0x12ca   : > { %v18199_v32 = vpop.permute.xlu0 %8728 }
0x12cb   : > { %8796 = vrot.lane.b32.xlu0 %v8672_v34, %s10381_s30 }
0x12cd   : > { %8730 = vrot.lane.b32.xlu1 %v8639_v5, %s10381_s30  ;;  %v10002_v5 = vunpack.i.h.bf16 %v17973_v16  ;;  %v8653_v16 = vmul.f32 %v10007_v49, %v20863_v44  ;;  %v20868_v49 = vld [vmem:[#allocation347_spill] sm:$0xff] }
0x12ce   : > { %v18210_v51 = vpop.permute.xlu0 %8267 }
0x12cf   : > { %8319 = vrot.lane.b32.xlu0 %v8197_v14, %s10382_s6  ;;  %v8180_v26 = vmul.f32 %v10002_v5, %v20863_v44  ;;  %v10027_v5 = vunpack.i.h.bf16 %v18016_v22  ;;  %v10032_v44 = vunpack.i.h.bf16 %v17943_v10  ;;  %v20869_v10 = vld [vmem:[#allocation340_spill] sm:$0xff] }
0x12d1   : > { %8269 = vrot.lane.b32.xlu1 %v8172_v55, %s10382_s6 }
0x12d2   : > { %v18215_v20 = vpop.permute.xlu0 %8740 }
0x12d3   : > { %8792 = vrot.lane.b32.xlu0 %v8670_v52, %s10381_s30 }
0x12d5   : > { %8742 = vrot.lane.b32.xlu1 %v8645_v7, %s10381_s30  ;;  %v10121_v7 = vunpack.i.l.bf16 %v18117_v33 }
0x12d6   : > { %v18223_v50 = vpop.permute.xlu0 %8263 }
0x12d9   : > { %8265 = vrot.lane.b32.xlu1 %v8170_v15, %s10382_s6 }
0x12da   : > { %v18228_v34 = vpop.permute.xlu0 %8736 }
0x12dd   : > { %8738 = vrot.lane.b32.xlu1 %v8643_v39, %s10381_s30  ;;  %v10017_v39 = vunpack.i.h.bf16 %v17918_v35  ;;  %v20867_v35 = vld [vmem:[#allocation325_spill] sm:$0xff] }
0x12de   : > { %v18236_v37 = vpop.permute.xlu0 %8275 }
0x12df   : > { %v8651_v60 = vmul.f32 %v10017_v39, %v20865_v9  ;;  %v20871_v39 = vld [vmem:[#allocation190_spill] sm:$0xff] }
0x12e1   : > { %8277 = vrot.lane.b32.xlu1 %v8176_v6, %s10382_s6  ;;  %v8201_v6 = vmul.f32 %v10121_v7, %v20866_v29 }
0x12e2   : > { %v18243_v30 = vpop.permute.xlu0 %8748 }
0x12e5   : > { %8750 = vrot.lane.b32.xlu1 %v8649_v2, %s10381_s30  ;;  %v10022_v2 = vunpack.i.h.bf16 %v18007_v59  ;;  %v8657_v59 = vmul.f32 %v10027_v5, %v20867_v35 }
0x12e6   : > { %v18255_v53 = vpop.permute.xlu0 %8271 }
0x12e9   : > { %8273 = vrot.lane.b32.xlu1 %v8174_v0, %s10382_s6  ;;  %v8674_v0 = vmul.f32 %v10126_v40, %v20866_v29  ;;  %v10057_v29 = vunpack.i.h.bf16 %v17986_v36  ;;  %v10062_v40 = vunpack.i.h.bf16 %v18076_v62  ;;  %v8855_v36 = vsel %vm575_vm8, %v18140_v63, 0.0 }
0x12ea   : > { %v18265_v28 = vpop.permute.xlu0 %8744  ;;  %v10072_v62 = vunpack.i.h.bf16 %v18012_v18  ;;  %v10082_v18 = vunpack.i.h.bf16 %v18115_v24 }
0x12ec   : > { %v18238_v14 = vpop.xlane.xlu1 %7978 }
0x12ed   : > { %8746 = vrot.lane.b32.xlu1 %v8647_v25, %s10381_s30  ;;  %v8184_v25 = vmul.f32 %v10022_v2, %v20867_v35  ;;  %v20872_v2 = vld [vmem:[#allocation289_spill] sm:$0xff]  ;;  %v10067_v35 = vunpack.i.h.bf16 %v18085_v47  ;;  %v10077_v47 = vunpack.i.h.bf16 %v18021_v21  ;;  %v10087_v21 = vunpack.i.h.bf16 %v18126_v8 }
0x12ef   : > { %v8665_v5 = vmul.f32 %v10067_v35, %v20872_v2 }
0x12f0   : > { %v8117_v55 = vpop.permute.xlu1 %8116 }
0x12f1   : > { %v8203_v52 = vmul.f32 %v8117_v55, %v20864_v4  ;;  %8285 = vrot.lane.b32.xlu1 %v8180_v26, %s10382_s6  ;;  %v18274_v26 = vpop.permute.xlu0 %8283  ;;  %v8182_v55 = vmul.f32 %v10032_v44, %v20868_v49 }
0x12f3   : > { %8331 = vrot.lane.b32.xlu0 %v8203_v52, %s10382_s6 }
0x12f4   : > { %v8590_v45 = vpop.permute.xlu1 %8589 }
0x12f5   : > { %v8676_v15 = vmul.f32 %v8590_v45, %v20864_v4  ;;  %8758 = vrot.lane.b32.xlu1 %v8653_v16, %s10381_s30  ;;  %v10037_v4 = vunpack.i.h.bf16 %v17954_v13  ;;  %v18279_v52 = vpop.permute.xlu0 %8756  ;;  %v8188_v16 = vmul.f32 %v10042_v31, %v20869_v10  ;;  %v20870_v45 = vld [vmem:[#allocation62_spill] sm:$0xff]  ;;  %v10052_v13 = vunpack.i.h.bf16 %v17978_v27  ;;  %v20874_v31 = vld [vmem:[#allocation312_spill] sm:$0xff] }
0x12f6   : > { %v10047_v7 = vunpack.i.h.bf16 %v20870_v45  ;;  %v8382_v27 = vsel %vm575_vm8, %v18130_v1, 0.0  ;;  %v20873_v1 = vld [vmem:[#allocation351_spill] sm:$0xff]  ;;  %v10092_v45 = vunpack.i.h.bf16 %v18049_v12 }
0x12f7   : > { %8804 = vrot.lane.b32.xlu0 %v8676_v15, %s10381_s30  ;;  %v8655_v22 = vmul.f32 %v10037_v4, %v20868_v49  ;;  %v8186_v48 = vmul.f32 %v10052_v13, %v20871_v39  ;;  %v8663_v63 = vmul.f32 %v10077_v47, %v20873_v1  ;;  %v8388_v47 = vsel %vm575_vm8, %v18189_v58, 0.0 }
0x12f8   : > { %v8661_v9 = vmul.f32 %v10047_v7, %v20869_v10  ;;  %v8196_v10 = vmul.f32 %v10082_v18, %v20874_v31  ;;  %v8669_v7 = vmul.f32 %v10087_v21, %v20874_v31  ;;  %v10117_v18 = vunpack.i.h.bf16 %v18092_v17 }
0x12f9   : > { %8281 = vrot.lane.b32.xlu1 %v8178_v42, %s10382_s6  ;;  %v18287_v15 = vpop.permute.xlu0 %8279  ;;  %v8406_v17 = vsel %vm575_vm8, %v18210_v51, 0.0 }
0x12fa   : > { %v8671_v31 = vmul.f32 %v10117_v18, %v20857_v61 }
0x12fb   : > { %8327 = vrot.lane.b32.xlu0 %v8201_v6, %s10382_s6  ;;  %v8659_v6 = vmul.f32 %v10057_v29, %v20871_v39  ;;  %v20875_v39 = vld [vmem:[#allocation352_spill] sm:$0xff]  ;;  %v10097_v29 = vunpack.i.h.bf16 %v18057_v54  ;;  %v8394_v54 = vsel %vm575_vm8, %v18168_v41, 0.0 }
0x12fd   : > { %8754 = vrot.lane.b32.xlu1 %v8651_v60, %s10381_s30  ;;  %v18292_v42 = vpop.permute.xlu0 %8752 }
0x12fe   : > { %v8897_v18 = vsel %vm575_vm8, %v18292_v42, 0.0 }
0x12ff   : > { %8800 = vrot.lane.b32.xlu0 %v8674_v0, %s10381_s30  ;;  %v8192_v0 = vmul.f32 %v10062_v40, %v20872_v2  ;;  %v8667_v40 = vmul.f32 %v10097_v29, %v20875_v39  ;;  %v8873_v29 = vsel %vm575_vm8, %v18228_v34, 0.0  ;;  %v8412_v34 = vsel %vm575_vm8, %v18255_v53, 0.0 }
0x1300   : > { %v8903_v53 = vsel %vm575_vm8, %v18279_v52, 0.0  ;;  %v8849_v52 = vsel %vm575_vm8, %v18158_v43, 0.0 }
0x1301   : > { %8293 = vrot.lane.b32.xlu1 %v8184_v25, %s10382_s6  ;;  %v18300_v60 = vpop.permute.xlu0 %8291 }
0x1305   : > { %8766 = vrot.lane.b32.xlu1 %v8657_v59, %s10381_s30  ;;  %v18307_v25 = vpop.permute.xlu0 %8764  ;;  %v8190_v59 = vmul.f32 %v10072_v62, %v20873_v1  ;;  %v10112_v1 = vunpack.i.h.bf16 %v18081_v38 }
0x1306   : > { %v8915_v42 = vsel %vm575_vm8, %v18307_v25, 0.0 }
0x1309   : > { %8289 = vrot.lane.b32.xlu1 %v8182_v55, %s10382_s6  ;;  %v18319_v49 = vpop.permute.xlu0 %8287 }
0x130d   : > { %8762 = vrot.lane.b32.xlu1 %v8655_v22, %s10381_s30  ;;  %v18326_v4 = vpop.permute.xlu0 %8760 }
0x130e   : > { %v8909_v25 = vsel %vm575_vm8, %v18326_v4, 0.0 }
0x1311   : > { %8301 = vrot.lane.b32.xlu1 %v8188_v16, %s10382_s6  ;;  %v18338_v13 = vpop.permute.xlu0 %8299 }
0x1315   : > { %8774 = vrot.lane.b32.xlu1 %v8661_v9, %s10381_s30  ;;  %v18344_v8 = vpop.permute.xlu0 %8772 }
0x1319   : > { %8297 = vrot.lane.b32.xlu1 %v8186_v48, %s10382_s6  ;;  %v8194_v48 = vmul.f32 %v10092_v45, %v20875_v39  ;;  %v18357_v62 = vpop.permute.xlu0 %8295  ;;  %v20877_v45 = vld [vmem:[#allocation207_spill] sm:$0xff] }
0x131d   : > { %8770 = vrot.lane.b32.xlu1 %v8659_v6, %s10381_s30  ;;  %v18366_v41 = vpop.permute.xlu0 %8768 }
0x131e   : > { %8383 = vadd.xlane.f32.xlu0 %v8382_v27  ;;  %v10102_v27 = vunpack.i.h.bf16 %v18163_v57  ;;  %v8867_v57 = vsel %vm575_vm8, %v18178_v23, 0.0  ;;  %v8861_v23 = vsel %vm575_vm8, %v18199_v32, 0.0 }
0x1321   : > { %8309 = vrot.lane.b32.xlu1 %v8192_v0, %s10382_s6  ;;  %v20876_v0 = vld [vmem:[#allocation78_spill] sm:$0xff]  ;;  %v18382_v21 = vpop.permute.xlu0 %8307 }
0x1322   : > { %8856 = vadd.xlane.f32.xlu0 %v8855_v36  ;;  %v8200_v35 = vmul.f32 %v10102_v27, %v20876_v0  ;;  %v10107_v36 = vunpack.i.h.bf16 %v18175_v11 }
0x1325   : > { %v18314_v44 = vpop.xlane.xlu1 %7972  ;;  %8782 = vrot.lane.b32.xlu1 %v8665_v5, %s10381_s30  ;;  %v18391_v32 = vpop.permute.xlu0 %8780 }
0x1329   : > { %v18321_v55 = vpop.xlane.xlu1 %7984  ;;  %8305 = vrot.lane.b32.xlu1 %v8190_v59, %s10382_s6  ;;  %v8673_v59 = vmul.f32 %v10107_v36, %v20876_v0  ;;  %v18404_v39 = vpop.permute.xlu0 %8303 }
0x132d   : > { %8778 = vrot.lane.b32.xlu1 %v8663_v63, %s10381_s30  ;;  %v18329_v22 = vpop.permute.xlu1 %8253  ;;  %v8198_v63 = vmul.f32 %v10112_v1, %v20857_v61 }
0x1331   : > { %8317 = vrot.lane.b32.xlu1 %v8196_v10, %s10382_s6  ;;  %v18334_v16 = vpop.permute.xlu1 %8726  ;;  %v10122_v10 = vunpack.i.h.bf16 %v18117_v33  ;;  %v8879_v33 = vsel %vm575_vm8, %v18215_v20, 0.0  ;;  %v18410_v20 = vpop.permute.xlu0 %8776 }
0x1332   : > { %v8858_v43 = vsel %vm575_vm8, %v18334_v16, 0.0 }
0x1335   : > { %8790 = vrot.lane.b32.xlu1 %v8669_v7, %s10381_s30  ;;  %v8250_v24 = vpop.permute.xlu1 %8249  ;;  %v8202_v7 = vmul.f32 %v10122_v10, %v20877_v45  ;;  %v18420_v27 = vpop.permute.xlu0 %8315 }
0x1336   : > { %v8379_v9 = vsel %vm575_vm8, %v8250_v24, 0.0  ;;  %v10127_v24 = vunpack.i.h.bf16 %v18122_v3  ;;  %v8400_v3 = vsel %vm575_vm8, %v18223_v50, 0.0  ;;  %v8891_v50 = vsel %vm575_vm8, %v18243_v30, 0.0 }
0x1337   : > { %8380 = vadd.xlane.f32.xlu0 %v8379_v9  ;;  %v8430_v30 = vsel %vm575_vm8, %v18274_v26, 0.0  ;;  %v8376_v26 = vsel %vm575_vm8, %v18150_v46, 0.0  ;;  %v8385_v46 = vsel %vm575_vm8, %v18329_v22, 0.0 }
0x1338   : > { %v8675_v9 = vmul.f32 %v10127_v24, %v20877_v45 }
0x1339   : > { %8313 = vrot.lane.b32.xlu1 %v8194_v48, %s10382_s6  ;;  %v8723_v6 = vpop.permute.xlu1 %8722  ;;  %v18426_v0 = vpop.permute.xlu0 %8788 }
0x133a   : > { %v8852_v12 = vsel %vm575_vm8, %v8723_v6, 0.0 }
0x133b   : > { %8853 = vadd.xlane.f32.xlu0 %v8852_v12  ;;  %v8418_v12 = vsel %vm575_vm8, %v18236_v37, 0.0  ;;  %v8885_v37 = vsel %vm575_vm8, %v18265_v28, 0.0  ;;  %v8424_v28 = vsel %vm575_vm8, %v18287_v15, 0.0  ;;  %v8442_v15 = vsel %vm575_vm8, %v18300_v60, 0.0 }
0x133c   : > { %v8436_v60 = vsel %vm575_vm8, %v18319_v49, 0.0  ;;  %v8454_v49 = vsel %vm575_vm8, %v18338_v13, 0.0  ;;  %v8448_v13 = vsel %vm575_vm8, %v18357_v62, 0.0 }
0x133d   : > { %8786 = vrot.lane.b32.xlu1 %v8667_v40, %s10381_s30  ;;  %v18351_v2 = vpop.permute.xlu1 %8261 }
0x133e   : > { %v8397_v22 = vsel %vm575_vm8, %v18351_v2, 0.0 }
0x133f   : > { %8395 = vadd.xlane.f32.xlu0 %v8394_v54 }
0x1341   : > { %8325 = vrot.lane.b32.xlu1 %v8200_v35, %s10382_s6  ;;  %v18360_v5 = vpop.permute.xlu1 %8734 }
0x1342   : > { %v8870_v16 = vsel %vm575_vm8, %v18360_v5, 0.0 }
0x1343   : > { %8868 = vadd.xlane.f32.xlu0 %v8867_v57  ;;  %v18436_v57 = vpop.permute.xlu0 %8311 }
0x1345   : > { %8798 = vrot.lane.b32.xlu1 %v8673_v59, %s10381_s30  ;;  %v18369_v11 = vpop.permute.xlu1 %8257 }
0x1346   : > { %v8391_v2 = vsel %vm575_vm8, %v18369_v11, 0.0 }
0x1347   : > { %8389 = vadd.xlane.f32.xlu0 %v8388_v47  ;;  %v18442_v59 = vpop.permute.xlu0 %8784 }
0x1349   : > { %8321 = vrot.lane.b32.xlu1 %v8198_v63, %s10382_s6  ;;  %v18376_v38 = vpop.permute.xlu1 %8730 }
0x134a   : > { %v8864_v5 = vsel %vm575_vm8, %v18376_v38, 0.0 }
0x134b   : > { %8862 = vadd.xlane.f32.xlu0 %v8861_v23  ;;  %v18454_v23 = vpop.permute.xlu0 %8323 }
0x134d   : > { %8794 = vrot.lane.b32.xlu1 %v8671_v31, %s10381_s30  ;;  %v18385_v58 = vpop.permute.xlu1 %8269 }
0x134f   : > { %8407 = vadd.xlane.f32.xlu0 %v8406_v17  ;;  %v18464_v10 = vpop.permute.xlu0 %8796 }
0x1351   : > { %8329 = vrot.lane.b32.xlu1 %v8202_v7, %s10382_s6  ;;  %v18394_v61 = vpop.permute.xlu1 %8742 }
0x1352   : > { %v8882_v38 = vsel %vm575_vm8, %v18394_v61, 0.0 }
0x1353   : > { %8880 = vadd.xlane.f32.xlu0 %v8879_v33  ;;  %v18474_v45 = vpop.permute.xlu0 %8319 }
0x1355   : > { %8802 = vrot.lane.b32.xlu1 %v8675_v9, %s10381_s30  ;;  %v18400_v51 = vpop.permute.xlu1 %8265  ;;  %v8927_v9 = vsel %vm575_vm8, %v18344_v8, 0.0  ;;  %v8921_v8 = vsel %vm575_vm8, %v18366_v41, 0.0  ;;  %v8939_v41 = vsel %vm575_vm8, %v18391_v32, 0.0  ;;  %s9771_s30 = smul.u32 344, %s20917_s19 }
0x1357   : > { %8401 = vadd.xlane.f32.xlu0 %v8400_v3  ;;  %v18484_v24 = vpop.permute.xlu0 %8792  ;;  %s18534_s8 = scalar_lea.vmem %s18851_s5, %s9771_s30 }
0x1359   : > { %v18406_v48 = vpop.permute.xlu1 %8738 }
0x135b   : > { %8874 = vadd.xlane.f32.xlu0 %v8873_v29  ;;  %v8409_v29 = vsel %vm575_vm8, %v18385_v58, 0.0  ;;  %v8403_v58 = vsel %vm575_vm8, %v18400_v51, 0.0 }
0x135d   : > { %v18412_v6 = vpop.permute.xlu1 %8277 }
0x135e   : > { %v8421_v51 = vsel %vm575_vm8, %v18412_v6, 0.0 }
0x135f   : > { %8419 = vadd.xlane.f32.xlu0 %v8418_v12 }
0x1361   : > { %v18416_v40 = vpop.permute.xlu1 %8750 }
0x1363   : > { %8892 = vadd.xlane.f32.xlu0 %v8891_v50  ;;  %v8466_v50 = vsel %vm575_vm8, %v18382_v21, 0.0  ;;  %v8460_v21 = vsel %vm575_vm8, %v18404_v39, 0.0  ;;  %v20878_v39 = vld [vmem:[#allocation272_spill] sm:$0xff] }
0x1365   : > { %v18422_v54 = vpop.permute.xlu1 %8273  ;;  %v18490_v33 = vpop.permute.xlu0 %8331 }
0x1367   : > { %8413 = vadd.xlane.f32.xlu0 %v8412_v34 }
0x1369   : > { %v18428_v35 = vpop.permute.xlu1 %8746  ;;  %v18500_v3 = vpop.permute.xlu0 %8804 }
0x136b   : > { %8886 = vadd.xlane.f32.xlu0 %v8885_v37  ;;  %v8876_v37 = vsel %vm575_vm8, %v18406_v48, 0.0  ;;  %v8933_v48 = vsel %vm575_vm8, %v18410_v20, 0.0  ;;  %v8415_v20 = vsel %vm575_vm8, %v18422_v54, 0.0  ;;  %v8945_v54 = vsel %vm575_vm8, %v18442_v59, 0.0 }
0x136c   : > { %v8963_v59 = vsel %vm575_vm8, %v18464_v10, 0.0 }
0x136d   : > { %v18432_v36 = vpop.permute.xlu1 %8285  ;;  %v18510_v12 = vpop.permute.xlu0 %8327 }
0x136f   : > { %8431 = vadd.xlane.f32.xlu0 %v8430_v30 }
0x1371   : > { %v18438_v1 = vpop.permute.xlu1 %8758  ;;  %v18520_v34 = vpop.permute.xlu0 %8800 }
0x1373   : > { %8904 = vadd.xlane.f32.xlu0 %v8903_v53 }
0x1375   : > { %v18444_v47 = vpop.permute.xlu1 %8281 }
0x1377   : > { %8425 = vadd.xlane.f32.xlu0 %v8424_v28 }
0x1379   : > { %8377 = vadd.xlane.f32.xlu1 %v8376_v26  ;;  %v18450_v63 = vpop.permute.xlu1 %8754  ;;  %v8894_v26 = vsel %vm575_vm8, %v18416_v40, 0.0  ;;  %v8888_v40 = vsel %vm575_vm8, %v18428_v35, 0.0  ;;  %v8906_v35 = vsel %vm575_vm8, %v18438_v1, 0.0 }
0x137b   : > { %8898 = vadd.xlane.f32.xlu0 %v8897_v18  ;;  %v8478_v18 = vsel %vm575_vm8, %v18420_v27, 0.0  ;;  %v8472_v27 = vsel %vm575_vm8, %v18436_v57, 0.0 }
0x137d   : > { %8850 = vadd.xlane.f32.xlu1 %v8849_v52  ;;  %v18460_v31 = vpop.permute.xlu1 %8293 }
0x137f   : > { %8443 = vadd.xlane.f32.xlu0 %v8442_v15  ;;  %v8951_v15 = vsel %vm575_vm8, %v18426_v0, 0.0 }
0x1381   : > { %8386 = vadd.xlane.f32.xlu1 %v8385_v46  ;;  %v18470_v17 = vpop.permute.xlu1 %8766 }
0x1383   : > { %8916 = vadd.xlane.f32.xlu0 %v8915_v42  ;;  %v8433_v42 = vsel %vm575_vm8, %v18432_v36, 0.0  ;;  %v8427_v36 = vsel %vm575_vm8, %v18444_v47, 0.0  ;;  %v8484_v47 = vsel %vm575_vm8, %v18474_v45, 0.0 }
0x1385   : > { %8859 = vadd.xlane.f32.xlu1 %v8858_v43  ;;  %v18480_v7 = vpop.permute.xlu1 %8289  ;;  %v8490_v43 = vsel %vm575_vm8, %v18454_v23, 0.0 }
0x1387   : > { %8437 = vadd.xlane.f32.xlu0 %v8436_v60 }
0x1389   : > { %8398 = vadd.xlane.f32.xlu1 %v8397_v22  ;;  %v18492_v4 = vpop.permute.xlu1 %8762  ;;  %v20879_v22 = vld [vmem:[#allocation18_spill] sm:$0xff] }
0x138b   : > { %8910 = vadd.xlane.f32.xlu0 %v8909_v25 }
0x138d   : > { %8871 = vadd.xlane.f32.xlu1 %v8870_v16  ;;  %v18502_v11 = vpop.permute.xlu1 %8301  ;;  %v8900_v16 = vsel %vm575_vm8, %v18450_v63, 0.0  ;;  %v8957_v63 = vsel %vm575_vm8, %v18484_v24, 0.0 }
0x138f   : > { %8455 = vadd.xlane.f32.xlu0 %v8454_v49 }
0x1391   : > { %8392 = vadd.xlane.f32.xlu1 %v8391_v2  ;;  %v18512_v62 = vpop.permute.xlu1 %8774  ;;  %v8445_v2 = vsel %vm575_vm8, %v18460_v31, 0.0 }
0x1393   : > { %8928 = vadd.xlane.f32.xlu0 %v8927_v9  ;;  %v20880_v9 = vld [vmem:[#allocation14_spill] sm:$0xff] }
0x1395   : > { %8865 = vadd.xlane.f32.xlu1 %v8864_v5  ;;  %v18522_v61 = vpop.permute.xlu1 %8297 }
0x1397   : > { %8449 = vadd.xlane.f32.xlu0 %v8448_v13 }
0x1399   : > { %8410 = vadd.xlane.f32.xlu1 %v8409_v29  ;;  %v18536_v32 = vpop.permute.xlu1 %8770  ;;  %v8918_v29 = vsel %vm575_vm8, %v18470_v17, 0.0  ;;  %v8496_v17 = vsel %vm575_vm8, %v18510_v12, 0.0 }
0x139b   : > { %8922 = vadd.xlane.f32.xlu0 %v8921_v8  ;;  %v8502_v8 = vsel %vm6951_vm14, %v18490_v33, 0.0 }
0x139d   : > { %8883 = vadd.xlane.f32.xlu1 %v8882_v38  ;;  %v18549_v52 = vpop.permute.xlu1 %8309  ;;  %v8439_v38 = vsel %vm575_vm8, %v18480_v7, 0.0  ;;  %v8969_v7 = vsel %vm575_vm8, %v18520_v34, 0.0  ;;  %v8930_v34 = vsel %vm575_vm8, %v18512_v62, 0.0 }
0x139f   : > { %8467 = vadd.xlane.f32.xlu0 %v8466_v50 }
0x13a1   : > { %8404 = vadd.xlane.f32.xlu1 %v8403_v58  ;;  %v18557_v46 = vpop.permute.xlu1 %8782  ;;  %v20881_v58 = vld [vmem:[#allocation253_spill] sm:$0xff] }
0x13a3   : > { %8940 = vadd.xlane.f32.xlu0 %v8939_v41 }
0x13a5   : > { %8877 = vadd.xlane.f32.xlu1 %v8876_v37  ;;  %v18565_v0 = vpop.permute.xlu1 %8305  ;;  %v8912_v37 = vsel %vm575_vm8, %v18492_v4, 0.0  ;;  %v20882_v4 = vld [vmem:[#allocation15_spill] sm:$0xff] }
0x13a7   : > { %8461 = vadd.xlane.f32.xlu0 %v8460_v21  ;;  %v8384_v30 = vpop.xlane.xlu0 %8383 }
0x13a8   : > { %v8981_v53 = vsel %vm8978_vm4, %v20878_v39, %v8384_v30  ;;  %v8457_v30 = vsel %vm575_vm8, %v18502_v11, 0.0 }
0x13a9   : > { %8422 = vadd.xlane.f32.xlu1 %v8421_v51  ;;  %v18573_v60 = vpop.permute.xlu1 %8778  ;;  %v8975_v51 = vsel %vm6951_vm14, %v18500_v3, 0.0  ;;  %v8451_v3 = vsel %vm575_vm8, %v18522_v61, 0.0 }
0x13ab   : > { %8934 = vadd.xlane.f32.xlu0 %v8933_v48  ;;  %v8857_v28 = vpop.xlane.xlu0 %8856 }
0x13ac   : > { %v9025_v6 = vsel %vm9022_vm0, %v8981_v53, %v8857_v28 }
0x13ad   : > { %9069 = vst.msk [vmem:[%s18534_s8 + $0x10] sm:$0xff] %vm9066_vm2, %v9025_v6  ;;  %8895 = vadd.xlane.f32.xlu1 %v8894_v26  ;;  %v18586_v49 = vpop.permute.xlu1 %8317  ;;  %v20883_v26 = vld [vmem:[#allocation16_spill] sm:$0xff] }
0x13af   : > { %8479 = vadd.xlane.f32.xlu0 %v8478_v18 }
0x13b1   : > { %8416 = vadd.xlane.f32.xlu1 %v8415_v20  ;;  %v18599_v31 = vpop.permute.xlu1 %8790 }
0x13b3   : > { %8952 = vadd.xlane.f32.xlu0 %v8951_v15  ;;  %v8924_v15 = vsel %vm575_vm8, %v18536_v32, 0.0  ;;  %v8942_v32 = vsel %vm575_vm8, %v18557_v46, 0.0 }
0x13b5   : > { %8889 = vadd.xlane.f32.xlu1 %v8888_v40  ;;  %v18607_v50 = vpop.permute.xlu1 %8313 }
0x13b7   : > { %8473 = vadd.xlane.f32.xlu0 %v8472_v27 }
0x13b9   : > { %8434 = vadd.xlane.f32.xlu1 %v8433_v42  ;;  %v8787_v48 = vpop.permute.xlu1 %8786  ;;  %v8469_v42 = vsel %vm575_vm8, %v18549_v52, 0.0 }
0x13bb   : > { %8946 = vadd.xlane.f32.xlu0 %v8945_v54  ;;  %v20884_v54 = vld [vmem:[#allocation34_spill] sm:$0xff] }
0x13bd   : > { %8907 = vadd.xlane.f32.xlu1 %v8906_v35  ;;  %v8326_v11 = vpop.permute.xlu1 %8325 }
0x13bf   : > { %8491 = vadd.xlane.f32.xlu0 %v8490_v43 }
0x13c0   : > { %v8381_v57 = vpop.xlane.xlu0 %8380 }
0x13c1   : > { %8428 = vadd.xlane.f32.xlu1 %v8427_v36  ;;  %v8980_v25 = vsel %vm8978_vm4, %v20879_v22, %v8381_v57  ;;  %v8799_v40 = vpop.permute.xlu1 %8798  ;;  %v20885_v22 = vld [vmem:[#allocation32_spill] sm:$0xff] }
0x13c3   : > { %8964 = vadd.xlane.f32.xlu0 %v8963_v59  ;;  %v8463_v59 = vsel %vm575_vm8, %v18565_v0, 0.0  ;;  %v8481_v0 = vsel %vm575_vm8, %v18586_v49, 0.0  ;;  %v8475_v49 = vsel %vm575_vm8, %v18607_v50, 0.0 }
0x13c4   : > { %v8854_v1 = vpop.xlane.xlu0 %8853 }
0x13c5   : > { %v9024_v23 = vsel %vm9022_vm0, %v8980_v25, %v8854_v1  ;;  %8901 = vadd.xlane.f32.xlu1 %v8900_v16  ;;  %v8322_v61 = vpop.permute.xlu1 %8321  ;;  %v8936_v16 = vsel %vm575_vm8, %v18573_v60, 0.0 }
0x13c6   : > { %9068 = vst.msk [vmem:[%s18534_s8 + $0x8] sm:$0xff] %vm9066_vm2, %v9024_v23 }
0x13c7   : > { %8485 = vadd.xlane.f32.xlu0 %v8484_v47 }
0x13c8   : > { %v8396_v10 = vpop.xlane.xlu0 %8395 }
0x13c9   : > { %8446 = vadd.xlane.f32.xlu1 %v8445_v2  ;;  %v8985_v5 = vsel %vm8978_vm4, %v20880_v9, %v8396_v10  ;;  %v8795_v52 = vpop.permute.xlu1 %8794  ;;  %v20886_v10 = vld [vmem:[#allocation35_spill] sm:$0xff]  ;;  %v8954_v9 = vsel %vm575_vm8, %v18599_v31, 0.0 }
0x13cb   : > { %8958 = vadd.xlane.f32.xlu0 %v8957_v63 }
0x13cc   : > { %v8869_v13 = vpop.xlane.xlu0 %8868 }
0x13cd   : > { %v9029_v45 = vsel %vm9022_vm0, %v8985_v5, %v8869_v13  ;;  %8919 = vadd.xlane.f32.xlu1 %v8918_v29  ;;  %v8330_v23 = vpop.permute.xlu1 %8329 }
0x13ce   : > { %9073 = vst.msk [vmem:[%s18534_s8 + $0x30] sm:$0xff] %vm9066_vm2, %v9029_v45  ;;  %v8948_v45 = vsel %vm575_vm8, %v8787_v48, 0.0 }
0x13cf   : > { %8503 = vadd.xlane.f32.xlu0 %v8502_v8  ;;  %v20887_v8 = vld [vmem:[#allocation38_spill] sm:$0xff] }
0x13d0   : > { %v8390_v24 = vpop.xlane.xlu0 %8389 }
0x13d1   : > { %8440 = vadd.xlane.f32.xlu1 %v8439_v38  ;;  %v8983_v33 = vsel %vm8978_vm4, %v20881_v58, %v8390_v24  ;;  %v8803_v5 = vpop.permute.xlu1 %8802 }
0x13d3   : > { %8497 = vadd.xlane.f32.xlu0 %v8496_v17  ;;  %v20888_v17 = vld [vmem:[#allocation244_spill] sm:$0xff] }
0x13d4   : > { %v8863_v41 = vpop.xlane.xlu0 %8862 }
0x13d5   : > { %v9027_v21 = vsel %vm9022_vm0, %v8983_v33, %v8863_v41  ;;  %8913 = vadd.xlane.f32.xlu1 %v8912_v37  ;;  %v8493_v41 = vsel %vm575_vm8, %v8326_v11, 0.0 }
0x13d6   : > { %9071 = vst.msk [vmem:[%s18534_s8 + $0x20] sm:$0xff] %vm9066_vm2, %v9027_v21 }
0x13d7   : > { %8970 = vadd.xlane.f32.xlu0 %v8969_v7  ;;  %v8966_v7 = vsel %vm575_vm8, %v8799_v40, 0.0 }
0x13d8   : > { %v8408_v12 = vpop.xlane.xlu0 %8407 }
0x13d9   : > { %8458 = vadd.xlane.f32.xlu1 %v8457_v30  ;;  %v8989_v39 = vsel %vm8978_vm4, %v20882_v4, %v8408_v12  ;;  %v20889_v12 = vld [vmem:[#allocation41_spill] sm:$0xff] }
0x13da   : > { %v20890_v4 = vld [vmem:[#allocation17_spill] sm:$0xff] }
0x13db   : > { %8976 = vadd.xlane.f32.xlu0 %v8975_v51 }
0x13dc   : > { %v8881_v53 = vpop.xlane.xlu0 %8880 }
0x13dd   : > { %v9033_v28 = vsel %vm9022_vm0, %v8989_v39, %v8881_v53  ;;  %8931 = vadd.xlane.f32.xlu1 %v8930_v34 }
0x13de   : > { %9077 = vst.msk [vmem:[%s18534_s8 + $0x50] sm:$0xff] %vm9066_vm2, %v9033_v28  ;;  %v8487_v28 = vsel %vm575_vm8, %v8322_v61, 0.0  ;;  %v8499_v61 = vsel %vm575_vm8, %v8330_v23, 0.0  ;;  %v20895_v23 = vld [vmem:[#allocation50_spill] sm:$0xff] }
0x13e0   : > { %v8402_v6 = vpop.xlane.xlu0 %8401 }
0x13e1   : > { %8452 = vadd.xlane.f32.xlu1 %v8451_v3  ;;  %v8987_v18 = vsel %vm8978_vm4, %v20883_v26, %v8402_v6  ;;  %v8960_v3 = vsel %vm575_vm8, %v8795_v52, 0.0  ;;  %v20891_v26 = vld [vmem:[#allocation44_spill] sm:$0xff] }
0x13e2   : > { %v20894_v52 = vld [vmem:[#allocation40_spill] sm:$0xff] }
0x13e4   : > { %v8875_v20 = vpop.xlane.xlu0 %8874 }
0x13e5   : > { %v9031_v62 = vsel %vm9022_vm0, %v8987_v18, %v8875_v20  ;;  %8925 = vadd.xlane.f32.xlu1 %v8924_v15 }
0x13e6   : > { %9075 = vst.msk [vmem:[%s18534_s8 + $0x40] sm:$0xff] %vm9066_vm2, %v9031_v62  ;;  %v20892_v62 = vld [vmem:[#allocation37_spill] sm:$0xff] }
0x13e8   : > { %v8420_v27 = vpop.xlane.xlu0 %8419 }
0x13e9   : > { %8470 = vadd.xlane.f32.xlu1 %v8469_v42  ;;  %v8993_v35 = vsel %vm8978_vm4, %v20884_v54, %v8420_v27 }
0x13ec   : > { %v8893_v43 = vpop.xlane.xlu0 %8892 }
0x13ed   : > { %v9037_v57 = vsel %vm9022_vm0, %v8993_v35, %v8893_v43  ;;  %8943 = vadd.xlane.f32.xlu1 %v8942_v32  ;;  %v8972_v43 = vsel %vm575_vm8, %v8803_v5, 0.0  ;;  %v20893_v32 = vld [vmem:[#allocation47_spill] sm:$0xff]  ;;  %vm9109_vm8 = vcmask 20480  }
0x13ee   : > { %9081 = vst.msk [vmem:[%s18534_s8 + $0x70] sm:$0xff] %vm9066_vm2, %v9037_v57 }
0x13f0   : > { %v8414_v36 = vpop.xlane.xlu0 %8413 }
0x13f1   : > { %8464 = vadd.xlane.f32.xlu1 %v8463_v59  ;;  %v8991_v25 = vsel %vm8978_vm4, %v20885_v22, %v8414_v36 }
0x13f4   : > { %v8887_v1 = vpop.xlane.xlu0 %8886 }
0x13f5   : > { %v9035_v46 = vsel %vm9022_vm0, %v8991_v25, %v8887_v1  ;;  %8937 = vadd.xlane.f32.xlu1 %v8936_v16 }
0x13f6   : > { %9079 = vst.msk [vmem:[%s18534_s8 + $0x60] sm:$0xff] %vm9066_vm2, %v9035_v46 }
0x13f8   : > { %v8432_v47 = vpop.xlane.xlu0 %8431 }
0x13f9   : > { %8482 = vadd.xlane.f32.xlu1 %v8481_v0  ;;  %v8997_v2 = vsel %vm8978_vm4, %v20886_v10, %v8432_v47 }
0x13fc   : > { %v8905_v63 = vpop.xlane.xlu0 %8904 }
0x13fd   : > { %v9041_v60 = vsel %vm9022_vm0, %v8997_v2, %v8905_v63  ;;  %8955 = vadd.xlane.f32.xlu1 %v8954_v9  ;;  %v20896_v2 = vld [vmem:[#allocation43_spill] sm:$0xff] }
0x13fe   : > { %9085 = vst.msk [vmem:[%s18534_s8 + $0x90] sm:$0xff] %vm9066_vm2, %v9041_v60 }
0x1400   : > { %v8426_v13 = vpop.xlane.xlu0 %8425 }
0x1401   : > { %8476 = vadd.xlane.f32.xlu1 %v8475_v49  ;;  %v8995_v24 = vsel %vm8978_vm4, %v20887_v8, %v8426_v13  ;;  %v20897_v49 = vld [vmem:[#allocation53_spill] sm:$0xff] }
0x1402   : > { %v8378_v29 = vpop.xlane.xlu1 %8377 }
0x1403   : > { %v8979_v58 = vsel %vm8978_vm4, %v20888_v17, %v8378_v29 }
0x1404   : > { %v8899_v38 = vpop.xlane.xlu0 %8898 }
0x1405   : > { %v9039_v31 = vsel %vm9022_vm0, %v8995_v24, %v8899_v38  ;;  %8949 = vadd.xlane.f32.xlu1 %v8948_v45  ;;  %v20898_v24 = vld [vmem:[#allocation46_spill] sm:$0xff] }
0x1406   : > { %9083 = vst.msk [vmem:[%s18534_s8 + $0x80] sm:$0xff] %vm9066_vm2, %v9039_v31  ;;  %v8851_v33 = vpop.xlane.xlu1 %8850 }
0x1407   : > { %v9023_v50 = vsel %vm9022_vm0, %v8979_v58, %v8851_v33 }
0x1408   : > { %9067 = vst.msk [vmem:[%s18534_s8] sm:$0xff] %vm9066_vm2, %v9023_v50  ;;  %v8444_v37 = vpop.xlane.xlu0 %8443  ;;  %v20899_v50 = vld [vmem:[#allocation56_spill] sm:$0xff] }
0x1409   : > { %8494 = vadd.xlane.f32.xlu1 %v8493_v41  ;;  %v9001_v30 = vsel %vm8978_vm4, %v20889_v12, %v8444_v37 }
0x140a   : > { %v8387_v21 = vpop.xlane.xlu1 %8386 }
0x140b   : > { %v8982_v39 = vsel %vm8978_vm4, %v20890_v4, %v8387_v21 }
0x140c   : > { %v8917_v51 = vpop.xlane.xlu0 %8916 }
0x140d   : > { %v9045_v48 = vsel %vm9022_vm0, %v9001_v30, %v8917_v51  ;;  %8967 = vadd.xlane.f32.xlu1 %v8966_v7  ;;  %v20900_v7 = vld [vmem:[#allocation49_spill] sm:$0xff] }
0x140e   : > { %9089 = vst.msk [vmem:[%s18534_s8 + $0xb0] sm:$0xff] %vm9066_vm2, %v9045_v48  ;;  %v8860_v53 = vpop.xlane.xlu1 %8859 }
0x140f   : > { %v9026_v34 = vsel %vm9022_vm0, %v8982_v39, %v8860_v53  ;;  %v20901_v39 = vld [vmem:[#allocation59_spill] sm:$0xff] }
0x1410   : > { %9070 = vst.msk [vmem:[%s18534_s8 + $0x18] sm:$0xff] %vm9066_vm2, %v9026_v34  ;;  %v8438_v11 = vpop.xlane.xlu0 %8437 }
0x1411   : > { %8488 = vadd.xlane.f32.xlu1 %v8487_v28  ;;  %v8999_v18 = vsel %vm8978_vm4, %v20891_v26, %v8438_v11  ;;  %v20902_v11 = vld [vmem:[#allocation52_spill] sm:$0xff] }
0x1412   : > { %v8399_v6 = vpop.xlane.xlu1 %8398 }
0x1413   : > { %v8986_v40 = vsel %vm8978_vm4, %v20892_v62, %v8399_v6 }
0x1414   : > { %v8911_v20 = vpop.xlane.xlu0 %8910 }
0x1415   : > { %v9043_v15 = vsel %vm9022_vm0, %v8999_v18, %v8911_v20  ;;  %8961 = vadd.xlane.f32.xlu1 %v8960_v3 }
0x1416   : > { %9087 = vst.msk [vmem:[%s18534_s8 + $0xa0] sm:$0xff] %vm9066_vm2, %v9043_v15  ;;  %v8872_v27 = vpop.xlane.xlu1 %8871  ;;  %v20903_v15 = vld [vmem:[#allocation64_spill] sm:$0xff] }
0x1417   : > { %v9030_v42 = vsel %vm9022_vm0, %v8986_v40, %v8872_v27 }
0x1418   : > { %9074 = vst.msk [vmem:[%s18534_s8 + $0x38] sm:$0xff] %vm9066_vm2, %v9030_v42  ;;  %v8456_v54 = vpop.xlane.xlu0 %8455  ;;  %v20904_v42 = vld [vmem:[#allocation55_spill] sm:$0xff] }
0x1419   : > { %8500 = vadd.xlane.f32.xlu1 %v8499_v61  ;;  %v9005_v57 = vsel %vm8978_vm4, %v20893_v32, %v8456_v54 }
0x141a   : > { %v8393_v35 = vpop.xlane.xlu1 %8392 }
0x141b   : > { %v8984_v22 = vsel %vm8978_vm4, %v20894_v52, %v8393_v35 }
0x141c   : > { %v8929_v36 = vpop.xlane.xlu0 %8928 }
0x141d   : > { %v9049_v59 = vsel %vm9022_vm0, %v9005_v57, %v8929_v36  ;;  %8973 = vadd.xlane.f32.xlu1 %v8972_v43  ;;  %v20905_v57 = vld [vmem:[#allocation67_spill] sm:$0xff] }
0x141e   : > { %9093 = vst.msk [vmem:[%s18534_s8 + $0xd0] sm:$0xff] %vm9066_vm2, %v9049_v59  ;;  %v8866_v25 = vpop.xlane.xlu1 %8865 }
0x141f   : > { %v9028_v1 = vsel %vm9022_vm0, %v8984_v22, %v8866_v25  ;;  %v20906_v22 = vld [vmem:[#allocation58_spill] sm:$0xff] }
0x1420   : > { %9072 = vst.msk [vmem:[%s18534_s8 + $0x28] sm:$0xff] %vm9066_vm2, %v9028_v1  ;;  %v8450_v16 = vpop.xlane.xlu0 %8449 }
0x1421   : > { %v9003_v47 = vsel %vm8978_vm4, %v20895_v23, %v8450_v16 }
0x1422   : > { %v8411_v46 = vpop.xlane.xlu1 %8410 }
0x1423   : > { %v8990_v63 = vsel %vm8978_vm4, %v20896_v2, %v8411_v46 }
0x1424   : > { %v8923_v0 = vpop.xlane.xlu0 %8922 }
0x1425   : > { %v9047_v10 = vsel %vm9022_vm0, %v9003_v47, %v8923_v0  ;;  %v20907_v47 = vld [vmem:[#allocation259_spill] sm:$0xff] }
0x1426   : > { %9091 = vst.msk [vmem:[%s18534_s8 + $0xc0] sm:$0xff] %vm9066_vm2, %v9047_v10  ;;  %v8884_v9 = vpop.xlane.xlu1 %8883 }
0x1427   : > { %v9034_v60 = vsel %vm9022_vm0, %v8990_v63, %v8884_v9  ;;  %v20908_v63 = vld [vmem:[#allocation61_spill] sm:$0xff] }
0x1428   : > { %9078 = vst.msk [vmem:[%s18534_s8 + $0x58] sm:$0xff] %vm9066_vm2, %v9034_v60  ;;  %v8468_v5 = vpop.xlane.xlu0 %8467 }
0x1429   : > { %v9009_v29 = vsel %vm8978_vm4, %v20897_v49, %v8468_v5 }
0x142a   : > { %v8405_v13 = vpop.xlane.xlu1 %8404 }
0x142b   : > { %v8988_v38 = vsel %vm8978_vm4, %v20898_v24, %v8405_v13 }
0x142c   : > { %v8941_v45 = vpop.xlane.xlu0 %8940 }
0x142d   : > { %v9053_v8 = vsel %vm9022_vm0, %v9009_v29, %v8941_v45  ;;  %v20909_v45 = vld [vmem:[#allocation242_spill] sm:$0xff] }
0x142e   : > { %9097 = vst.msk [vmem:[%s18534_s8 + $0xf0] sm:$0xff] %vm9066_vm2, %v9053_v8  ;;  %v8878_v31 = vpop.xlane.xlu1 %8877 }
0x142f   : > { %v9032_v17 = vsel %vm9022_vm0, %v8988_v38, %v8878_v31  ;;  %v20910_v31 = vld [vmem:[#allocation73_spill] sm:$0xff] }
0x1430   : > { %9076 = vst.msk [vmem:[%s18534_s8 + $0x48] sm:$0xff] %vm9066_vm2, %v9032_v17  ;;  %v8462_v58 = vpop.xlane.xlu0 %8461 }
0x1431   : > { %v9007_v41 = vsel %vm8978_vm4, %v20899_v50, %v8462_v58 }
0x1432   : > { %v8423_v33 = vpop.xlane.xlu1 %8422 }
0x1433   : > { %v8994_v12 = vsel %vm8978_vm4, %v20900_v7, %v8423_v33 }
0x1434   : > { %v8935_v37 = vpop.xlane.xlu0 %8934 }
0x1435   : > { %v9051_v21 = vsel %vm9022_vm0, %v9007_v41, %v8935_v37  ;;  %v20911_v41 = vld [vmem:[#allocation68_spill] sm:$0xff] }
0x1436   : > { %9095 = vst.msk [vmem:[%s18534_s8 + $0xe0] sm:$0xff] %vm9066_vm2, %v9051_v21  ;;  %v8896_v30 = vpop.xlane.xlu1 %8895 }
0x1437   : > { %v9038_v51 = vsel %vm9022_vm0, %v8994_v12, %v8896_v30  ;;  %v20912_v12 = vld [vmem:[#allocation252_spill] sm:$0xff] }
0x1438   : > { %9082 = vst.msk [vmem:[%s18534_s8 + $0x78] sm:$0xff] %vm9066_vm2, %v9038_v51  ;;  %v8480_v48 = vpop.xlane.xlu0 %8479 }
0x1439   : > { %v9013_v53 = vsel %vm8978_vm4, %v20901_v39, %v8480_v48  ;;  %v20913_v39 = vld [vmem:[#allocation65_spill] sm:$0xff] }
0x143a   : > { %v8417_v4 = vpop.xlane.xlu1 %8416 }
0x143b   : > { %v8992_v6 = vsel %vm8978_vm4, %v20902_v11, %v8417_v4 }
0x143c   : > { %v8953_v34 = vpop.xlane.xlu0 %8952 }
0x143d   : > { %v9057_v28 = vsel %vm9022_vm0, %v9013_v53, %v8953_v34 }
0x143e   : > { %9101 = vst.msk [vmem:[%s18534_s8 + $0x110] sm:$0xff] %vm9066_vm2, %v9057_v28  ;;  %v8890_v3 = vpop.xlane.xlu1 %8889 }
0x143f   : > { %v9036_v26 = vsel %vm9022_vm0, %v8992_v6, %v8890_v3  ;;  %v20914_v6 = vld [vmem:[#allocation70_spill] sm:$0xff] }
0x1440   : > { %9080 = vst.msk [vmem:[%s18534_s8 + $0x68] sm:$0xff] %vm9066_vm2, %v9036_v26  ;;  %v8474_v18 = vpop.xlane.xlu0 %8473 }
0x1441   : > { %v9011_v62 = vsel %vm8978_vm4, %v20903_v15, %v8474_v18  ;;  %v20915_v15 = vld [vmem:[#allocation306_spill] sm:$0xff] }
0x1442   : > { %v8435_v20 = vpop.xlane.xlu1 %8434 }
0x1443   : > { %v8998_v61 = vsel %vm8978_vm4, %v20904_v42, %v8435_v20 }
0x1444   : > { %v8947_v40 = vpop.xlane.xlu0 %8946 }
0x1445   : > { %v9055_v27 = vsel %vm9022_vm0, %v9011_v62, %v8947_v40 }
0x1446   : > { %9099 = vst.msk [vmem:[%s18534_s8 + $0x100] sm:$0xff] %vm9066_vm2, %v9055_v27  ;;  %v8908_v54 = vpop.xlane.xlu1 %8907 }
0x1447   : > { %v9042_v35 = vsel %vm9022_vm0, %v8998_v61, %v8908_v54 }
0x1448   : > { %9086 = vst.msk [vmem:[%s18534_s8 + $0x98] sm:$0xff] %vm9066_vm2, %v9042_v35  ;;  %v8492_v43 = vpop.xlane.xlu0 %8491 }
0x1449   : > { %v9017_v36 = vsel %vm8978_vm4, %v20905_v57, %v8492_v43 }
0x144a   : > { %v8429_v32 = vpop.xlane.xlu1 %8428 }
0x144b   : > { %v8996_v25 = vsel %vm8978_vm4, %v20906_v22, %v8429_v32 }
0x144c   : > { %v8965_v59 = vpop.xlane.xlu0 %8964 }
0x144d   : > { %v9061_v52 = vsel %vm9022_vm0, %v9017_v36, %v8965_v59 }
0x144e   : > { %9105 = vst.msk [vmem:[%s18534_s8 + $0x130] sm:$0xff] %vm9066_vm2, %v9061_v52  ;;  %v8902_v1 = vpop.xlane.xlu1 %8901 }
0x144f   : > { %v9040_v16 = vsel %vm9022_vm0, %v8996_v25, %v8902_v1 }
0x1450   : > { %9084 = vst.msk [vmem:[%s18534_s8 + $0x88] sm:$0xff] %vm9066_vm2, %v9040_v16  ;;  %v8486_v46 = vpop.xlane.xlu0 %8485 }
0x1451   : > { %v9015_v0 = vsel %vm8978_vm4, %v20907_v47, %v8486_v46 }
0x1452   : > { %v8447_v23 = vpop.xlane.xlu1 %8446 }
0x1453   : > { %v9002_v9 = vsel %vm8978_vm4, %v20908_v63, %v8447_v23 }
0x1454   : > { %v8959_v10 = vpop.xlane.xlu0 %8958 }
0x1455   : > { %v9059_v2 = vsel %vm9022_vm0, %v9015_v0, %v8959_v10 }
0x1456   : > { %9103 = vst.msk [vmem:[%s18534_s8 + $0x120] sm:$0xff] %vm9066_vm2, %v9059_v2  ;;  %v8920_v60 = vpop.xlane.xlu1 %8919 }
0x1457   : > { %v9046_v5 = vsel %vm9022_vm0, %v9002_v9, %v8920_v60 }
0x1458   : > { %9090 = vst.msk [vmem:[%s18534_s8 + $0xb8] sm:$0xff] %vm9066_vm2, %v9046_v5  ;;  %v8504_v13 = vpop.xlane.xlu0 %8503 }
0x1459   : > { %v9021_v37 = vsel %vm8978_vm4, %v20911_v41, %v8504_v13 }
0x145a   : > { %v8441_v49 = vpop.xlane.xlu1 %8440 }
0x145b   : > { %v9000_v8 = vsel %vm8978_vm4, %v20909_v45, %v8441_v49 }
0x145c   : > { %v8498_v29 = vpop.xlane.xlu0 %8497 }
0x145d   : > { %v9019_v17 = vsel %vm8978_vm4, %v20910_v31, %v8498_v29 }
0x145e   : > { %v8914_v24 = vpop.xlane.xlu1 %8913 }
0x145f   : > { %v9044_v38 = vsel %vm9022_vm0, %v9000_v8, %v8914_v24 }
0x1460   : > { %9088 = vst.msk [vmem:[%s18534_s8 + $0xa8] sm:$0xff] %vm9066_vm2, %v9044_v38  ;;  %v8971_v58 = vpop.xlane.xlu0 %8970 }
0x1461   : > { %v9063_v33 = vsel %vm9022_vm0, %v9019_v17, %v8971_v58 }
0x1462   : > { %9107 = vst.msk [vmem:[%s18534_s8 + $0x140] sm:$0xff] %vm9066_vm2, %v9063_v33  ;;  %v8459_v50 = vpop.xlane.xlu1 %8458 }
0x1463   : > { %v9006_v30 = vsel %vm8978_vm4, %v20912_v12, %v8459_v50 }
0x1464   : > { %v8977_v21 = vpop.xlane.xlu0 %8976 }
0x1465   : > { %v9065_v7 = vsel %vm9022_vm0, %v9021_v37, %v8977_v21 }
0x1466   : > { %9110 = vst.msk [vmem:[%s18534_s8 + $0x150] sm:$0x1f] %vm9109_vm8, %v9065_v7  ;;  %v8932_v51 = vpop.xlane.xlu1 %8931 }
0x1467   : > { %v9050_v48 = vsel %vm9022_vm0, %v9006_v30, %v8932_v51 }
0x1468   : > { %9094 = vst.msk [vmem:[%s18534_s8 + $0xd8] sm:$0xff] %vm9066_vm2, %v9050_v48 }
0x146a   : > { %v8453_v4 = vpop.xlane.xlu1 %8452 }
0x146b   : > { %v9004_v53 = vsel %vm8978_vm4, %v20913_v39, %v8453_v4 }
0x146e   : > { %v8926_v34 = vpop.xlane.xlu1 %8925 }
0x146f   : > { %v9048_v28 = vsel %vm9022_vm0, %v9004_v53, %v8926_v34 }
0x1470   : > { %9092 = vst.msk [vmem:[%s18534_s8 + $0xc8] sm:$0xff] %vm9066_vm2, %v9048_v28 }
0x1472   : > { %v8471_v11 = vpop.xlane.xlu1 %8470 }
0x1473   : > { %v9010_v3 = vsel %vm8978_vm4, %v20914_v6, %v8471_v11 }
0x1476   : > { %v8944_v26 = vpop.xlane.xlu1 %8943 }
0x1477   : > { %v9054_v18 = vsel %vm9022_vm0, %v9010_v3, %v8944_v26 }
0x1478   : > { %9098 = vst.msk [vmem:[%s18534_s8 + $0xf8] sm:$0xff] %vm9066_vm2, %v9054_v18 }
0x147a   : > { %v8465_v20 = vpop.xlane.xlu1 %8464 }
0x147b   : > { %v9008_v62 = vsel %vm8978_vm4, %v20915_v15, %v8465_v20 }
0x147e   : > { %v8938_v40 = vpop.xlane.xlu1 %8937 }
0x147f   : > { %v9052_v27 = vsel %vm9022_vm0, %v9008_v62, %v8938_v40 }
0x1480   : > { %9096 = vst.msk [vmem:[%s18534_s8 + $0xe8] sm:$0xff] %vm9066_vm2, %v9052_v27 }
0x1482   : > { %v8483_v42 = vpop.xlane.xlu1 %8482 }
0x1483   : > { %v9014_v61 = vsel %vm8978_vm4, %v18135_v19, %v8483_v42 }
0x1486   : > { %v8956_v54 = vpop.xlane.xlu1 %8955 }
0x1487   : > { %v9058_v35 = vsel %vm9022_vm0, %v9014_v61, %v8956_v54 }
0x1488   : > { %9102 = vst.msk [vmem:[%s18534_s8 + $0x118] sm:$0xff] %vm9066_vm2, %v9058_v35 }
0x148a   : > { %v8477_v43 = vpop.xlane.xlu1 %8476 }
0x148b   : > { %v9012_v32 = vsel %vm8978_vm4, %v18147_v56, %v8477_v43 }
0x148e   : > { %v8950_v57 = vpop.xlane.xlu1 %8949 }
0x148f   : > { %v9056_v36 = vsel %vm9022_vm0, %v9012_v32, %v8950_v57 }
0x1490   : > { %9100 = vst.msk [vmem:[%s18534_s8 + $0x108] sm:$0xff] %vm9066_vm2, %v9056_v36 }
0x1492   : > { %v8495_v59 = vpop.xlane.xlu1 %8494 }
0x1493   : > { %v9018_v19 = vsel %vm8978_vm4, %v18238_v14, %v8495_v59 }
0x1496   : > { %v8968_v52 = vpop.xlane.xlu1 %8967 }
0x1497   : > { %v9062_v22 = vsel %vm9022_vm0, %v9018_v19, %v8968_v52 }
0x1498   : > { %9106 = vst.msk [vmem:[%s18534_s8 + $0x138] sm:$0xff] %vm9066_vm2, %v9062_v22 }
0x149a   : > { %v8489_v25 = vpop.xlane.xlu1 %8488 }
0x149b   : > { %v9016_v1 = vsel %vm8978_vm4, %v18314_v44, %v8489_v25 }
0x149e   : > { %v8962_v56 = vpop.xlane.xlu1 %8961 }
0x149f   : > { %v9060_v16 = vsel %vm9022_vm0, %v9016_v1, %v8962_v56 }
0x14a0   : > { %9104 = vst.msk [vmem:[%s18534_s8 + $0x128] sm:$0xff] %vm9066_vm2, %v9060_v16 }
0x14a2   : > { %v8501_v46 = vpop.xlane.xlu1 %8500 }
0x14a3   : > { %v9020_v23 = vsel %vm8978_vm4, %v18321_v55, %v8501_v46 }
0x14a6   : > { %v8974_v47 = vpop.xlane.xlu1 %8973 }
0x14a7   : > { %v9064_v14 = vsel %vm9022_vm0, %v9020_v23, %v8974_v47 }
0x14a8   : > { %9108 = vst.msk [vmem:[%s18534_s8 + $0x148] sm:$0xff] %vm9066_vm2, %v9064_v14 }
0x14a9 PF: > { %s15_s18 = sadd.s32 1, %s10377_s18  }
0x14aa   : > { %p12_p4 = scmp.ge.s32.totalorder %s15_s18, 4  }
0x14ac   :  { %14 = sbr.rel (!%p12_p4) target bundleno = 1 (0x1), region = 70 }

</bundles_post_ra>
